<compile_context>
chip_gen: v7x
topology: tpu7x:2x2x1
jax: 0.10.0
libtpu: 0.0.40
codegen_flags: <defaults>
</compile_context>

<pallas_src>
import functools

import jax
import jax.numpy as jnp
from jax.experimental import pallas as pl
from jax.experimental.pallas import tpu as pltpu


def cvae_kernel(x_ref, label_ref, z_ref,
                we_ref, be_ref, wc_ref, bc_ref, wmv_ref, bmv_ref,
                wd1_ref, bd1_ref, wd2_ref, bd2_ref,
                out_ref, loss_ref):
    latent = z_ref.shape[-1]
    x = x_ref[...]                                   # f32 (tile_b, input_dim)

    # encoder: relu(x @ We + be)   (bf16 MXU operands, f32 accumulate)
    hidden = jnp.maximum(
        jnp.dot(x.astype(jnp.bfloat16), we_ref[...],
                preferred_element_type=jnp.float32) + be_ref[...],
        0.0)

    # fused mean || log_var head: one (hidden_dim, 2*latent_dim) matmul
    mv = jnp.dot(hidden.astype(jnp.bfloat16), wmv_ref[...],
                 preferred_element_type=jnp.float32) + bmv_ref[...]
    mean = mv[:, :latent]
    log_var = mv[:, latent:]

    # condition head in-kernel (tiny f32 matmul; MXU has slack, saves the
    # 128-lane f32 cond_mean HBM read of the previous version).
    cond_mean = jnp.dot(label_ref[...], wc_ref[...],
                        preferred_element_type=jnp.float32) + bc_ref[...]

    # reparameterization: Z = mean + eps * exp(log_var / 2); exp issued once,
    # reused as var = std*std for the KL term.
    std = jnp.exp(log_var * 0.5)
    z = mean + z_ref[...] * std

    # decoder: relu(Z @ Wd1 + bd1) @ Wd2 + bd2  -> logits
    h2 = jnp.maximum(
        jnp.dot(z.astype(jnp.bfloat16), wd1_ref[...],
                preferred_element_type=jnp.float32) + bd1_ref[...],
        0.0)
    logits = jnp.dot(h2.astype(jnp.bfloat16), wd2_ref[...],
                     preferred_element_type=jnp.float32) + bd2_ref[...]

    # Shared transcendental work: t = exp(-|l|) feeds both sigmoid and softplus.
    t = jnp.exp(-jnp.abs(logits))
    one_plus_t = 1.0 + t
    inv_1pt = pl.reciprocal(one_plus_t, approx=True)
    out_ref[...] = jnp.where(logits >= 0.0, inv_1pt, t * inv_1pt)  # sigmoid(l)

    # BCE(sigmoid(l), x) per element == softplus(l) - x*l.
    # TODO(synk): torch.BCELoss's -100 log clamp only differs for |logits|>~17
    # (f32 log underflow); logits never saturate with these inits.
    softplus_pos = jnp.maximum(logits, 0.0) + jnp.log(one_plus_t)
    recon = jnp.sum(softplus_pos - x * logits)

    # KL against the conditioned prior mean.
    diff = mean - cond_mean
    kl = jnp.sum(0.5 * (-log_var + diff * diff + std * std - 1.0))

    # per-tile scalar partial -> (1,1) SMEM block (lane-dense, no masked store)
    loss_ref[0, 0] = recon + kl


@functools.partial(jax.jit, static_argnames=("tile_b",))
def cvae_forward(x, label, noise, p, *, tile_b=None):
    B, input_dim = x.shape
    num_classes = label.shape[-1]
    latent_dim = noise.shape[-1]
    hidden_dim = p["we"].shape[-1]
    if tile_b is None:
        tile_b = B            # single-TC (v5e/v6e): grid=(1,) is optimal here
    assert B % tile_b == 0
    num_tiles = B // tile_b

    batch_map = lambda i: (i, 0)
    fixed_map = lambda i: (0, 0)   # weights VMEM-resident across grid steps

    in_specs = [
        pl.BlockSpec((tile_b, input_dim), batch_map),            # x
        pl.BlockSpec((tile_b, num_classes), batch_map),          # label (one-hot)
        pl.BlockSpec((tile_b, latent_dim), batch_map),           # noise
        pl.BlockSpec((input_dim, hidden_dim), fixed_map),        # we  (bf16)
        pl.BlockSpec((1, hidden_dim), fixed_map),                # be
        pl.BlockSpec((num_classes, latent_dim), fixed_map),      # wc  (f32)
        pl.BlockSpec((1, latent_dim), fixed_map),                # bc
        pl.BlockSpec((hidden_dim, 2 * latent_dim), fixed_map),   # wmv (bf16)
        pl.BlockSpec((1, 2 * latent_dim), fixed_map),            # bmv
        pl.BlockSpec((latent_dim, hidden_dim), fixed_map),       # wd1 (bf16)
        pl.BlockSpec((1, hidden_dim), fixed_map),                # bd1
        pl.BlockSpec((hidden_dim, input_dim), fixed_map),        # wd2 (bf16)
        pl.BlockSpec((1, input_dim), fixed_map),                 # bd2
    ]
    out, loss_partials = pl.pallas_call(
        cvae_kernel,
        grid=(num_tiles,),
        in_specs=in_specs,
        out_specs=(
            pl.BlockSpec((tile_b, input_dim), batch_map),
            pl.BlockSpec((1, 1), batch_map,
                         memory_space=pltpu.MemorySpace.SMEM),
        ),
        out_shape=(
            jax.ShapeDtypeStruct((B, input_dim), jnp.float32),
            jax.ShapeDtypeStruct((num_tiles, 1), jnp.float32),
        ),
        # NOTE: on v7x (2 TCs) pass tile_b=B//2 so the batch grid can shard
        # across both cores; "parallel" is harmless on single-TC chips.
        compiler_params=pltpu.CompilerParams(
            dimension_semantics=("parallel",)),
    )(x, label, noise,
      p["we"], p["be"], p["wc"], p["bc"], p["wmv"], p["bmv"],
      p["wd1"], p["bd1"], p["wd2"], p["bd2"])

    loss = jnp.sum(loss_partials) / B          # tiny XLA reduce over partials
    return out, loss


def cvae_reference(x, label, noise, p):
    bf16, f32 = jnp.bfloat16, jnp.float32
    latent = noise.shape[-1]
    cond_mean = label @ p["wc"] + p["bc"]
    hidden = jnp.maximum(
        jnp.dot(x.astype(bf16), p["we"], preferred_element_type=f32) + p["be"], 0.0)
    mv = jnp.dot(hidden.astype(bf16), p["wmv"], preferred_element_type=f32) + p["bmv"]
    mean, log_var = mv[:, :latent], mv[:, latent:]
    z = mean + noise * jnp.exp(log_var * 0.5)
    h2 = jnp.maximum(
        jnp.dot(z.astype(bf16), p["wd1"], preferred_element_type=f32) + p["bd1"], 0.0)
    output = jax.nn.sigmoid(
        jnp.dot(h2.astype(bf16), p["wd2"], preferred_element_type=f32) + p["bd2"])
    # torch-faithful BCELoss(reduction='none') form: log of sigmoid, clamped.
    log_o = jnp.maximum(jnp.log(output), -100.0)
    log_1mo = jnp.maximum(jnp.log(1.0 - output), -100.0)
    recon = jnp.sum(-(x * log_o + (1.0 - x) * log_1mo), axis=-1)
    diff = mean - cond_mean
    kl = jnp.sum(0.5 * (-log_var + diff * diff + jnp.exp(log_var) - 1.0), axis=-1)
    return output, jnp.mean(recon + kl)


def init_linear(key, fan_in, fan_out):
    kw, kb = jax.random.split(key)
    bound = 1.0 / jnp.sqrt(fan_in)
    w = jax.random.uniform(kw, (fan_in, fan_out), jnp.float32, -bound, bound)
    b = jax.random.uniform(kb, (1, fan_out), jnp.float32, -bound, bound)
    return w, b


if __name__ == "__main__":
    # args.*: model hyper-parameters (TPU-friendly small sizes).
    B, input_dim, hidden_dim, latent_dim, num_classes = 512, 256, 128, 128, 16

    key = jax.random.PRNGKey(0)
    keys = jax.random.split(key, 10)

    we, be = init_linear(keys[0], input_dim, hidden_dim)
    wc, bc = init_linear(keys[1], num_classes, latent_dim)
    wm, bm = init_linear(keys[2], hidden_dim, latent_dim)
    wv, bv = init_linear(keys[3], hidden_dim, latent_dim)
    wd1, bd1 = init_linear(keys[4], latent_dim, hidden_dim)
    wd2, bd2 = init_linear(keys[5], hidden_dim, input_dim)

    # Kernel-side parameter layout: (in, out) weight matrices as bf16 MXU
    # operands, mean/log_var heads fused; condition head and biases stay f32.
    params = {
        "we": we.astype(jnp.bfloat16), "be": be,
        "wc": wc, "bc": bc,
        "wmv": jnp.concatenate([wm, wv], axis=1).astype(jnp.bfloat16),
        "bmv": jnp.concatenate([bm, bv], axis=1),
        "wd1": wd1.astype(jnp.bfloat16), "bd1": bd1,
        "wd2": wd2.astype(jnp.bfloat16), "bd2": bd2,
    }

    # Inputs: batch in [0,1] (BCE target), one-hot label, pre-sampled eps.
    x = jax.random.uniform(keys[6], (B, input_dim), jnp.float32)
    label_idx = jax.random.randint(keys[7], (B,), 0, num_classes)
    label = jax.nn.one_hot(label_idx, num_classes, dtype=jnp.float32)
    # TODO(synk): torch.randn inside forward is replaced by deterministic
    # externally-supplied noise (same distribution, reproducible).
    noise = jax.random.normal(keys[8], (B, latent_dim), jnp.float32)

    out_ref, loss_ref = cvae_reference(x, label, noise, params)

    # 1) single-TC configuration (v5e/v6e): tile_b = B  -> grid=(1,)
    out, loss = jax.block_until_ready(cvae_forward(x, label, noise, params))
    assert out.shape == (B, input_dim) and out.dtype == jnp.float32
    assert jnp.allclose(out, out_ref, atol=2e-3, rtol=1e-3), \
        float(jnp.max(jnp.abs(out - out_ref)))
    assert jnp.allclose(loss, loss_ref, atol=5e-2, rtol=1e-3), \
        (float(loss), float(loss_ref))

    # 2) dual-TC configuration (v7x): tile_b = B//2 -> grid=(2,), batch sharded
    out2, loss2 = jax.block_until_ready(
        cvae_forward(x, label, noise, params, tile_b=B // 2))
    assert jnp.allclose(out2, out_ref, atol=2e-3, rtol=1e-3), \
        float(jnp.max(jnp.abs(out2 - out_ref)))
    assert jnp.allclose(loss2, loss_ref, atol=5e-2, rtol=1e-3), \
        (float(loss2), float(loss_ref))

    print("KERNEL_OK")
</pallas_src>

<mosaic_0001>
module attributes {stable_mosaic.version = 11 : i64} {
  func.func @cvae_kernel(%arg0: i32, %arg1: memref<512x256xf32, #tpu.memory_space<vmem>>, %arg2: memref<512x16xf32, #tpu.memory_space<vmem>>, %arg3: memref<512x128xf32, #tpu.memory_space<vmem>>, %arg4: memref<256x128xbf16, #tpu.memory_space<vmem>>, %arg5: memref<1x128xf32, #tpu.memory_space<vmem>>, %arg6: memref<16x128xf32, #tpu.memory_space<vmem>>, %arg7: memref<1x128xf32, #tpu.memory_space<vmem>>, %arg8: memref<128x256xbf16, #tpu.memory_space<vmem>>, %arg9: memref<1x256xf32, #tpu.memory_space<vmem>>, %arg10: memref<128x128xbf16, #tpu.memory_space<vmem>>, %arg11: memref<1x128xf32, #tpu.memory_space<vmem>>, %arg12: memref<128x256xbf16, #tpu.memory_space<vmem>>, %arg13: memref<1x256xf32, #tpu.memory_space<vmem>>, %arg14: memref<512x256xf32, #tpu.memory_space<vmem>>, %arg15: memref<1x1xf32, #tpu.memory_space<smem>>) attributes {dimension_semantics = [#tpu.dimension_semantics<parallel>], iteration_bounds = array<i64: 1>, scalar_prefetch = 0 : i64, scratch_operands = 0 : i64, tpu.core_type = #tpu.core_type<tc>, window_params = [{transform_indices = @transform_0, window_bounds = array<i64: 512, 256>}, {transform_indices = @transform_1, window_bounds = array<i64: 512, 16>}, {transform_indices = @transform_2, window_bounds = array<i64: 512, 128>}, {pipeline_mode = #tpu.pipeline_mode<synchronous>, transform_indices = @transform_3, window_bounds = array<i64: 256, 128>}, {pipeline_mode = #tpu.pipeline_mode<synchronous>, transform_indices = @transform_4, window_bounds = array<i64: 1, 128>}, {pipeline_mode = #tpu.pipeline_mode<synchronous>, transform_indices = @transform_5, window_bounds = array<i64: 16, 128>}, {pipeline_mode = #tpu.pipeline_mode<synchronous>, transform_indices = @transform_6, window_bounds = array<i64: 1, 128>}, {pipeline_mode = #tpu.pipeline_mode<synchronous>, transform_indices = @transform_7, window_bounds = array<i64: 128, 256>}, {pipeline_mode = #tpu.pipeline_mode<synchronous>, transform_indices = @transform_8, window_bounds = array<i64: 1, 256>}, {pipeline_mode = #tpu.pipeline_mode<synchronous>, transform_indices = @transform_9, window_bounds = array<i64: 128, 128>}, {pipeline_mode = #tpu.pipeline_mode<synchronous>, transform_indices = @transform_10, window_bounds = array<i64: 1, 128>}, {pipeline_mode = #tpu.pipeline_mode<synchronous>, transform_indices = @transform_11, window_bounds = array<i64: 128, 256>}, {pipeline_mode = #tpu.pipeline_mode<synchronous>, transform_indices = @transform_12, window_bounds = array<i64: 1, 256>}, {transform_indices = @transform_13, window_bounds = array<i64: 512, 256>}, {transform_indices = @transform_14, window_bounds = array<i64: 1, 1>}]} {
    %c0 = arith.constant 0 : index
    %c0_0 = arith.constant 0 : index
    %0 = vector.load %arg1[%c0, %c0_0] : memref<512x256xf32, #tpu.memory_space<vmem>>, vector<512x256xf32>
    %1 = arith.truncf %0 : vector<512x256xf32> to vector<512x256xbf16>
    %c0_1 = arith.constant 0 : index
    %c0_2 = arith.constant 0 : index
    %2 = vector.load %arg4[%c0_1, %c0_2] : memref<256x128xbf16, #tpu.memory_space<vmem>>, vector<256x128xbf16>
    %cst = arith.constant dense<0.000000e+00> : vector<512x128xf32>
    %3 = tpu.matmul %1, %2, %cst {dimension_numbers = #tpu.dot_dimension_numbers<[1], [0], [0], [1], [0, 0, 1, 1], [], []>} : vector<512x256xbf16>, vector<256x128xbf16>, vector<512x128xf32> -> vector<512x128xf32>
    %c0_3 = arith.constant 0 : index
    %c0_4 = arith.constant 0 : index
    %4 = vector.load %arg5[%c0_3, %c0_4] : memref<1x128xf32, #tpu.memory_space<vmem>>, vector<1x128xf32>
    %5 = vector.broadcast %4 : vector<1x128xf32> to vector<512x128xf32>
    %6 = arith.addf %3, %5 : vector<512x128xf32>
    %cst_5 = arith.constant 0.000000e+00 : f32
    %7 = vector.broadcast %cst_5 : f32 to vector<512x128xf32>
    %8 = arith.maximumf %6, %7 : vector<512x128xf32>
    %9 = arith.truncf %8 : vector<512x128xf32> to vector<512x128xbf16>
    %c0_6 = arith.constant 0 : index
    %c0_7 = arith.constant 0 : index
    %10 = vector.load %arg8[%c0_6, %c0_7] : memref<128x256xbf16, #tpu.memory_space<vmem>>, vector<128x256xbf16>
    %cst_8 = arith.constant dense<0.000000e+00> : vector<512x256xf32>
    %11 = tpu.matmul %9, %10, %cst_8 {dimension_numbers = #tpu.dot_dimension_numbers<[1], [0], [0], [1], [0, 0, 1, 1], [], []>} : vector<512x128xbf16>, vector<128x256xbf16>, vector<512x256xf32> -> vector<512x256xf32>
    %c0_9 = arith.constant 0 : index
    %c0_10 = arith.constant 0 : index
    %12 = vector.load %arg9[%c0_9, %c0_10] : memref<1x256xf32, #tpu.memory_space<vmem>>, vector<1x256xf32>
    %13 = vector.broadcast %12 : vector<1x256xf32> to vector<512x256xf32>
    %14 = arith.addf %11, %13 : vector<512x256xf32>
    %15 = vector.extract_strided_slice %14 {offsets = [0, 0], sizes = [512, 128], strides = [1, 1]} : vector<512x256xf32> to vector<512x128xf32>
    %16 = vector.extract_strided_slice %14 {offsets = [0, 128], sizes = [512, 128], strides = [1, 1]} : vector<512x256xf32> to vector<512x128xf32>
    %c0_11 = arith.constant 0 : index
    %c0_12 = arith.constant 0 : index
    %17 = vector.load %arg2[%c0_11, %c0_12] : memref<512x16xf32, #tpu.memory_space<vmem>>, vector<512x16xf32>
    %c0_13 = arith.constant 0 : index
    %c0_14 = arith.constant 0 : index
    %18 = vector.load %arg6[%c0_13, %c0_14] : memref<16x128xf32, #tpu.memory_space<vmem>>, vector<16x128xf32>
    %cst_15 = arith.constant dense<0.000000e+00> : vector<512x128xf32>
    %19 = tpu.matmul %17, %18, %cst_15 {dimension_numbers = #tpu.dot_dimension_numbers<[1], [0], [0], [1], [0, 0, 1, 1], [], []>} : vector<512x16xf32>, vector<16x128xf32>, vector<512x128xf32> -> vector<512x128xf32>
    %c0_16 = arith.constant 0 : index
    %c0_17 = arith.constant 0 : index
    %20 = vector.load %arg7[%c0_16, %c0_17] : memref<1x128xf32, #tpu.memory_space<vmem>>, vector<1x128xf32>
    %21 = vector.broadcast %20 : vector<1x128xf32> to vector<512x128xf32>
    %22 = arith.addf %19, %21 : vector<512x128xf32>
    %cst_18 = arith.constant 5.000000e-01 : f32
    %23 = vector.broadcast %cst_18 : f32 to vector<512x128xf32>
    %24 = arith.mulf %16, %23 : vector<512x128xf32>
    %25 = math.exp %24 : vector<512x128xf32>
    %c0_19 = arith.constant 0 : index
    %c0_20 = arith.constant 0 : index
    %26 = vector.load %arg3[%c0_19, %c0_20] : memref<512x128xf32, #tpu.memory_space<vmem>>, vector<512x128xf32>
    %27 = arith.mulf %26, %25 : vector<512x128xf32>
    %28 = arith.addf %15, %27 : vector<512x128xf32>
    %29 = arith.truncf %28 : vector<512x128xf32> to vector<512x128xbf16>
    %c0_21 = arith.constant 0 : index
    %c0_22 = arith.constant 0 : index
    %30 = vector.load %arg10[%c0_21, %c0_22] : memref<128x128xbf16, #tpu.memory_space<vmem>>, vector<128x128xbf16>
    %cst_23 = arith.constant dense<0.000000e+00> : vector<512x128xf32>
    %31 = tpu.matmul %29, %30, %cst_23 {dimension_numbers = #tpu.dot_dimension_numbers<[1], [0], [0], [1], [0, 0, 1, 1], [], []>} : vector<512x128xbf16>, vector<128x128xbf16>, vector<512x128xf32> -> vector<512x128xf32>
    %c0_24 = arith.constant 0 : index
    %c0_25 = arith.constant 0 : index
    %32 = vector.load %arg11[%c0_24, %c0_25] : memref<1x128xf32, #tpu.memory_space<vmem>>, vector<1x128xf32>
    %33 = vector.broadcast %32 : vector<1x128xf32> to vector<512x128xf32>
    %34 = arith.addf %31, %33 : vector<512x128xf32>
    %cst_26 = arith.constant 0.000000e+00 : f32
    %35 = vector.broadcast %cst_26 : f32 to vector<512x128xf32>
    %36 = arith.maximumf %34, %35 : vector<512x128xf32>
    %37 = arith.truncf %36 : vector<512x128xf32> to vector<512x128xbf16>
    %c0_27 = arith.constant 0 : index
    %c0_28 = arith.constant 0 : index
    %38 = vector.load %arg12[%c0_27, %c0_28] : memref<128x256xbf16, #tpu.memory_space<vmem>>, vector<128x256xbf16>
    %cst_29 = arith.constant dense<0.000000e+00> : vector<512x256xf32>
    %39 = tpu.matmul %37, %38, %cst_29 {dimension_numbers = #tpu.dot_dimension_numbers<[1], [0], [0], [1], [0, 0, 1, 1], [], []>} : vector<512x128xbf16>, vector<128x256xbf16>, vector<512x256xf32> -> vector<512x256xf32>
    %c0_30 = arith.constant 0 : index
    %c0_31 = arith.constant 0 : index
    %40 = vector.load %arg13[%c0_30, %c0_31] : memref<1x256xf32, #tpu.memory_space<vmem>>, vector<1x256xf32>
    %41 = vector.broadcast %40 : vector<1x256xf32> to vector<512x256xf32>
    %42 = arith.addf %39, %41 : vector<512x256xf32>
    %43 = math.absf %42 : vector<512x256xf32>
    %cst_32 = arith.constant 0.000000e+00 : f32
    %44 = vector.broadcast %cst_32 : f32 to vector<512x256xf32>
    %45 = arith.subf %44, %43 : vector<512x256xf32>
    %46 = math.exp %45 : vector<512x256xf32>
    %cst_33 = arith.constant 1.000000e+00 : f32
    %47 = vector.broadcast %cst_33 : f32 to vector<512x256xf32>
    %48 = arith.addf %47, %46 : vector<512x256xf32>
    %49 = tpu.reciprocal %48 {approx = true} : vector<512x256xf32> -> vector<512x256xf32>
    %cst_34 = arith.constant 0.000000e+00 : f32
    %50 = vector.broadcast %cst_34 : f32 to vector<512x256xf32>
    %51 = arith.cmpf oge, %42, %50 : vector<512x256xf32>
    %52 = arith.mulf %46, %49 : vector<512x256xf32>
    %53 = arith.select %51, %49, %52 : vector<512x256xi1>, vector<512x256xf32>
    %c0_35 = arith.constant 0 : index
    %c0_36 = arith.constant 0 : index
    %54 = vector.load %arg14[%c0_35, %c0_36] : memref<512x256xf32, #tpu.memory_space<vmem>>, vector<512x256xf32>
    tpu.vector_store %arg14[%c0_35, %c0_36], %53 {strides = array<i32>} : memref<512x256xf32, #tpu.memory_space<vmem>>, vector<512x256xf32>,
    %cst_37 = arith.constant 0.000000e+00 : f32
    %55 = vector.broadcast %cst_37 : f32 to vector<512x256xf32>
    %56 = arith.maximumf %42, %55 : vector<512x256xf32>
    %57 = math.log %48 : vector<512x256xf32>
    %58 = arith.addf %56, %57 : vector<512x256xf32>
    %59 = arith.mulf %0, %42 : vector<512x256xf32>
    %60 = arith.subf %58, %59 : vector<512x256xf32>
    %61 = vector.shape_cast %60 : vector<512x256xf32> to vector<1x512x256xf32>
    %cst_38 = arith.constant dense<0.000000e+00> : vector<1xf32>
    %62 = vector.multi_reduction <add>, %61, %cst_38 [1, 2] : vector<1x512x256xf32> to vector<1xf32>
    %63 = vector.shape_cast %62 : vector<1xf32> to vector<1x1x1xf32>
    %64 = vector.extract %63[0, 0, 0] : f32 from vector<1x1x1xf32>
    %65 = arith.subf %15, %22 : vector<512x128xf32>
    %cst_39 = arith.constant 0.000000e+00 : f32
    %66 = vector.broadcast %cst_39 : f32 to vector<512x128xf32>
    %67 = arith.subf %66, %16 : vector<512x128xf32>
    %68 = arith.mulf %65, %65 : vector<512x128xf32>
    %69 = arith.addf %67, %68 : vector<512x128xf32>
    %70 = arith.mulf %25, %25 : vector<512x128xf32>
    %71 = arith.addf %69, %70 : vector<512x128xf32>
    %cst_40 = arith.constant 1.000000e+00 : f32
    %72 = vector.broadcast %cst_40 : f32 to vector<512x128xf32>
    %73 = arith.subf %71, %72 : vector<512x128xf32>
    %cst_41 = arith.constant 5.000000e-01 : f32
    %74 = vector.broadcast %cst_41 : f32 to vector<512x128xf32>
    %75 = arith.mulf %74, %73 : vector<512x128xf32>
    %76 = vector.shape_cast %75 : vector<512x128xf32> to vector<1x512x128xf32>
    %cst_42 = arith.constant dense<0.000000e+00> : vector<1xf32>
    %77 = vector.multi_reduction <add>, %76, %cst_42 [1, 2] : vector<1x512x128xf32> to vector<1xf32>
    %78 = vector.shape_cast %77 : vector<1xf32> to vector<1x1x1xf32>
    %79 = vector.extract %78[0, 0, 0] : f32 from vector<1x1x1xf32>
    %80 = arith.addf %64, %79 : f32
    %c0_43 = arith.constant 0 : index
    %c0_44 = arith.constant 0 : index
    %81 = memref.load %arg15[%c0_43, %c0_44] : memref<1x1xf32, #tpu.memory_space<smem>>
    memref.store %80, %arg15[%c0_43, %c0_44] : memref<1x1xf32, #tpu.memory_space<smem>>
    return
  }
  func.func @transform_0(%arg0: i32) -> (i32, i32) {
    %c0_i32 = arith.constant 0 : i32
    %c0_i32_0 = arith.constant 0 : i32
    return %arg0, %c0_i32 : i32, i32
  }
  func.func @transform_1(%arg0: i32) -> (i32, i32) {
    %c0_i32 = arith.constant 0 : i32
    %c0_i32_0 = arith.constant 0 : i32
    return %arg0, %c0_i32 : i32, i32
  }
  func.func @transform_2(%arg0: i32) -> (i32, i32) {
    %c0_i32 = arith.constant 0 : i32
    %c0_i32_0 = arith.constant 0 : i32
    return %arg0, %c0_i32 : i32, i32
  }
  func.func @transform_3(%arg0: i32) -> (i32, i32) {
    %c0_i32 = arith.constant 0 : i32
    %c0_i32_0 = arith.constant 0 : i32
    %c0_i32_1 = arith.constant 0 : i32
    return %c0_i32, %c0_i32_0 : i32, i32
  }
  func.func @transform_4(%arg0: i32) -> (i32, i32) {
    %c0_i32 = arith.constant 0 : i32
    %c0_i32_0 = arith.constant 0 : i32
    %c0_i32_1 = arith.constant 0 : i32
    return %c0_i32, %c0_i32_0 : i32, i32
  }
  func.func @transform_5(%arg0: i32) -> (i32, i32) {
    %c0_i32 = arith.constant 0 : i32
    %c0_i32_0 = arith.constant 0 : i32
    %c0_i32_1 = arith.constant 0 : i32
    return %c0_i32, %c0_i32_0 : i32, i32
  }
  func.func @transform_6(%arg0: i32) -> (i32, i32) {
    %c0_i32 = arith.constant 0 : i32
    %c0_i32_0 = arith.constant 0 : i32
    %c0_i32_1 = arith.constant 0 : i32
    return %c0_i32, %c0_i32_0 : i32, i32
  }
  func.func @transform_7(%arg0: i32) -> (i32, i32) {
    %c0_i32 = arith.constant 0 : i32
    %c0_i32_0 = arith.constant 0 : i32
    %c0_i32_1 = arith.constant 0 : i32
    return %c0_i32, %c0_i32_0 : i32, i32
  }
  func.func @transform_8(%arg0: i32) -> (i32, i32) {
    %c0_i32 = arith.constant 0 : i32
    %c0_i32_0 = arith.constant 0 : i32
    %c0_i32_1 = arith.constant 0 : i32
    return %c0_i32, %c0_i32_0 : i32, i32
  }
  func.func @transform_9(%arg0: i32) -> (i32, i32) {
    %c0_i32 = arith.constant 0 : i32
    %c0_i32_0 = arith.constant 0 : i32
    %c0_i32_1 = arith.constant 0 : i32
    return %c0_i32, %c0_i32_0 : i32, i32
  }
  func.func @transform_10(%arg0: i32) -> (i32, i32) {
    %c0_i32 = arith.constant 0 : i32
    %c0_i32_0 = arith.constant 0 : i32
    %c0_i32_1 = arith.constant 0 : i32
    return %c0_i32, %c0_i32_0 : i32, i32
  }
  func.func @transform_11(%arg0: i32) -> (i32, i32) {
    %c0_i32 = arith.constant 0 : i32
    %c0_i32_0 = arith.constant 0 : i32
    %c0_i32_1 = arith.constant 0 : i32
    return %c0_i32, %c0_i32_0 : i32, i32
  }
  func.func @transform_12(%arg0: i32) -> (i32, i32) {
    %c0_i32 = arith.constant 0 : i32
    %c0_i32_0 = arith.constant 0 : i32
    %c0_i32_1 = arith.constant 0 : i32
    return %c0_i32, %c0_i32_0 : i32, i32
  }
  func.func @transform_13(%arg0: i32) -> (i32, i32) {
    %c0_i32 = arith.constant 0 : i32
    %c0_i32_0 = arith.constant 0 : i32
    return %arg0, %c0_i32 : i32, i32
  }
  func.func @transform_14(%arg0: i32) -> (i32, i32) {
    %c0_i32 = arith.constant 0 : i32
    %c0_i32_0 = arith.constant 0 : i32
    return %arg0, %c0_i32 : i32, i32
  }
}

</mosaic_0001>

<bundles_post_ra>
// kernel: cvae_forward.1
= control target key start
LH: loop header
LB: loop body
LE: loop exit
PB: predicated region body
PF: predicated region fallthrough
CT: control target
= control target key end

     0   :  { %20 = vsyncpa [#allocation3], 0  ;;  %s12663_s0 = inlined_call_operand.hbm [shape: f32[512,256], index: 0, kind: input, shape index: {}]   ;;  %s12664_s1 = inlined_call_operand.vmem [shape: f32[512,16], index: 1, kind: input, shape index: {}]   ;;  %s12665_s2 = inlined_call_operand.vmem [shape: f32[512,128], index: 2, kind: input, shape index: {}]   ;;  %s12666_s3 = inlined_call_operand.hbm [shape: bf16[256,128], index: 3, kind: input, shape index: {}]   ;;  %s12667_s4 = inlined_call_operand.vmem [shape: f32[1,128], index: 4, kind: input, shape index: {}]   ;;  %s12668_s5 = inlined_call_operand.vmem [shape: f32[16,128], index: 5, kind: input, shape index: {}]   ;;  %s12669_s6 = inlined_call_operand.vmem [shape: f32[1,128], index: 6, kind: input, shape index: {}]   ;;  %s12670_s7 = inlined_call_operand.hbm [shape: bf16[128,256], index: 7, kind: input, shape index: {}]   ;;  %s12671_s8 = inlined_call_operand.vmem [shape: f32[1,256], index: 8, kind: input, shape index: {}]   ;;  %s12672_s9 = inlined_call_operand.vmem [shape: bf16[128,128], index: 9, kind: input, shape index: {}]   ;;  %s12673_s10 = inlined_call_operand.hbm [shape: f32[1,128], index: 10, kind: input, shape index: {}]   ;;  %s12674_s11 = inlined_call_operand.hbm [shape: bf16[128,256], index: 11, kind: input, shape index: {}]   ;;  %s12675_s12 = inlined_call_operand.vmem [shape: f32[1,256], index: 12, kind: input, shape index: {}]   ;;  %s12676_s13 = inlined_call_operand.hbm [shape: f32[512,256], index: 13, kind: output, shape index: {0}]   ;;  %s12677_s14 = inlined_call_operand.hbm [shape: f32[1,1], index: 14, kind: output, shape index: {1}]  }
   0x1   :  { %21 = vsyncpa [#allocation7], 0 }
   0x2   :  { %22 = vsyncpa [#allocation10], 0 }
   0x3   :  { %23 = vsyncpa [#allocation4], 0 }
   0x4   :  { %24 = vsyncpa [#allocation5], 0  ;;  %s7836_s29 = smov [#allocation6]   ;;  %s7684_s17 = scalar_lea.hbm %s12666_s3, 2048 }
   0x5   :  { %s46_s30 = sshll.u32 %s7836_s29, 4  ;;  %p7685_p0 = scmp.ne.s32.totalorder %s12666_s3, %s7684_s17  ;;  %s47_s30 = int_to_ptr.vmem [resolvable:$true] %s46_s30 }
   0x6   :  { %p7688_p1 = scmp.lt.u32.totalorder %s7684_s17, %s12666_s3 }
   0x8   :  { %p7690_p2 = pnand %p7688_p1, %p7685_p0 }
   0xa   :  { %7693 = shalt.err (!%p7690_p2)
}
   0xb   :  { %s7694_s22 = scalar_lea.vmem %s47_s30, 2048  ;;  %p7699_p4 = scmp.lt.s32.totalorder %s47_s30, %s47_s30 }
   0xc   :  { %p7695_p3 = scmp.ne.s32.totalorder %s47_s30, %s7694_s22  ;;  %p7700_p5 = scmp.lt.s32.totalorder %s7694_s22, %s7694_s22 }
   0xe   :  { %p7701_p6 = por %p7700_p5, %p7699_p4 }
  0x10   :  { %p7702_p7 = pnand %p7701_p6, %p7695_p3 }
  0x12   :  { %7705 = shalt.err (!%p7702_p7)
}
  0x13   :  { %s7837_s23 = smov 64   ;;  %s7838_s24 = smov 4  }
  0x14   :  { %52 = dma.hbm_to_vmem [thread:$0]  %s12666_s3, 2048, %s47_s30, [#allocation7], %s7837_s23, %s7837_s23, %s7838_s24  }
  0x15   :  { %s7839_s27 = smov [#allocation9]   ;;  %s7840_s29 = smov [#allocation2]  }
  0x16   :  { %s81_s28 = sshll.u32 %s7839_s27, 4  ;;  %s30_s15 = sshll.u32 %s7840_s29, 4  ;;  %s82_s28 = int_to_ptr.vmem [resolvable:$true] %s81_s28  ;;  %s31_s15 = int_to_ptr.vmem [resolvable:$true] %s30_s15 }
  0x17   :  { %s7706_s18 = scalar_lea.hbm %s12673_s10, 16 }
  0x18   :  { %p7707_p8 = scmp.ne.s32.totalorder %s12673_s10, %s7706_s18  ;;  %p7710_p9 = scmp.lt.u32.totalorder %s7706_s18, %s12673_s10 }
  0x1a   :  { %p7712_p10 = pnand %p7710_p9, %p7707_p8 }
  0x1c   :  { %7715 = shalt.err (!%p7712_p10)
}
  0x1d   :  { %s7716_s3 = scalar_lea.vmem %s82_s28, 16  ;;  %s7720_s30 = scalar_lea.vmem %s82_s28, 32 }
  0x1e   :  { %p7717_p11 = scmp.ne.s32.totalorder %s82_s28, %s7716_s3  ;;  %p7721_p12 = scmp.lt.s32.totalorder %s82_s28, %s82_s28 }
  0x1f   :  { %p7722_p13 = scmp.lt.s32.totalorder %s7720_s30, %s7716_s3 }
  0x21   :  { %p7723_p0 = por %p7722_p13, %p7721_p12 }
  0x23   :  { %p7724_p1 = pnand %p7723_p0, %p7717_p11 }
  0x25   :  { %7727 = shalt.err (!%p7724_p1)
}
  0x26   :  { %84 = dma.hbm_to_vmem [thread:$0]  %s12673_s10, 16, %s82_s28, [#allocation10]  }
  0x27   :  { %s7728_s27 = scalar_lea.hbm %s12663_s0, 16384 }
  0x28   :  { %p7729_p2 = scmp.ne.s32.totalorder %s12663_s0, %s7728_s27  ;;  %p7732_p3 = scmp.lt.u32.totalorder %s7728_s27, %s12663_s0 }
  0x2a   :  { %p7734_p4 = pnand %p7732_p3, %p7729_p2 }
  0x2c   :  { %7737 = shalt.err (!%p7734_p4)
}
  0x2d   :  { %s7738_s19 = scalar_lea.vmem %s31_s15, 16384  ;;  %p7743_p6 = scmp.lt.s32.totalorder %s31_s15, %s31_s15 }
  0x2e   :  { %p7739_p5 = scmp.ne.s32.totalorder %s31_s15, %s7738_s19  ;;  %p7744_p7 = scmp.lt.s32.totalorder %s7738_s19, %s7738_s19 }
  0x30   :  { %p7745_p8 = por %p7744_p7, %p7743_p6 }
  0x32   :  { %p7746_p9 = pnand %p7745_p8, %p7739_p5 }
  0x34   :  { %7749 = shalt.err (!%p7746_p9)
}
  0x35   :  { %s7841_s10 = smov 256   ;;  %s7842_s28 = smov 16  }
  0x36   :  { %36 = dma.hbm_to_vmem [thread:$0]  %s12663_s0, 16384, %s31_s15, [#allocation3], %s7841_s10, %s7841_s10, %s7842_s28  }
  0x37   :  { %s7843_s22 = smov [#allocation8]   ;;  %s7750_s24 = scalar_lea.hbm %s12670_s7, 2048 }
  0x38   :  { %s64_s3 = sshll.u32 %s7843_s22, 4  ;;  %p7751_p10 = scmp.ne.s32.totalorder %s12670_s7, %s7750_s24  ;;  %s65_s3 = int_to_ptr.vmem [resolvable:$true] %s64_s3 }
  0x39   :  { %p7754_p11 = scmp.lt.u32.totalorder %s7750_s24, %s12670_s7 }
  0x3b   :  { %p7756_p12 = pnand %p7754_p11, %p7751_p10 }
  0x3d   :  { %7759 = shalt.err (!%p7756_p12)
}
  0x3e   :  { %s7760_s16 = scalar_lea.vmem %s65_s3, 2048  ;;  %p7765_p0 = scmp.lt.s32.totalorder %s65_s3, %s65_s3 }
  0x3f   :  { %p7761_p13 = scmp.ne.s32.totalorder %s65_s3, %s7760_s16  ;;  %p7766_p1 = scmp.lt.s32.totalorder %s7760_s16, %s7760_s16 }
  0x41   :  { %p7767_p2 = por %p7766_p1, %p7765_p0 }
  0x43   :  { %p7768_p3 = pnand %p7767_p2, %p7761_p13 }
  0x45   :  { %7771 = shalt.err (!%p7768_p3)
}
  0x46   :  { %s7844_s0 = smov 128   ;;  %s7845_s15 = smov 8  }
  0x47   :  { %70 = dma.hbm_to_vmem [thread:$0]  %s12670_s7, 2048, %s65_s3, [#allocation7], %s7844_s0, %s7844_s0, %s7845_s15  }
  0x48   :  { %s7846_s19 = smov [#allocation11]   ;;  %s7772_s30 = scalar_lea.hbm %s12674_s11, 2048 }
  0x49   :  { %s90_s20 = sshll.u32 %s7846_s19, 4  ;;  %p7773_p4 = scmp.ne.s32.totalorder %s12674_s11, %s7772_s30  ;;  %s91_s20 = int_to_ptr.vmem [resolvable:$true] %s90_s20 }
  0x4a   :  { %p7776_p5 = scmp.lt.u32.totalorder %s7772_s30, %s12674_s11 }
  0x4c   :  { %p7778_p6 = pnand %p7776_p5, %p7773_p4 }
  0x4e   :  { %7781 = shalt.err (!%p7778_p6)
}
  0x4f   :  { %s7782_s27 = scalar_lea.vmem %s91_s20, 2048  ;;  %p7787_p8 = scmp.lt.s32.totalorder %s91_s20, %s91_s20 }
  0x50   :  { %p7783_p7 = scmp.ne.s32.totalorder %s91_s20, %s7782_s27  ;;  %p7788_p9 = scmp.lt.s32.totalorder %s7782_s27, %s7782_s27 }
  0x52   :  { %p7789_p10 = por %p7788_p9, %p7787_p8 }
  0x54   :  { %p7790_p11 = pnand %p7789_p10, %p7783_p7 }
  0x56   :  { %7793 = shalt.err (!%p7790_p11)
}
  0x57   :  { %96 = dma.hbm_to_vmem [thread:$0]  %s12674_s11, 2048, %s91_s20, [#allocation10], %s7844_s0, %s7844_s0, %s7845_s15  }
  0x58   :  { %7826 = dma.done.wait [#allocation3], 16384  }
  0x59   :  { %7827 = vsyncadd [#allocation3], 4294950912 }
  0x5a   :  { %7828 = dma.done.wait [#allocation7], 4096  }
  0x5b   :  { %7829 = vsyncadd [#allocation7], 4294963200 }
  0x5c   :  { %7830 = dma.done.wait [#allocation10], 2064  }
  0x5d   :  { %7831 = vsyncadd [#allocation10], 4294965232  ;;  %v12680_v0 = vmov 0   ;;  %v6586_v1 = vld [vmem:[#allocation6] sm:$0xff]   ;;  %v6587_v2 = vld [vmem:[#allocation6 + $0x8] sm:$0xff]   ;;  %vm1361_vm0 = vcmask 130048  }
  0x5e   :  { %442 = vmatprep.subr.bf16.mxu0 %v12680_v0  ;;  %1107 = vmatprep.mubr.bf16.mxu1 %v12680_v0  ;;  %v6588_v3 = vld [vmem:[#allocation6 + $0x10] sm:$0xff]   ;;  %v6589_v4 = vld [vmem:[#allocation6 + $0x18] sm:$0xff]   ;;  %v6590_v5 = vld [vmem:[#allocation6 + $0x20] sm:$0xff]  }
  0x5f   :  { %443 = vmatpush1.bf16.msra.mxu0 %v6586_v1  ;;  %v116_v6 = vld [vmem:[#allocation2 + $0x8] sm:$0xff]  ;;  %v118_v7 = vld [vmem:[#allocation2 + $0x18] sm:$0xff]  ;;  %v6592_v12 = vld [vmem:[#allocation6 + $0x30] sm:$0xff]  }
  0x60   :  { %444 = vmatprep.subr.bf16.mxu0 %v12680_v0  ;;  %v244_v8 = vpack.c.bf16 %v118_v7, %v116_v6  ;;  %v6591_v9 = vld [vmem:[#allocation6 + $0x28] sm:$0xff]   ;;  %v6607_v13 = vld [vmem:[#allocation8 + $0x14] ss:$8 sps:$4 sm:$0xff]   ;;  %v6605_v15 = vld [vmem:[#allocation8 + $0x10] ss:$8 sps:$4 sm:$0xff]  }
  0x61   :  { %v6604_v10 = vld [vmem:[#allocation8 + $0x4] ss:$8 sps:$4 sm:$0xff]   ;;  %v6602_v11 = vld [vmem:[#allocation8] ss:$8 sps:$4 sm:$0xff]   ;;  %v6593_v14 = vld [vmem:[#allocation6 + $0x38] sm:$0xff]  }
  0x62   :  { %474 = vmatprep.mubr.bf16.mxu0 %v244_v8  ;;  %6552 = vmatprep.subr.bf16.mxu1 %v6604_v10  ;;  %v6594_v16 = vld [vmem:[#allocation6 + $0x40] sm:$0xff]   ;;  %v6595_v19 = vld [vmem:[#allocation6 + $0x48] sm:$0xff]   ;;  %v6596_v20 = vld [vmem:[#allocation6 + $0x50] sm:$0xff]  }
  0x63   :  { %445 = vmatpush1.bf16.msra.mxu0 %v6587_v2  ;;  %6560 = vmatpush1.bf16.msra.mxu1 %v6602_v11  ;;  %v6610_v17 = vld [vmem:[#allocation8 + $0x24] ss:$8 sps:$4 sm:$0xff]   ;;  %v6608_v18 = vld [vmem:[#allocation8 + $0x20] ss:$8 sps:$4 sm:$0xff]   ;;  %v6613_v21 = vld [vmem:[#allocation8 + $0x34] ss:$8 sps:$4 sm:$0xff]  }
  0x64   :  { %446 = vmatprep.subr.bf16.mxu0 %v12680_v0  ;;  %6553 = vmatprep.subr.bf16.mxu1 %v6607_v13  ;;  %v6611_v22 = vld [vmem:[#allocation8 + $0x30] ss:$8 sps:$4 sm:$0xff]   ;;  %v6598_v24 = vld [vmem:[#allocation6 + $0x60] sm:$0xff]   ;;  %v6599_v25 = vld [vmem:[#allocation6 + $0x68] sm:$0xff]  }
  0x65   :  { %v6597_v23 = vld [vmem:[#allocation6 + $0x58] sm:$0xff]   ;;  %v6600_v26 = vld [vmem:[#allocation6 + $0x70] sm:$0xff]   ;;  %v115_v28 = vld [vmem:[#allocation2] sm:$0xff] }
  0x66   :  { %v6601_v27 = vld [vmem:[#allocation6 + $0x78] sm:$0xff]   ;;  %v117_v29 = vld [vmem:[#allocation2 + $0x10] sm:$0xff]  ;;  %v120_v30 = vld [vmem:[#allocation2 + $0x28] sm:$0xff] }
  0x67   :  { %447 = vmatpush1.bf16.msra.mxu0 %v6588_v3  ;;  %6561 = vmatpush1.bf16.msra.mxu1 %v6605_v15  ;;  %v122_v31 = vld [vmem:[#allocation2 + $0x38] sm:$0xff]  ;;  %v243_v32 = vpack.c.bf16 %v117_v29, %v115_v28  ;;  %v6616_v34 = vld [vmem:[#allocation8 + $0x44] ss:$8 sps:$4 sm:$0xff]   ;;  %v121_v36 = vld [vmem:[#allocation2 + $0x30] sm:$0xff] }
  0x68   :  { %448 = vmatprep.subr.bf16.mxu0 %v12680_v0  ;;  %6554 = vmatprep.subr.bf16.mxu1 %v6610_v17  ;;  %v246_v33 = vpack.c.bf16 %v122_v31, %v120_v30  ;;  %v119_v35 = vld [vmem:[#allocation2 + $0x20] sm:$0xff]  ;;  %v124_v38 = vld [vmem:[#allocation2 + $0x48] sm:$0xff]  ;;  %v126_v39 = vld [vmem:[#allocation2 + $0x58] sm:$0xff] }
  0x69   :  { %v6614_v37 = vld [vmem:[#allocation8 + $0x40] ss:$8 sps:$4 sm:$0xff]   ;;  %v245_v40 = vpack.c.bf16 %v121_v36, %v119_v35  ;;  %v248_v41 = vpack.c.bf16 %v126_v39, %v124_v38  ;;  %v125_v43 = vld [vmem:[#allocation2 + $0x50] sm:$0xff]  ;;  %v130_v45 = vld [vmem:[#allocation2 + $0x78] sm:$0xff] }
  0x6a   :  { %v123_v42 = vld [vmem:[#allocation2 + $0x40] sm:$0xff]  ;;  %v128_v44 = vld [vmem:[#allocation2 + $0x68] sm:$0xff]  ;;  %v129_v49 = vld [vmem:[#allocation2 + $0x70] sm:$0xff] }
  0x6b   :  { %449 = vmatpush1.bf16.msra.mxu0 %v6589_v4  ;;  %6562 = vmatpush1.bf16.msra.mxu1 %v6608_v18  ;;  %v247_v46 = vpack.c.bf16 %v125_v43, %v123_v42  ;;  %v250_v47 = vpack.c.bf16 %v130_v45, %v128_v44  ;;  %v127_v48 = vld [vmem:[#allocation2 + $0x60] sm:$0xff]  ;;  %v132_v50 = vld [vmem:[#allocation2 + $0x88] sm:$0xff]  ;;  %v134_v51 = vld [vmem:[#allocation2 + $0x98] sm:$0xff] }
  0x6c   :  { %450 = vmatprep.subr.bf16.mxu0 %v12680_v0  ;;  %6555 = vmatprep.subr.bf16.mxu1 %v6613_v21  ;;  %v249_v52 = vpack.c.bf16 %v129_v49, %v127_v48  ;;  %v252_v53 = vpack.c.bf16 %v134_v51, %v132_v50  ;;  %v131_v54 = vld [vmem:[#allocation2 + $0x80] sm:$0xff]  ;;  %v133_v55 = vld [vmem:[#allocation2 + $0x90] sm:$0xff]  ;;  %v136_v56 = vld [vmem:[#allocation2 + $0xa8] sm:$0xff] }
  0x6d   :  { %v138_v57 = vld [vmem:[#allocation2 + $0xb8] sm:$0xff]  ;;  %v251_v58 = vpack.c.bf16 %v133_v55, %v131_v54  ;;  %v135_v62 = vld [vmem:[#allocation2 + $0xa0] sm:$0xff]  ;;  %v137_v63 = vld [vmem:[#allocation2 + $0xb0] sm:$0xff] }
  0x6e   :  { %v254_v59 = vpack.c.bf16 %v138_v57, %v136_v56  ;;  %v6617_v60 = vld [vmem:[#allocation8 + $0x50] ss:$8 sps:$4 sm:$0xff]   ;;  %v6619_v61 = vld [vmem:[#allocation8 + $0x54] ss:$8 sps:$4 sm:$0xff]   ;;  %v140_v1 = vld [vmem:[#allocation2 + $0xc8] sm:$0xff]  ;;  %v253_v3 = vpack.c.bf16 %v137_v63, %v135_v62 }
  0x6f   :  { %451 = vmatpush1.bf16.msra.mxu0 %v6590_v5  ;;  %6563 = vmatpush1.bf16.msra.mxu1 %v6611_v22  ;;  %v142_v2 = vld [vmem:[#allocation2 + $0xd8] sm:$0xff]  ;;  %v139_v5 = vld [vmem:[#allocation2 + $0xc0] sm:$0xff]  ;;  %v141_v6 = vld [vmem:[#allocation2 + $0xd0] sm:$0xff] }
  0x70   :  { %452 = vmatprep.subr.bf16.mxu0 %v12680_v0  ;;  %6556 = vmatprep.subr.bf16.mxu1 %v6616_v34  ;;  %v256_v4 = vpack.c.bf16 %v142_v2, %v140_v1  ;;  %v144_v7 = vld [vmem:[#allocation2 + $0xe8] sm:$0xff]  ;;  %v146_v8 = vld [vmem:[#allocation2 + $0xf8] sm:$0xff]  ;;  %v155_v31 = vld [vmem:[#allocation2 + $0x140] sm:$0xff] }
  0x71   :  { %v158_v28 = vld [vmem:[#allocation2 + $0x158] sm:$0xff]  ;;  %v161_v38 = vld [vmem:[#allocation2 + $0x170] sm:$0xff]  ;;  %v164_v39 = vld [vmem:[#allocation2 + $0x188] sm:$0xff] }
  0x72   :  { %v163_v43 = vld [vmem:[#allocation2 + $0x180] sm:$0xff]  ;;  %v165_v44 = vld [vmem:[#allocation2 + $0x190] sm:$0xff]  ;;  %v168_v45 = vld [vmem:[#allocation2 + $0x1a8] sm:$0xff] }
  0x73   :  { %453 = vmatpush1.bf16.msra.mxu0 %v6591_v9  ;;  %6564 = vmatpush1.bf16.msra.mxu1 %v6614_v37  ;;  %v255_v9 = vpack.c.bf16 %v141_v6, %v139_v5  ;;  %v167_v49 = vld [vmem:[#allocation2 + $0x1a0] sm:$0xff]  ;;  %v169_v50 = vld [vmem:[#allocation2 + $0x1b0] sm:$0xff]  ;;  %v172_v51 = vld [vmem:[#allocation2 + $0x1c8] sm:$0xff] }
  0x74   :  { %454 = vmatprep.subr.bf16.mxu0 %v12680_v0  ;;  %6557 = vmatprep.subr.bf16.mxu1 %v6619_v61  ;;  %v6625_v54 = vld [vmem:[#allocation8 + $0x74] ss:$8 sps:$4 sm:$0xff]   ;;  %v269_v55 = vpack.c.bf16 %v169_v50, %v167_v49  ;;  %v171_v57 = vld [vmem:[#allocation2 + $0x1c0] sm:$0xff]  ;;  %v180_v2 = vld [vmem:[#allocation2 + $0x208] sm:$0xff] }
  0x75   :  { %v175_v63 = vld [vmem:[#allocation2 + $0x1e0] sm:$0xff]  ;;  %v177_v1 = vld [vmem:[#allocation2 + $0x1f0] sm:$0xff]  ;;  %v212_v50 = vld [vmem:[#allocation2 + $0x308] sm:$0xff] }
  0x76   :  { %v179_v6 = vld [vmem:[#allocation2 + $0x200] sm:$0xff]  ;;  %v209_v49 = vld [vmem:[#allocation2 + $0x2f0] sm:$0xff] }
  0x77   :  { %455 = vmatpush1.bf16.msra.mxu0 %v6592_v12  ;;  %6565 = vmatpush1.bf16.msra.mxu1 %v6617_v60  ;;  %v145_v12 = vld [vmem:[#allocation2 + $0xf0] sm:$0xff] }
  0x78   :  { %456 = vmatprep.subr.bf16.mxu0 %v12680_v0 }
  0x7b   :  { %457 = vmatpush1.bf16.msra.mxu0 %v6593_v14  ;;  %v150_v14 = vld [vmem:[#allocation2 + $0x118] sm:$0xff] }
  0x7c   :  { %458 = vmatprep.subr.bf16.mxu0 %v12680_v0 }
  0x7f   :  { %459 = vmatpush1.bf16.msra.mxu0 %v6594_v16 }
  0x80   :  { %460 = vmatprep.subr.bf16.mxu0 %v12680_v0 }
  0x83   :  { %461 = vmatpush1.bf16.msra.mxu0 %v6595_v19  ;;  %v152_v19 = vld [vmem:[#allocation2 + $0x128] sm:$0xff] }
  0x84   :  { %462 = vmatprep.subr.bf16.mxu0 %v12680_v0 }
  0x87   :  { %463 = vmatpush1.bf16.msra.mxu0 %v6596_v20  ;;  %v154_v20 = vld [vmem:[#allocation2 + $0x138] sm:$0xff] }
  0x88   :  { %464 = vmatprep.subr.bf16.mxu0 %v12680_v0 }
  0x8b   :  { %465 = vmatpush1.bf16.msra.mxu0 %v6597_v23  ;;  %v6620_v23 = vld [vmem:[#allocation8 + $0x60] ss:$8 sps:$4 sm:$0xff]  }
  0x8c   :  { %466 = vmatprep.subr.bf16.mxu0 %v12680_v0 }
  0x8f   :  { %467 = vmatpush1.bf16.msra.mxu0 %v6598_v24  ;;  %v6622_v24 = vld [vmem:[#allocation8 + $0x64] ss:$8 sps:$4 sm:$0xff]  }
  0x90   :  { %468 = vmatprep.subr.bf16.mxu0 %v12680_v0  ;;  %6558 = vmatprep.subr.bf16.mxu1 %v6622_v24 }
  0x91   :  { %6566 = vmatpush1.bf16.msra.mxu1 %v6620_v23 }
  0x92   :  { %6559 = vmatprep.subr.bf16.mxu1 %v6625_v54 }
  0x93   :  { %469 = vmatpush1.bf16.msra.mxu0 %v6599_v25  ;;  %v151_v25 = vld [vmem:[#allocation2 + $0x120] sm:$0xff] }
  0x94   :  { %470 = vmatprep.subr.bf16.mxu0 %v12680_v0 }
  0x97   :  { %471 = vmatpush1.bf16.msra.mxu0 %v6600_v26  ;;  %v153_v26 = vld [vmem:[#allocation2 + $0x130] sm:$0xff] }
  0x98   :  { %472 = vmatprep.subr.bf16.mxu0 %v12680_v0  ;;  %v261_v29 = vpack.c.bf16 %v153_v26, %v151_v25  ;;  %v193_v25 = vld [vmem:[#allocation2 + $0x270] sm:$0xff]  ;;  %v196_v26 = vld [vmem:[#allocation2 + $0x288] sm:$0xff] }
  0x9b   :  { %473 = vmatpush1.bf16.msra.mxu0 %v6601_v27  ;;  %v156_v27 = vld [vmem:[#allocation2 + $0x148] sm:$0xff] }
  0x9c   :  { %935 = vmatprep.subr.bf16.mxu0 %v6604_v10  ;;  %v258_v10 = vpack.c.bf16 %v146_v8, %v144_v7  ;;  %v264_v30 = vpack.c.bf16 %v158_v28, %v156_v27  ;;  %v181_v7 = vld [vmem:[#allocation2 + $0x210] sm:$0xff]  ;;  %v184_v8 = vld [vmem:[#allocation2 + $0x228] sm:$0xff]  ;;  %v198_v27 = vld [vmem:[#allocation2 + $0x298] sm:$0xff] }
  0x9e   :  { %475 = vmatmul.mubr.bf16.vlgmr.msra.gmra.mrb[0].mxu0 %v243_v32  ;;  %v157_v32 = vld [vmem:[#allocation2 + $0x150] sm:$0xff] }
  0x9f   :  { %936 = vmatpush1.bf16.msra.mxu0 %v6602_v11  ;;  %482 = vmatprep.mubr.bf16.mxu0 %v246_v33  ;;  %v143_v11 = vld [vmem:[#allocation2 + $0xe0] sm:$0xff]  ;;  %v160_v33 = vld [vmem:[#allocation2 + $0x168] sm:$0xff]  ;;  %v263_v35 = vpack.c.bf16 %v157_v32, %v155_v31  ;;  %v197_v31 = vld [vmem:[#allocation2 + $0x290] sm:$0xff] }
  0xa0   :  { %937 = vmatprep.subr.bf16.mxu0 %v6607_v13  ;;  %v148_v13 = vld [vmem:[#allocation2 + $0x108] sm:$0xff] }
  0xa1   :  { %v260_v16 = vpack.c.bf16 %v150_v14, %v148_v13  ;;  %v185_v13 = vld [vmem:[#allocation2 + $0x230] sm:$0xff]  ;;  %v188_v14 = vld [vmem:[#allocation2 + $0x248] sm:$0xff] }
  0xa2   :  { %v200_v32 = vld [vmem:[#allocation2 + $0x2a8] sm:$0xff] }
  0xa3   :  { %938 = vmatpush1.bf16.msra.mxu0 %v6605_v15  ;;  %v257_v15 = vpack.c.bf16 %v145_v12, %v143_v11  ;;  %v183_v12 = vld [vmem:[#allocation2 + $0x220] sm:$0xff] }
  0xa4   :  { %939 = vmatprep.subr.bf16.mxu0 %v6610_v17  ;;  %v147_v17 = vld [vmem:[#allocation2 + $0x100] sm:$0xff] }
  0xa6   :  { %483 = vmatmul.mubr.bf16.gmra.mrb[4].mxu0 %v245_v40  ;;  %v166_v40 = vld [vmem:[#allocation2 + $0x198] sm:$0xff] }
  0xa7   :  { %490 = vmatprep.mubr.bf16.mxu0 %v248_v41  ;;  %940 = vmatpush1.bf16.msra.mxu0 %v6608_v18  ;;  %v149_v18 = vld [vmem:[#allocation2 + $0x110] sm:$0xff]  ;;  %v268_v42 = vpack.c.bf16 %v166_v40, %v164_v39  ;;  %v206_v39 = vld [vmem:[#allocation2 + $0x2d8] sm:$0xff] }
  0xa8   :  { %941 = vmatprep.subr.bf16.mxu0 %v6613_v21  ;;  %v259_v21 = vpack.c.bf16 %v149_v18, %v147_v17  ;;  %v187_v18 = vld [vmem:[#allocation2 + $0x240] sm:$0xff] }
  0xab   :  { %942 = vmatpush1.bf16.msra.mxu0 %v6611_v22  ;;  %v262_v22 = vpack.c.bf16 %v154_v20, %v152_v19  ;;  %v189_v19 = vld [vmem:[#allocation2 + $0x250] sm:$0xff]  ;;  %v192_v20 = vld [vmem:[#allocation2 + $0x268] sm:$0xff] }
  0xac   :  { %943 = vmatprep.subr.bf16.mxu0 %v6616_v34  ;;  %v162_v34 = vld [vmem:[#allocation2 + $0x178] sm:$0xff] }
  0xad   :  { %v266_v36 = vpack.c.bf16 %v162_v34, %v160_v33  ;;  %v202_v33 = vld [vmem:[#allocation2 + $0x2b8] sm:$0xff] }
  0xae   :  { %491 = vmatmul.mubr.bf16.gmra.mrb[8].mxu0 %v247_v46  ;;  %v170_v46 = vld [vmem:[#allocation2 + $0x1b8] sm:$0xff] }
  0xaf   :  { %498 = vmatprep.mubr.bf16.mxu0 %v250_v47  ;;  %944 = vmatpush1.bf16.msra.mxu0 %v6614_v37  ;;  %v159_v37 = vld [vmem:[#allocation2 + $0x160] sm:$0xff]  ;;  %v267_v47 = vpack.c.bf16 %v165_v44, %v163_v43  ;;  %v270_v48 = vpack.c.bf16 %v170_v46, %v168_v45  ;;  %v205_v43 = vld [vmem:[#allocation2 + $0x2d0] sm:$0xff]  ;;  %v208_v44 = vld [vmem:[#allocation2 + $0x2e8] sm:$0xff] }
  0xb0   :  { %945 = vmatprep.subr.bf16.mxu0 %v6619_v61  ;;  %v265_v41 = vpack.c.bf16 %v161_v38, %v159_v37  ;;  %v201_v37 = vld [vmem:[#allocation2 + $0x2b0] sm:$0xff]  ;;  %v204_v38 = vld [vmem:[#allocation2 + $0x2c8] sm:$0xff]  ;;  %v210_v45 = vld [vmem:[#allocation2 + $0x2f8] sm:$0xff] }
  0xb3   :  { %946 = vmatpush1.bf16.msra.mxu0 %v6617_v60  ;;  %v178_v60 = vld [vmem:[#allocation2 + $0x1f8] sm:$0xff] }
  0xb4   :  { %947 = vmatprep.subr.bf16.mxu0 %v6622_v24  ;;  %v191_v24 = vld [vmem:[#allocation2 + $0x260] sm:$0xff] }
  0xb5   :  { %v281_v28 = vpack.c.bf16 %v193_v25, %v191_v24  ;;  %v227_v24 = vld [vmem:[#allocation2 + $0x380] sm:$0xff]  ;;  %v229_v25 = vld [vmem:[#allocation2 + $0x390] sm:$0xff] }
  0xb6   :  { %499 = vmatmul.mubr.bf16.gmra.mrb[12].mxu0 %v249_v52  ;;  %v174_v52 = vld [vmem:[#allocation2 + $0x1d8] sm:$0xff] }
  0xb7   :  { %506 = vmatprep.mubr.bf16.mxu0 %v252_v53  ;;  %948 = vmatpush1.bf16.msra.mxu0 %v6620_v23  ;;  %v6623_v53 = vld [vmem:[#allocation8 + $0x70] ss:$8 sps:$4 sm:$0xff]   ;;  %v272_v56 = vpack.c.bf16 %v174_v52, %v172_v51 }
  0xb8   :  { %949 = vmatprep.subr.bf16.mxu0 %v6625_v54  ;;  %6567 = vmatpush1.bf16.msra.mxu1 %v6623_v53  ;;  %v214_v51 = vld [vmem:[#allocation2 + $0x318] sm:$0xff]  ;;  %v211_v54 = vld [vmem:[#allocation2 + $0x300] sm:$0xff] }
  0xbb   :  { %950 = vmatpush1.bf16.msra.mxu0 %v6623_v53  ;;  %v292_v53 = vpack.c.bf16 %v214_v51, %v212_v50 }
  0xbe   :  { %507 = vmatmul.mubr.bf16.gmra.mrb[16].mxu0 %v251_v58  ;;  %v173_v58 = vld [vmem:[#allocation2 + $0x1d0] sm:$0xff] }
  0xbf   :  { %514 = vmatprep.mubr.bf16.mxu0 %v254_v59  ;;  %v176_v59 = vld [vmem:[#allocation2 + $0x1e8] sm:$0xff]  ;;  %v271_v61 = vpack.c.bf16 %v173_v58, %v171_v57  ;;  %v218_v57 = vld [vmem:[#allocation2 + $0x338] sm:$0xff] }
  0xc0   :  { %v274_v62 = vpack.c.bf16 %v178_v60, %v176_v59  ;;  %v215_v60 = vld [vmem:[#allocation2 + $0x320] sm:$0xff] }
  0xc6   :  { %515 = vmatmul.mubr.bf16.gmra.mrb[20].mxu0 %v253_v3  ;;  %v182_v3 = vld [vmem:[#allocation2 + $0x218] sm:$0xff] }
  0xc7   :  { %522 = vmatprep.mubr.bf16.mxu0 %v256_v4  ;;  %v273_v4 = vpack.c.bf16 %v177_v1, %v175_v63  ;;  %v276_v5 = vpack.c.bf16 %v182_v3, %v180_v2  ;;  %v222_v63 = vld [vmem:[#allocation2 + $0x358] sm:$0xff]  ;;  %v219_v3 = vld [vmem:[#allocation2 + $0x340] sm:$0xff] }
  0xce   :  { %523 = vmatmul.mubr.bf16.gmra.mrb[24].mxu0 %v255_v9  ;;  %v186_v9 = vld [vmem:[#allocation2 + $0x238] sm:$0xff] }
  0xcf   :  { %530 = vmatprep.mubr.bf16.mxu0 %v258_v10  ;;  %v275_v10 = vpack.c.bf16 %v181_v7, %v179_v6  ;;  %v278_v11 = vpack.c.bf16 %v186_v9, %v184_v8  ;;  %v226_v6 = vld [vmem:[#allocation2 + $0x378] sm:$0xff]  ;;  %v8008_v9 = vld [vmem:[%s12667_s4] ss:$0 sm:$0xff] }
  0xd6   :  { %531 = vmatmul.mubr.bf16.gmra.mrb[28].mxu0 %v257_v15  ;;  %v190_v15 = vld [vmem:[#allocation2 + $0x258] sm:$0xff] }
  0xd7   :  { %538 = vmatprep.mubr.bf16.mxu0 %v260_v16  ;;  %v277_v16 = vpack.c.bf16 %v185_v13, %v183_v12  ;;  %v280_v17 = vpack.c.bf16 %v190_v15, %v188_v14  ;;  %v228_v12 = vld [vmem:[#allocation2 + $0x388] sm:$0xff]  ;;  %v230_v13 = vld [vmem:[#allocation2 + $0x398] sm:$0xff] }
  0xde   :  { %539 = vmatmul.mubr.bf16.gmra.mrb[32].mxu0 %v259_v21  ;;  %v194_v21 = vld [vmem:[#allocation2 + $0x278] sm:$0xff] }
  0xdf   :  { %546 = vmatprep.mubr.bf16.mxu0 %v262_v22  ;;  %v279_v22 = vpack.c.bf16 %v189_v19, %v187_v18  ;;  %v282_v23 = vpack.c.bf16 %v194_v21, %v192_v20  ;;  %v300_v19 = vpack.c.bf16 %v230_v13, %v228_v12 }
  0xe6   :  { %547 = vmatmul.mubr.bf16.gmra.mrb[36].mxu0 %v261_v29  ;;  %v284_v29 = vpack.c.bf16 %v198_v27, %v196_v26  ;;  %v232_v27 = vld [vmem:[#allocation2 + $0x3a8] sm:$0xff] }
  0xe7   :  { %554 = vmatprep.mubr.bf16.mxu0 %v264_v30  ;;  %v195_v30 = vld [vmem:[#allocation2 + $0x280] sm:$0xff] }
  0xe8   :  { %v283_v34 = vpack.c.bf16 %v197_v31, %v195_v30 }
  0xee   :  { %555 = vmatmul.mubr.bf16.gmra.mrb[40].mxu0 %v263_v35  ;;  %v286_v35 = vpack.c.bf16 %v202_v33, %v200_v32  ;;  %v299_v32 = vpack.c.bf16 %v229_v25, %v227_v24 }
  0xef   :  { %562 = vmatprep.mubr.bf16.mxu0 %v266_v36  ;;  %v199_v36 = vld [vmem:[#allocation2 + $0x2a0] sm:$0xff] }
  0xf0   :  { %v285_v40 = vpack.c.bf16 %v201_v37, %v199_v36 }
  0xf6   :  { %563 = vmatmul.mubr.bf16.gmra.mrb[44].mxu0 %v265_v41  ;;  %v288_v41 = vpack.c.bf16 %v206_v39, %v204_v38  ;;  %v231_v39 = vld [vmem:[#allocation2 + $0x3a0] sm:$0xff] }
  0xf7   :  { %570 = vmatprep.mubr.bf16.mxu0 %v268_v42  ;;  %v203_v42 = vld [vmem:[#allocation2 + $0x2c0] sm:$0xff] }
  0xf8   :  { %v287_v46 = vpack.c.bf16 %v205_v43, %v203_v42  ;;  %v236_v42 = vld [vmem:[#allocation2 + $0x3c8] sm:$0xff]  ;;  %v238_v43 = vld [vmem:[#allocation2 + $0x3d8] sm:$0xff] }
  0xfe   :  { %571 = vmatmul.mubr.bf16.gmra.mrb[48].mxu0 %v267_v47  ;;  %v290_v47 = vpack.c.bf16 %v210_v45, %v208_v44 }
  0xff   :  { %578 = vmatprep.mubr.bf16.mxu0 %v270_v48  ;;  %v207_v48 = vld [vmem:[#allocation2 + $0x2e0] sm:$0xff] }
 0x100   :  { %v289_v52 = vpack.c.bf16 %v209_v49, %v207_v48  ;;  %v304_v49 = vpack.c.bf16 %v238_v43, %v236_v42 }
 0x106   :  { %579 = vmatmul.mubr.bf16.gmra.mrb[52].mxu0 %v269_v55  ;;  %v213_v55 = vld [vmem:[#allocation2 + $0x310] sm:$0xff] }
 0x107   :  { %586 = vmatprep.mubr.bf16.mxu0 %v272_v56  ;;  %v216_v56 = vld [vmem:[#allocation2 + $0x328] sm:$0xff]  ;;  %v291_v58 = vpack.c.bf16 %v213_v55, %v211_v54  ;;  %v235_v54 = vld [vmem:[#allocation2 + $0x3c0] sm:$0xff]  ;;  %v237_v55 = vld [vmem:[#allocation2 + $0x3d0] sm:$0xff] }
 0x108   :  { %v294_v59 = vpack.c.bf16 %v218_v57, %v216_v56  ;;  %v240_v57 = vld [vmem:[#allocation2 + $0x3e8] sm:$0xff] }
 0x10e   :  { %587 = vmatmul.mubr.bf16.gmra.mrb[56].mxu0 %v271_v61  ;;  %v217_v61 = vld [vmem:[#allocation2 + $0x330] sm:$0xff] }
 0x10f   :  { %594 = vmatprep.mubr.bf16.mxu0 %v274_v62  ;;  %v220_v62 = vld [vmem:[#allocation2 + $0x348] sm:$0xff]  ;;  %v293_v1 = vpack.c.bf16 %v217_v61, %v215_v60 }
 0x110   :  { %v296_v2 = vpack.c.bf16 %v222_v63, %v220_v62  ;;  %v303_v62 = vpack.c.bf16 %v237_v55, %v235_v54  ;;  %v6627_v54 = vld [vmem:[%s12672_s9 + $0x8] sm:$0xff]  }
 0x116   :  { %595 = vmatmul.mubr.bf16.gmra.mrb[60].mxu0 %v273_v4  ;;  %v221_v4 = vld [vmem:[#allocation2 + $0x350] sm:$0xff] }
 0x117   :  { %602 = vmatprep.mubr.bf16.mxu0 %v276_v5  ;;  %v224_v5 = vld [vmem:[#allocation2 + $0x368] sm:$0xff]  ;;  %v295_v7 = vpack.c.bf16 %v221_v4, %v219_v3 }
 0x118   :  { %v298_v8 = vpack.c.bf16 %v226_v6, %v224_v5  ;;  %v239_v6 = vld [vmem:[#allocation2 + $0x3e0] sm:$0xff] }
 0x11e   :  { %603 = vmatmul.mubr.bf16.gmra.mrb[64].mxu0 %v275_v10  ;;  %v223_v10 = vld [vmem:[#allocation2 + $0x360] sm:$0xff] }
 0x11f   :  { %610 = vmatprep.mubr.bf16.mxu0 %v278_v11  ;;  %v225_v11 = vld [vmem:[#allocation2 + $0x370] sm:$0xff] }
 0x126   :  { %611 = vmatmul.mubr.bf16.gmra.mrb[68].mxu0 %v277_v16 }
 0x127   :  { %618 = vmatprep.mubr.bf16.mxu0 %v280_v17  ;;  %v297_v17 = vpack.c.bf16 %v225_v11, %v223_v10 }
 0x12e   :  { %619 = vmatmul.mubr.bf16.gmra.mrb[72].mxu0 %v279_v22 }
 0x12f   :  { %626 = vmatprep.mubr.bf16.mxu0 %v282_v23 }
 0x136   :  { %627 = vmatmul.mubr.bf16.gmra.mrb[76].mxu0 %v281_v28  ;;  %v234_v28 = vld [vmem:[#allocation2 + $0x3b8] sm:$0xff] }
 0x137   :  { %634 = vmatprep.mubr.bf16.mxu0 %v284_v29 }
 0x13e   :  { %635 = vmatmul.mubr.bf16.gmra.mrb[80].mxu0 %v283_v34  ;;  %v302_v34 = vpack.c.bf16 %v234_v28, %v232_v27 }
 0x13f   :  { %642 = vmatprep.mubr.bf16.mxu0 %v286_v35 }
 0x146   :  { %643 = vmatmul.mubr.bf16.gmra.mrb[84].mxu0 %v285_v40  ;;  %v233_v40 = vld [vmem:[#allocation2 + $0x3b0] sm:$0xff] }
 0x147   :  { %650 = vmatprep.mubr.bf16.mxu0 %v288_v41 }
 0x14e   :  { %651 = vmatmul.mubr.bf16.gmra.mrb[88].mxu0 %v287_v46 }
 0x14f   :  { %658 = vmatprep.mubr.bf16.mxu0 %v290_v47  ;;  %v301_v47 = vpack.c.bf16 %v233_v40, %v231_v39 }
 0x156   :  { %659 = vmatmul.mubr.bf16.gmra.mrb[92].mxu0 %v289_v52 }
 0x157   :  { %666 = vmatprep.mubr.bf16.mxu0 %v292_v53 }
 0x15e   :  { %667 = vmatmul.mubr.bf16.gmra.mrb[96].mxu0 %v291_v58  ;;  %v242_v58 = vld [vmem:[#allocation2 + $0x3f8] sm:$0xff] }
 0x15f   :  { %674 = vmatprep.mubr.bf16.mxu0 %v294_v59 }
 0x166   :  { %675 = vmatmul.mubr.bf16.gmra.mrb[100].mxu0 %v293_v1  ;;  %v306_v1 = vpack.c.bf16 %v242_v58, %v240_v57 }
 0x167   :  { %682 = vmatprep.mubr.bf16.mxu0 %v296_v2 }
 0x16e   :  { %683 = vmatmul.mubr.bf16.gmra.mrb[104].mxu0 %v295_v7  ;;  %v241_v7 = vld [vmem:[#allocation2 + $0x3f0] sm:$0xff] }
 0x16f   :  { %690 = vmatprep.mubr.bf16.mxu0 %v298_v8  ;;  %v305_v13 = vpack.c.bf16 %v241_v7, %v239_v6 }
 0x171   :  { %v476_v14 = vpop.f32.mrb[0].mxu0 }
 0x172   :  { %v477_v15 = vadd.f32 %v8008_v9, %v476_v14  ;;  %v478_v16 = vpop.f32.mrb[1].mxu0 }
 0x173   :  { %v479_v18 = vpop.f32.mrb[2].mxu0 }
 0x174   :  { %v480_v20 = vadd.f32 %v8008_v9, %v479_v18  ;;  %v481_v21 = vpop.f32.mrb[3].mxu0  ;;  %v731_v22 = vmax.f32 %v477_v15, 0.0 }
 0x176   :  { %v732_v23 = vmax.f32 %v480_v20, 0.0  ;;  %691 = vmatmul.mubr.bf16.gmra.mrb[108].mxu0 %v297_v17 }
 0x177   :  { %698 = vmatprep.mubr.bf16.mxu0 %v300_v19 }
 0x178   :  { %v8012_v26 = vpack.c.bf16 %v732_v23, %v731_v22 }
 0x179   :  { %v484_v29 = vpop.f32.mrb[4].mxu0 }
 0x17a   :  { %v485_v30 = vadd.f32 %v8008_v9, %v484_v29  ;;  %v486_v31 = vpop.f32.mrb[5].mxu0 }
 0x17b   :  { %v487_v33 = vpop.f32.mrb[6].mxu0 }
 0x17c   :  { %v488_v35 = vadd.f32 %v8008_v9, %v487_v33  ;;  %v489_v36 = vpop.f32.mrb[7].mxu0  ;;  %v733_v37 = vmax.f32 %v485_v30, 0.0 }
 0x17e   :  { %v734_v38 = vmax.f32 %v488_v35, 0.0  ;;  %699 = vmatmul.mubr.bf16.gmra.mrb[112].mxu0 %v299_v32 }
 0x17f   :  { %706 = vmatprep.mubr.bf16.mxu0 %v302_v34 }
 0x180   :  { %v8016_v41 = vpack.c.bf16 %v734_v38, %v733_v37 }
 0x181   :  { %v492_v44 = vpop.f32.mrb[8].mxu0 }
 0x182   :  { %v493_v45 = vadd.f32 %v8008_v9, %v492_v44  ;;  %v494_v46 = vpop.f32.mrb[9].mxu0 }
 0x183   :  { %v495_v48 = vpop.f32.mrb[10].mxu0 }
 0x184   :  { %v496_v50 = vadd.f32 %v8008_v9, %v495_v48  ;;  %v497_v51 = vpop.f32.mrb[11].mxu0  ;;  %v735_v52 = vmax.f32 %v493_v45, 0.0 }
 0x186   :  { %v736_v53 = vmax.f32 %v496_v50, 0.0  ;;  %707 = vmatmul.mubr.bf16.gmra.mrb[116].mxu0 %v301_v47 }
 0x187   :  { %714 = vmatprep.mubr.bf16.mxu0 %v304_v49 }
 0x188   :  { %v797_v56 = vpack.c.bf16 %v736_v53, %v735_v52 }
 0x189   :  { %v500_v59 = vpop.f32.mrb[12].mxu0 }
 0x18a   :  { %v501_v60 = vadd.f32 %v8008_v9, %v500_v59  ;;  %v502_v61 = vpop.f32.mrb[13].mxu0 }
 0x18b   :  { %v503_v63 = vpop.f32.mrb[14].mxu0 }
 0x18c   :  { %v504_v2 = vadd.f32 %v8008_v9, %v503_v63  ;;  %v505_v3 = vpop.f32.mrb[15].mxu0  ;;  %v737_v4 = vmax.f32 %v501_v60, 0.0 }
 0x18e   :  { %v738_v5 = vmax.f32 %v504_v2, 0.0  ;;  %715 = vmatmul.mubr.bf16.gmra.mrb[120].mxu0 %v303_v62 }
 0x18f   :  { %722 = vmatprep.mubr.bf16.mxu0 %v306_v1 }
 0x190   :  { %v798_v8 = vpack.c.bf16 %v738_v5, %v737_v4  ;;  %v6628_v4 = vld [vmem:[%s12672_s9 + $0x10] sm:$0xff]  }
 0x191   :  { %v508_v10 = vpop.f32.mrb[16].mxu0 }
 0x192   :  { %v509_v11 = vadd.f32 %v8008_v9, %v508_v10  ;;  %v510_v12 = vpop.f32.mrb[17].mxu0 }
 0x193   :  { %v511_v14 = vpop.f32.mrb[18].mxu0 }
 0x194   :  { %v512_v15 = vadd.f32 %v8008_v9, %v511_v14  ;;  %v513_v16 = vpop.f32.mrb[19].mxu0  ;;  %v739_v17 = vmax.f32 %v509_v11, 0.0 }
 0x196   :  { %v740_v18 = vmax.f32 %v512_v15, 0.0  ;;  %723 = vmatmul.mubr.bf16.gmra.mrb[124].mxu0 %v305_v13 }
 0x197   :  { %967 = vmatprep.mubr.bf16.mxu0 %v12680_v0 }
 0x198   :  { %v799_v19 = vpack.c.bf16 %v740_v18, %v739_v17 }
 0x199   :  { %v516_v20 = vpop.f32.mrb[20].mxu0 }
 0x19a   :  { %v517_v21 = vadd.f32 %v8008_v9, %v516_v20  ;;  %v518_v22 = vpop.f32.mrb[21].mxu0 }
 0x19b   :  { %v519_v23 = vpop.f32.mrb[22].mxu0 }
 0x19c   :  { %v520_v24 = vadd.f32 %v8008_v9, %v519_v23  ;;  %v521_v25 = vpop.f32.mrb[23].mxu0  ;;  %v741_v27 = vmax.f32 %v517_v21, 0.0 }
 0x19e   :  { %v742_v28 = vmax.f32 %v520_v24, 0.0  ;;  %968 = vmatmul.mubr.bf16.vlgmr.msra.gmra.mrb[128].mxu0 %v8012_v26  ;;  %v6626_v26 = vld [vmem:[%s12672_s9] sm:$0xff]   ;;  %v6629_v24 = vld [vmem:[%s12672_s9 + $0x18] sm:$0xff]  }
 0x19f   :  { %977 = vmatprep.mubr.bf16.mxu0 %v12680_v0  ;;  %6468 = vmatprep.subr.bf16.mxu0 %v6626_v26 }
 0x1a0   :  { %v800_v29 = vpack.c.bf16 %v742_v28, %v741_v27  ;;  %6469 = vmatpush3.bf16.msra.mxu0 %v6626_v26 }
 0x1a1   :  { %v524_v30 = vpop.f32.mrb[24].mxu0  ;;  %6470 = vmatprep.subr.bf16.mxu0 %v6627_v54 }
 0x1a2   :  { %v525_v31 = vadd.f32 %v8008_v9, %v524_v30  ;;  %v526_v32 = vpop.f32.mrb[25].mxu0 }
 0x1a3   :  { %v527_v33 = vpop.f32.mrb[26].mxu0 }
 0x1a4   :  { %v528_v34 = vadd.f32 %v8008_v9, %v527_v33  ;;  %v529_v35 = vpop.f32.mrb[27].mxu0  ;;  %v743_v36 = vmax.f32 %v525_v31, 0.0  ;;  %6471 = vmatpush3.bf16.msra.mxu0 %v6627_v54 }
 0x1a5   :  { %6472 = vmatprep.subr.bf16.mxu0 %v6628_v4 }
 0x1a6   :  { %v744_v37 = vmax.f32 %v528_v34, 0.0  ;;  %978 = vmatmul.mubr.bf16.gmra.mrb[132].mxu0 %v8016_v41 }
 0x1a7   :  { %987 = vmatprep.mubr.bf16.mxu0 %v12680_v0 }
 0x1a8   :  { %v801_v38 = vpack.c.bf16 %v744_v37, %v743_v36  ;;  %6473 = vmatpush3.bf16.msra.mxu0 %v6628_v4 }
 0x1a9   :  { %v532_v39 = vpop.f32.mrb[28].mxu0  ;;  %6474 = vmatprep.subr.bf16.mxu0 %v6629_v24 }
 0x1aa   :  { %v533_v40 = vadd.f32 %v8008_v9, %v532_v39  ;;  %v534_v42 = vpop.f32.mrb[29].mxu0 }
 0x1ab   :  { %v535_v43 = vpop.f32.mrb[30].mxu0 }
 0x1ac   :  { %v536_v44 = vadd.f32 %v8008_v9, %v535_v43  ;;  %v537_v45 = vpop.f32.mrb[31].mxu0  ;;  %v745_v46 = vmax.f32 %v533_v40, 0.0  ;;  %6475 = vmatpush3.bf16.msra.mxu0 %v6629_v24 }
 0x1ae   :  { %v746_v47 = vmax.f32 %v536_v44, 0.0  ;;  %988 = vmatmul.mubr.bf16.gmra.mrb[136].mxu0 %v797_v56  ;;  %v6630_v44 = vld [vmem:[%s12672_s9 + $0x20] sm:$0xff]  }
 0x1af   :  { %997 = vmatprep.mubr.bf16.mxu0 %v12680_v0  ;;  %6476 = vmatprep.subr.bf16.mxu0 %v6630_v44 }
 0x1b0   :  { %v802_v41 = vpack.c.bf16 %v746_v47, %v745_v46  ;;  %6477 = vmatpush3.bf16.msra.mxu0 %v6630_v44 }
 0x1b1   :  { %v540_v48 = vpop.f32.mrb[32].mxu0 }
 0x1b2   :  { %v541_v49 = vadd.f32 %v8008_v9, %v540_v48  ;;  %v542_v50 = vpop.f32.mrb[33].mxu0 }
 0x1b3   :  { %v543_v51 = vpop.f32.mrb[34].mxu0  ;;  %v1352_v50 = vld [vmem:[%s12668_s5] sm:$0xff] }
 0x1b4   :  { %v544_v52 = vadd.f32 %v8008_v9, %v543_v51  ;;  %v545_v53 = vpop.f32.mrb[35].mxu0  ;;  %v747_v55 = vmax.f32 %v541_v49, 0.0  ;;  %v1353_v51 = vld [vmem:[%s12668_s5 + $0x8] sm:$0xff] }
 0x1b6   :  { %v748_v57 = vmax.f32 %v544_v52, 0.0  ;;  %998 = vmatmul.mubr.bf16.gmra.mrb[140].mxu0 %v798_v8  ;;  %v6548_v52 = vpack.c.bf16 %v1353_v51, %v1352_v50 }
 0x1b7   :  { %1007 = vmatprep.mubr.bf16.mxu0 %v12680_v0 }
 0x1b8   :  { %v803_v56 = vpack.c.bf16 %v748_v57, %v747_v55  ;;  %6549 = vmatprep.subr.bf16.mxu1 %v6548_v52 }
 0x1b9   :  { %v548_v58 = vpop.f32.mrb[36].mxu0 }
 0x1ba   :  { %v549_v59 = vadd.f32 %v8008_v9, %v548_v58  ;;  %v550_v60 = vpop.f32.mrb[37].mxu0 }
 0x1bb   :  { %v551_v61 = vpop.f32.mrb[38].mxu0 }
 0x1bc   :  { %v552_v62 = vadd.f32 %v8008_v9, %v551_v61  ;;  %v553_v63 = vpop.f32.mrb[39].mxu0  ;;  %v749_v1 = vmax.f32 %v549_v59, 0.0 }
 0x1be   :  { %v750_v2 = vmax.f32 %v552_v62, 0.0  ;;  %1008 = vmatmul.mubr.bf16.gmra.mrb[144].mxu0 %v799_v19  ;;  %v6631_v62 = vld [vmem:[%s12672_s9 + $0x28] sm:$0xff]  }
 0x1bf   :  { %1017 = vmatprep.mubr.bf16.mxu0 %v12680_v0  ;;  %6478 = vmatprep.subr.bf16.mxu0 %v6631_v62 }
 0x1c0   :  { %v8048_v3 = vpack.c.bf16 %v750_v2, %v749_v1  ;;  %6479 = vmatpush3.bf16.msra.mxu0 %v6631_v62 }
 0x1c1   :  { %v556_v5 = vpop.f32.mrb[40].mxu0 }
 0x1c2   :  { %v557_v6 = vadd.f32 %v8008_v9, %v556_v5  ;;  %v558_v7 = vpop.f32.mrb[41].mxu0 }
 0x1c3   :  { %v559_v8 = vpop.f32.mrb[42].mxu0 }
 0x1c4   :  { %v560_v10 = vadd.f32 %v8008_v9, %v559_v8  ;;  %v561_v11 = vpop.f32.mrb[43].mxu0  ;;  %v751_v12 = vmax.f32 %v557_v6, 0.0 }
 0x1c6   :  { %v752_v13 = vmax.f32 %v560_v10, 0.0  ;;  %1018 = vmatmul.mubr.bf16.gmra.mrb[148].mxu0 %v800_v29 }
 0x1c7   :  { %1027 = vmatprep.mubr.bf16.mxu0 %v12680_v0 }
 0x1c8   :  { %v8056_v14 = vpack.c.bf16 %v752_v13, %v751_v12 }
 0x1c9   :  { %v564_v15 = vpop.f32.mrb[44].mxu0 }
 0x1ca   :  { %v565_v16 = vadd.f32 %v8008_v9, %v564_v15  ;;  %v566_v17 = vpop.f32.mrb[45].mxu0 }
 0x1cb   :  { %v567_v18 = vpop.f32.mrb[46].mxu0  ;;  %v6632_v17 = vld [vmem:[%s12672_s9 + $0x30] sm:$0xff]  }
 0x1cc   :  { %v568_v19 = vadd.f32 %v8008_v9, %v567_v18  ;;  %v569_v20 = vpop.f32.mrb[47].mxu0  ;;  %v753_v21 = vmax.f32 %v565_v16, 0.0  ;;  %6480 = vmatprep.subr.bf16.mxu0 %v6632_v17 }
 0x1cd   :  { %6481 = vmatpush3.bf16.msra.mxu0 %v6632_v17 }
 0x1ce   :  { %v754_v22 = vmax.f32 %v568_v19, 0.0  ;;  %1028 = vmatmul.mubr.bf16.gmra.mrb[152].mxu0 %v801_v38 }
 0x1cf   :  { %1037 = vmatprep.mubr.bf16.mxu0 %v12680_v0 }
 0x1d0   :  { %v8061_v23 = vpack.c.bf16 %v754_v22, %v753_v21 }
 0x1d1   :  { %v572_v25 = vpop.f32.mrb[48].mxu0 }
 0x1d2   :  { %v573_v27 = vadd.f32 %v8008_v9, %v572_v25  ;;  %v574_v28 = vpop.f32.mrb[49].mxu0 }
 0x1d3   :  { %v575_v29 = vpop.f32.mrb[50].mxu0 }
 0x1d4   :  { %v576_v30 = vadd.f32 %v8008_v9, %v575_v29  ;;  %v577_v31 = vpop.f32.mrb[51].mxu0  ;;  %v755_v32 = vmax.f32 %v573_v27, 0.0 }
 0x1d6   :  { %v756_v33 = vmax.f32 %v576_v30, 0.0  ;;  %1038 = vmatmul.mubr.bf16.gmra.mrb[156].mxu0 %v802_v41 }
 0x1d7   :  { %1047 = vmatprep.mubr.bf16.mxu0 %v12680_v0 }
 0x1d8   :  { %v8069_v34 = vpack.c.bf16 %v756_v33, %v755_v32 }
 0x1d9   :  { %v580_v35 = vpop.f32.mrb[52].mxu0 }
 0x1da   :  { %v581_v36 = vadd.f32 %v8008_v9, %v580_v35  ;;  %v582_v37 = vpop.f32.mrb[53].mxu0 }
 0x1db   :  { %v583_v38 = vpop.f32.mrb[54].mxu0 }
 0x1dc   :  { %v584_v26 = vadd.f32 %v8008_v9, %v583_v38  ;;  %v585_v39 = vpop.f32.mrb[55].mxu0  ;;  %v757_v40 = vmax.f32 %v581_v36, 0.0 }
 0x1de   :  { %v758_v42 = vmax.f32 %v584_v26, 0.0  ;;  %1048 = vmatmul.mubr.bf16.gmra.mrb[160].mxu0 %v803_v56 }
 0x1df   :  { %1057 = vmatprep.mubr.bf16.mxu0 %v12680_v0 }
 0x1e0   :  { %v8074_v43 = vpack.c.bf16 %v758_v42, %v757_v40  ;;  %v6633_v40 = vld [vmem:[%s12672_s9 + $0x38] sm:$0xff]  }
 0x1e1   :  { %v588_v45 = vpop.f32.mrb[56].mxu0  ;;  %6482 = vmatprep.subr.bf16.mxu0 %v6633_v40 }
 0x1e2   :  { %v589_v46 = vadd.f32 %v8008_v9, %v588_v45  ;;  %v590_v47 = vpop.f32.mrb[57].mxu0  ;;  %6483 = vmatpush3.bf16.msra.mxu0 %v6633_v40 }
 0x1e3   :  { %v591_v41 = vpop.f32.mrb[58].mxu0 }
 0x1e4   :  { %v592_v48 = vadd.f32 %v8008_v9, %v591_v41  ;;  %v593_v49 = vpop.f32.mrb[59].mxu0  ;;  %v759_v53 = vmax.f32 %v589_v46, 0.0 }
 0x1e6   :  { %v760_v54 = vmax.f32 %v592_v48, 0.0  ;;  %1058 = vmatmul.mubr.bf16.gmra.mrb[164].mxu0 %v8048_v3 }
 0x1e7   :  { %1067 = vmatprep.mubr.bf16.mxu0 %v12680_v0 }
 0x1e8   :  { %v809_v55 = vpack.c.bf16 %v760_v54, %v759_v53 }
 0x1e9   :  { %v596_v57 = vpop.f32.mrb[60].mxu0 }
 0x1ea   :  { %v597_v56 = vadd.f32 %v8008_v9, %v596_v57  ;;  %v598_v58 = vpop.f32.mrb[61].mxu0  ;;  %1108 = vmatmul.mubr.bf16.vlgmr.msra.gmra.mrb[0].mxu1 %v809_v55 }
 0x1eb   :  { %v599_v59 = vpop.f32.mrb[62].mxu0  ;;  %1117 = vmatprep.mubr.bf16.mxu1 %v12680_v0  ;;  %6551 = vmatpush3.bf16.msra.mxu1 %v6548_v52 }
 0x1ec   :  { %v600_v60 = vadd.f32 %v8008_v9, %v599_v59  ;;  %v601_v61 = vpop.f32.mrb[63].mxu0  ;;  %v761_v63 = vmax.f32 %v597_v56, 0.0 }
 0x1ee   :  { %v762_v1 = vmax.f32 %v600_v60, 0.0  ;;  %1068 = vmatmul.mubr.bf16.gmra.mrb[168].mxu0 %v8056_v14 }
 0x1ef   :  { %1077 = vmatprep.mubr.bf16.mxu0 %v12680_v0 }
 0x1f0   :  { %v810_v2 = vpack.c.bf16 %v762_v1, %v761_v63 }
 0x1f1   :  { %v604_v3 = vpop.f32.mrb[64].mxu0 }
 0x1f2   :  { %v605_v4 = vadd.f32 %v8008_v9, %v604_v3  ;;  %v606_v5 = vpop.f32.mrb[65].mxu0  ;;  %1118 = vmatmul.mubr.bf16.gmra.mrb[4].mxu1 %v810_v2 }
 0x1f3   :  { %v607_v6 = vpop.f32.mrb[66].mxu0  ;;  %1127 = vmatprep.mubr.bf16.mxu1 %v12680_v0 }
 0x1f4   :  { %v608_v7 = vadd.f32 %v8008_v9, %v607_v6  ;;  %v609_v8 = vpop.f32.mrb[67].mxu0  ;;  %v763_v10 = vmax.f32 %v605_v4, 0.0 }
 0x1f6   :  { %v764_v11 = vmax.f32 %v608_v7, 0.0  ;;  %1078 = vmatmul.mubr.bf16.gmra.mrb[172].mxu0 %v8061_v23 }
 0x1f7   :  { %1087 = vmatprep.mubr.bf16.mxu0 %v12680_v0 }
 0x1f8   :  { %v811_v12 = vpack.c.bf16 %v764_v11, %v763_v10 }
 0x1f9   :  { %v612_v13 = vpop.f32.mrb[68].mxu0 }
 0x1fa   :  { %v613_v14 = vadd.f32 %v8008_v9, %v612_v13  ;;  %v614_v15 = vpop.f32.mrb[69].mxu0  ;;  %1128 = vmatmul.mubr.bf16.gmra.mrb[8].mxu1 %v811_v12 }
 0x1fb   :  { %v615_v16 = vpop.f32.mrb[70].mxu0  ;;  %1137 = vmatprep.mubr.bf16.mxu1 %v12680_v0 }
 0x1fc   :  { %v616_v18 = vadd.f32 %v8008_v9, %v615_v16  ;;  %v617_v19 = vpop.f32.mrb[71].mxu0  ;;  %v765_v20 = vmax.f32 %v613_v14, 0.0 }
 0x1fe   :  { %v766_v21 = vmax.f32 %v616_v18, 0.0  ;;  %1088 = vmatmul.mubr.bf16.gmra.mrb[176].mxu0 %v8069_v34 }
 0x1ff   :  { %1097 = vmatprep.mubr.bf16.mxu0 %v12680_v0 }
 0x200   :  { %v812_v22 = vpack.c.bf16 %v766_v21, %v765_v20 }
 0x201   :  { %v620_v23 = vpop.f32.mrb[72].mxu0 }
 0x202   :  { %v621_v24 = vadd.f32 %v8008_v9, %v620_v23  ;;  %v622_v25 = vpop.f32.mrb[73].mxu0  ;;  %1138 = vmatmul.mubr.bf16.gmra.mrb[12].mxu1 %v812_v22 }
 0x203   :  { %v623_v27 = vpop.f32.mrb[74].mxu0  ;;  %1147 = vmatprep.mubr.bf16.mxu1 %v12680_v0 }
 0x204   :  { %v624_v28 = vadd.f32 %v8008_v9, %v623_v27  ;;  %v625_v29 = vpop.f32.mrb[75].mxu0  ;;  %v767_v30 = vmax.f32 %v621_v24, 0.0 }
 0x206   :  { %v768_v31 = vmax.f32 %v624_v28, 0.0  ;;  %1098 = vmatmul.mubr.bf16.gmra.mrb[180].mxu0 %v8074_v43 }
 0x208   :  { %v813_v32 = vpack.c.bf16 %v768_v31, %v767_v30 }
 0x209   :  { %v628_v33 = vpop.f32.mrb[76].mxu0 }
 0x20a   :  { %v629_v34 = vadd.f32 %v8008_v9, %v628_v33  ;;  %v630_v35 = vpop.f32.mrb[77].mxu0  ;;  %1148 = vmatmul.mubr.bf16.gmra.mrb[16].mxu1 %v813_v32 }
 0x20b   :  { %v631_v36 = vpop.f32.mrb[78].mxu0  ;;  %1157 = vmatprep.mubr.bf16.mxu1 %v12680_v0 }
 0x20c   :  { %v632_v37 = vadd.f32 %v8008_v9, %v631_v36  ;;  %v633_v38 = vpop.f32.mrb[79].mxu0  ;;  %v769_v26 = vmax.f32 %v629_v34, 0.0 }
 0x20e   :  { %v770_v39 = vmax.f32 %v632_v37, 0.0 }
 0x210   :  { %v814_v42 = vpack.c.bf16 %v770_v39, %v769_v26 }
 0x211   :  { %v636_v43 = vpop.f32.mrb[80].mxu0 }
 0x212   :  { %v637_v44 = vadd.f32 %v8008_v9, %v636_v43  ;;  %v638_v45 = vpop.f32.mrb[81].mxu0  ;;  %1158 = vmatmul.mubr.bf16.gmra.mrb[20].mxu1 %v814_v42 }
 0x213   :  { %v639_v46 = vpop.f32.mrb[82].mxu0  ;;  %1167 = vmatprep.mubr.bf16.mxu1 %v12680_v0 }
 0x214   :  { %v640_v47 = vadd.f32 %v8008_v9, %v639_v46  ;;  %v641_v41 = vpop.f32.mrb[83].mxu0  ;;  %v771_v48 = vmax.f32 %v637_v44, 0.0 }
 0x216   :  { %v772_v49 = vmax.f32 %v640_v47, 0.0 }
 0x218   :  { %v815_v50 = vpack.c.bf16 %v772_v49, %v771_v48 }
 0x219   :  { %v644_v51 = vpop.f32.mrb[84].mxu0 }
 0x21a   :  { %v645_v52 = vadd.f32 %v8008_v9, %v644_v51  ;;  %v646_v53 = vpop.f32.mrb[85].mxu0  ;;  %1168 = vmatmul.mubr.bf16.gmra.mrb[24].mxu1 %v815_v50 }
 0x21b   :  { %v647_v54 = vpop.f32.mrb[86].mxu0  ;;  %1177 = vmatprep.mubr.bf16.mxu1 %v12680_v0 }
 0x21c   :  { %v648_v55 = vadd.f32 %v8008_v9, %v647_v54  ;;  %v649_v57 = vpop.f32.mrb[87].mxu0  ;;  %v773_v56 = vmax.f32 %v645_v52, 0.0 }
 0x21e   :  { %v774_v58 = vmax.f32 %v648_v55, 0.0 }
 0x220   :  { %v816_v59 = vpack.c.bf16 %v774_v58, %v773_v56 }
 0x221   :  { %v652_v60 = vpop.f32.mrb[88].mxu0 }
 0x222   :  { %v653_v61 = vadd.f32 %v8008_v9, %v652_v60  ;;  %v654_v62 = vpop.f32.mrb[89].mxu0  ;;  %1178 = vmatmul.mubr.bf16.gmra.mrb[28].mxu1 %v816_v59 }
 0x223   :  { %v655_v63 = vpop.f32.mrb[90].mxu0  ;;  %1187 = vmatprep.mubr.bf16.mxu1 %v12680_v0 }
 0x224   :  { %v656_v1 = vadd.f32 %v8008_v9, %v655_v63  ;;  %v657_v2 = vpop.f32.mrb[91].mxu0  ;;  %v775_v3 = vmax.f32 %v653_v61, 0.0 }
 0x226   :  { %v776_v4 = vmax.f32 %v656_v1, 0.0 }
 0x228   :  { %v817_v5 = vpack.c.bf16 %v776_v4, %v775_v3 }
 0x229   :  { %v660_v6 = vpop.f32.mrb[92].mxu0 }
 0x22a   :  { %v661_v7 = vadd.f32 %v8008_v9, %v660_v6  ;;  %v662_v8 = vpop.f32.mrb[93].mxu0  ;;  %1188 = vmatmul.mubr.bf16.gmra.mrb[32].mxu1 %v817_v5 }
 0x22b   :  { %v663_v10 = vpop.f32.mrb[94].mxu0  ;;  %1197 = vmatprep.mubr.bf16.mxu1 %v12680_v0 }
 0x22c   :  { %v664_v11 = vadd.f32 %v8008_v9, %v663_v10  ;;  %v665_v12 = vpop.f32.mrb[95].mxu0  ;;  %v777_v13 = vmax.f32 %v661_v7, 0.0 }
 0x22d   :  { %v845_v12 = vlaneseq }
 0x22e   :  { %v778_v14 = vmax.f32 %v664_v11, 0.0 }
 0x230   :  { %v818_v15 = vpack.c.bf16 %v778_v14, %v777_v13 }
 0x231   :  { %v668_v16 = vpop.f32.mrb[96].mxu0 }
 0x232   :  { %v669_v17 = vadd.f32 %v8008_v9, %v668_v16  ;;  %v670_v18 = vpop.f32.mrb[97].mxu0  ;;  %1198 = vmatmul.mubr.bf16.gmra.mrb[36].mxu1 %v818_v15 }
 0x233   :  { %v671_v19 = vpop.f32.mrb[98].mxu0  ;;  %1207 = vmatprep.mubr.bf16.mxu1 %v12680_v0 }
 0x234   :  { %v672_v20 = vadd.f32 %v8008_v9, %v671_v19  ;;  %v673_v21 = vpop.f32.mrb[99].mxu0  ;;  %v779_v22 = vmax.f32 %v669_v17, 0.0  ;;  %v8153_v17 = vshrl.u32 %v845_v12, 7 }
 0x236   :  { %v780_v23 = vmax.f32 %v672_v20, 0.0  ;;  %12865 = vst [vmem:[#allocation19_spill] sm:$0xff] %v8153_v17 }
 0x238   :  { %v819_v24 = vpack.c.bf16 %v780_v23, %v779_v22  ;;  %v12678_v23 = vsub.s32 1, %v8153_v17 }
 0x239   :  { %v676_v25 = vpop.f32.mrb[100].mxu0 }
 0x23a   :  { %v677_v27 = vadd.f32 %v8008_v9, %v676_v25  ;;  %v678_v28 = vpop.f32.mrb[101].mxu0  ;;  %1208 = vmatmul.mubr.bf16.gmra.mrb[40].mxu1 %v819_v24 }
 0x23b   :  { %v679_v29 = vpop.f32.mrb[102].mxu0  ;;  %1217 = vmatprep.mubr.bf16.mxu1 %v12680_v0 }
 0x23c   :  { %v680_v30 = vadd.f32 %v8008_v9, %v679_v29  ;;  %v681_v31 = vpop.f32.mrb[103].mxu0  ;;  %v781_v32 = vmax.f32 %v677_v27, 0.0  ;;  %v843_v27 = vld [vmem:[%s12671_s8] sm:$0x3] }
 0x23e   :  { %v782_v33 = vmax.f32 %v680_v30, 0.0  ;;  %v8164_v30 = vrot.slane %v843_v27, %v12678_v23 }
 0x240   :  { %v820_v34 = vpack.c.bf16 %v782_v33, %v781_v32  ;;  %v1288_v32 = vld [vmem:[%s12664_s1] sm:$0xff] }
 0x241   :  { %v684_v35 = vpop.f32.mrb[104].mxu0 }
 0x242   :  { %v685_v36 = vadd.f32 %v8008_v9, %v684_v35  ;;  %v686_v37 = vpop.f32.mrb[105].mxu0  ;;  %1218 = vmatmul.mubr.bf16.gmra.mrb[44].mxu1 %v820_v34 }
 0x243   :  { %v687_v38 = vpop.f32.mrb[106].mxu0  ;;  %1227 = vmatprep.mubr.bf16.mxu1 %v12680_v0 }
 0x244   :  { %v688_v26 = vadd.f32 %v8008_v9, %v687_v38  ;;  %v689_v39 = vpop.f32.mrb[107].mxu0  ;;  %v783_v40 = vmax.f32 %v685_v36, 0.0 }
 0x246   :  { %v784_v42 = vmax.f32 %v688_v26, 0.0 }
 0x248   :  { %v821_v43 = vpack.c.bf16 %v784_v42, %v783_v40  ;;  %v1289_v40 = vld [vmem:[%s12664_s1 + $0x8] sm:$0xff] }
 0x249   :  { %v692_v44 = vpop.f32.mrb[108].mxu0  ;;  %v6634_v42 = vld [vmem:[#allocation11] ss:$8 sps:$4 sm:$0xff]  }
 0x24a   :  { %v693_v45 = vadd.f32 %v8008_v9, %v692_v44  ;;  %v694_v46 = vpop.f32.mrb[109].mxu0  ;;  %1228 = vmatmul.mubr.bf16.gmra.mrb[48].mxu1 %v821_v43  ;;  %v1290_v43 = vld [vmem:[%s12664_s1 + $0x10] sm:$0xff] }
 0x24b   :  { %v695_v47 = vpop.f32.mrb[110].mxu0  ;;  %1237 = vmatprep.mubr.bf16.mxu1 %v12680_v0  ;;  %v6636_v44 = vld [vmem:[#allocation11 + $0x4] ss:$8 sps:$4 sm:$0xff]  }
 0x24c   :  { %v696_v41 = vadd.f32 %v8008_v9, %v695_v47  ;;  %v697_v48 = vpop.f32.mrb[111].mxu0  ;;  %v785_v49 = vmax.f32 %v693_v45, 0.0  ;;  %2919 = vmatprep.subr.bf16.mxu1 %v6636_v44 }
 0x24e   :  { %v786_v50 = vmax.f32 %v696_v41, 0.0 }
 0x250   :  { %v822_v51 = vpack.c.bf16 %v786_v50, %v785_v49  ;;  %v1291_v49 = vld [vmem:[%s12664_s1 + $0x18] sm:$0xff] }
 0x251   :  { %v700_v52 = vpop.f32.mrb[112].mxu0 }
 0x252   :  { %v701_v53 = vadd.f32 %v8008_v9, %v700_v52  ;;  %v702_v54 = vpop.f32.mrb[113].mxu0  ;;  %1238 = vmatmul.mubr.bf16.gmra.mrb[52].mxu1 %v822_v51  ;;  %v1292_v51 = vld [vmem:[%s12664_s1 + $0x20] sm:$0xff] }
 0x253   :  { %v703_v55 = vpop.f32.mrb[114].mxu0  ;;  %1247 = vmatprep.mubr.bf16.mxu1 %v12680_v0  ;;  %v12679_v54 = vsub.s32 0, %v8153_v17  ;;  %v6646_v17 = vld [vmem:[#allocation11 + $0x40] ss:$8 sps:$4 sm:$0xff]  }
 0x254   :  { %v704_v57 = vadd.f32 %v8008_v9, %v703_v55  ;;  %v705_v56 = vpop.f32.mrb[115].mxu0  ;;  %v787_v58 = vmax.f32 %v701_v53, 0.0 }
 0x255   :  { %v1293_v56 = vld [vmem:[%s12664_s1 + $0x28] sm:$0xff] }
 0x256   :  { %v788_v59 = vmax.f32 %v704_v57, 0.0 }
 0x258   :  { %v823_v60 = vpack.c.bf16 %v788_v59, %v787_v58  ;;  %v1294_v58 = vld [vmem:[%s12664_s1 + $0x30] sm:$0xff] }
 0x259   :  { %v708_v61 = vpop.f32.mrb[116].mxu0 }
 0x25a   :  { %v709_v62 = vadd.f32 %v8008_v9, %v708_v61  ;;  %v710_v63 = vpop.f32.mrb[117].mxu0  ;;  %1248 = vmatmul.mubr.bf16.gmra.mrb[56].mxu1 %v823_v60  ;;  %v2131_v61 = vld [vmem:[%s12665_s2] sm:$0xff] }
 0x25b   :  { %v711_v1 = vpop.f32.mrb[118].mxu0  ;;  %1257 = vmatprep.mubr.bf16.mxu1 %v12680_v0 }
 0x25c   :  { %v712_v2 = vadd.f32 %v8008_v9, %v711_v1  ;;  %v713_v3 = vpop.f32.mrb[119].mxu0  ;;  %v789_v4 = vmax.f32 %v709_v62, 0.0  ;;  %v8220_v62 = vrot.slane %v843_v27, %v12679_v54  ;;  %v2133_v27 = vld [vmem:[%s12665_s2 + $0x10] sm:$0xff] }
 0x25e   :  { %v790_v5 = vmax.f32 %v712_v2, 0.0 }
 0x260   :  { %v824_v6 = vpack.c.bf16 %v790_v5, %v789_v4  ;;  %v1295_v4 = vld [vmem:[%s12664_s1 + $0x38] sm:$0xff]  ;;  %v2132_v5 = vld [vmem:[%s12665_s2 + $0x8] sm:$0xff] }
 0x261   :  { %v716_v7 = vpop.f32.mrb[120].mxu0 }
 0x262   :  { %v717_v8 = vadd.f32 %v8008_v9, %v716_v7  ;;  %v718_v10 = vpop.f32.mrb[121].mxu0  ;;  %1258 = vmatmul.mubr.bf16.gmra.mrb[60].mxu1 %v824_v6  ;;  %v1296_v7 = vld [vmem:[%s12664_s1 + $0x40] sm:$0xff] }
 0x263   :  { %v719_v11 = vpop.f32.mrb[122].mxu0  ;;  %1267 = vmatprep.mubr.bf16.mxu1 %v12680_v0 }
 0x264   :  { %v720_v13 = vadd.f32 %v8008_v9, %v719_v11  ;;  %v721_v14 = vpop.f32.mrb[123].mxu0  ;;  %v791_v15 = vmax.f32 %v717_v8, 0.0 }
 0x266   :  { %v792_v16 = vmax.f32 %v720_v13, 0.0 }
 0x268   :  { %v825_v18 = vpack.c.bf16 %v792_v16, %v791_v15 }
 0x269   :  { %v724_v19 = vpop.f32.mrb[124].mxu0 }
 0x26a   :  { %v725_v20 = vadd.f32 %v8008_v9, %v724_v19  ;;  %v726_v21 = vpop.f32.mrb[125].mxu0  ;;  %1268 = vmatmul.mubr.bf16.gmra.mrb[64].mxu1 %v825_v18  ;;  %v1297_v19 = vld [vmem:[%s12664_s1 + $0x48] sm:$0xff] }
 0x26b   :  { %v727_v22 = vpop.f32.mrb[126].mxu0  ;;  %1277 = vmatprep.mubr.bf16.mxu1 %v12680_v0 }
 0x26c   :  { %v728_v24 = vadd.f32 %v8008_v9, %v727_v22  ;;  %v729_v25 = vpop.f32.mrb[127].mxu0  ;;  %v793_v28 = vmax.f32 %v725_v20, 0.0  ;;  %v6637_v20 = vld [vmem:[#allocation11 + $0x10] ss:$8 sps:$4 sm:$0xff]  }
 0x26d   :  { %v6639_v25 = vld [vmem:[#allocation11 + $0x14] ss:$8 sps:$4 sm:$0xff]  }
 0x26e   :  { %v794_v29 = vmax.f32 %v728_v24, 0.0  ;;  %v1298_v24 = vld [vmem:[%s12664_s1 + $0x50] sm:$0xff] }
 0x270   :  { %v826_v31 = vpack.c.bf16 %v794_v29, %v793_v28 }
 0x271   :  { %v969_v33 = vpop.f32.mrb[128].mxu0 }
 0x272   :  { %v971_v34 = vpop.f32.mrb[129].mxu0  ;;  %1278 = vmatmul.mubr.bf16.gmra.mrb[68].mxu1 %v826_v31  ;;  %v8248_v13 = vadd.f32 %v969_v33, %v8220_v62 }
 0x273   :  { %v8170_v9 = vadd.f32 %v971_v34, %v8164_v30  ;;  %v973_v35 = vpop.f32.mrb[130].mxu0  ;;  %6372 = vmatprep.mubr.msk.f32.mxu1 %vm1361_vm0, %v1288_v32  ;;  %v2134_v34 = vld [vmem:[%s12665_s2 + $0x18] sm:$0xff] }
 0x274   :  { %v975_v36 = vpop.f32.mrb[131].mxu0  ;;  %12868 = vst [vmem:[#allocation22_spill] sm:$0xff] %v8248_v13  ;;  %v8251_v14 = vadd.f32 %v973_v35, %v8220_v62 }
 0x275   :  { %12866 = vst [vmem:[#allocation20_spill] sm:$0xff] %v8170_v9  ;;  %v1939_v37 = vmul.f32 0.5, %v8170_v9  ;;  %v8175_v38 = vadd.f32 %v975_v36, %v8164_v30 }
 0x276   :  { %12869 = vst [vmem:[#allocation23_spill] sm:$0xff] %v8251_v14 }
 0x277   :  { %v2003_v26 = vmul.f32 1.442695, %v1939_v37  ;;  %v1940_v39 = vmul.f32 0.5, %v8175_v38  ;;  %v1299_v37 = vld [vmem:[%s12664_s1 + $0x58] sm:$0xff] }
 0x279   :  { %6658 = vpow2.f32 %v2003_v26  ;;  %v2005_v45 = vmul.f32 1.442695, %v1940_v39  ;;  %v8184_v46 = vpop.f32.mrb[132].mxu0 }
 0x27a   :  { %v981_v47 = vpop.f32.mrb[133].mxu0  ;;  %6373 = vmatmul.mubr.msk.f32.vlgmr.msra.gmra.mrb[72].mxu1 %vm1361_vm0, %v1289_v40  ;;  %v1300_v40 = vld [vmem:[%s12664_s1 + $0x60] sm:$0xff] }
 0x27b   :  { %6660 = vpow2.f32 %v2005_v45  ;;  %v8188_v41 = vadd.f32 %v981_v47, %v8164_v30  ;;  %v8190_v48 = vpop.f32.mrb[134].mxu0  ;;  %6375 = vmatprep.mubr.msk.f32.mxu1 %vm1361_vm0, %v1290_v43  ;;  %2920 = vmatpush1.bf16.msra.mxu1 %v6634_v42  ;;  %v8297_v45 = vadd.f32 %v8184_v46, %v8220_v62 }
 0x27c   :  { %v985_v50 = vpop.f32.mrb[135].mxu0  ;;  %2921 = vmatprep.subr.bf16.mxu1 %v6639_v25  ;;  %v8301_v47 = vadd.f32 %v8190_v48, %v8220_v62  ;;  %v1302_v48 = vld [vmem:[%s12664_s1 + $0x70] sm:$0xff] }
 0x27d   :  { %v1941_v52 = vmul.f32 0.5, %v8188_v41  ;;  %v8201_v53 = vadd.f32 %v985_v50, %v8164_v30  ;;  %12872 = vst [vmem:[#allocation26_spill] sm:$0xff] %v8297_v45 }
 0x27e   :  { %6376 = vmatmul.mubr.msk.f32.gmra.mrb[74].mxu1 %vm1361_vm0, %v1291_v49  ;;  %12873 = vst [vmem:[#allocation27_spill] sm:$0xff] %v8301_v47 }
 0x27f   :  { %v2007_v55 = vmul.f32 1.442695, %v1941_v52  ;;  %v1942_v57 = vmul.f32 0.5, %v8201_v53  ;;  %6378 = vmatprep.mubr.msk.f32.mxu1 %vm1361_vm0, %v1292_v51  ;;  %2922 = vmatpush1.bf16.msra.mxu1 %v6637_v20  ;;  %v1301_v52 = vld [vmem:[%s12664_s1 + $0x68] sm:$0xff] }
 0x281   :  { %6662 = vpow2.f32 %v2007_v55  ;;  %v2009_v59 = vmul.f32 1.442695, %v1942_v57  ;;  %v8213_v60 = vpop.f32.mrb[136].mxu0 }
 0x282   :  { %v991_v63 = vpop.f32.mrb[137].mxu0  ;;  %6379 = vmatmul.mubr.msk.f32.gmra.mrb[76].mxu1 %vm1361_vm0, %v1293_v56  ;;  %v8347_v20 = vadd.f32 %v8213_v60, %v8220_v62 }
 0x283   :  { %v8223_v1 = vpop.eup %6658  ;;  %6664 = vpow2.f32 %v2009_v59  ;;  %v8226_v2 = vadd.f32 %v991_v63, %v8164_v30  ;;  %v8228_v3 = vpop.f32.mrb[138].mxu0  ;;  %6381 = vmatprep.mubr.msk.f32.mxu1 %vm1361_vm0, %v1294_v58  ;;  %v2135_v58 = vld [vmem:[%s12665_s2 + $0x20] sm:$0xff] }
 0x284   :  { %v995_v6 = vpop.f32.mrb[139].mxu0  ;;  %v2195_v8 = vmul.f32 %v8223_v1, %v2131_v61  ;;  %12876 = vst [vmem:[#allocation30_spill] sm:$0xff] %v8347_v20 }
 0x285   :  { %12867 = vst [vmem:[#allocation21_spill] sm:$0xff] %v8226_v2  ;;  %v8241_v10 = vpop.eup %6660  ;;  %v1943_v11 = vmul.f32 0.5, %v8226_v2  ;;  %v8245_v12 = vadd.f32 %v995_v6, %v8164_v30  ;;  %v1303_v6 = vld [vmem:[%s12664_s1 + $0x78] sm:$0xff] }
 0x286   :  { %6382 = vmatmul.mubr.msk.f32.gmra.mrb[78].mxu1 %vm1361_vm0, %v1295_v4  ;;  %v2196_v15 = vmul.f32 %v8241_v10, %v2132_v5  ;;  %v2259_v21 = vadd.f32 %v2195_v8, %v8248_v13 }
 0x287   :  { %v2011_v16 = vmul.f32 1.442695, %v1943_v11  ;;  %v1944_v18 = vmul.f32 0.5, %v8245_v12  ;;  %6384 = vmatprep.mubr.msk.f32.mxu1 %vm1361_vm0, %v1296_v7  ;;  %v2136_v7 = vld [vmem:[%s12665_s2 + $0x28] sm:$0xff]  ;;  %v1304_v11 = vld [vmem:[%s12664_s1 + $0x80] sm:$0xff] }
 0x288   :  { %v2260_v22 = vadd.f32 %v2196_v15, %v8251_v14 }
 0x289   :  { %6666 = vpow2.f32 %v2011_v16  ;;  %v2013_v28 = vmul.f32 1.442695, %v1944_v18  ;;  %v8268_v29 = vpop.f32.mrb[140].mxu0 }
 0x28a   :  { %v1001_v31 = vpop.f32.mrb[141].mxu0  ;;  %6385 = vmatmul.mubr.msk.f32.gmra.mrb[80].mxu1 %vm1361_vm0, %v1297_v19  ;;  %v2323_v32 = vpack.c.bf16 %v2260_v22, %v2259_v21  ;;  %v8351_v21 = vadd.f32 %v8228_v3, %v8220_v62  ;;  %v1306_v3 = vld [vmem:[%s12664_s1 + $0x90] sm:$0xff] }
 0x28b   :  { %v8271_v33 = vpop.eup %6662  ;;  %6668 = vpow2.f32 %v2013_v28  ;;  %v8277_v35 = vadd.f32 %v1001_v31, %v8164_v30  ;;  %v8279_v36 = vpop.f32.mrb[142].mxu0  ;;  %6387 = vmatprep.mubr.msk.f32.mxu1 %vm1361_vm0, %v1298_v24  ;;  %v6640_v28 = vld [vmem:[#allocation11 + $0x20] ss:$8 sps:$4 sm:$0xff]  }
 0x28c   :  { %v2197_v26 = vmul.f32 %v8271_v33, %v2133_v27  ;;  %v1005_v39 = vpop.f32.mrb[143].mxu0  ;;  %6484 = vmatprep.mubr.bf16.mxu0 %v2323_v32  ;;  %12877 = vst [vmem:[#allocation31_spill] sm:$0xff] %v8351_v21  ;;  %v1305_v27 = vld [vmem:[%s12664_s1 + $0x88] sm:$0xff] }
 0x28d   :  { %12870 = vst [vmem:[#allocation24_spill] sm:$0xff] %v8277_v35  ;;  %v8289_v42 = vpop.eup %6664  ;;  %v1945_v43 = vmul.f32 0.5, %v8277_v35  ;;  %v8293_v44 = vadd.f32 %v1005_v39, %v8164_v30  ;;  %v6642_v32 = vld [vmem:[#allocation11 + $0x24] ss:$8 sps:$4 sm:$0xff]  }
 0x28e   :  { %v2198_v49 = vmul.f32 %v8289_v42, %v2134_v34  ;;  %6388 = vmatmul.mubr.msk.f32.gmra.mrb[82].mxu1 %vm1361_vm0, %v1299_v37  ;;  %v2261_v46 = vadd.f32 %v2197_v26, %v8297_v45  ;;  %v2137_v26 = vld [vmem:[%s12665_s2 + $0x30] sm:$0xff]  ;;  %2923 = vmatprep.subr.bf16.mxu1 %v6642_v32  ;;  %v1311_v32 = vld [vmem:[%s12664_s1 + $0xb8] sm:$0xff] }
 0x28f   :  { %12871 = vst [vmem:[#allocation25_spill] sm:$0xff] %v8293_v44  ;;  %v2015_v50 = vmul.f32 1.442695, %v1945_v43  ;;  %v1946_v51 = vmul.f32 0.5, %v8293_v44  ;;  %6390 = vmatprep.mubr.msk.f32.mxu1 %vm1361_vm0, %v1300_v40  ;;  %2924 = vmatpush1.bf16.msra.mxu1 %v6640_v28 }
 0x290   :  { %v2262_v55 = vadd.f32 %v2198_v49, %v8301_v47 }
 0x291   :  { %6670 = vpow2.f32 %v2015_v50  ;;  %v2017_v57 = vmul.f32 1.442695, %v1946_v51  ;;  %v8315_v56 = vpop.f32.mrb[144].mxu0  ;;  %v1307_v51 = vld [vmem:[%s12664_s1 + $0x98] sm:$0xff] }
 0x292   :  { %v1011_v59 = vpop.f32.mrb[145].mxu0  ;;  %6391 = vmatmul.mubr.msk.f32.gmra.mrb[84].mxu1 %vm1361_vm0, %v1301_v52  ;;  %v2324_v61 = vpack.c.bf16 %v2262_v55, %v2261_v46  ;;  %v2138_v52 = vld [vmem:[%s12665_s2 + $0x38] sm:$0xff]  ;;  %v1308_v55 = vld [vmem:[%s12664_s1 + $0xa0] sm:$0xff] }
 0x293   :  { %v8321_v63 = vpop.eup %6666  ;;  %6672 = vpow2.f32 %v2017_v57  ;;  %v8324_v4 = vadd.f32 %v1011_v59, %v8164_v30  ;;  %v8326_v5 = vpop.f32.mrb[146].mxu0  ;;  %6393 = vmatprep.mubr.msk.f32.mxu1 %vm1361_vm0, %v1302_v48 }
 0x294   :  { %v1015_v8 = vpop.f32.mrb[147].mxu0  ;;  %6485 = vmatmul.mubr.bf16.vlgmr.msra.gmra.mrb[184].mxu0 %v2324_v61  ;;  %v2199_v15 = vmul.f32 %v8321_v63, %v2135_v58  ;;  %v8397_v61 = vadd.f32 %v8268_v29, %v8220_v62 }
 0x295   :  { %12874 = vst [vmem:[#allocation28_spill] sm:$0xff] %v8324_v4  ;;  %v8339_v16 = vpop.eup %6668  ;;  %v1947_v18 = vmul.f32 0.5, %v8324_v4  ;;  %v8343_v19 = vadd.f32 %v1015_v8, %v8164_v30 }
 0x296   :  { %6394 = vmatmul.mubr.msk.f32.gmra.mrb[86].mxu1 %vm1361_vm0, %v1303_v6  ;;  %v2200_v22 = vmul.f32 %v8339_v16, %v2136_v7  ;;  %v2263_v60 = vadd.f32 %v2199_v15, %v8347_v20  ;;  %12880 = vst [vmem:[#allocation34_spill] sm:$0xff] %v8397_v61  ;;  %v8401_v6 = vadd.f32 %v8279_v36, %v8220_v62  ;;  %v1309_v15 = vld [vmem:[%s12664_s1 + $0xa8] sm:$0xff]  ;;  %v1310_v36 = vld [vmem:[%s12664_s1 + $0xb0] sm:$0xff] }
 0x297   :  { %12875 = vst [vmem:[#allocation29_spill] sm:$0xff] %v8343_v19  ;;  %v2019_v24 = vmul.f32 1.442695, %v1947_v18  ;;  %v1948_v25 = vmul.f32 0.5, %v8343_v19  ;;  %6396 = vmatprep.mubr.msk.f32.mxu1 %vm1361_vm0, %v1304_v11 }
 0x298   :  { %v2264_v31 = vadd.f32 %v2200_v22, %v8351_v21  ;;  %12881 = vst [vmem:[#allocation35_spill] sm:$0xff] %v8401_v6 }
 0x299   :  { %6674 = vpow2.f32 %v2019_v24  ;;  %v2021_v34 = vmul.f32 1.442695, %v1948_v25  ;;  %v8365_v37 = vpop.f32.mrb[148].mxu0  ;;  %v2139_v25 = vld [vmem:[%s12665_s2 + $0x40] sm:$0xff] }
 0x29a   :  { %v1021_v39 = vpop.f32.mrb[149].mxu0  ;;  %6397 = vmatmul.mubr.msk.f32.gmra.mrb[88].mxu1 %vm1361_vm0, %v1305_v27  ;;  %v2325_v40 = vpack.c.bf16 %v2264_v31, %v2263_v60 }
 0x29b   :  { %v8371_v43 = vpop.eup %6670  ;;  %6676 = vpow2.f32 %v2021_v34  ;;  %v8374_v49 = vadd.f32 %v1021_v39, %v8164_v30  ;;  %v8376_v50 = vpop.f32.mrb[150].mxu0  ;;  %6399 = vmatprep.mubr.msk.f32.mxu1 %vm1361_vm0, %v1306_v3  ;;  %v2140_v34 = vld [vmem:[%s12665_s2 + $0x48] sm:$0xff]  ;;  %v1312_v39 = vld [vmem:[%s12664_s1 + $0xc0] sm:$0xff] }
 0x29c   :  { %v1025_v46 = vpop.f32.mrb[151].mxu0  ;;  %6488 = vmatprep.mubr.bf16.mxu0 %v2325_v40  ;;  %v2201_v48 = vmul.f32 %v8371_v43, %v2137_v26 }
 0x29d   :  { %12878 = vst [vmem:[#allocation32_spill] sm:$0xff] %v8374_v49  ;;  %v8389_v57 = vpop.eup %6672  ;;  %v1949_v58 = vmul.f32 0.5, %v8374_v49  ;;  %v8393_v59 = vadd.f32 %v1025_v46, %v8164_v30 }
 0x29e   :  { %6400 = vmatmul.mubr.msk.f32.gmra.mrb[90].mxu1 %vm1361_vm0, %v1307_v51  ;;  %v2202_v7 = vmul.f32 %v8389_v57, %v2138_v52  ;;  %v2265_v29 = vadd.f32 %v2201_v48, %v8397_v61  ;;  %v8451_v48 = vadd.f32 %v8326_v5, %v8220_v62  ;;  %v1314_v5 = vld [vmem:[%s12664_s1 + $0xd0] sm:$0xff] }
 0x29f   :  { %12879 = vst [vmem:[#allocation33_spill] sm:$0xff] %v8393_v59  ;;  %v2023_v8 = vmul.f32 1.442695, %v1949_v58  ;;  %v1950_v11 = vmul.f32 0.5, %v8393_v59  ;;  %6402 = vmatprep.mubr.msk.f32.mxu1 %vm1361_vm0, %v1308_v55  ;;  %v8447_v55 = vadd.f32 %v8315_v56, %v8220_v62 }
 0x2a0   :  { %v2266_v18 = vadd.f32 %v2202_v7, %v8401_v6  ;;  %12885 = vst [vmem:[#allocation39_spill] sm:$0xff] %v8451_v48 }
 0x2a1   :  { %6678 = vpow2.f32 %v2023_v8  ;;  %v2025_v22 = vmul.f32 1.442695, %v1950_v11  ;;  %v8415_v24 = vpop.f32.mrb[152].mxu0  ;;  %12884 = vst [vmem:[#allocation38_spill] sm:$0xff] %v8447_v55  ;;  %v1313_v11 = vld [vmem:[%s12664_s1 + $0xc8] sm:$0xff] }
 0x2a2   :  { %v1031_v27 = vpop.f32.mrb[153].mxu0  ;;  %6403 = vmatmul.mubr.msk.f32.gmra.mrb[92].mxu1 %vm1361_vm0, %v1309_v15  ;;  %v2326_v28 = vpack.c.bf16 %v2266_v18, %v2265_v29  ;;  %v6643_v15 = vld [vmem:[#allocation11 + $0x30] ss:$8 sps:$4 sm:$0xff]   ;;  %v6645_v18 = vld [vmem:[#allocation11 + $0x34] ss:$8 sps:$4 sm:$0xff]   ;;  %v8547_v23 = vadd.f32 %v8415_v24, %v8220_v62 }
 0x2a3   :  { %v8421_v60 = vpop.eup %6674  ;;  %6680 = vpow2.f32 %v2025_v22  ;;  %v8424_v31 = vadd.f32 %v1031_v27, %v8164_v30  ;;  %v8426_v3 = vpop.f32.mrb[154].mxu0  ;;  %6405 = vmatprep.mubr.msk.f32.mxu1 %vm1361_vm0, %v1310_v36  ;;  %2925 = vmatprep.subr.bf16.mxu1 %v6645_v18 }
 0x2a4   :  { %v1035_v26 = vpop.f32.mrb[155].mxu0  ;;  %6489 = vmatmul.mubr.bf16.gmra.mrb[188].mxu0 %v2326_v28  ;;  %v2203_v40 = vmul.f32 %v8421_v60, %v2139_v25  ;;  %v2141_v25 = vld [vmem:[%s12665_s2 + $0x50] sm:$0xff]  ;;  %2926 = vmatpush1.bf16.msra.mxu1 %v6643_v15  ;;  %v8501_v15 = vadd.f32 %v8376_v50, %v8220_v62  ;;  %12896 = vst [vmem:[#allocation50_spill] sm:$0xff] %v8547_v23 }
 0x2a5   :  { %12882 = vst [vmem:[#allocation36_spill] sm:$0xff] %v8424_v31  ;;  %v8439_v51 = vpop.eup %6676  ;;  %v1951_v52 = vmul.f32 0.5, %v8424_v31  ;;  %v8443_v46 = vadd.f32 %v1035_v26, %v8164_v30  ;;  %v1318_v50 = vld [vmem:[%s12664_s1 + $0xf0] sm:$0xff] }
 0x2a6   :  { %6406 = vmatmul.mubr.msk.f32.gmra.mrb[94].mxu1 %vm1361_vm0, %v1311_v32  ;;  %v2204_v58 = vmul.f32 %v8439_v51, %v2140_v34  ;;  %v2267_v56 = vadd.f32 %v2203_v40, %v8447_v55  ;;  %v2142_v40 = vld [vmem:[%s12665_s2 + $0x58] sm:$0xff]  ;;  %12891 = vst [vmem:[#allocation45_spill] sm:$0xff] %v8501_v15 }
 0x2a7   :  { %12883 = vst [vmem:[#allocation37_spill] sm:$0xff] %v8443_v46  ;;  %v2027_v7 = vmul.f32 1.442695, %v1951_v52  ;;  %v1952_v8 = vmul.f32 0.5, %v8443_v46  ;;  %6408 = vmatprep.mubr.msk.f32.mxu1 %vm1361_vm0, %v1312_v39  ;;  %v1315_v39 = vld [vmem:[%s12664_s1 + $0xd8] sm:$0xff] }
 0x2a8   :  { %v2268_v29 = vadd.f32 %v2204_v58, %v8451_v48  ;;  %v1316_v58 = vld [vmem:[%s12664_s1 + $0xe0] sm:$0xff] }
 0x2a9   :  { %6682 = vpow2.f32 %v2027_v7  ;;  %v2029_v36 = vmul.f32 1.442695, %v1952_v8  ;;  %v8465_v22 = vpop.f32.mrb[156].mxu0 }
 0x2aa   :  { %v1041_v27 = vpop.f32.mrb[157].mxu0  ;;  %6409 = vmatmul.mubr.msk.f32.gmra.mrb[96].mxu1 %vm1361_vm0, %v1313_v11  ;;  %v2327_v28 = vpack.c.bf16 %v2268_v29, %v2267_v56  ;;  %v8497_v29 = vadd.f32 %v8365_v37, %v8220_v62 }
 0x2ab   :  { %v8471_v32 = vpop.eup %6678  ;;  %6684 = vpow2.f32 %v2029_v36  ;;  %v8474_v34 = vadd.f32 %v1041_v27, %v8164_v30  ;;  %v8476_v26 = vpop.f32.mrb[158].mxu0  ;;  %6411 = vmatprep.mubr.msk.f32.mxu1 %vm1361_vm0, %v1314_v5 }
 0x2ac   :  { %12886 = vst [vmem:[#allocation40_spill] sm:$0xff] %v8471_v32  ;;  %v1045_v52 = vpop.f32.mrb[159].mxu0  ;;  %6492 = vmatprep.mubr.bf16.mxu0 %v2327_v28  ;;  %v2205_v7 = vmul.f32 %v8471_v32, %v2141_v25  ;;  %12890 = vst [vmem:[#allocation44_spill] sm:$0xff] %v8497_v29  ;;  %v1317_v25 = vld [vmem:[%s12664_s1 + $0xe8] sm:$0xff] }
 0x2ad   :  { %12887 = vst [vmem:[#allocation41_spill] sm:$0xff] %v8474_v34  ;;  %v8489_v8 = vpop.eup %6680  ;;  %v1953_v11 = vmul.f32 0.5, %v8474_v34  ;;  %v8493_v56 = vadd.f32 %v1045_v52, %v8164_v30 }
 0x2ae   :  { %12888 = vst [vmem:[#allocation42_spill] sm:$0xff] %v8489_v8  ;;  %6412 = vmatmul.mubr.msk.f32.gmra.mrb[98].mxu1 %vm1361_vm0, %v1315_v39  ;;  %v2206_v5 = vmul.f32 %v8489_v8, %v2142_v40  ;;  %v2269_v37 = vadd.f32 %v2205_v7, %v8497_v29  ;;  %v2143_v40 = vld [vmem:[%s12665_s2 + $0x60] sm:$0xff] }
 0x2af   :  { %12889 = vst [vmem:[#allocation43_spill] sm:$0xff] %v8493_v56  ;;  %v2031_v18 = vmul.f32 1.442695, %v1953_v11  ;;  %v1954_v36 = vmul.f32 0.5, %v8493_v56  ;;  %6414 = vmatprep.mubr.msk.f32.mxu1 %vm1361_vm0, %v1316_v58 }
 0x2b0   :  { %v2270_v27 = vadd.f32 %v2206_v5, %v8501_v15 }
 0x2b1   :  { %6686 = vpow2.f32 %v2031_v18  ;;  %v2033_v28 = vmul.f32 1.442695, %v1954_v36  ;;  %v8515_v39 = vpop.f32.mrb[160].mxu0  ;;  %v1319_v18 = vld [vmem:[%s12664_s1 + $0xf8] sm:$0xff]  ;;  %v2144_v36 = vld [vmem:[%s12665_s2 + $0x68] sm:$0xff] }
 0x2b2   :  { %v1051_v52 = vpop.f32.mrb[161].mxu0  ;;  %6415 = vmatmul.mubr.msk.f32.gmra.mrb[100].mxu1 %vm1361_vm0, %v1317_v25  ;;  %v2328_v58 = vpack.c.bf16 %v2270_v27, %v2269_v37  ;;  %v1320_v37 = vld [vmem:[%s12664_s1 + $0x100] sm:$0xff] }
 0x2b3   :  { %v8521_v11 = vpop.eup %6682  ;;  %6688 = vpow2.f32 %v2033_v28  ;;  %v8524_v7 = vadd.f32 %v1051_v52, %v8164_v30  ;;  %v8526_v5 = vpop.f32.mrb[162].mxu0  ;;  %6417 = vmatprep.mubr.msk.f32.mxu1 %vm1361_vm0, %v1318_v50 }
 0x2b4   :  { %12892 = vst [vmem:[#allocation46_spill] sm:$0xff] %v8521_v11  ;;  %v1055_v25 = vpop.f32.mrb[163].mxu0  ;;  %6493 = vmatmul.mubr.bf16.gmra.mrb[192].mxu0 %v2328_v58  ;;  %v2207_v27 = vmul.f32 %v8521_v11, %v2143_v40  ;;  %v8551_v58 = vadd.f32 %v8426_v3, %v8220_v62  ;;  %v1322_v3 = vld [vmem:[%s12664_s1 + $0x110] sm:$0xff] }
 0x2b5   :  { %12893 = vst [vmem:[#allocation47_spill] sm:$0xff] %v8524_v7  ;;  %v8539_v28 = vpop.eup %6684  ;;  %v1955_v50 = vmul.f32 0.5, %v8524_v7  ;;  %v8543_v52 = vadd.f32 %v1055_v25, %v8164_v30  ;;  %v1321_v25 = vld [vmem:[%s12664_s1 + $0x108] sm:$0xff] }
 0x2b6   :  { %12894 = vst [vmem:[#allocation48_spill] sm:$0xff] %v8539_v28  ;;  %12897 = vst [vmem:[#allocation51_spill] sm:$0xff] %v8551_v58  ;;  %6418 = vmatmul.mubr.msk.f32.gmra.mrb[102].mxu1 %vm1361_vm0, %v1319_v18  ;;  %v2208_v54 = vmul.f32 %v8539_v28, %v2144_v36  ;;  %v2271_v24 = vadd.f32 %v2207_v27, %v8547_v23  ;;  %v6648_v18 = vld [vmem:[#allocation11 + $0x44] ss:$8 sps:$4 sm:$0xff]  }
 0x2b7   :  { %12895 = vst [vmem:[#allocation49_spill] sm:$0xff] %v8543_v52  ;;  %v2035_v40 = vmul.f32 1.442695, %v1955_v50  ;;  %v1956_v0 = vmul.f32 0.5, %v8543_v52  ;;  %6420 = vmatprep.mubr.msk.f32.mxu1 %vm1361_vm0, %v1320_v37  ;;  %v2145_v37 = vld [vmem:[%s12665_s2 + $0x70] sm:$0xff]  ;;  %2927 = vmatprep.subr.bf16.mxu1 %v6648_v18 }
 0x2b8   :  { %v2272_v29 = vadd.f32 %v2208_v54, %v8551_v58  ;;  %2928 = vmatpush1.bf16.msra.mxu1 %v6646_v17  ;;  %v8599_v17 = vadd.f32 %v8465_v22, %v8220_v62  ;;  %v1325_v22 = vld [vmem:[%s12664_s1 + $0x128] sm:$0xff] }
 0x2b9   :  { %6690 = vpow2.f32 %v2035_v40  ;;  %v2037_v36 = vmul.f32 1.442695, %v1956_v0  ;;  %v8565_v50 = vpop.f32.mrb[164].mxu0  ;;  %v1323_v0 = vld [vmem:[%s12664_s1 + $0x118] sm:$0xff] }
 0x2ba   :  { %v1061_v15 = vpop.f32.mrb[165].mxu0  ;;  %6421 = vmatmul.mubr.msk.f32.gmra.mrb[104].mxu1 %vm1361_vm0, %v1321_v25  ;;  %v2329_v55 = vpack.c.bf16 %v2272_v29, %v2271_v24  ;;  %v2146_v40 = vld [vmem:[%s12665_s2 + $0x78] sm:$0xff]  ;;  %12902 = vst [vmem:[#allocation56_spill] sm:$0xff] %v8599_v17 }
 0x2bb   :  { %v8571_v27 = vpop.eup %6686  ;;  %6692 = vpow2.f32 %v2037_v36  ;;  %v8574_v54 = vadd.f32 %v1061_v15, %v8164_v30  ;;  %v8576_v23 = vpop.f32.mrb[166].mxu0  ;;  %6423 = vmatprep.mubr.msk.f32.mxu1 %vm1361_vm0, %v1322_v3  ;;  %v1324_v15 = vld [vmem:[%s12664_s1 + $0x120] sm:$0xff] }
 0x2bc   :  { %12898 = vst [vmem:[#allocation52_spill] sm:$0xff] %v8571_v27  ;;  %v1065_v29 = vpop.f32.mrb[167].mxu0  ;;  %6496 = vmatprep.mubr.bf16.mxu0 %v2329_v55  ;;  %v2209_v25 = vmul.f32 %v8571_v27, %v2145_v37  ;;  %v8603_v55 = vadd.f32 %v8476_v26, %v8220_v62 }
 0x2bd   :  { %12899 = vst [vmem:[#allocation53_spill] sm:$0xff] %v8574_v54  ;;  %v8589_v24 = vpop.eup %6688  ;;  %v1957_v3 = vmul.f32 0.5, %v8574_v54  ;;  %v8593_v18 = vadd.f32 %v1065_v29, %v8164_v30  ;;  %v8595_v36 = vpop.f32.mrb[0].mxu1 }
 0x2be   :  { %12900 = vst [vmem:[#allocation54_spill] sm:$0xff] %v8589_v24  ;;  %12903 = vst [vmem:[#allocation57_spill] sm:$0xff] %v8603_v55  ;;  %v1111_v58 = vpop.f32.mrb[1].mxu1  ;;  %6424 = vmatmul.mubr.msk.f32.gmra.mrb[106].mxu1 %vm1361_vm0, %v1323_v0  ;;  %v2210_v37 = vmul.f32 %v8589_v24, %v2146_v40  ;;  %v2273_v20 = vadd.f32 %v2209_v25, %v8599_v17  ;;  %v1326_v40 = vld [vmem:[%s12664_s1 + $0x130] sm:$0xff] }
 0x2bf   :  { %12901 = vst [vmem:[#allocation55_spill] sm:$0xff] %v8593_v18  ;;  %v2039_v48 = vmul.f32 1.442695, %v1957_v3  ;;  %v1958_v61 = vmul.f32 0.5, %v8593_v18  ;;  %v8609_v29 = vadd.f32 %v1111_v58, %v8164_v30  ;;  %v8611_v6 = vpop.f32.mrb[2].mxu1  ;;  %6426 = vmatprep.mubr.msk.f32.mxu1 %vm1361_vm0, %v1324_v15  ;;  %v2147_v15 = vld [vmem:[%s12665_s2 + $0x80] sm:$0xff] }
 0x2c0   :  { %v1115_v26 = vpop.f32.mrb[3].mxu1  ;;  %v2274_v0 = vadd.f32 %v2210_v37, %v8603_v55 }
 0x2c1   :  { %12904 = vst [vmem:[#allocation58_spill] sm:$0xff] %v8609_v29  ;;  %6694 = vpow2.f32 %v2039_v48  ;;  %v2041_v58 = vmul.f32 1.442695, %v1958_v61  ;;  %v1967_v3 = vmul.f32 0.5, %v8609_v29  ;;  %v8623_v21 = vpop.f32.mrb[168].mxu0  ;;  %v8629_v45 = vadd.f32 %v1115_v26, %v8164_v30  ;;  %v1327_v26 = vld [vmem:[%s12664_s1 + $0x138] sm:$0xff] }
 0x2c2   :  { %v1071_v25 = vpop.f32.mrb[169].mxu0  ;;  %6427 = vmatmul.mubr.msk.f32.gmra.mrb[108].mxu1 %vm1361_vm0, %v1325_v22  ;;  %v2330_v37 = vpack.c.bf16 %v2274_v0, %v2273_v20  ;;  %v2148_v22 = vld [vmem:[%s12665_s2 + $0x88] sm:$0xff] }
 0x2c3   :  { %12905 = vst [vmem:[#allocation59_spill] sm:$0xff] %v8629_v45  ;;  %v8632_v17 = vpop.eup %6690  ;;  %6696 = vpow2.f32 %v2041_v58  ;;  %v2059_v48 = vmul.f32 1.442695, %v1967_v3  ;;  %v8635_v61 = vadd.f32 %v1071_v25, %v8164_v30  ;;  %v8637_v55 = vpop.f32.mrb[170].mxu0  ;;  %6429 = vmatprep.mubr.msk.f32.mxu1 %vm1361_vm0, %v1326_v40  ;;  %v1968_v20 = vmul.f32 0.5, %v8629_v45  ;;  %v1328_v58 = vld [vmem:[%s12664_s1 + $0x140] sm:$0xff] }
 0x2c4   :  { %12906 = vst [vmem:[#allocation60_spill] sm:$0xff] %v8632_v17  ;;  %v1075_v0 = vpop.f32.mrb[171].mxu0  ;;  %6497 = vmatmul.mubr.bf16.gmra.mrb[196].mxu0 %v2330_v37  ;;  %v2211_v3 = vmul.f32 %v8632_v17, %v2147_v15  ;;  %v8655_v40 = vadd.f32 %v8515_v39, %v8220_v62  ;;  %v8665_v37 = vadd.f32 %v8526_v5, %v8220_v62  ;;  %v1329_v5 = vld [vmem:[%s12664_s1 + $0x148] sm:$0xff] }
 0x2c5   :  { %12907 = vst [vmem:[#allocation61_spill] sm:$0xff] %v8635_v61  ;;  %v8651_v25 = vpop.eup %6692  ;;  %v1959_v47 = vmul.f32 0.5, %v8635_v61  ;;  %v8659_v13 = vadd.f32 %v1075_v0, %v8164_v30  ;;  %v8661_v14 = vpop.f32.mrb[4].mxu1  ;;  %6698 = vpow2.f32 %v2059_v48  ;;  %v2061_v45 = vmul.f32 1.442695, %v1968_v20 }
 0x2c6   :  { %12908 = vst [vmem:[#allocation62_spill] sm:$0xff] %v8651_v25  ;;  %12909 = vst [vmem:[#allocation63_spill] sm:$0xff] %v8655_v40  ;;  %v1121_v15 = vpop.f32.mrb[5].mxu1  ;;  %6430 = vmatmul.mubr.msk.f32.gmra.mrb[110].mxu1 %vm1361_vm0, %v1327_v26  ;;  %v2212_v17 = vmul.f32 %v8651_v25, %v2148_v22  ;;  %v2275_v26 = vadd.f32 %v2211_v3, %v8655_v40  ;;  %v6649_v20 = vld [vmem:[#allocation11 + $0x50] ss:$8 sps:$4 sm:$0xff]  }
 0x2c7   :  { %12910 = vst [vmem:[#allocation64_spill] sm:$0xff] %v8659_v13  ;;  %12911 = vst [vmem:[#allocation65_spill] sm:$0xff] %v8665_v37  ;;  %v2043_v39 = vmul.f32 1.442695, %v1959_v47  ;;  %v1960_v29 = vmul.f32 0.5, %v8659_v13  ;;  %v8671_v61 = vadd.f32 %v1121_v15, %v8164_v30  ;;  %v8673_v0 = vpop.f32.mrb[6].mxu1  ;;  %6432 = vmatprep.mubr.msk.f32.mxu1 %vm1361_vm0, %v1328_v58  ;;  %6700 = vpow2.f32 %v2061_v45 }
 0x2c8   :  { %v1125_v48 = vpop.f32.mrb[7].mxu1  ;;  %v2276_v22 = vadd.f32 %v2212_v17, %v8665_v37  ;;  %v1330_v47 = vld [vmem:[%s12664_s1 + $0x150] sm:$0xff] }
 0x2c9   :  { %12912 = vst [vmem:[#allocation66_spill] sm:$0xff] %v8671_v61  ;;  %v6651_v15 = vld [vmem:[#allocation11 + $0x54] ss:$8 sps:$4 sm:$0xff]   ;;  %6702 = vpow2.f32 %v2043_v39  ;;  %v2045_v25 = vmul.f32 1.442695, %v1960_v29  ;;  %v1969_v58 = vmul.f32 0.5, %v8671_v61  ;;  %v8691_v3 = vadd.f32 %v1125_v48, %v8164_v30 }
 0x2ca   :  { %v8685_v13 = vpop.f32.mrb[172].mxu0  ;;  %v2149_v45 = vld [vmem:[%s12665_s2 + $0x90] sm:$0xff]  ;;  %6433 = vmatmul.mubr.msk.f32.gmra.mrb[112].mxu1 %vm1361_vm0, %v1329_v5  ;;  %v2331_v40 = vpack.c.bf16 %v2276_v22, %v2275_v26  ;;  %2929 = vmatprep.subr.bf16.mxu1 %v6651_v15  ;;  %v1331_v48 = vld [vmem:[%s12664_s1 + $0x158] sm:$0xff]  ;;  %v1332_v15 = vld [vmem:[%s12664_s1 + $0x160] sm:$0xff] }
 0x2cb   :  { %12913 = vst [vmem:[#allocation67_spill] sm:$0xff] %v8691_v3  ;;  %v1081_v17 = vpop.f32.mrb[173].mxu0  ;;  %v8694_v37 = vpop.eup %6694  ;;  %6704 = vpow2.f32 %v2045_v25  ;;  %6435 = vmatprep.mubr.msk.f32.mxu1 %vm1361_vm0, %v1330_v47  ;;  %v2150_v5 = vld [vmem:[%s12665_s2 + $0x98] sm:$0xff]  ;;  %2930 = vmatpush1.bf16.msra.mxu1 %v6649_v20  ;;  %v2063_v26 = vmul.f32 1.442695, %v1969_v58  ;;  %v1970_v22 = vmul.f32 0.5, %v8691_v3  ;;  %v8723_v20 = vadd.f32 %v8565_v50, %v8220_v62 }
 0x2cc   :  { %12914 = vst [vmem:[#allocation68_spill] sm:$0xff] %v8694_v37  ;;  %v8697_v29 = vadd.f32 %v1081_v17, %v8164_v30  ;;  %v8699_v39 = vpop.f32.mrb[174].mxu0  ;;  %6500 = vmatprep.mubr.bf16.mxu0 %v2331_v40  ;;  %v2213_v47 = vmul.f32 %v8694_v37, %v2149_v45  ;;  %v8727_v40 = vadd.f32 %v8576_v23, %v8220_v62  ;;  %v1333_v23 = vld [vmem:[%s12664_s1 + $0x168] sm:$0xff] }
 0x2cd   :  { %v1085_v25 = vpop.f32.mrb[175].mxu0  ;;  %v8713_v17 = vpop.eup %6696  ;;  %12918 = vst [vmem:[#allocation72_spill] sm:$0xff] %v8723_v20  ;;  %v2065_v58 = vmul.f32 1.442695, %v1970_v22  ;;  %6706 = vpow2.f32 %v2063_v26  ;;  %v2159_v22 = vld [vmem:[%s12665_s2 + $0xe0] sm:$0xff] }
 0x2ce   :  { %12915 = vst [vmem:[#allocation69_spill] sm:$0xff] %v8697_v29  ;;  %12916 = vst [vmem:[#allocation70_spill] sm:$0xff] %v8713_v17  ;;  %v1961_v61 = vmul.f32 0.5, %v8697_v29  ;;  %v8717_v18 = vadd.f32 %v1085_v25, %v8164_v30  ;;  %v8719_v24 = vpop.f32.mrb[8].mxu1  ;;  %6436 = vmatmul.mubr.msk.f32.gmra.mrb[114].mxu1 %vm1361_vm0, %v1331_v48  ;;  %v2214_v45 = vmul.f32 %v8713_v17, %v2150_v5  ;;  %v2151_v26 = vld [vmem:[%s12665_s2 + $0xa0] sm:$0xff] }
 0x2cf   :  { %12919 = vst [vmem:[#allocation73_spill] sm:$0xff] %v8727_v40  ;;  %v1131_v3 = vpop.f32.mrb[9].mxu1  ;;  %6438 = vmatprep.mubr.msk.f32.mxu1 %vm1361_vm0, %v1332_v15  ;;  %v8741_v50 = vpop.eup %6698  ;;  %v2277_v5 = vadd.f32 %v2213_v47, %v8723_v20  ;;  %v2160_v47 = vld [vmem:[%s12665_s2 + $0xe8] sm:$0xff] }
 0x2d0   :  { %12917 = vst [vmem:[#allocation71_spill] sm:$0xff] %v8717_v18  ;;  %v2047_v37 = vmul.f32 1.442695, %v1961_v61  ;;  %v1962_v25 = vmul.f32 0.5, %v8717_v18  ;;  %v8733_v29 = vadd.f32 %v1131_v3, %v8164_v30  ;;  %v8735_v27 = vpop.f32.mrb[10].mxu1  ;;  %12921 = vst [vmem:[#allocation75_spill] sm:$0xff] %v8741_v50  ;;  %v2278_v61 = vadd.f32 %v2214_v45, %v8727_v40 }
 0x2d1   :  { %v1135_v48 = vpop.f32.mrb[11].mxu1  ;;  %v1334_v3 = vld [vmem:[%s12664_s1 + $0x170] sm:$0xff]  ;;  %v8752_v18 = vpop.f32.mrb[176].mxu0  ;;  %v8932_v8 = vadd.f32 %v8735_v27, %v8220_v62 }
 0x2d2   :  { %12920 = vst [vmem:[#allocation74_spill] sm:$0xff] %v8733_v29  ;;  %6708 = vpow2.f32 %v2047_v37  ;;  %v2049_v15 = vmul.f32 1.442695, %v1962_v25  ;;  %v1971_v17 = vmul.f32 0.5, %v8733_v29  ;;  %v8760_v45 = vpop.eup %6700  ;;  %v8763_v20 = vadd.f32 %v1135_v48, %v8164_v30  ;;  %v1091_v37 = vpop.f32.mrb[177].mxu0  ;;  %6439 = vmatmul.mubr.msk.f32.gmra.mrb[116].mxu1 %vm1361_vm0, %v1333_v23  ;;  %v2152_v23 = vld [vmem:[%s12665_s2 + $0xa8] sm:$0xff] }
 0x2d3   :  { %12922 = vst [vmem:[#allocation76_spill] sm:$0xff] %v8760_v45  ;;  %6710 = vpow2.f32 %v2065_v58  ;;  %v2332_v25 = vpack.c.bf16 %v2278_v61, %v2277_v5  ;;  %v8766_v40 = vpop.eup %6702  ;;  %v8769_v54 = vadd.f32 %v1091_v37, %v8164_v30  ;;  %v8771_v28 = vpop.f32.mrb[178].mxu0  ;;  %6441 = vmatprep.mubr.msk.f32.mxu1 %vm1361_vm0, %v1334_v3  ;;  %v1335_v58 = vld [vmem:[%s12664_s1 + $0x178] sm:$0xff]  ;;  %v2223_v48 = vmul.f32 %v8741_v50, %v2159_v22  ;;  %v1336_v3 = vld [vmem:[%s12664_s1 + $0x180] sm:$0xff] }
 0x2d4   :  { %12923 = vst [vmem:[#allocation77_spill] sm:$0xff] %v8763_v20  ;;  %12924 = vst [vmem:[#allocation78_spill] sm:$0xff] %v8766_v40  ;;  %6712 = vpow2.f32 %v2049_v15  ;;  %v2067_v29 = vmul.f32 1.442695, %v1971_v17  ;;  %v8783_v17 = vadd.f32 %v8595_v36, %v8220_v62  ;;  %v1972_v5 = vmul.f32 0.5, %v8763_v20  ;;  %v1095_v61 = vpop.f32.mrb[179].mxu0 }
 0x2d5   :  { %12925 = vst [vmem:[#allocation79_spill] sm:$0xff] %v8769_v54  ;;  %6501 = vmatmul.mubr.bf16.gmra.mrb[200].mxu0 %v2332_v25  ;;  %v2215_v15 = vmul.f32 %v8766_v40, %v2151_v26  ;;  %v2224_v37 = vmul.f32 %v8760_v45, %v2160_v47  ;;  %v8791_v52 = vpop.eup %6704  ;;  %v8795_v22 = vadd.f32 %v8611_v6, %v8220_v62  ;;  %v1963_v25 = vmul.f32 0.5, %v8769_v54  ;;  %v8805_v20 = vpop.f32.mrb[12].mxu1 }
 0x2d6   :  { %12926 = vst [vmem:[#allocation80_spill] sm:$0xff] %v8783_v17  ;;  %12927 = vst [vmem:[#allocation81_spill] sm:$0xff] %v8791_v52  ;;  %v8799_v36 = vadd.f32 %v8623_v21, %v8220_v62  ;;  %v8803_v50 = vadd.f32 %v1095_v61, %v8164_v30  ;;  %v8809_v26 = vadd.f32 %v8637_v55, %v8220_v62  ;;  %6714 = vpow2.f32 %v2067_v29  ;;  %v1141_v45 = vpop.f32.mrb[13].mxu1  ;;  %v1337_v55 = vld [vmem:[%s12664_s1 + $0x188] sm:$0xff] }
 0x2d7   :  { %12928 = vst [vmem:[#allocation82_spill] sm:$0xff] %v8795_v22  ;;  %v2069_v47 = vmul.f32 1.442695, %v1972_v5  ;;  %6442 = vmatmul.mubr.msk.f32.gmra.mrb[118].mxu1 %vm1361_vm0, %v1335_v58  ;;  %v2216_v6 = vmul.f32 %v8791_v52, %v2152_v23  ;;  %v2051_v21 = vmul.f32 1.442695, %v1963_v25  ;;  %v8815_v54 = vadd.f32 %v1141_v45, %v8164_v30  ;;  %v8817_v61 = vpop.f32.mrb[14].mxu1 }
 0x2d8   :  { %12929 = vst [vmem:[#allocation83_spill] sm:$0xff] %v8799_v36  ;;  %12930 = vst [vmem:[#allocation84_spill] sm:$0xff] %v8803_v50  ;;  %v1964_v40 = vmul.f32 0.5, %v8803_v50  ;;  %6444 = vmatprep.mubr.msk.f32.mxu1 %vm1361_vm0, %v1336_v3  ;;  %v8824_v29 = vadd.f32 %v2223_v48, %v8783_v17  ;;  %v1145_v58 = vpop.f32.mrb[15].mxu1  ;;  %v2279_v23 = vadd.f32 %v2215_v15, %v8799_v36  ;;  %v1338_v45 = vld [vmem:[%s12664_s1 + $0x190] sm:$0xff]  ;;  %v8840_v15 = vpop.eup %6706 }
 0x2d9   :  { %12931 = vst [vmem:[#allocation85_spill] sm:$0xff] %v8809_v26  ;;  %12932 = vst [vmem:[#allocation86_spill] sm:$0xff] %v8815_v54  ;;  %6716 = vpow2.f32 %v2069_v47  ;;  %v2280_v5 = vadd.f32 %v2216_v6, %v8809_v26  ;;  %v8832_v25 = vadd.f32 %v2224_v37, %v8795_v22  ;;  %v1973_v52 = vmul.f32 0.5, %v8815_v54  ;;  %v8835_v50 = vpop.f32.mrb[180].mxu0  ;;  %v2153_v48 = vld [vmem:[%s12665_s2 + $0xb0] sm:$0xff] }
 0x2da   :  { %6718 = vpow2.f32 %v2051_v21  ;;  %v2053_v3 = vmul.f32 1.442695, %v1964_v40  ;;  %12933 = vst [vmem:[#allocation87_spill] sm:$0xff] %v8840_v15  ;;  %v8843_v47 = vadd.f32 %v1145_v58, %v8164_v30  ;;  %v1101_v6 = vpop.f32.mrb[181].mxu0  ;;  %v1339_v58 = vld [vmem:[%s12664_s1 + $0x198] sm:$0xff]  ;;  %v1340_v40 = vld [vmem:[%s12664_s1 + $0x1a0] sm:$0xff] }
 0x2db   :  { %6445 = vmatmul.mubr.msk.f32.gmra.mrb[120].mxu1 %vm1361_vm0, %v1337_v55  ;;  %v2333_v37 = vpack.c.bf16 %v2280_v5, %v2279_v23  ;;  %v2071_v17 = vmul.f32 1.442695, %v1973_v52  ;;  %v8851_v22 = vadd.f32 %v1101_v6, %v8164_v30  ;;  %v8853_v36 = vpop.f32.mrb[182].mxu0  ;;  %v2154_v55 = vld [vmem:[%s12665_s2 + $0xb8] sm:$0xff]  ;;  %v2161_v23 = vld [vmem:[%s12665_s2 + $0xf0] sm:$0xff]  ;;  %v8869_v5 = vadd.f32 %v8661_v14, %v8220_v62  ;;  %12947 = vst [vmem:[#allocation101_spill] sm:$0xff] %v8932_v8 }
 0x2dc   :  { %12934 = vst [vmem:[#allocation88_spill] sm:$0xff] %v8843_v47  ;;  %v8848_v21 = vpop.eup %6708  ;;  %6720 = vpow2.f32 %v2053_v3  ;;  %6447 = vmatprep.mubr.msk.f32.mxu1 %vm1361_vm0, %v1338_v45  ;;  %v8873_v45 = vadd.f32 %v8673_v0, %v8220_v62  ;;  %v1974_v3 = vmul.f32 0.5, %v8843_v47  ;;  %v1105_v6 = vpop.f32.mrb[183].mxu0  ;;  %v8884_v14 = vadd.f32 %v8685_v13, %v8220_v62  ;;  %v1341_v13 = vld [vmem:[%s12664_s1 + $0x1a8] sm:$0xff] }
 0x2dd   :  { %12935 = vst [vmem:[#allocation89_spill] sm:$0xff] %v8848_v21  ;;  %12936 = vst [vmem:[#allocation90_spill] sm:$0xff] %v8851_v22  ;;  %v8865_v52 = vpop.eup %6710  ;;  %6504 = vmatprep.mubr.bf16.mxu0 %v2333_v37  ;;  %v2217_v26 = vmul.f32 %v8848_v21, %v2153_v48  ;;  %6722 = vpow2.f32 %v2071_v17  ;;  %v1965_v0 = vmul.f32 0.5, %v8851_v22  ;;  %v8888_v7 = vadd.f32 %v1105_v6, %v8164_v30  ;;  %v8890_v47 = vpop.f32.mrb[16].mxu1  ;;  %v2162_v37 = vld [vmem:[%s12665_s2 + $0xf8] sm:$0xff] }
 0x2de   :  { %12937 = vst [vmem:[#allocation91_spill] sm:$0xff] %v8865_v52  ;;  %12938 = vst [vmem:[#allocation92_spill] sm:$0xff] %v8869_v5  ;;  %v8880_v54 = vpop.eup %6712  ;;  %v8897_v48 = vadd.f32 %v8699_v39, %v8220_v62  ;;  %v2073_v21 = vmul.f32 1.442695, %v1974_v3  ;;  %v1151_v11 = vpop.f32.mrb[17].mxu1  ;;  %v2225_v6 = vmul.f32 %v8840_v15, %v2161_v23  ;;  %v8907_v22 = vadd.f32 %v8719_v24, %v8220_v62 }
 0x2df   :  { %12939 = vst [vmem:[#allocation93_spill] sm:$0xff] %v8873_v45  ;;  %12940 = vst [vmem:[#allocation94_spill] sm:$0xff] %v8880_v54  ;;  %6448 = vmatmul.mubr.msk.f32.gmra.mrb[122].mxu1 %vm1361_vm0, %v1339_v58  ;;  %v2218_v17 = vmul.f32 %v8880_v54, %v2154_v55  ;;  %v2055_v56 = vmul.f32 1.442695, %v1965_v0  ;;  %v1966_v39 = vmul.f32 0.5, %v8888_v7  ;;  %v8911_v3 = vadd.f32 %v1151_v11, %v8164_v30  ;;  %v8913_v32 = vpop.f32.mrb[18].mxu1 }
 0x2e0   :  { %12941 = vst [vmem:[#allocation95_spill] sm:$0xff] %v8884_v14  ;;  %12942 = vst [vmem:[#allocation96_spill] sm:$0xff] %v8888_v7  ;;  %6450 = vmatprep.mubr.msk.f32.mxu1 %vm1361_vm0, %v1340_v40  ;;  %v1342_v58 = vld [vmem:[%s12664_s1 + $0x1b0] sm:$0xff]  ;;  %v2163_v55 = vld [vmem:[%s12665_s2 + $0x100] sm:$0xff]  ;;  %v8922_v24 = vpop.eup %6714  ;;  %6724 = vpow2.f32 %v2073_v21  ;;  %v1155_v23 = vpop.f32.mrb[19].mxu1  ;;  %v2281_v0 = vadd.f32 %v2217_v26, %v8884_v14  ;;  %v2226_v15 = vmul.f32 %v8865_v52, %v2162_v37 }
 0x2e1   :  { %12943 = vst [vmem:[#allocation97_spill] sm:$0xff] %v8897_v48  ;;  %12944 = vst [vmem:[#allocation98_spill] sm:$0xff] %v8907_v22  ;;  %v2282_v11 = vadd.f32 %v2218_v17, %v8897_v48  ;;  %v2164_v40 = vld [vmem:[%s12665_s2 + $0x108] sm:$0xff]  ;;  %6726 = vpow2.f32 %v2055_v56  ;;  %v2057_v34 = vmul.f32 1.442695, %v1966_v39  ;;  %v1975_v21 = vmul.f32 0.5, %v8911_v3 }
 0x2e2   :  { %12945 = vst [vmem:[#allocation99_spill] sm:$0xff] %v8911_v3  ;;  %12946 = vst [vmem:[#allocation100_spill] sm:$0xff] %v8922_v24  ;;  %v6652_v54 = vld [vmem:[#allocation11 + $0x60] ss:$8 sps:$4 sm:$0xff]   ;;  %v6654_v7 = vld [vmem:[#allocation11 + $0x64] ss:$8 sps:$4 sm:$0xff]   ;;  %v8941_v37 = vadd.f32 %v1155_v23, %v8164_v30  ;;  %v8945_v48 = vadd.f32 %v2225_v6, %v8869_v5  ;;  %v8948_v56 = vadd.f32 %v2226_v15, %v8873_v45 }
 0x2e3   :  { %v2155_v26 = vld [vmem:[%s12665_s2 + $0xc0] sm:$0xff]  ;;  %v8938_v17 = vpop.eup %6716  ;;  %6451 = vmatmul.mubr.msk.f32.gmra.mrb[124].mxu1 %vm1361_vm0, %v1341_v13  ;;  %v2334_v14 = vpack.c.bf16 %v2282_v11, %v2281_v0  ;;  %6728 = vpow2.f32 %v2057_v34  ;;  %v2075_v39 = vmul.f32 1.442695, %v1975_v21  ;;  %v1343_v23 = vld [vmem:[%s12664_s1 + $0x1b8] sm:$0xff]  ;;  %v2156_v13 = vld [vmem:[%s12665_s2 + $0xc8] sm:$0xff]  ;;  %v2227_v6 = vmul.f32 %v8922_v24, %v2163_v55  ;;  %2931 = vmatprep.subr.bf16.mxu1 %v6654_v7 }
 0x2e4   :  { %12948 = vst [vmem:[#allocation102_spill] sm:$0xff] %v8938_v17  ;;  %12949 = vst [vmem:[#allocation103_spill] sm:$0xff] %v8941_v37  ;;  %v8950_v27 = vpop.eup %6718  ;;  %6453 = vmatprep.mubr.msk.f32.mxu1 %vm1361_vm0, %v1342_v58  ;;  %v2228_v0 = vmul.f32 %v8938_v17, %v2164_v40  ;;  %v1976_v15 = vmul.f32 0.5, %v8941_v37  ;;  %v1344_v34 = vld [vmem:[%s12664_s1 + $0x1c0] sm:$0xff]  ;;  %2932 = vmatpush1.bf16.msra.mxu1 %v6652_v54  ;;  %v8980_v40 = vadd.f32 %v8752_v18, %v8220_v62 }
 0x2e5   :  { %12950 = vst [vmem:[#allocation104_spill] sm:$0xff] %v8950_v27  ;;  %6505 = vmatmul.mubr.bf16.gmra.mrb[204].mxu0 %v2334_v14  ;;  %v2219_v58 = vmul.f32 %v8950_v27, %v2155_v26  ;;  %6730 = vpow2.f32 %v2075_v39  ;;  %v8970_v55 = vpop.f32.mrb[20].mxu1  ;;  %v8973_v7 = vadd.f32 %v2227_v6, %v8907_v22  ;;  %v8984_v26 = vadd.f32 %v8771_v28, %v8220_v62  ;;  %v2165_v6 = vld [vmem:[%s12665_s2 + $0x110] sm:$0xff]  ;;  %v1345_v28 = vld [vmem:[%s12664_s1 + $0x1c8] sm:$0xff] }
 0x2e6   :  { %v8968_v21 = vpop.eup %6720  ;;  %v8976_v14 = vadd.f32 %v2228_v0, %v8932_v8  ;;  %12952 = vst [vmem:[#allocation106_spill] sm:$0xff] %v8980_v40  ;;  %v2077_v54 = vmul.f32 1.442695, %v1976_v15  ;;  %v1161_v11 = vpop.f32.mrb[21].mxu1 }
 0x2e7   :  { %12951 = vst [vmem:[#allocation105_spill] sm:$0xff] %v8968_v21  ;;  %12953 = vst [vmem:[#allocation107_spill] sm:$0xff] %v8984_v26  ;;  %6454 = vmatmul.mubr.msk.f32.gmra.mrb[126].mxu1 %vm1361_vm0, %v1343_v23  ;;  %v2220_v39 = vmul.f32 %v8968_v21, %v2156_v13  ;;  %v8991_v0 = vpop.eup %6722  ;;  %v8994_v22 = vadd.f32 %v1161_v11, %v8164_v30  ;;  %v8996_v18 = vpop.f32.mrb[22].mxu1  ;;  %v2283_v15 = vadd.f32 %v2219_v58, %v8980_v40  ;;  %v1346_v11 = vld [vmem:[%s12664_s1 + $0x1d0] sm:$0xff] }
 0x2e8   :  { %12954 = vst [vmem:[#allocation108_spill] sm:$0xff] %v8991_v0  ;;  %6456 = vmatprep.mubr.msk.f32.mxu1 %vm1361_vm0, %v1344_v34  ;;  %6732 = vpow2.f32 %v2077_v54  ;;  %v1165_v13 = vpop.f32.mrb[23].mxu1  ;;  %v2166_v34 = vld [vmem:[%s12665_s2 + $0x118] sm:$0xff]  ;;  %v2157_v54 = vld [vmem:[%s12665_s2 + $0xd0] sm:$0xff]  ;;  %v2229_v58 = vmul.f32 %v8991_v0, %v2165_v6  ;;  %v9024_v23 = vadd.f32 %v8805_v20, %v8220_v62 }
 0x2e9   :  { %12955 = vst [vmem:[#allocation109_spill] sm:$0xff] %v8994_v22  ;;  %v2284_v8 = vadd.f32 %v2220_v39, %v8984_v26  ;;  %v1977_v5 = vmul.f32 0.5, %v8994_v22  ;;  %v9014_v45 = vadd.f32 %v1165_v13, %v8164_v30  ;;  %v9031_v13 = vadd.f32 %v8817_v61, %v8220_v62  ;;  %v1347_v6 = vld [vmem:[%s12664_s1 + $0x1d8] sm:$0xff]  ;;  %v1348_v61 = vld [vmem:[%s12664_s1 + $0x1e0] sm:$0xff] }
 0x2ea   :  { %v9020_v39 = vpop.eup %6724  ;;  %12958 = vst [vmem:[#allocation112_spill] sm:$0xff] %v9024_v23  ;;  %v2158_v20 = vld [vmem:[%s12665_s2 + $0xd8] sm:$0xff]  ;;  %v9051_v0 = vadd.f32 %v2229_v58, %v9024_v23 }
 0x2eb   :  { %12956 = vst [vmem:[#allocation110_spill] sm:$0xff] %v9014_v45  ;;  %12957 = vst [vmem:[#allocation111_spill] sm:$0xff] %v9020_v39  ;;  %6457 = vmatmul.mubr.msk.f32.gmra.mrb[128].mxu1 %vm1361_vm0, %v1345_v28  ;;  %v2335_v40 = vpack.c.bf16 %v2284_v8, %v2283_v15  ;;  %v9027_v26 = vpop.eup %6726  ;;  %v2079_v24 = vmul.f32 1.442695, %v1977_v5  ;;  %v1978_v17 = vmul.f32 0.5, %v9014_v45  ;;  %v2230_v8 = vmul.f32 %v9020_v39, %v2166_v34 }
 0x2ec   :  { %12959 = vst [vmem:[#allocation113_spill] sm:$0xff] %v9027_v26  ;;  %12960 = vst [vmem:[#allocation114_spill] sm:$0xff] %v9031_v13  ;;  %6459 = vmatprep.mubr.msk.f32.mxu1 %vm1361_vm0, %v1346_v11  ;;  %v2221_v5 = vmul.f32 %v9027_v26, %v2157_v54  ;;  %v9062_v34 = vadd.f32 %v8853_v36, %v8220_v62  ;;  %v1349_v36 = vld [vmem:[%s12664_s1 + $0x1e8] sm:$0xff]  ;;  %v6657_v39 = vld [vmem:[#allocation11 + $0x74] ss:$8 sps:$4 sm:$0xff]  }
 0x2ed   :  { %6508 = vmatprep.mubr.bf16.mxu0 %v2335_v40  ;;  %v9046_v28 = vpop.eup %6728  ;;  %6734 = vpow2.f32 %v2079_v24  ;;  %v2081_v15 = vmul.f32 1.442695, %v1978_v17  ;;  %v9048_v11 = vpop.f32.mrb[24].mxu1  ;;  %v9054_v52 = vadd.f32 %v2230_v8, %v9031_v13  ;;  %v9058_v40 = vadd.f32 %v8835_v50, %v8220_v62  ;;  %v2167_v17 = vld [vmem:[%s12665_s2 + $0x120] sm:$0xff]  ;;  %v6655_v13 = vld [vmem:[#allocation11 + $0x70] ss:$8 sps:$4 sm:$0xff]   ;;  %2933 = vmatprep.subr.bf16.mxu1 %v6657_v39 }
 0x2ee   :  { %12961 = vst [vmem:[#allocation115_spill] sm:$0xff] %v9046_v28  ;;  %12963 = vst [vmem:[#allocation117_spill] sm:$0xff] %v9062_v34  ;;  %v1171_v54 = vpop.f32.mrb[25].mxu1  ;;  %v2222_v24 = vmul.f32 %v9046_v28, %v2158_v20  ;;  %v9104_v20 = vadd.f32 %v8913_v32, %v8220_v62  ;;  %2934 = vmatpush1.bf16.msra.mxu1 %v6655_v13  ;;  %v12968_v32 = vpack.c.bf16 %v8832_v25, %v8824_v29  ;;  %v2170_v25 = vld [vmem:[%s12665_s2 + $0x138] sm:$0xff]  ;;  %v13063_v35 = vld [vmem:[#allocation104_spill] sm:$0xff] }
 0x2ef   :  { %12962 = vst [vmem:[#allocation116_spill] sm:$0xff] %v9058_v40  ;;  %6460 = vmatmul.mubr.msk.f32.gmra.mrb[130].mxu1 %vm1361_vm0, %v1347_v6  ;;  %v9069_v58 = vpop.eup %6730  ;;  %6736 = vpow2.f32 %v2081_v15  ;;  %v9072_v8 = vadd.f32 %v1171_v54, %v8164_v30  ;;  %v9074_v50 = vpop.f32.mrb[26].mxu1  ;;  %v1350_v6 = vld [vmem:[%s12664_s1 + $0x1f0] sm:$0xff]  ;;  %v2285_v15 = vadd.f32 %v2221_v5, %v9058_v40  ;;  %v9099_v5 = vadd.f32 %v8890_v47, %v8220_v62 }
 0x2f0   :  { %6462 = vmatprep.mubr.msk.f32.mxu1 %vm1361_vm0, %v1348_v61  ;;  %v1175_v23 = vpop.f32.mrb[27].mxu1  ;;  %v2286_v54 = vadd.f32 %v2222_v24, %v9062_v34  ;;  %v2168_v61 = vld [vmem:[%s12665_s2 + $0x128] sm:$0xff]  ;;  %v2231_v27 = vmul.f32 %v9069_v58, %v2167_v17  ;;  %12967 = vst [vmem:[#allocation121_spill] sm:$0xff] %v9104_v20  ;;  %v1351_v17 = vld [vmem:[%s12664_s1 + $0x1f8] sm:$0xff] }
 0x2f1   :  { %12964 = vst [vmem:[#allocation118_spill] sm:$0xff] %v9072_v8  ;;  %v1979_v28 = vmul.f32 0.5, %v9072_v8  ;;  %v9092_v26 = vadd.f32 %v1175_v23, %v8164_v30  ;;  %12966 = vst [vmem:[#allocation120_spill] sm:$0xff] %v9099_v5  ;;  %v13061_v37 = vld [vmem:[#allocation105_spill] sm:$0xff] }
 0x2f2   :  { %v9095_v21 = vpop.eup %6732  ;;  %v2336_v24 = vpack.c.bf16 %v2286_v54, %v2285_v15  ;;  %v2169_v15 = vld [vmem:[%s12665_s2 + $0x130] sm:$0xff] }
 0x2f3   :  { %12965 = vst [vmem:[#allocation119_spill] sm:$0xff] %v9092_v26  ;;  %6463 = vmatmul.mubr.msk.f32.gmra.mrb[132].mxu1 %vm1361_vm0, %v1349_v36  ;;  %v2083_v40 = vmul.f32 1.442695, %v1979_v28  ;;  %v1980_v23 = vmul.f32 0.5, %v9092_v26  ;;  %v2232_v47 = vmul.f32 %v9095_v21, %v2168_v61  ;;  %v2295_v28 = vadd.f32 %v2231_v27, %v9099_v5  ;;  %v13066_v22 = vld [vmem:[#allocation113_spill] sm:$0xff] }
 0x2f4   :  { %6465 = vmatprep.mubr.msk.f32.mxu1 %vm1361_vm0, %v1350_v6  ;;  %6509 = vmatmul.mubr.bf16.gmra.mrb[208].mxu0 %v2336_v24  ;;  %v12970_v27 = vmov 0   ;;  %v12974_v5 = vpack.c.bf16 %v8948_v56, %v8945_v48 }
 0x2f5   :  { %6738 = vpow2.f32 %v2083_v40  ;;  %v2085_v36 = vmul.f32 1.442695, %v1980_v23  ;;  %v9112_v39 = vpop.f32.mrb[28].mxu1  ;;  %6512 = vmatprep.mubr.bf16.mxu0 %v12968_v32  ;;  %v2296_v6 = vadd.f32 %v2232_v47, %v9104_v20  ;;  %v9141_v32 = vadd.f32 %v8970_v55, %v8220_v62 }
 0x2f6   :  { %v1181_v54 = vpop.f32.mrb[29].mxu1 }
 0x2f7   :  { %6466 = vmatmul.mubr.msk.f32.gmra.mrb[134].mxu1 %vm1361_vm0, %v1351_v17  ;;  %v9123_v13 = vpop.eup %6734  ;;  %6740 = vpow2.f32 %v2085_v36  ;;  %v9126_v40 = vadd.f32 %v1181_v54, %v8164_v30  ;;  %v1183_v61 = vpop.f32.mrb[30].mxu1  ;;  %v2341_v29 = vpack.c.bf16 %v2296_v6, %v2295_v28  ;;  %12972 = vst [vmem:[#allocation124_spill] sm:$0xff] %v9141_v32  ;;  %v9145_v28 = vadd.f32 %v8996_v18, %v8220_v62 }
 0x2f8   :  { %2951 = vmatprep.mubr.bf16.mxu1 %v12970_v27  ;;  %v1185_v24 = vpop.f32.mrb[31].mxu1  ;;  %v2233_v23 = vmul.f32 %v9123_v13, %v2169_v15  ;;  %v12975_v18 = vpack.c.bf16 %v8976_v14, %v8973_v7 }
 0x2f9   :  { %12969 = vst [vmem:[#allocation122_spill] sm:$0xff] %v9126_v40  ;;  %v9133_v47 = vpop.eup %6736  ;;  %v1981_v17 = vmul.f32 0.5, %v9126_v40  ;;  %v9137_v36 = vadd.f32 %v1185_v24, %v8164_v30  ;;  %12973 = vst [vmem:[#allocation125_spill] sm:$0xff] %v9145_v28 }
 0x2fa   :  { %v2234_v6 = vmul.f32 %v9133_v47, %v2170_v25  ;;  %v2297_v24 = vadd.f32 %v2233_v23, %v9141_v32  ;;  %v2171_v25 = vld [vmem:[%s12665_s2 + $0x140] sm:$0xff]  ;;  %v2172_v23 = vld [vmem:[%s12665_s2 + $0x148] sm:$0xff] }
 0x2fb   :  { %12971 = vst [vmem:[#allocation123_spill] sm:$0xff] %v9137_v36  ;;  %v2087_v54 = vmul.f32 1.442695, %v1981_v17  ;;  %v1982_v15 = vmul.f32 0.5, %v9137_v36 }
 0x2fc   :  { %6513 = vmatmul.mubr.bf16.gmra.mrb[212].mxu0 %v12974_v5  ;;  %v2298_v20 = vadd.f32 %v2234_v6, %v9145_v28 }
 0x2fd   :  { %6742 = vpow2.f32 %v2087_v54  ;;  %v2089_v55 = vmul.f32 1.442695, %v1982_v15  ;;  %v9154_v34 = vpop.f32.mrb[32].mxu1  ;;  %6516 = vmatprep.mubr.bf16.mxu0 %v12975_v18  ;;  %v9179_v15 = vadd.f32 %v9048_v11, %v8220_v62 }
 0x2fe   :  { %v1191_v17 = vpop.f32.mrb[33].mxu1  ;;  %v2342_v27 = vpack.c.bf16 %v2298_v20, %v2297_v24  ;;  %v9183_v24 = vadd.f32 %v9074_v50, %v8220_v62  ;;  %v2173_v50 = vld [vmem:[%s12665_s2 + $0x150] sm:$0xff] }
 0x2ff   :  { %v9162_v48 = vpop.eup %6738  ;;  %6744 = vpow2.f32 %v2089_v55  ;;  %v9165_v56 = vadd.f32 %v1191_v17, %v8164_v30  ;;  %v1193_v5 = vpop.f32.mrb[34].mxu1  ;;  %12979 = vst [vmem:[#allocation129_spill] sm:$0xff] %v9179_v15  ;;  %v12981_v17 = vpack.c.bf16 %v9054_v52, %v9051_v0 }
 0x300   :  { %v1195_v6 = vpop.f32.mrb[35].mxu1  ;;  %v2235_v7 = vmul.f32 %v9162_v48, %v2171_v25  ;;  %12980 = vst [vmem:[#allocation130_spill] sm:$0xff] %v9183_v24 }
 0x301   :  { %12976 = vst [vmem:[#allocation126_spill] sm:$0xff] %v9165_v56  ;;  %v9171_v14 = vpop.eup %6740  ;;  %v1983_v54 = vmul.f32 0.5, %v9165_v56  ;;  %v9175_v20 = vadd.f32 %v1195_v6, %v8164_v30 }
 0x302   :  { %12977 = vst [vmem:[#allocation127_spill] sm:$0xff] %v9171_v14  ;;  %v2236_v55 = vmul.f32 %v9171_v14, %v2172_v23  ;;  %v2299_v6 = vadd.f32 %v2235_v7, %v9179_v15  ;;  %v2174_v7 = vld [vmem:[%s12665_s2 + $0x158] sm:$0xff] }
 0x303   :  { %12978 = vst [vmem:[#allocation128_spill] sm:$0xff] %v9175_v20  ;;  %v2091_v18 = vmul.f32 1.442695, %v1983_v54  ;;  %v1984_v25 = vmul.f32 0.5, %v9175_v20 }
 0x304   :  { %6517 = vmatmul.mubr.bf16.gmra.mrb[216].mxu0 %v12981_v17  ;;  %v2300_v32 = vadd.f32 %v2236_v55, %v9183_v24  ;;  %v9214_v17 = vadd.f32 %v9112_v39, %v8220_v62  ;;  %v2175_v39 = vld [vmem:[%s12665_s2 + $0x160] sm:$0xff] }
 0x305   :  { %6746 = vpow2.f32 %v2091_v18  ;;  %v2093_v11 = vmul.f32 1.442695, %v1984_v25  ;;  %v9192_v28 = vpop.f32.mrb[36].mxu1  ;;  %6520 = vmatprep.mubr.bf16.mxu0 %v2341_v29 }
 0x306   :  { %v1201_v23 = vpop.f32.mrb[37].mxu1  ;;  %v2343_v54 = vpack.c.bf16 %v2300_v32, %v2299_v6  ;;  %12986 = vst [vmem:[#allocation135_spill] sm:$0xff] %v9214_v17  ;;  %v9217_v6 = vadd.f32 %v1183_v61, %v8220_v62 }
 0x307   :  { %v9197_v14 = vpop.eup %6742  ;;  %6748 = vpow2.f32 %v2093_v11  ;;  %v9200_v52 = vadd.f32 %v1201_v23, %v8164_v30  ;;  %v1203_v0 = vpop.f32.mrb[38].mxu1 }
 0x308   :  { %12982 = vst [vmem:[#allocation131_spill] sm:$0xff] %v9197_v14  ;;  %v1205_v55 = vpop.f32.mrb[39].mxu1  ;;  %v2237_v29 = vmul.f32 %v9197_v14, %v2173_v50  ;;  %12987 = vst [vmem:[#allocation136_spill] sm:$0xff] %v9217_v6 }
 0x309   :  { %12983 = vst [vmem:[#allocation132_spill] sm:$0xff] %v9200_v52  ;;  %v9206_v18 = vpop.eup %6744  ;;  %v1985_v25 = vmul.f32 0.5, %v9200_v52  ;;  %v9210_v32 = vadd.f32 %v1205_v55, %v8164_v30 }
 0x30a   :  { %12984 = vst [vmem:[#allocation133_spill] sm:$0xff] %v9206_v18  ;;  %v2238_v11 = vmul.f32 %v9206_v18, %v2174_v7  ;;  %v2301_v50 = vadd.f32 %v2237_v29, %v9214_v17 }
 0x30b   :  { %12985 = vst [vmem:[#allocation134_spill] sm:$0xff] %v9210_v32  ;;  %v2095_v23 = vmul.f32 1.442695, %v1985_v25  ;;  %v1986_v15 = vmul.f32 0.5, %v9210_v32 }
 0x30c   :  { %6521 = vmatmul.mubr.bf16.gmra.mrb[220].mxu0 %v2342_v27  ;;  %v2302_v24 = vadd.f32 %v2238_v11, %v9217_v6 }
 0x30d   :  { %6750 = vpow2.f32 %v2095_v23  ;;  %v2097_v55 = vmul.f32 1.442695, %v1986_v15  ;;  %v9223_v14 = vpop.f32.mrb[40].mxu1  ;;  %6524 = vmatprep.mubr.bf16.mxu0 %v2343_v54  ;;  %v2176_v15 = vld [vmem:[%s12665_s2 + $0x168] sm:$0xff] }
 0x30e   :  { %v1211_v61 = vpop.f32.mrb[41].mxu1  ;;  %v2344_v52 = vpack.c.bf16 %v2302_v24, %v2301_v50  ;;  %v9247_v50 = vadd.f32 %v9154_v34, %v8220_v62  ;;  %v2177_v34 = vld [vmem:[%s12665_s2 + $0x170] sm:$0xff] }
 0x30f   :  { %v9228_v7 = vpop.eup %6746  ;;  %6752 = vpow2.f32 %v2097_v55  ;;  %v9231_v27 = vadd.f32 %v1211_v61, %v8164_v30  ;;  %v9233_v29 = vpop.f32.mrb[42].mxu1  ;;  %v9250_v55 = vadd.f32 %v1193_v5, %v8220_v62 }
 0x310   :  { %12988 = vst [vmem:[#allocation137_spill] sm:$0xff] %v9228_v7  ;;  %v1215_v25 = vpop.f32.mrb[43].mxu1  ;;  %v2239_v54 = vmul.f32 %v9228_v7, %v2175_v39  ;;  %12991 = vst [vmem:[#allocation140_spill] sm:$0xff] %v9247_v50 }
 0x311   :  { %12989 = vst [vmem:[#allocation138_spill] sm:$0xff] %v9231_v27  ;;  %v9239_v11 = vpop.eup %6748  ;;  %v1987_v23 = vmul.f32 0.5, %v9231_v27  ;;  %v9243_v24 = vadd.f32 %v1215_v25, %v8164_v30  ;;  %12992 = vst [vmem:[#allocation141_spill] sm:$0xff] %v9250_v55  ;;  %v13096_v20 = vld [vmem:[#allocation133_spill] sm:$0xff] }
 0x312   :  { %v2240_v61 = vmul.f32 %v9239_v11, %v2176_v15  ;;  %v2303_v39 = vadd.f32 %v2239_v54, %v9247_v50  ;;  %v9305_v50 = vmul.f32 %v8241_v10, %v8241_v10  ;;  %v9686_v56 = vmul.f32 %v13096_v20, %v13096_v20 }
 0x313   :  { %12990 = vst [vmem:[#allocation139_spill] sm:$0xff] %v9243_v24  ;;  %v2099_v17 = vmul.f32 1.442695, %v1987_v23  ;;  %v1988_v6 = vmul.f32 0.5, %v9243_v24 }
 0x314   :  { %6525 = vmatmul.mubr.bf16.gmra.mrb[224].mxu0 %v2344_v52  ;;  %v2304_v7 = vadd.f32 %v2240_v61, %v9250_v55 }
 0x315   :  { %6754 = vpow2.f32 %v2099_v17  ;;  %v2101_v25 = vmul.f32 1.442695, %v1988_v6  ;;  %v9256_v27 = vpop.f32.mrb[44].mxu1  ;;  %v2178_v17 = vld [vmem:[%s12665_s2 + $0x178] sm:$0xff] }
 0x316   :  { %v1221_v5 = vpop.f32.mrb[45].mxu1  ;;  %v2345_v18 = vpack.c.bf16 %v2304_v7, %v2303_v39 }
 0x317   :  { %v9261_v32 = vpop.eup %6750  ;;  %6756 = vpow2.f32 %v2101_v25  ;;  %v9264_v15 = vadd.f32 %v1221_v5, %v8164_v30  ;;  %v9266_v52 = vpop.f32.mrb[46].mxu1  ;;  %v9281_v25 = vadd.f32 %v9192_v28, %v8220_v62  ;;  %v9284_v5 = vadd.f32 %v1203_v0, %v8220_v62 }
 0x318   :  { %v1225_v6 = vpop.f32.mrb[47].mxu1  ;;  %6528 = vmatprep.mubr.bf16.mxu0 %v2345_v18  ;;  %v2241_v54 = vmul.f32 %v9261_v32, %v2177_v34  ;;  %v9295_v28 = vmul.f32 %v8223_v1, %v8223_v1 }
 0x319   :  { %12993 = vst [vmem:[#allocation142_spill] sm:$0xff] %v9264_v15  ;;  %v9272_v23 = vpop.eup %6752  ;;  %v1989_v7 = vmul.f32 0.5, %v9264_v15  ;;  %v9276_v61 = vadd.f32 %v1225_v6, %v8164_v30  ;;  %12994 = vst [vmem:[#allocation143_spill] sm:$0xff] %v9281_v25 }
 0x31a   :  { %12995 = vst [vmem:[#allocation144_spill] sm:$0xff] %v9284_v5  ;;  %v2242_v18 = vmul.f32 %v9272_v23, %v2178_v17  ;;  %v2305_v39 = vadd.f32 %v2241_v54, %v9281_v25 }
 0x31b   :  { %v2103_v55 = vmul.f32 1.442695, %v1989_v7  ;;  %v1990_v15 = vmul.f32 0.5, %v9276_v61  ;;  %v2179_v7 = vld [vmem:[%s12665_s2 + $0x180] sm:$0xff] }
 0x31c   :  { %v2306_v9 = vadd.f32 %v2242_v18, %v9284_v5  ;;  %v2180_v18 = vld [vmem:[%s12665_s2 + $0x188] sm:$0xff] }
 0x31d   :  { %6758 = vpow2.f32 %v2103_v55  ;;  %v2105_v17 = vmul.f32 1.442695, %v1990_v15  ;;  %v9298_v34 = vpop.f32.mrb[48].mxu1  ;;  %v9311_v55 = vmul.f32 %v8271_v33, %v8271_v33 }
 0x31e   :  { %v1231_v1 = vpop.f32.mrb[49].mxu1  ;;  %v2346_v6 = vpack.c.bf16 %v2306_v9, %v2305_v39  ;;  %v9326_v9 = vmul.f32 %v8289_v42, %v8289_v42 }
 0x31f   :  { %v9313_v15 = vpop.eup %6754  ;;  %6760 = vpow2.f32 %v2105_v17  ;;  %v9317_v25 = vadd.f32 %v1231_v1, %v8164_v30  ;;  %v9319_v10 = vpop.f32.mrb[50].mxu1  ;;  %v9332_v17 = vmul.f32 %v8339_v16, %v8339_v16  ;;  %v9336_v1 = vmul.f32 %v8321_v63, %v8321_v63 }
 0x320   :  { %v1235_v39 = vpop.f32.mrb[51].mxu1  ;;  %6529 = vmatmul.mubr.bf16.gmra.mrb[228].mxu0 %v2346_v6  ;;  %v2243_v0 = vmul.f32 %v9313_v15, %v2179_v7  ;;  %v9347_v6 = vmul.f32 %v8371_v43, %v8371_v43  ;;  %v9352_v7 = vadd.f32 %v9223_v14, %v8220_v62  ;;  %v9356_v63 = vadd.f32 %v9233_v29, %v8220_v62 }
 0x321   :  { %12996 = vst [vmem:[#allocation145_spill] sm:$0xff] %v9332_v17  ;;  %12997 = vst [vmem:[#allocation146_spill] sm:$0xff] %v9336_v1  ;;  %v9338_v54 = vpop.eup %6756  ;;  %v1991_v42 = vmul.f32 0.5, %v9317_v25  ;;  %v9343_v33 = vadd.f32 %v1235_v39, %v8164_v30  ;;  %v9363_v43 = vmul.f32 %v8389_v57, %v8389_v57  ;;  %v9370_v29 = vmul.f32 %v8421_v60, %v8421_v60  ;;  %v2181_v57 = vld [vmem:[%s12665_s2 + $0x190] sm:$0xff]  ;;  %v13005_v60 = vld [vmem:[#allocation42_spill] sm:$0xff] }
 0x322   :  { %12998 = vst [vmem:[#allocation147_spill] sm:$0xff] %v9347_v6  ;;  %12999 = vst [vmem:[#allocation148_spill] sm:$0xff] %v9352_v7  ;;  %v2244_v5 = vmul.f32 %v9338_v54, %v2180_v18  ;;  %v2307_v14 = vadd.f32 %v2243_v0, %v9352_v7  ;;  %v9380_v16 = vmul.f32 %v8439_v51, %v8439_v51  ;;  %v13022_v6 = vld [vmem:[#allocation54_spill] sm:$0xff]  ;;  %v13050_v17 = vld [vmem:[#allocation68_spill] sm:$0xff] }
 0x323   :  { %13000 = vst [vmem:[#allocation149_spill] sm:$0xff] %v9356_v63  ;;  %v2107_v39 = vmul.f32 1.442695, %v1991_v42  ;;  %v1992_v19 = vmul.f32 0.5, %v9343_v33  ;;  %13001 = vst [vmem:[#allocation150_spill] sm:$0xff] %v9363_v43  ;;  %v9385_v31 = vmul.f32 %v13005_v60, %v13005_v60  ;;  %v9545_v0 = vmul.f32 %v13061_v37, %v13061_v37 }
 0x324   :  { %v2308_v49 = vadd.f32 %v2244_v5, %v9356_v63  ;;  %13002 = vst [vmem:[#allocation151_spill] sm:$0xff] %v9370_v29  ;;  %13003 = vst [vmem:[#allocation152_spill] sm:$0xff] %v9380_v16  ;;  %v13018_v5 = vld [vmem:[#allocation52_spill] sm:$0xff]  ;;  %v9435_v16 = vmul.f32 %v13022_v6, %v13022_v6  ;;  %v9741_v24 = vmul.f32 %v9338_v54, %v9338_v54 }
 0x325   :  { %6762 = vpow2.f32 %v2107_v39  ;;  %v2109_v42 = vmul.f32 1.442695, %v1992_v19  ;;  %v9373_v4 = vpop.f32.mrb[52].mxu1  ;;  %13006 = vst [vmem:[#allocation42_spill] sm:$0xff] %v9385_v31  ;;  %v13007_v39 = vld [vmem:[#allocation40_spill] sm:$0xff]  ;;  %13062 = vst [vmem:[#allocation105_spill] sm:$0xff] %v9545_v0 }
 0x326   :  { %v1241_v7 = vpop.f32.mrb[53].mxu1  ;;  %v2347_v63 = vpack.c.bf16 %v2308_v49, %v2307_v14  ;;  %v9389_v19 = vmul.f32 %v13007_v39, %v13007_v39  ;;  %v2182_v49 = vld [vmem:[%s12665_s2 + $0x198] sm:$0xff]  ;;  %13023 = vst [vmem:[#allocation54_spill] sm:$0xff] %v9435_v16  ;;  %v9567_v37 = vadd.f32 %v9373_v4, %v8220_v62 }
 0x327   :  { %v9391_v18 = vpop.eup %6758  ;;  %6764 = vpow2.f32 %v2109_v42  ;;  %v9395_v51 = vadd.f32 %v1241_v7, %v8164_v30  ;;  %v9397_v29 = vpop.f32.mrb[54].mxu1  ;;  %v13011_v14 = vld [vmem:[#allocation46_spill] sm:$0xff]  ;;  %v13015_v7 = vld [vmem:[#allocation48_spill] sm:$0xff] }
 0x328   :  { %13008 = vst [vmem:[#allocation40_spill] sm:$0xff] %v9389_v19  ;;  %v9404_v60 = vmul.f32 %v13011_v14, %v13011_v14  ;;  %v1245_v31 = vpop.f32.mrb[55].mxu1  ;;  %6532 = vmatprep.mubr.bf16.mxu0 %v2347_v63  ;;  %v2245_v42 = vmul.f32 %v9391_v18, %v2181_v57  ;;  %v9411_v59 = vmul.f32 %v13015_v7, %v13015_v7  ;;  %13070 = vst [vmem:[#allocation161_spill] sm:$0xff] %v9567_v37 }
 0x329   :  { %13010 = vst [vmem:[#allocation153_spill] sm:$0xff] %v9395_v51  ;;  %v9413_v46 = vpop.eup %6760  ;;  %v1993_v43 = vmul.f32 0.5, %v9395_v51  ;;  %v9418_v14 = vadd.f32 %v1245_v31, %v8164_v30  ;;  %v9422_v19 = vmul.f32 %v13018_v5, %v13018_v5  ;;  %v9426_v63 = vadd.f32 %v9256_v27, %v8220_v62 }
 0x32a   :  { %13012 = vst [vmem:[#allocation46_spill] sm:$0xff] %v9404_v60  ;;  %13016 = vst [vmem:[#allocation48_spill] sm:$0xff] %v9411_v59  ;;  %v9430_v57 = vadd.f32 %v9266_v52, %v8220_v62  ;;  %v2246_v7 = vmul.f32 %v9413_v46, %v2182_v49  ;;  %v13029_v60 = vld [vmem:[#allocation62_spill] sm:$0xff]  ;;  %v9512_v27 = vmul.f32 %v13050_v17, %v13050_v17 }
 0x32b   :  { %13019 = vst [vmem:[#allocation52_spill] sm:$0xff] %v9422_v19  ;;  %13020 = vst [vmem:[#allocation154_spill] sm:$0xff] %v9426_v63  ;;  %v2111_v5 = vmul.f32 1.442695, %v1993_v43  ;;  %v1994_v19 = vmul.f32 0.5, %v9418_v14  ;;  %v2309_v52 = vadd.f32 %v2245_v42, %v9426_v63  ;;  %v2183_v43 = vld [vmem:[%s12665_s2 + $0x1a0] sm:$0xff]  ;;  %v9452_v39 = vmul.f32 %v13029_v60, %v13029_v60 }
 0x32c   :  { %13021 = vst [vmem:[#allocation155_spill] sm:$0xff] %v9430_v57  ;;  %v2310_v1 = vadd.f32 %v2246_v7, %v9430_v57  ;;  %v13033_v57 = vld [vmem:[#allocation60_spill] sm:$0xff]  ;;  %v9487_v42 = vadd.f32 %v9298_v34, %v8220_v62  ;;  %v13049_v49 = vld [vmem:[#allocation70_spill] sm:$0xff] }
 0x32d   :  { %6766 = vpow2.f32 %v2111_v5  ;;  %v2113_v6 = vmul.f32 1.442695, %v1994_v19  ;;  %v9445_v16 = vpop.f32.mrb[56].mxu1  ;;  %13030 = vst [vmem:[#allocation62_spill] sm:$0xff] %v9452_v39  ;;  %v9458_v5 = vmul.f32 %v13033_v57, %v13033_v57  ;;  %13051 = vst [vmem:[#allocation70_spill] sm:$0xff] %v9512_v27  ;;  %v13077_v27 = vld [vmem:[#allocation87_spill] sm:$0xff] }
 0x32e   :  { %v1251_v63 = vpop.f32.mrb[57].mxu1  ;;  %v2348_v7 = vpack.c.bf16 %v2310_v1, %v2309_v52  ;;  %v2184_v1 = vld [vmem:[%s12665_s2 + $0x1a8] sm:$0xff]  ;;  %13045 = vst [vmem:[#allocation158_spill] sm:$0xff] %v9487_v42 }
 0x32f   :  { %13034 = vst [vmem:[#allocation60_spill] sm:$0xff] %v9458_v5  ;;  %v9460_v19 = vpop.eup %6762  ;;  %6768 = vpow2.f32 %v2113_v6  ;;  %v9465_v60 = vadd.f32 %v1251_v63, %v8164_v30  ;;  %v9467_v31 = vpop.f32.mrb[58].mxu1 }
 0x330   :  { %v1255_v5 = vpop.f32.mrb[59].mxu1  ;;  %6533 = vmatmul.mubr.bf16.gmra.mrb[232].mxu0 %v2348_v7  ;;  %v2247_v59 = vmul.f32 %v9460_v19, %v2183_v43  ;;  %v9491_v43 = vadd.f32 %v9319_v10, %v8220_v62 }
 0x331   :  { %13037 = vst [vmem:[#allocation156_spill] sm:$0xff] %v9465_v60  ;;  %v9476_v6 = vpop.eup %6764  ;;  %v1995_v39 = vmul.f32 0.5, %v9465_v60  ;;  %v9482_v2 = vadd.f32 %v1255_v5, %v8164_v30 }
 0x332   :  { %13046 = vst [vmem:[#allocation159_spill] sm:$0xff] %v9491_v43  ;;  %v2248_v7 = vmul.f32 %v9476_v6, %v2184_v1  ;;  %v2311_v34 = vadd.f32 %v2247_v59, %v9487_v42  ;;  %v2185_v1 = vld [vmem:[%s12665_s2 + $0x1b0] sm:$0xff]  ;;  %v13054_v42 = vld [vmem:[#allocation78_spill] sm:$0xff] }
 0x333   :  { %13043 = vst [vmem:[#allocation157_spill] sm:$0xff] %v9482_v2  ;;  %v2115_v57 = vmul.f32 1.442695, %v1995_v39  ;;  %v1996_v5 = vmul.f32 0.5, %v9482_v2  ;;  %v9508_v39 = vmul.f32 %v13049_v49, %v13049_v49  ;;  %v13059_v59 = vld [vmem:[#allocation89_spill] sm:$0xff] }
 0x334   :  { %v2312_v44 = vadd.f32 %v2248_v7, %v9491_v43  ;;  %v9521_v43 = vmul.f32 %v13054_v42, %v13054_v42  ;;  %v9539_v42 = vmul.f32 %v13059_v59, %v13059_v59 }
 0x335   :  { %6770 = vpow2.f32 %v2115_v57  ;;  %v2117_v10 = vmul.f32 1.442695, %v1996_v5  ;;  %v9501_v63 = vpop.f32.mrb[60].mxu1  ;;  %v13052_v57 = vld [vmem:[#allocation81_spill] sm:$0xff] }
 0x336   :  { %v1261_v52 = vpop.f32.mrb[61].mxu1  ;;  %v2349_v7 = vpack.c.bf16 %v2312_v44, %v2311_v34  ;;  %v9517_v5 = vmul.f32 %v13052_v57, %v13052_v57  ;;  %13055 = vst [vmem:[#allocation81_spill] sm:$0xff] %v9521_v43  ;;  %v2186_v44 = vld [vmem:[%s12665_s2 + $0x1b8] sm:$0xff]  ;;  %13060 = vst [vmem:[#allocation89_spill] sm:$0xff] %v9539_v42  ;;  %v9549_v43 = vmul.f32 %v13063_v35, %v13063_v35  ;;  %v13074_v42 = vld [vmem:[#allocation75_spill] sm:$0xff] }
 0x337   :  { %v9523_v3 = vpop.eup %6766  ;;  %6772 = vpow2.f32 %v2117_v10  ;;  %v9526_v49 = vadd.f32 %v1261_v52, %v8164_v30  ;;  %v9528_v17 = vpop.f32.mrb[62].mxu1  ;;  %v13057_v34 = vld [vmem:[#allocation94_spill] sm:$0xff]  ;;  %v9571_v35 = vadd.f32 %v9397_v29, %v8220_v62 }
 0x338   :  { %13053 = vst [vmem:[#allocation68_spill] sm:$0xff] %v9517_v5  ;;  %v9535_v57 = vmul.f32 %v13057_v34, %v13057_v34  ;;  %v1265_v10 = vpop.f32.mrb[63].mxu1  ;;  %6536 = vmatprep.mubr.bf16.mxu0 %v2349_v7  ;;  %v2249_v52 = vmul.f32 %v9523_v3, %v2185_v1  ;;  %13064 = vst [vmem:[#allocation104_spill] sm:$0xff] %v9549_v43  ;;  %v9559_v7 = vmul.f32 %v13066_v22, %v13066_v22  ;;  %v13068_v1 = vld [vmem:[#allocation76_spill] sm:$0xff] }
 0x339   :  { %13056 = vst [vmem:[#allocation78_spill] sm:$0xff] %v9526_v49  ;;  %v9551_v34 = vpop.eup %6768  ;;  %v9555_v59 = vadd.f32 %v1265_v10, %v8164_v30  ;;  %v9563_v45 = vmul.f32 %v13068_v1, %v13068_v1  ;;  %13071 = vst [vmem:[#allocation162_spill] sm:$0xff] %v9571_v35  ;;  %v13072_v10 = vld [vmem:[#allocation115_spill] sm:$0xff]  ;;  %v9581_v1 = vmul.f32 %v13074_v42, %v13074_v42 }
 0x33a   :  { %13058 = vst [vmem:[#allocation94_spill] sm:$0xff] %v9535_v57  ;;  %v1997_v57 = vmul.f32 0.5, %v9526_v49  ;;  %13067 = vst [vmem:[#allocation113_spill] sm:$0xff] %v9559_v7  ;;  %v2250_v43 = vmul.f32 %v9551_v34, %v2186_v44  ;;  %v9576_v0 = vmul.f32 %v13072_v10, %v13072_v10  ;;  %v2313_v5 = vadd.f32 %v2249_v52, %v9567_v37  ;;  %v13079_v37 = vld [vmem:[#allocation100_spill] sm:$0xff] }
 0x33b   :  { %13065 = vst [vmem:[#allocation160_spill] sm:$0xff] %v9555_v59  ;;  %13069 = vst [vmem:[#allocation76_spill] sm:$0xff] %v9563_v45  ;;  %v1998_v7 = vmul.f32 0.5, %v9555_v59  ;;  %v13075_v45 = vld [vmem:[#allocation91_spill] sm:$0xff]  ;;  %v9592_v10 = vmul.f32 %v13077_v27, %v13077_v27  ;;  %v9606_v27 = vmul.f32 %v13079_v37, %v13079_v37  ;;  %v9628_v37 = vmul.f32 %v9095_v21, %v9095_v21 }
 0x33c   :  { %13073 = vst [vmem:[#allocation115_spill] sm:$0xff] %v9576_v0  ;;  %v2119_v22 = vmul.f32 1.442695, %v1997_v57  ;;  %v9585_v4 = vmul.f32 %v13075_v45, %v13075_v45  ;;  %v2314_v44 = vadd.f32 %v2250_v43, %v9571_v35  ;;  %v2187_v45 = vld [vmem:[%s12665_s2 + $0x1c0] sm:$0xff] }
 0x33d   :  { %v2121_v0 = vmul.f32 1.442695, %v1998_v7  ;;  %v9595_v42 = vpop.f32.mrb[64].mxu1  ;;  %v13080_v35 = vld [vmem:[#allocation111_spill] sm:$0xff]  ;;  %v13081_v7 = vld [vmem:[#allocation108_spill] sm:$0xff] }
 0x33e   :  { %13076 = vst [vmem:[#allocation75_spill] sm:$0xff] %v9585_v4  ;;  %6774 = vpow2.f32 %v2119_v22  ;;  %v13078_v4 = vld [vmem:[#allocation102_spill] sm:$0xff]  ;;  %v1271_v52 = vpop.f32.mrb[65].mxu1  ;;  %v2350_v43 = vpack.c.bf16 %v2314_v44, %v2313_v5  ;;  %v9610_v22 = vmul.f32 %v13080_v35, %v13080_v35  ;;  %v9614_v57 = vmul.f32 %v13081_v7, %v13081_v7  ;;  %v2188_v5 = vld [vmem:[%s12665_s2 + $0x1c8] sm:$0xff] }
 0x33f   :  { %v9602_v29 = vmul.f32 %v13078_v4, %v13078_v4  ;;  %v9616_v8 = vpop.eup %6770  ;;  %6776 = vpow2.f32 %v2121_v0  ;;  %v9619_v4 = vadd.f32 %v1271_v52, %v8164_v30  ;;  %v9621_v26 = vpop.f32.mrb[66].mxu1  ;;  %13084 = vst [vmem:[#allocation102_spill] sm:$0xff] %v9628_v37  ;;  %v9632_v35 = vmul.f32 %v9069_v58, %v9069_v58 }
 0x340   :  { %13082 = vst [vmem:[#allocation91_spill] sm:$0xff] %v9614_v57  ;;  %v1275_v0 = vpop.f32.mrb[67].mxu1  ;;  %6537 = vmatmul.mubr.bf16.gmra.mrb[236].mxu0 %v2350_v43  ;;  %v2251_v52 = vmul.f32 %v9616_v8, %v2187_v45  ;;  %v9638_v7 = vmul.f32 %v9133_v47, %v9133_v47  ;;  %v9642_v57 = vmul.f32 %v9123_v13, %v9123_v13 }
 0x341   :  { %13083 = vst [vmem:[#allocation87_spill] sm:$0xff] %v9619_v4  ;;  %13085 = vst [vmem:[#allocation100_spill] sm:$0xff] %v9632_v35  ;;  %v9644_v21 = vpop.eup %6772  ;;  %v1999_v58 = vmul.f32 0.5, %v9619_v4  ;;  %v9649_v44 = vadd.f32 %v1275_v0, %v8164_v30  ;;  %v9653_v45 = vmul.f32 %v9162_v48, %v9162_v48  ;;  %v9658_v43 = vadd.f32 %v9445_v16, %v8220_v62 }
 0x342   :  { %13086 = vst [vmem:[#allocation111_spill] sm:$0xff] %v9638_v7  ;;  %13087 = vst [vmem:[#allocation108_spill] sm:$0xff] %v9642_v57  ;;  %v9662_v13 = vadd.f32 %v9467_v31, %v8220_v62  ;;  %v2252_v37 = vmul.f32 %v9644_v21, %v2188_v5  ;;  %v13092_v57 = vld [vmem:[#allocation127_spill] sm:$0xff]  ;;  %v9798_v60 = vadd.f32 %v9595_v42, %v8220_v62 }
 0x343   :  { %13088 = vst [vmem:[#allocation163_spill] sm:$0xff] %v9649_v44  ;;  %13089 = vst [vmem:[#allocation164_spill] sm:$0xff] %v9653_v45  ;;  %v2123_v0 = vmul.f32 1.442695, %v1999_v58  ;;  %v2000_v36 = vmul.f32 0.5, %v9649_v44  ;;  %v9669_v48 = vmul.f32 %v13092_v57, %v13092_v57  ;;  %v2315_v16 = vadd.f32 %v2251_v52, %v9658_v43  ;;  %v13094_v7 = vld [vmem:[#allocation131_spill] sm:$0xff] }
 0x344   :  { %13090 = vst [vmem:[#allocation165_spill] sm:$0xff] %v9658_v43  ;;  %13091 = vst [vmem:[#allocation166_spill] sm:$0xff] %v9662_v13  ;;  %v2316_v45 = vadd.f32 %v2252_v37, %v9662_v13  ;;  %v9676_v31 = vmul.f32 %v13094_v7, %v13094_v7  ;;  %v2189_v57 = vld [vmem:[%s12665_s2 + $0x1d0] sm:$0xff]  ;;  %v9691_v7 = vmul.f32 %v9239_v11, %v9239_v11 }
 0x345   :  { %6778 = vpow2.f32 %v2123_v0  ;;  %v2125_v58 = vmul.f32 1.442695, %v2000_v36  ;;  %v9679_v40 = vpop.f32.mrb[68].mxu1  ;;  %v13098_v0 = vld [vmem:[#allocation137_spill] sm:$0xff]  ;;  %v9710_v11 = vmul.f32 %v9261_v32, %v9261_v32  ;;  %13110 = vst [vmem:[#allocation170_spill] sm:$0xff] %v9798_v60 }
 0x346   :  { %v1281_v43 = vpop.f32.mrb[69].mxu1  ;;  %v2351_v13 = vpack.c.bf16 %v2316_v45, %v2315_v16  ;;  %v9695_v36 = vmul.f32 %v13098_v0, %v13098_v0  ;;  %v2190_v45 = vld [vmem:[%s12665_s2 + $0x1d8] sm:$0xff]  ;;  %v9728_v0 = vmul.f32 %v9313_v15, %v9313_v15 }
 0x347   :  { %6780 = vpow2.f32 %v2125_v58  ;;  %v9701_v20 = vadd.f32 %v1281_v43, %v8164_v30  ;;  %v9703_v5 = vpop.f32.mrb[70].mxu1  ;;  %v13101_v16 = vld [vmem:[#allocation142_spill] sm:$0xff]  ;;  %v9717_v43 = vmul.f32 %v9272_v23, %v9272_v23  ;;  %v9736_v23 = vadd.f32 %v9528_v17, %v8220_v62 }
 0x348   :  { %13099 = vst [vmem:[#allocation127_spill] sm:$0xff] %v9695_v36  ;;  %v9697_v35 = vpop.eup %6774  ;;  %v1285_v52 = vpop.f32.mrb[71].mxu1  ;;  %6540 = vmatprep.mubr.bf16.mxu0 %v2351_v13  ;;  %v9732_v13 = vadd.f32 %v9501_v63, %v8220_v62  ;;  %v9748_v63 = vld [vmem:[%s12669_s6] ss:$0 sm:$0xff]  ;;  %v9752_v17 = vmul.f32 %v9391_v18, %v9391_v18 }
 0x349   :  { %13100 = vst [vmem:[#allocation131_spill] sm:$0xff] %v9701_v20  ;;  %v2253_v58 = vmul.f32 %v9697_v35, %v2189_v57  ;;  %v9719_v47 = vpop.eup %6776  ;;  %v2001_v36 = vmul.f32 0.5, %v9701_v20  ;;  %v9724_v32 = vadd.f32 %v1285_v52, %v8164_v30  ;;  %13105 = vst [vmem:[#allocation167_spill] sm:$0xff] %v9736_v23  ;;  %v2191_v18 = vld [vmem:[%s12665_s2 + $0x1e0] sm:$0xff]  ;;  %v9773_v30 = vmul.f32 %v9476_v6, %v9476_v6 }
 0x34a   :  { %13102 = vst [vmem:[#allocation133_spill] sm:$0xff] %v9719_v47  ;;  %13104 = vst [vmem:[#allocation142_spill] sm:$0xff] %v9732_v13  ;;  %v2254_v57 = vmul.f32 %v9719_v47, %v2190_v45  ;;  %v9767_v45 = vmul.f32 %v9460_v19, %v9460_v19  ;;  %v2192_v19 = vld [vmem:[%s12665_s2 + $0x1e8] sm:$0xff] }
 0x34b   :  { %13103 = vst [vmem:[#allocation137_spill] sm:$0xff] %v9724_v32  ;;  %v2127_v52 = vmul.f32 1.442695, %v2001_v36  ;;  %v2002_v15 = vmul.f32 0.5, %v9724_v32  ;;  %v2317_v37 = vadd.f32 %v2253_v58, %v9732_v13  ;;  %v9759_v36 = vmul.f32 %v9413_v46, %v9413_v46 }
 0x34c   :  { %v2318_v54 = vadd.f32 %v2254_v57, %v9736_v23  ;;  %v13194_v23 = vld [vmem:[#allocation68_spill] sm:$0xff] }
 0x34d   :  { %6782 = vpow2.f32 %v2127_v52  ;;  %v2129_v32 = vmul.f32 1.442695, %v2002_v15  ;;  %v6374_v20 = vpop.f32.mrb[72].mxu1  ;;  %v9809_v15 = vmul.f32 %v9616_v8, %v9616_v8 }
 0x34e   :  { %v1626_v57 = vadd.f32 %v6374_v20, %v9748_v63  ;;  %v1620_v13 = vpop.f32.mrb[73].mxu1  ;;  %v2352_v46 = vpack.c.bf16 %v2318_v54, %v2317_v37  ;;  %v9784_v20 = vmul.f32 %v9523_v3, %v9523_v3  ;;  %v13108_v54 = vld [vmem:[#allocation23_spill] sm:$0xff]  ;;  %v9802_v3 = vadd.f32 %v9621_v26, %v8220_v62 }
 0x34f   :  { %v9775_v52 = vpop.eup %6778  ;;  %6784 = vpow2.f32 %v2129_v32  ;;  %v1621_v47 = vadd.f32 %v9748_v63, %v1620_v13  ;;  %v9791_v32 = vmul.f32 %v9551_v34, %v9551_v34  ;;  %v9815_v26 = vmul.f32 %v9644_v21, %v9644_v21  ;;  %v13120_v21 = vld [vmem:[#allocation26_spill] sm:$0xff] }
 0x350   :  { %13106 = vst [vmem:[#allocation168_spill] sm:$0xff] %v9775_v52  ;;  %13107 = vst [vmem:[#allocation169_spill] sm:$0xff] %v9784_v20  ;;  %v5457_v6 = vsub.f32 %v13108_v54, %v1626_v57  ;;  %6541 = vmatmul.mubr.bf16.gmra.mrb[240].mxu0 %v2352_v46  ;;  %v2255_v58 = vmul.f32 %v9775_v52, %v2191_v18  ;;  %v13112_v57 = vld [vmem:[#allocation22_spill] sm:$0xff] }
 0x351   :  { %v9793_v13 = vpop.eup %6780  ;;  %13111 = vst [vmem:[#allocation171_spill] sm:$0xff] %v9802_v3  ;;  %v5456_v46 = vsub.f32 %v13112_v57, %v1621_v47  ;;  %v6377_v54 = vpop.f32.mrb[74].mxu1  ;;  %13113 = vst [vmem:[#allocation22_spill] sm:$0xff] %v9809_v15  ;;  %v13115_v47 = vsub.f32 0.0, %v8175_v38  ;;  %v13116_v57 = vld [vmem:[#allocation27_spill] sm:$0xff]  ;;  %v13193_v20 = vld [vmem:[#allocation70_spill] sm:$0xff] }
 0x352   :  { %13109 = vst [vmem:[#allocation23_spill] sm:$0xff] %v9793_v13  ;;  %v5585_v18 = vmul.f32 %v5457_v6, %v5457_v6  ;;  %v1636_v37 = vadd.f32 %v6377_v54, %v9748_v63  ;;  %v1630_v34 = vpop.f32.mrb[75].mxu1  ;;  %v2256_v52 = vmul.f32 %v9793_v13, %v2192_v19  ;;  %13114 = vst [vmem:[#allocation172_spill] sm:$0xff] %v9815_v26 }
 0x353   :  { %v5584_v49 = vmul.f32 %v5456_v46, %v5456_v46  ;;  %v1631_v59 = vadd.f32 %v9748_v63, %v1630_v34  ;;  %v2319_v19 = vadd.f32 %v2255_v58, %v9798_v60  ;;  %v9825_v46 = vadd.f32 %v9679_v40, %v8220_v62  ;;  %v13118_v34 = vld [vmem:[#allocation20_spill] sm:$0xff] }
 0x354   :  { %v5649_v6 = vadd.f32 %v5585_v18, %v13115_v47  ;;  %v5459_v54 = vsub.f32 %v13116_v57, %v1636_v37  ;;  %v2320_v13 = vadd.f32 %v2256_v52, %v9802_v3  ;;  %v13119_v42 = vsub.f32 0.0, %v13118_v34  ;;  %v2193_v52 = vld [vmem:[%s12665_s2 + $0x1f0] sm:$0xff] }
 0x355   :  { %13117 = vst [vmem:[#allocation27_spill] sm:$0xff] %v9825_v46  ;;  %v5458_v15 = vsub.f32 %v13120_v21, %v1631_v59  ;;  %v6380_v26 = vpop.f32.mrb[76].mxu1  ;;  %v9839_v40 = vadd.f32 %v9703_v5, %v8220_v62  ;;  %v13127_v5 = vsub.f32 0.0, %v8188_v41 }
 0x356   :  { %v5648_v4 = vadd.f32 %v5584_v49, %v13119_v42  ;;  %v5777_v38 = vadd.f32 %v9305_v50, %v5649_v6  ;;  %v5587_v18 = vmul.f32 %v5459_v54, %v5459_v54  ;;  %v1646_v37 = vadd.f32 %v6380_v26, %v9748_v63  ;;  %v1640_v58 = vpop.f32.mrb[77].mxu1 }
 0x357   :  { %v2353_v47 = vpack.c.bf16 %v2320_v13, %v2319_v19  ;;  %v9835_v57 = vpop.eup %6782  ;;  %13122 = vst [vmem:[#allocation26_spill] sm:$0xff] %v9839_v40  ;;  %v5586_v59 = vmul.f32 %v5458_v15, %v5458_v15  ;;  %v1641_v50 = vadd.f32 %v9748_v63, %v1640_v58  ;;  %v13123_v26 = vsub.f32 0.0, %v8201_v53  ;;  %v13124_v13 = vld [vmem:[#allocation31_spill] sm:$0xff]  ;;  %v2194_v53 = vld [vmem:[%s12665_s2 + $0x1f8] sm:$0xff] }
 0x358   :  { %13121 = vst [vmem:[#allocation20_spill] sm:$0xff] %v9835_v57  ;;  %v5776_v49 = vadd.f32 %v9295_v28, %v5648_v4  ;;  %v6199_v42 = vadd.f32 -1.0, %v5777_v38  ;;  %v5461_v54 = vsub.f32 %v13124_v13, %v1646_v37  ;;  %v9848_v19 = vmul.f32 %v9697_v35, %v9697_v35  ;;  %v13128_v4 = vld [vmem:[#allocation30_spill] sm:$0xff] }
 0x359   :  { %v5651_v6 = vadd.f32 %v5587_v18, %v13123_v26  ;;  %6544 = vmatprep.mubr.bf16.mxu0 %v2353_v47  ;;  %v9850_v34 = vpop.eup %6784  ;;  %v5650_v28 = vadd.f32 %v5586_v59, %v13127_v5  ;;  %v5460_v15 = vsub.f32 %v13128_v4, %v1641_v50  ;;  %v6383_v21 = vpop.f32.mrb[78].mxu1  ;;  %v2257_v38 = vmul.f32 %v9835_v57, %v2193_v52  ;;  %v13130_v4 = vld [vmem:[#allocation35_spill] sm:$0xff]  ;;  %v13133_v57 = vld [vmem:[#allocation34_spill] sm:$0xff] }
 0x35a   :  { %13125 = vst [vmem:[#allocation31_spill] sm:$0xff] %v9848_v19  ;;  %13126 = vst [vmem:[#allocation173_spill] sm:$0xff] %v9850_v34  ;;  %v6198_v62 = vadd.f32 -1.0, %v5776_v49  ;;  %v5905_v18 = vmul.f32 0.5, %v6199_v42  ;;  %v5589_v35 = vmul.f32 %v5461_v54, %v5461_v54  ;;  %v1656_v58 = vadd.f32 %v6383_v21, %v9748_v63  ;;  %v1650_v47 = vpop.f32.mrb[79].mxu1 }
 0x35b   :  { %v5779_v37 = vadd.f32 %v9326_v9, %v5651_v6  ;;  %v5778_v41 = vadd.f32 %v9311_v55, %v5650_v28  ;;  %v5588_v59 = vmul.f32 %v5460_v15, %v5460_v15  ;;  %v1651_v50 = vadd.f32 %v9748_v63, %v1650_v47  ;;  %v13131_v6 = vld [vmem:[#allocation21_spill] sm:$0xff] }
 0x35c   :  { %v5904_v49 = vmul.f32 0.5, %v6198_v62  ;;  %v13129_v13 = vsub.f32 0.0, %v8245_v12  ;;  %v5463_v8 = vsub.f32 %v13130_v4, %v1656_v58  ;;  %v2258_v52 = vmul.f32 %v9850_v34, %v2194_v53  ;;  %v13134_v28 = vld [vmem:[#allocation145_spill] sm:$0xff] }
 0x35d   :  { %v6201_v26 = vadd.f32 -1.0, %v5779_v37  ;;  %v6200_v9 = vadd.f32 -1.0, %v5778_v41  ;;  %v13132_v54 = vsub.f32 0.0, %v13131_v6  ;;  %v5462_v62 = vsub.f32 %v13133_v57, %v1651_v50  ;;  %v6386_v19 = vpop.f32.mrb[80].mxu1  ;;  %v13138_v6 = vld [vmem:[#allocation39_spill] sm:$0xff] }
 0x35e   :  { %v5653_v5 = vadd.f32 %v5589_v35, %v13129_v13  ;;  %v5968_v42 = vadd.f32 %v5905_v18, %v5904_v49  ;;  %v5591_v47 = vmul.f32 %v5463_v8, %v5463_v8  ;;  %v1666_v37 = vadd.f32 %v6386_v19, %v9748_v63  ;;  %v1660_v12 = vpop.f32.mrb[81].mxu1  ;;  %v13135_v13 = vld [vmem:[#allocation146_spill] sm:$0xff]  ;;  %v13136_v49 = vld [vmem:[#allocation25_spill] sm:$0xff]  ;;  %v13139_v8 = vld [vmem:[#allocation24_spill] sm:$0xff] }
 0x35f   :  { %v5652_v21 = vadd.f32 %v5588_v59, %v13132_v54  ;;  %v5907_v55 = vmul.f32 0.5, %v6201_v26  ;;  %v5906_v35 = vmul.f32 0.5, %v6200_v9  ;;  %v5590_v4 = vmul.f32 %v5462_v62, %v5462_v62  ;;  %v13142_v62 = vld [vmem:[#allocation150_spill] sm:$0xff] }
 0x360   :  { %v5781_v15 = vadd.f32 %v13134_v28, %v5653_v5  ;;  %v1661_v53 = vadd.f32 %v9748_v63, %v1660_v12  ;;  %v13137_v41 = vsub.f32 0.0, %v13136_v49  ;;  %v5465_v57 = vsub.f32 %v13138_v6, %v1666_v37  ;;  %v13141_v28 = vld [vmem:[#allocation38_spill] sm:$0xff]  ;;  %v13143_v37 = vld [vmem:[#allocation147_spill] sm:$0xff] }
 0x361   :  { %v5780_v58 = vadd.f32 %v13135_v13, %v5652_v21  ;;  %v2321_v50 = vadd.f32 %v2257_v38, %v9825_v46  ;;  %v5969_v26 = vadd.f32 %v5968_v42, %v5906_v35  ;;  %v13140_v54 = vsub.f32 0.0, %v13139_v8  ;;  %v6389_v34 = vpop.f32.mrb[82].mxu1  ;;  %v13144_v35 = vld [vmem:[#allocation29_spill] sm:$0xff] }
 0x362   :  { %v6203_v18 = vadd.f32 -1.0, %v5781_v15  ;;  %v5655_v59 = vadd.f32 %v5591_v47, %v13137_v41  ;;  %v5464_v9 = vsub.f32 %v13141_v28, %v1661_v53  ;;  %v5593_v12 = vmul.f32 %v5465_v57, %v5465_v57  ;;  %v1670_v49 = vpop.f32.mrb[83].mxu1  ;;  %v13146_v28 = vld [vmem:[#allocation28_spill] sm:$0xff] }
 0x363   :  { %v6202_v5 = vadd.f32 -1.0, %v5780_v58  ;;  %v5654_v19 = vadd.f32 %v5590_v4, %v13140_v54  ;;  %v2322_v15 = vadd.f32 %v2258_v52, %v9839_v40  ;;  %v5970_v41 = vadd.f32 %v5969_v26, %v5907_v55  ;;  %v13148_v55 = vld [vmem:[#allocation152_spill] sm:$0xff] }
 0x364   :  { %v5909_v21 = vmul.f32 0.5, %v6203_v18  ;;  %v5783_v13 = vadd.f32 %v13142_v62, %v5655_v59  ;;  %v5592_v38 = vmul.f32 %v5464_v9, %v5464_v9  ;;  %v13145_v58 = vsub.f32 0.0, %v13144_v35 }
 0x365   :  { %v5908_v47 = vmul.f32 0.5, %v6202_v5  ;;  %v5782_v6 = vadd.f32 %v13143_v37, %v5654_v19  ;;  %v2354_v4 = vpack.c.bf16 %v2322_v15, %v2321_v50  ;;  %v1676_v53 = vadd.f32 %v6389_v34, %v9748_v63  ;;  %v6392_v62 = vpop.f32.mrb[84].mxu1  ;;  %v13149_v19 = vld [vmem:[#allocation45_spill] sm:$0xff]  ;;  %v9893_v50 = vld [vmem:[#allocation9] ss:$0 sm:$0xff]  ;;  %v13151_v37 = vld [vmem:[#allocation44_spill] sm:$0xff] }
 0x366   :  { %v6205_v42 = vadd.f32 -1.0, %v5783_v13  ;;  %v5657_v8 = vadd.f32 %v5593_v12, %v13145_v58  ;;  %v13147_v59 = vsub.f32 0.0, %v13146_v28  ;;  %v1671_v52 = vadd.f32 %v9748_v63, %v1670_v49  ;;  %v1680_v12 = vpop.f32.mrb[85].mxu1 }
 0x367   :  { %v5971_v54 = vadd.f32 %v5970_v41, %v5908_v47  ;;  %v6204_v18 = vadd.f32 -1.0, %v5782_v6  ;;  %6545 = vmatmul.mubr.bf16.gmra.mrb[244].mxu0 %v2354_v4  ;;  %v5467_v9 = vsub.f32 %v13149_v19, %v1676_v53  ;;  %v1686_v13 = vadd.f32 %v6392_v62, %v9748_v63  ;;  %v13150_v47 = vld [vmem:[#allocation151_spill] sm:$0xff] }
 0x368   :  { %v5656_v57 = vadd.f32 %v5592_v38, %v13147_v59  ;;  %v5911_v5 = vmul.f32 0.5, %v6205_v42  ;;  %v5785_v26 = vadd.f32 %v13148_v55, %v5657_v8  ;;  %v5466_v6 = vsub.f32 %v13151_v37, %v1671_v52  ;;  %v6486_v38 = vpop.f32.mrb[184].mxu0  ;;  %v13152_v42 = vld [vmem:[#allocation51_spill] sm:$0xff] }
 0x369   :  { %v5910_v34 = vmul.f32 0.5, %v6204_v18  ;;  %v5972_v15 = vadd.f32 %v5971_v54, %v5909_v21  ;;  %v5595_v35 = vmul.f32 %v5467_v9, %v5467_v9  ;;  %v5469_v58 = vsub.f32 %v13152_v42, %v1686_v13  ;;  %v2460_v4 = vpop.f32.mrb[185].mxu0  ;;  %v6395_v55 = vpop.f32.mrb[86].mxu1  ;;  %v13153_v54 = vld [vmem:[#allocation33_spill] sm:$0xff] }
 0x36a   :  { %v5784_v41 = vadd.f32 %v13150_v47, %v5656_v57  ;;  %v6207_v49 = vadd.f32 -1.0, %v5785_v26  ;;  %v1681_v8 = vadd.f32 %v9748_v63, %v1680_v12  ;;  %v5594_v59 = vmul.f32 %v5466_v6, %v5466_v6  ;;  %v6487_v18 = vpop.f32.mrb[186].mxu0  ;;  %v13155_v47 = vld [vmem:[#allocation50_spill] sm:$0xff]  ;;  %v1690_v9 = vpop.f32.mrb[87].mxu1  ;;  %v13156_v12 = vld [vmem:[#allocation32_spill] sm:$0xff] }
 0x36b   :  { %v5973_v53 = vadd.f32 %v5972_v15, %v5910_v34  ;;  %v2469_v62 = vadd.f32 %v6486_v38, %v9893_v50  ;;  %v13154_v57 = vsub.f32 0.0, %v13153_v54  ;;  %v5597_v52 = vmul.f32 %v5469_v58, %v5469_v58  ;;  %v2463_v37 = vpop.f32.mrb[187].mxu0  ;;  %v13159_v38 = vld [vmem:[#allocation37_spill] sm:$0xff]  ;;  %v13161_v58 = vld [vmem:[#allocation40_spill] sm:$0xff] }
 0x36c   :  { %v6206_v28 = vadd.f32 -1.0, %v5784_v41  ;;  %v5913_v21 = vmul.f32 0.5, %v6207_v49  ;;  %v5468_v26 = vsub.f32 %v13155_v47, %v1681_v8  ;;  %v13157_v46 = vsub.f32 0.0, %v13156_v12  ;;  %v13158_v41 = vld [vmem:[#allocation42_spill] sm:$0xff]  ;;  %v13162_v47 = vld [vmem:[#allocation48_spill] sm:$0xff] }
 0x36d   :  { %v5659_v19 = vadd.f32 %v5595_v35, %v13154_v57  ;;  %v5974_v42 = vadd.f32 %v5973_v53, %v5911_v5  ;;  %v2717_v15 = vmax.f32 %v2469_v62, 0.0  ;;  %v13160_v40 = vsub.f32 0.0, %v13159_v38  ;;  %v6398_v5 = vpop.f32.mrb[88].mxu1  ;;  %v13166_v38 = vld [vmem:[#allocation46_spill] sm:$0xff] }
 0x36e   :  { %v5912_v13 = vmul.f32 0.5, %v6206_v28  ;;  %v5658_v34 = vadd.f32 %v5594_v59, %v13157_v46  ;;  %v5596_v49 = vmul.f32 %v5468_v26, %v5468_v26  ;;  %v2461_v54 = vadd.f32 %v9893_v50, %v2460_v4  ;;  %v13163_v59 = vld [vmem:[#allocation36_spill] sm:$0xff]  ;;  %v13165_v26 = vld [vmem:[#allocation57_spill] sm:$0xff] }
 0x36f   :  { %v5787_v6 = vadd.f32 %v13158_v41, %v5659_v19  ;;  %v5661_v44 = vadd.f32 %v5597_v52, %v13160_v40  ;;  %v1696_v8 = vadd.f32 %v6395_v55, %v9748_v63  ;;  %v2472_v28 = vadd.f32 %v6487_v18, %v9893_v50  ;;  %v1700_v41 = vpop.f32.mrb[89].mxu1 }
 0x370   :  { %v5975_v35 = vadd.f32 %v5974_v42, %v5912_v13  ;;  %v5786_v57 = vadd.f32 %v13161_v58, %v5658_v34  ;;  %v13164_v62 = vsub.f32 0.0, %v13163_v59  ;;  %v2715_v12 = vmax.f32 %v2461_v54, 0.0 }
 0x371   :  { %v6209_v53 = vadd.f32 -1.0, %v5787_v6  ;;  %v5789_v46 = vadd.f32 %v13162_v47, %v5661_v44  ;;  %v5471_v4 = vsub.f32 %v13165_v26, %v1696_v8  ;;  %v2718_v13 = vmax.f32 %v2472_v28, 0.0 }
 0x372   :  { %v5660_v19 = vadd.f32 %v5596_v49, %v13164_v62  ;;  %v6208_v40 = vadd.f32 -1.0, %v5786_v57  ;;  %v5976_v52 = vadd.f32 %v5975_v35, %v5913_v21  ;;  %v1691_v18 = vadd.f32 %v9748_v63, %v1690_v9  ;;  %v6401_v49 = vpop.f32.mrb[90].mxu1  ;;  %v13167_v57 = vld [vmem:[#allocation56_spill] sm:$0xff] }
 0x373   :  { %v5915_v42 = vmul.f32 0.5, %v6209_v53  ;;  %v6211_v34 = vadd.f32 -1.0, %v5789_v46  ;;  %v5599_v6 = vmul.f32 %v5471_v4, %v5471_v4  ;;  %v9918_v60 = vpack.c.bf16 %v2718_v13, %v2717_v15  ;;  %v1710_v8 = vpop.f32.mrb[91].mxu1  ;;  %v13168_v53 = vld [vmem:[#allocation43_spill] sm:$0xff]  ;;  %v13171_v13 = vld [vmem:[#allocation54_spill] sm:$0xff] }
 0x374   :  { %v5788_v55 = vadd.f32 %v13166_v38, %v5660_v19  ;;  %v5914_v58 = vmul.f32 0.5, %v6208_v40  ;;  %v2464_v44 = vadd.f32 %v9893_v50, %v2463_v37  ;;  %v5470_v21 = vsub.f32 %v13167_v57, %v1691_v18  ;;  %v13170_v40 = vld [vmem:[#allocation65_spill] sm:$0xff] }
 0x375   :  { %v5917_v54 = vmul.f32 0.5, %v6211_v34  ;;  %v1706_v35 = vadd.f32 %v6398_v5, %v9748_v63  ;;  %v13169_v46 = vsub.f32 0.0, %v13168_v53  ;;  %v1701_v9 = vadd.f32 %v9748_v63, %v1700_v41  ;;  %v6404_v18 = vpop.f32.mrb[92].mxu1 }
 0x376   :  { %v6210_v47 = vadd.f32 -1.0, %v5788_v55  ;;  %v5977_v28 = vadd.f32 %v5976_v52, %v5914_v58  ;;  %v2716_v62 = vmax.f32 %v2464_v44, 0.0  ;;  %v5598_v15 = vmul.f32 %v5470_v21, %v5470_v21  ;;  %v13172_v55 = vld [vmem:[#allocation63_spill] sm:$0xff]  ;;  %v13173_v52 = vld [vmem:[#allocation41_spill] sm:$0xff] }
 0x377   :  { %v5663_v59 = vadd.f32 %v5599_v6, %v13169_v46  ;;  %v5473_v26 = vsub.f32 %v13170_v40, %v1706_v35  ;;  %v1716_v37 = vadd.f32 %v6401_v49, %v9748_v63  ;;  %v5472_v5 = vsub.f32 %v13172_v55, %v1701_v9  ;;  %v13175_v44 = vld [vmem:[#allocation73_spill] sm:$0xff]  ;;  %v6490_v49 = vpop.f32.mrb[188].mxu0 }
 0x378   :  { %v5916_v19 = vmul.f32 0.5, %v6210_v47  ;;  %v5978_v4 = vadd.f32 %v5977_v28, %v5915_v42  ;;  %v2779_v38 = vpack.c.bf16 %v2716_v62, %v2715_v12  ;;  %v13174_v58 = vsub.f32 0.0, %v13173_v52  ;;  %v1720_v47 = vpop.f32.mrb[93].mxu1  ;;  %v13176_v12 = vld [vmem:[#allocation52_spill] sm:$0xff] }
 0x379   :  { %v5791_v34 = vadd.f32 %v13171_v13, %v5663_v59  ;;  %v5601_v6 = vmul.f32 %v5473_v26, %v5473_v26  ;;  %v5475_v53 = vsub.f32 %v13175_v44, %v1716_v37  ;;  %v1711_v41 = vadd.f32 %v9748_v63, %v1710_v8  ;;  %v13177_v59 = vld [vmem:[#allocation49_spill] sm:$0xff]  ;;  %v2476_v13 = vpop.f32.mrb[189].mxu0 }
 0x37a   :  { %v5662_v57 = vadd.f32 %v5598_v15, %v13174_v58  ;;  %v5979_v21 = vadd.f32 %v5978_v4, %v5916_v19  ;;  %v5600_v46 = vmul.f32 %v5472_v5, %v5472_v5  ;;  %2952 = vmatmul.mubr.bf16.vlgmr.msra.gmra.mrb[136].mxu1 %v2779_v38  ;;  %v1726_v42 = vadd.f32 %v6404_v18, %v9748_v63  ;;  %v13179_v15 = vld [vmem:[#allocation72_spill] sm:$0xff]  ;;  %v13181_v19 = vld [vmem:[#allocation47_spill] sm:$0xff]  ;;  %v13183_v38 = vld [vmem:[#allocation85_spill] sm:$0xff]  ;;  %v6407_v18 = vpop.f32.mrb[94].mxu1  ;;  %v6491_v52 = vpop.f32.mrb[190].mxu0 }
 0x37b   :  { %v6213_v35 = vadd.f32 -1.0, %v5791_v34  ;;  %v13178_v62 = vsub.f32 0.0, %v13177_v59  ;;  %v5603_v40 = vmul.f32 %v5475_v53, %v5475_v53  ;;  %v5474_v26 = vsub.f32 %v13179_v15, %v1711_v41  ;;  %v1730_v41 = vpop.f32.mrb[95].mxu1  ;;  %v13187_v15 = vld [vmem:[#allocation60_spill] sm:$0xff] }
 0x37c   :  { %v5790_v28 = vadd.f32 %v13176_v12, %v5662_v57  ;;  %v13180_v37 = vmov 0   ;;  %v5980_v55 = vadd.f32 %v5979_v21, %v5917_v54  ;;  %v13182_v4 = vsub.f32 0.0, %v13181_v19  ;;  %v13184_v57 = vld [vmem:[#allocation62_spill] sm:$0xff]  ;;  %v13185_v12 = vld [vmem:[#allocation55_spill] sm:$0xff] }
 0x37d   :  { %v5665_v9 = vadd.f32 %v5601_v6, %v13178_v62  ;;  %2961 = vmatprep.mubr.bf16.mxu1 %v13180_v37  ;;  %v5919_v8 = vmul.f32 0.5, %v6213_v35  ;;  %v5477_v5 = vsub.f32 %v13183_v38, %v1726_v42  ;;  %v13186_v6 = vsub.f32 0.0, %v13185_v12  ;;  %v2479_v62 = vpop.f32.mrb[191].mxu0  ;;  %v13192_v12 = vld [vmem:[#allocation83_spill] sm:$0xff] }
 0x37e   :  { %v5664_v34 = vadd.f32 %v5600_v46, %v13182_v4  ;;  %v6212_v58 = vadd.f32 -1.0, %v5790_v28  ;;  %v5602_v59 = vmul.f32 %v5474_v26, %v5474_v26  ;;  %v1721_v54 = vadd.f32 %v9748_v63, %v1720_v47  ;;  %v13188_v28 = vld [vmem:[#allocation53_spill] sm:$0xff] }
 0x37f   :  { %v5793_v44 = vadd.f32 %v13184_v57, %v5665_v9  ;;  %v5667_v53 = vadd.f32 %v5603_v40, %v13186_v6  ;;  %v5605_v35 = vmul.f32 %v5477_v5, %v5477_v5  ;;  %v2485_v21 = vadd.f32 %v6490_v49, %v9893_v50  ;;  %v13190_v57 = vld [vmem:[#allocation64_spill] sm:$0xff] }
 0x380   :  { %v5792_v3 = vadd.f32 %v13187_v15, %v5664_v34  ;;  %v5918_v46 = vmul.f32 0.5, %v6212_v58  ;;  %v13189_v4 = vsub.f32 0.0, %v13188_v28  ;;  %v13191_v40 = vsub.f32 0.0, %v13190_v57  ;;  %v6410_v34 = vpop.f32.mrb[96].mxu1 }
 0x381   :  { %v6215_v42 = vadd.f32 -1.0, %v5793_v44  ;;  %v5795_v19 = vadd.f32 %v9508_v39, %v5667_v53  ;;  %v5476_v6 = vsub.f32 %v13192_v12, %v1721_v54  ;;  %v2721_v2 = vmax.f32 %v2485_v21, 0.0  ;;  %v1740_v58 = vpop.f32.mrb[97].mxu1  ;;  %v13195_v21 = vld [vmem:[#allocation61_spill] sm:$0xff] }
 0x382   :  { %v5666_v9 = vadd.f32 %v5602_v59, %v13189_v4  ;;  %v6214_v38 = vadd.f32 -1.0, %v5792_v3  ;;  %v5669_v26 = vadd.f32 %v5605_v35, %v13191_v40  ;;  %v5981_v5 = vadd.f32 %v5980_v55, %v5918_v46  ;;  %2962 = vmatmul.mubr.bf16.gmra.mrb[140].mxu1 %v9918_v60  ;;  %v13198_v40 = vld [vmem:[#allocation81_spill] sm:$0xff] }
 0x383   :  { %v5921_v15 = vmul.f32 0.5, %v6215_v42  ;;  %v6217_v47 = vadd.f32 -1.0, %v5795_v19  ;;  %v5604_v53 = vmul.f32 %v5476_v6, %v5476_v6  ;;  %v2477_v59 = vadd.f32 %v9893_v50, %v2476_v13  ;;  %2971 = vmatprep.mubr.bf16.mxu1 %v13180_v37  ;;  %v13197_v13 = vld [vmem:[#allocation97_spill] sm:$0xff] }
 0x384   :  { %v5794_v49 = vadd.f32 %v13193_v20, %v5666_v9  ;;  %v5920_v44 = vmul.f32 0.5, %v6214_v38  ;;  %v5797_v39 = vadd.f32 %v13194_v23, %v5669_v26  ;;  %v5982_v3 = vadd.f32 %v5981_v5, %v5919_v8  ;;  %v6413_v23 = vpop.f32.mrb[98].mxu1 }
 0x385   :  { %v5923_v35 = vmul.f32 0.5, %v6217_v47  ;;  %v1736_v54 = vadd.f32 %v6407_v18, %v9748_v63  ;;  %v13196_v46 = vsub.f32 0.0, %v13195_v21  ;;  %v2719_v42 = vmax.f32 %v2477_v59, 0.0  ;;  %v1750_v8 = vpop.f32.mrb[99].mxu1  ;;  %v13199_v47 = vld [vmem:[#allocation95_spill] sm:$0xff] }
 0x386   :  { %v6216_v28 = vadd.f32 -1.0, %v5794_v49  ;;  %v6219_v55 = vadd.f32 -1.0, %v5797_v39  ;;  %v2488_v19 = vadd.f32 %v6491_v52, %v9893_v50  ;;  %v5983_v4 = vadd.f32 %v5982_v3, %v5920_v44 }
 0x387   :  { %v5668_v20 = vadd.f32 %v5604_v53, %v13196_v46  ;;  %v5479_v38 = vsub.f32 %v13197_v13, %v1736_v54  ;;  %v1731_v60 = vadd.f32 %v9748_v63, %v1730_v41  ;;  %v2480_v12 = vadd.f32 %v9893_v50, %v2479_v62  ;;  %v6416_v41 = vpop.f32.mrb[100].mxu1  ;;  %v13202_v46 = vld [vmem:[#allocation107_spill] sm:$0xff] }
 0x388   :  { %v5922_v9 = vmul.f32 0.5, %v6216_v28  ;;  %v5925_v57 = vmul.f32 0.5, %v6219_v55  ;;  %v2722_v26 = vmax.f32 %v2488_v19, 0.0  ;;  %v5984_v6 = vadd.f32 %v5983_v4, %v5921_v15  ;;  %v13200_v28 = vld [vmem:[#allocation71_spill] sm:$0xff]  ;;  %v1760_v15 = vpop.f32.mrb[101].mxu1  ;;  %v13203_v4 = vld [vmem:[#allocation106_spill] sm:$0xff] }
 0x389   :  { %v5796_v18 = vadd.f32 %v13198_v40, %v5668_v20  ;;  %v5607_v5 = vmul.f32 %v5479_v38, %v5479_v38  ;;  %v5478_v49 = vsub.f32 %v13199_v47, %v1731_v60  ;;  %v1746_v52 = vadd.f32 %v6410_v34, %v9748_v63  ;;  %v13204_v60 = vld [vmem:[#allocation94_spill] sm:$0xff] }
 0x38a   :  { %v9970_v44 = vpack.c.bf16 %v2722_v26, %v2721_v2  ;;  %v2720_v53 = vmax.f32 %v2480_v12, 0.0  ;;  %v1741_v59 = vadd.f32 %v9748_v63, %v1740_v58  ;;  %v5985_v3 = vadd.f32 %v5984_v6, %v5922_v9  ;;  %v6494_v2 = vpop.f32.mrb[192].mxu0  ;;  %v13205_v58 = vld [vmem:[#allocation69_spill] sm:$0xff] }
 0x38b   :  { %v6218_v39 = vadd.f32 -1.0, %v5796_v18  ;;  %v13201_v54 = vsub.f32 0.0, %v13200_v28  ;;  %v5606_v21 = vmul.f32 %v5478_v49, %v5478_v49  ;;  %v5481_v62 = vsub.f32 %v13202_v46, %v1746_v52  ;;  %v2492_v12 = vpop.f32.mrb[193].mxu0  ;;  %v6419_v52 = vpop.f32.mrb[102].mxu1  ;;  %v13211_v46 = vld [vmem:[#allocation79_spill] sm:$0xff] }
 0x38c   :  { %v2781_v19 = vpack.c.bf16 %v2720_v53, %v2719_v42  ;;  %v5480_v13 = vsub.f32 %v13203_v4, %v1741_v59  ;;  %v1756_v34 = vadd.f32 %v6413_v23, %v9748_v63  ;;  %v5986_v38 = vadd.f32 %v5985_v3, %v5923_v35  ;;  %v13208_v35 = vld [vmem:[#allocation89_spill] sm:$0xff]  ;;  %v13209_v3 = vld [vmem:[#allocation84_spill] sm:$0xff] }
 0x38d   :  { %v5671_v55 = vadd.f32 %v5607_v5, %v13201_v54  ;;  %v5924_v20 = vmul.f32 0.5, %v6218_v39  ;;  %v13206_v18 = vsub.f32 0.0, %v13205_v58  ;;  %v5609_v26 = vmul.f32 %v5481_v62, %v5481_v62  ;;  %v13207_v5 = vld [vmem:[#allocation117_spill] sm:$0xff]  ;;  %v6495_v39 = vpop.f32.mrb[194].mxu0 }
 0x38e   :  { %v5608_v6 = vmul.f32 %v5480_v13, %v5480_v13  ;;  %v5483_v47 = vsub.f32 %v13207_v5, %v1756_v34  ;;  %2972 = vmatmul.mubr.bf16.gmra.mrb[144].mxu1 %v2781_v19  ;;  %v1751_v49 = vadd.f32 %v9748_v63, %v1750_v8  ;;  %v1766_v42 = vadd.f32 %v6416_v41, %v9748_v63  ;;  %v13213_v8 = vld [vmem:[#allocation116_spill] sm:$0xff]  ;;  %v13214_v41 = vld [vmem:[#allocation82_spill] sm:$0xff] }
 0x38f   :  { %v5799_v40 = vadd.f32 %v13204_v60, %v5671_v55  ;;  %v5670_v9 = vadd.f32 %v5606_v21, %v13206_v18  ;;  %v5987_v23 = vadd.f32 %v5986_v38, %v5924_v20  ;;  %v13210_v28 = vsub.f32 0.0, %v13209_v3  ;;  %2981 = vmatprep.mubr.bf16.mxu1 %v13180_v37  ;;  %v1770_v55 = vpop.f32.mrb[103].mxu1  ;;  %v2495_v21 = vpop.f32.mrb[195].mxu0  ;;  %v13216_v18 = vld [vmem:[#allocation104_spill] sm:$0xff] }
 0x390   :  { %v13212_v62 = vsub.f32 0.0, %v13211_v46  ;;  %v5611_v4 = vmul.f32 %v5483_v47, %v5483_v47  ;;  %v5482_v13 = vsub.f32 %v13213_v8, %v1751_v49  ;;  %v5485_v34 = vsub.f32 %v13214_v41, %v1766_v42  ;;  %v6422_v51 = vpop.f32.mrb[104].mxu1 }
 0x391   :  { %v6221_v53 = vadd.f32 -1.0, %v5799_v40  ;;  %v5798_v59 = vadd.f32 %v13208_v35, %v5670_v9  ;;  %v5673_v54 = vadd.f32 %v5609_v26, %v13210_v28  ;;  %v5988_v38 = vadd.f32 %v5987_v23, %v5925_v57  ;;  %v13215_v40 = vld [vmem:[#allocation105_spill] sm:$0xff]  ;;  %v13217_v26 = vld [vmem:[#allocation96_spill] sm:$0xff]  ;;  %v1780_v42 = vpop.f32.mrb[105].mxu1  ;;  %v13220_v23 = vld [vmem:[#allocation90_spill] sm:$0xff] }
 0x392   :  { %v5672_v19 = vadd.f32 %v5608_v6, %v13212_v62  ;;  %v13218_v5 = vsub.f32 0.0, %v13217_v26  ;;  %v5610_v3 = vmul.f32 %v5482_v13, %v5482_v13  ;;  %v5613_v28 = vmul.f32 %v5485_v34, %v5485_v34  ;;  %v13224_v34 = vld [vmem:[#allocation80_spill] sm:$0xff] }
 0x393   :  { %v5927_v60 = vmul.f32 0.5, %v6221_v53  ;;  %v6220_v20 = vadd.f32 -1.0, %v5798_v59  ;;  %v5801_v58 = vadd.f32 %v13215_v40, %v5673_v54  ;;  %v1761_v47 = vadd.f32 %v9748_v63, %v1760_v15  ;;  %v13219_v59 = vld [vmem:[#allocation115_spill] sm:$0xff]  ;;  %v13225_v15 = vld [vmem:[#allocation113_spill] sm:$0xff] }
 0x394   :  { %v5800_v9 = vadd.f32 %v13216_v18, %v5672_v19  ;;  %v5675_v35 = vadd.f32 %v5611_v4, %v13218_v5  ;;  %v2501_v49 = vadd.f32 %v6494_v2, %v9893_v50  ;;  %v13221_v54 = vsub.f32 0.0, %v13220_v23  ;;  %v13222_v19 = vld [vmem:[#allocation59_spill] sm:$0xff]  ;;  %v13226_v2 = vld [vmem:[#allocation76_spill] sm:$0xff] }
 0x395   :  { %v5926_v46 = vmul.f32 0.5, %v6220_v20  ;;  %v6223_v6 = vadd.f32 -1.0, %v5801_v58  ;;  %v13223_v8 = vsub.f32 0.0, %v13222_v19  ;;  %v5484_v40 = vsub.f32 %v13224_v34, %v1761_v47 }
 0x396   :  { %v6222_v53 = vadd.f32 -1.0, %v5800_v9  ;;  %v5803_v57 = vadd.f32 %v13219_v59, %v5675_v35  ;;  %v5674_v62 = vadd.f32 %v5610_v3, %v13221_v54  ;;  %v2725_v20 = vmax.f32 %v2501_v49, 0.0  ;;  %2982 = vmatmul.mubr.bf16.gmra.mrb[148].mxu1 %v9970_v44  ;;  %v6425_v9 = vpop.f32.mrb[106].mxu1 }
 0x397   :  { %v5677_v41 = vadd.f32 %v5613_v28, %v13223_v8  ;;  %v5989_v4 = vadd.f32 %v5988_v38, %v5926_v46  ;;  %v5929_v13 = vmul.f32 0.5, %v6223_v6  ;;  %v5612_v59 = vmul.f32 %v5484_v40, %v5484_v40  ;;  %2991 = vmatprep.mubr.bf16.mxu1 %v13180_v37  ;;  %v1790_v38 = vpop.f32.mrb[107].mxu1 }
 0x398   :  { %v5928_v58 = vmul.f32 0.5, %v6222_v53  ;;  %v6225_v18 = vadd.f32 -1.0, %v5803_v57  ;;  %v5802_v26 = vadd.f32 %v13225_v15, %v5674_v62  ;;  %v2493_v3 = vadd.f32 %v9893_v50, %v2492_v12  ;;  %v13227_v57 = vld [vmem:[#allocation58_spill] sm:$0xff]  ;;  %v13229_v62 = vld [vmem:[#allocation93_spill] sm:$0xff]  ;;  %v13230_v15 = vld [vmem:[#allocation92_spill] sm:$0xff] }
 0x399   :  { %v5805_v5 = vadd.f32 %v13226_v2, %v5677_v41  ;;  %v5990_v35 = vadd.f32 %v5989_v4, %v5927_v60  ;;  %v1776_v28 = vadd.f32 %v6419_v52, %v9748_v63  ;;  %v2504_v49 = vadd.f32 %v6495_v39, %v9893_v50  ;;  %v6428_v41 = vpop.f32.mrb[108].mxu1 }
 0x39a   :  { %v5931_v46 = vmul.f32 0.5, %v6225_v18  ;;  %v6224_v6 = vadd.f32 -1.0, %v5802_v26  ;;  %v13228_v23 = vsub.f32 0.0, %v13227_v57  ;;  %v2723_v44 = vmax.f32 %v2493_v3, 0.0  ;;  %v1800_v39 = vpop.f32.mrb[109].mxu1 }
 0x39b   :  { %v6227_v47 = vadd.f32 -1.0, %v5805_v5  ;;  %v5991_v53 = vadd.f32 %v5990_v35, %v5928_v58  ;;  %v5487_v60 = vsub.f32 %v13229_v62, %v1776_v28  ;;  %v2726_v12 = vmax.f32 %v2504_v49, 0.0  ;;  %v6498_v35 = vpop.f32.mrb[196].mxu0  ;;  %v13233_v49 = vld [vmem:[#allocation101_spill] sm:$0xff] }
 0x39c   :  { %v5676_v54 = vadd.f32 %v5612_v59, %v13228_v23  ;;  %v5930_v19 = vmul.f32 0.5, %v6224_v6  ;;  %v1771_v52 = vadd.f32 %v9748_v63, %v1770_v55  ;;  %v2496_v18 = vadd.f32 %v9893_v50, %v2495_v21  ;;  %v13231_v55 = vld [vmem:[#allocation67_spill] sm:$0xff]  ;;  %v6431_v23 = vpop.f32.mrb[110].mxu1 }
 0x39d   :  { %v5933_v8 = vmul.f32 0.5, %v6227_v47  ;;  %v5992_v4 = vadd.f32 %v5991_v53, %v5929_v13  ;;  %v5615_v40 = vmul.f32 %v5487_v60, %v5487_v60  ;;  %v10017_v58 = vpack.c.bf16 %v2726_v12, %v2725_v20  ;;  %v13234_v53 = vld [vmem:[#allocation98_spill] sm:$0xff]  ;;  %v10028_v12 = vpop.f32.mrb[111].mxu1 }
 0x39e   :  { %v5804_v34 = vadd.f32 %v9581_v1, %v5676_v54  ;;  %v5486_v26 = vsub.f32 %v13230_v15, %v1771_v52  ;;  %v1786_v2 = vadd.f32 %v6422_v51, %v9748_v63  ;;  %v1781_v5 = vadd.f32 %v9748_v63, %v1780_v42  ;;  %v2508_v1 = vpop.f32.mrb[197].mxu0  ;;  %v13235_v42 = vld [vmem:[#allocation75_spill] sm:$0xff] }
 0x39f   :  { %v5993_v59 = vadd.f32 %v5992_v4, %v5930_v19  ;;  %v13232_v28 = vsub.f32 0.0, %v13231_v55  ;;  %v2724_v6 = vmax.f32 %v2496_v18, 0.0  ;;  %v1796_v57 = vadd.f32 %v6425_v9, %v9748_v63  ;;  %v6499_v54 = vpop.f32.mrb[198].mxu0  ;;  %v13236_v4 = vld [vmem:[#allocation66_spill] sm:$0xff] }
 0x3a0   :  { %v6226_v3 = vadd.f32 -1.0, %v5804_v34  ;;  %v5614_v47 = vmul.f32 %v5486_v26, %v5486_v26  ;;  %v5489_v21 = vsub.f32 %v13233_v49, %v1786_v2  ;;  %v5488_v20 = vsub.f32 %v13234_v53, %v1781_v5  ;;  %v10030_v52 = vpop.f32.mrb[199].mxu0  ;;  %v13238_v26 = vld [vmem:[#allocation114_spill] sm:$0xff] }
 0x3a1   :  { %v5679_v13 = vadd.f32 %v5615_v40, %v13232_v28  ;;  %v5994_v62 = vadd.f32 %v5993_v59, %v5931_v46  ;;  %v2783_v19 = vpack.c.bf16 %v2724_v6, %v2723_v44  ;;  %v13237_v34 = vsub.f32 0.0, %v13236_v4  ;;  %v13239_v59 = vld [vmem:[#allocation77_spill] sm:$0xff] }
 0x3a2   :  { %v5932_v51 = vmul.f32 0.5, %v6226_v3  ;;  %v5617_v18 = vmul.f32 %v5489_v21, %v5489_v21  ;;  %v5616_v15 = vmul.f32 %v5488_v20, %v5488_v20  ;;  %v5491_v2 = vsub.f32 %v13238_v26, %v1796_v57  ;;  %v6434_v21 = vpop.f32.mrb[112].mxu1  ;;  %v13243_v57 = vld [vmem:[#allocation112_spill] sm:$0xff] }
 0x3a3   :  { %v5807_v60 = vadd.f32 %v13235_v42, %v5679_v13  ;;  %v5678_v40 = vadd.f32 %v5614_v47, %v13237_v34  ;;  %2992 = vmatmul.mubr.bf16.gmra.mrb[152].mxu1 %v2783_v19  ;;  %v1791_v3 = vadd.f32 %v9748_v63, %v1790_v38  ;;  %v1806_v46 = vadd.f32 %v6428_v41, %v9748_v63  ;;  %v13241_v13 = vld [vmem:[#allocation74_spill] sm:$0xff]  ;;  %v1820_v42 = vpop.f32.mrb[113].mxu1  ;;  %v13245_v19 = vld [vmem:[#allocation88_spill] sm:$0xff] }
 0x3a4   :  { %v5995_v5 = vadd.f32 %v5994_v62, %v5932_v51  ;;  %v13240_v55 = vsub.f32 0.0, %v13239_v59  ;;  %v13242_v6 = vsub.f32 0.0, %v13241_v13  ;;  %v5619_v47 = vmul.f32 %v5491_v2, %v5491_v2  ;;  %3001 = vmatprep.mubr.bf16.mxu1 %v13180_v37  ;;  %v13244_v62 = vld [vmem:[#allocation121_spill] sm:$0xff]  ;;  %v13249_v59 = vld [vmem:[#allocation103_spill] sm:$0xff] }
 0x3a5   :  { %v6229_v9 = vadd.f32 -1.0, %v5807_v60  ;;  %v5806_v44 = vadd.f32 %v9592_v10, %v5678_v40  ;;  %v5490_v51 = vsub.f32 %v13243_v57, %v1791_v3  ;;  %v5493_v38 = vsub.f32 %v13244_v62, %v1806_v46  ;;  %v6437_v3 = vpop.f32.mrb[114].mxu1  ;;  %v13247_v46 = vld [vmem:[#allocation86_spill] sm:$0xff] }
 0x3a6   :  { %v5681_v28 = vadd.f32 %v5617_v18, %v13240_v55  ;;  %v5680_v49 = vadd.f32 %v5616_v15, %v13242_v6  ;;  %v5996_v20 = vadd.f32 %v5995_v5, %v5933_v8  ;;  %v13246_v4 = vsub.f32 0.0, %v13245_v19 }
 0x3a7   :  { %v5935_v53 = vmul.f32 0.5, %v6229_v9  ;;  %v6228_v41 = vadd.f32 -1.0, %v5806_v44  ;;  %v5618_v40 = vmul.f32 %v5490_v51, %v5490_v51  ;;  %v5621_v18 = vmul.f32 %v5493_v38, %v5493_v38  ;;  %v13252_v51 = vld [vmem:[#allocation91_spill] sm:$0xff]  ;;  %v13253_v38 = vld [vmem:[#allocation102_spill] sm:$0xff] }
 0x3a8   :  { %v5809_v10 = vadd.f32 %v9602_v29, %v5681_v28  ;;  %v5808_v60 = vadd.f32 %v9606_v27, %v5680_v49  ;;  %v5683_v34 = vadd.f32 %v5619_v47, %v13246_v4  ;;  %v1801_v15 = vadd.f32 %v9748_v63, %v1800_v39  ;;  %v13251_v28 = vld [vmem:[#allocation120_spill] sm:$0xff]  ;;  %v1830_v49 = vpop.f32.mrb[115].mxu1 }
 0x3a9   :  { %v2517_v26 = vadd.f32 %v6498_v35, %v9893_v50  ;;  %v5934_v8 = vmul.f32 0.5, %v6228_v41  ;;  %v13248_v44 = vsub.f32 0.0, %v13247_v46  ;;  %v13250_v27 = vsub.f32 0.0, %v13249_v59  ;;  %v6502_v46 = vpop.f32.mrb[200].mxu0 }
 0x3aa   :  { %v6231_v2 = vadd.f32 -1.0, %v5809_v10  ;;  %v6230_v5 = vadd.f32 -1.0, %v5808_v60  ;;  %v5811_v9 = vadd.f32 %v9610_v22, %v5683_v34  ;;  %v5492_v13 = vsub.f32 %v13251_v28, %v1801_v15  ;;  %v13254_v15 = vld [vmem:[#allocation99_spill] sm:$0xff] }
 0x3ab   :  { %v5682_v29 = vadd.f32 %v5618_v40, %v13248_v44  ;;  %v5685_v55 = vadd.f32 %v5621_v18, %v13250_v27  ;;  %v2729_v6 = vmax.f32 %v2517_v26, 0.0  ;;  %v5997_v47 = vadd.f32 %v5996_v20, %v5934_v8  ;;  %3002 = vmatmul.mubr.bf16.gmra.mrb[156].mxu1 %v10017_v58  ;;  %v6440_v20 = vpop.f32.mrb[116].mxu1 }
 0x3ac   :  { %v5937_v39 = vmul.f32 0.5, %v6231_v2  ;;  %v5936_v57 = vmul.f32 0.5, %v6230_v5  ;;  %v6233_v35 = vadd.f32 -1.0, %v5811_v9  ;;  %v5620_v22 = vmul.f32 %v5492_v13, %v5492_v13  ;;  %3011 = vmatprep.mubr.bf16.mxu1 %v13180_v37  ;;  %v10066_v5 = vpop.f32.mrb[117].mxu1  ;;  %v13256_v9 = vld [vmem:[#allocation125_spill] sm:$0xff] }
 0x3ad   :  { %v5810_v62 = vadd.f32 %v13252_v51, %v5682_v29  ;;  %v5813_v41 = vadd.f32 %v13253_v38, %v5685_v55  ;;  %v2509_v10 = vadd.f32 %v9893_v50, %v2508_v1  ;;  %v5998_v60 = vadd.f32 %v5997_v47, %v5935_v53  ;;  %v13257_v29 = vld [vmem:[#allocation100_spill] sm:$0xff]  ;;  %v10074_v55 = vpop.f32.mrb[201].mxu0  ;;  %v10079_v51 = vpop.f32.mrb[118].mxu1 }
 0x3ae   :  { %v5939_v19 = vmul.f32 0.5, %v6233_v35  ;;  %v1816_v4 = vadd.f32 %v6431_v23, %v9748_v63  ;;  %v2520_v34 = vadd.f32 %v6499_v54, %v9893_v50  ;;  %v13255_v26 = vsub.f32 0.0, %v13254_v15 }
 0x3af   :  { %v6232_v40 = vadd.f32 -1.0, %v5810_v62  ;;  %v6235_v18 = vadd.f32 -1.0, %v5813_v41  ;;  %v2727_v2 = vmax.f32 %v2509_v10, 0.0  ;;  %v5999_v1 = vadd.f32 %v5998_v60, %v5936_v57  ;;  %v13258_v57 = vld [vmem:[#allocation124_spill] sm:$0xff]  ;;  %v10081_v62 = vpop.f32.mrb[202].mxu0  ;;  %v10085_v10 = vpop.f32.mrb[119].mxu1 }
 0x3b0   :  { %v5684_v8 = vadd.f32 %v5620_v22, %v13255_v26  ;;  %v5495_v58 = vsub.f32 %v13256_v9, %v1816_v4  ;;  %v2730_v53 = vmax.f32 %v2520_v34, 0.0  ;;  %v1811_v23 = vadd.f32 %v9748_v63, %v10028_v12  ;;  %v13259_v60 = vld [vmem:[#allocation110_spill] sm:$0xff] }
 0x3b1   :  { %v5938_v54 = vmul.f32 0.5, %v6232_v40  ;;  %v5941_v44 = vmul.f32 0.5, %v6235_v18  ;;  %v2512_v27 = vadd.f32 %v9893_v50, %v10030_v52  ;;  %v6000_v28 = vadd.f32 %v5999_v1, %v5937_v39  ;;  %v10087_v52 = vpop.f32.mrb[203].mxu0  ;;  %v13261_v26 = vld [vmem:[#allocation130_spill] sm:$0xff]  ;;  %v13262_v1 = vld [vmem:[#allocation129_spill] sm:$0xff] }
 0x3b2   :  { %v5812_v59 = vadd.f32 %v13257_v29, %v5684_v8  ;;  %v5623_v13 = vmul.f32 %v5495_v58, %v5495_v58  ;;  %v10076_v47 = vpack.c.bf16 %v2730_v53, %v2729_v6  ;;  %v5494_v35 = vsub.f32 %v13258_v57, %v1811_v23  ;;  %v13263_v58 = vld [vmem:[#allocation111_spill] sm:$0xff]  ;;  %v13264_v53 = vld [vmem:[#allocation109_spill] sm:$0xff] }
 0x3b3   :  { %v2728_v38 = vmax.f32 %v2512_v27, 0.0  ;;  %v1826_v41 = vadd.f32 %v6434_v21, %v9748_v63  ;;  %v1821_v22 = vadd.f32 %v9748_v63, %v1820_v42  ;;  %v6001_v39 = vadd.f32 %v6000_v28, %v5938_v54  ;;  %v10098_v27 = vpop.f32.mrb[120].mxu1 }
 0x3b4   :  { %v6234_v12 = vadd.f32 -1.0, %v5812_v59  ;;  %v13260_v6 = vsub.f32 0.0, %v13259_v60  ;;  %v5622_v34 = vmul.f32 %v5494_v35, %v5494_v35  ;;  %v1836_v40 = vadd.f32 %v6437_v3, %v9748_v63  ;;  %v13266_v59 = vld [vmem:[#allocation136_spill] sm:$0xff]  ;;  %v10102_v57 = vpop.f32.mrb[121].mxu1 }
 0x3b5   :  { %v2785_v15 = vpack.c.bf16 %v2728_v38, %v2727_v2  ;;  %v5497_v8 = vsub.f32 %v13261_v26, %v1826_v41  ;;  %v5496_v9 = vsub.f32 %v13262_v1, %v1821_v22  ;;  %v6002_v21 = vadd.f32 %v6001_v39, %v5939_v19  ;;  %v13268_v22 = vld [vmem:[#allocation119_spill] sm:$0xff] }
 0x3b6   :  { %v5687_v4 = vadd.f32 %v5623_v13, %v13260_v6  ;;  %v5940_v18 = vmul.f32 0.5, %v6234_v12  ;;  %v13265_v23 = vsub.f32 0.0, %v13264_v53  ;;  %v5499_v54 = vsub.f32 %v13266_v59, %v1836_v40  ;;  %v13267_v12 = vld [vmem:[#allocation108_spill] sm:$0xff]  ;;  %v13270_v6 = vld [vmem:[#allocation118_spill] sm:$0xff]  ;;  %v13272_v40 = vld [vmem:[#allocation135_spill] sm:$0xff] }
 0x3b7   :  { %v5625_v28 = vmul.f32 %v5497_v8, %v5497_v8  ;;  %v5624_v13 = vmul.f32 %v5496_v9, %v5496_v9  ;;  %3012 = vmatmul.mubr.bf16.gmra.mrb[160].mxu1 %v2785_v15  ;;  %v1831_v3 = vadd.f32 %v9748_v63, %v1830_v49  ;;  %v1846_v2 = vadd.f32 %v6440_v20, %v9748_v63  ;;  %v13273_v49 = vld [vmem:[#allocation141_spill] sm:$0xff] }
 0x3b8   :  { %v5815_v42 = vadd.f32 %v13263_v58, %v5687_v4  ;;  %v5686_v29 = vadd.f32 %v5622_v34, %v13265_v23  ;;  %v6003_v35 = vadd.f32 %v6002_v21, %v5940_v18  ;;  %v5627_v41 = vmul.f32 %v5499_v54, %v5499_v54  ;;  %3021 = vmatprep.mubr.bf16.mxu1 %v13180_v37  ;;  %v13274_v18 = vld [vmem:[#allocation123_spill] sm:$0xff]  ;;  %v10114_v21 = vpop.f32.mrb[122].mxu1 }
 0x3b9   :  { %v13269_v39 = vsub.f32 0.0, %v13268_v22  ;;  %v13271_v4 = vsub.f32 0.0, %v13270_v6  ;;  %v5498_v15 = vsub.f32 %v13272_v40, %v1831_v3  ;;  %v5501_v26 = vsub.f32 %v13273_v49, %v1846_v2  ;;  %v10118_v59 = vpop.f32.mrb[123].mxu1 }
 0x3ba   :  { %v6237_v19 = vadd.f32 -1.0, %v5815_v42  ;;  %v5814_v38 = vadd.f32 %v13267_v12, %v5686_v29  ;;  %v6004_v8 = vadd.f32 %v6003_v35, %v5941_v44  ;;  %v13275_v1 = vsub.f32 0.0, %v13274_v18  ;;  %v13276_v42 = vld [vmem:[#allocation164_spill] sm:$0xff]  ;;  %v10124_v44 = vld [vmem:[%s12669_s6] ss:$0 sm:$0xff] }
 0x3bb   :  { %v5689_v60 = vadd.f32 %v5625_v28, %v13269_v39  ;;  %v5688_v34 = vadd.f32 %v5624_v13, %v13271_v4  ;;  %v5626_v23 = vmul.f32 %v5498_v15, %v5498_v15  ;;  %v5629_v29 = vmul.f32 %v5501_v26, %v5501_v26  ;;  %v13277_v35 = vld [vmem:[#allocation122_spill] sm:$0xff] }
 0x3bc   :  { %v5943_v63 = vmul.f32 0.5, %v6237_v19  ;;  %v6236_v20 = vadd.f32 -1.0, %v5814_v38  ;;  %v5691_v9 = vadd.f32 %v5627_v41, %v13275_v1  ;;  %v1841_v13 = vadd.f32 %v10124_v44, %v10066_v5  ;;  %v13279_v38 = vld [vmem:[#allocation128_spill] sm:$0xff]  ;;  %v10142_v1 = vpop.f32.mrb[204].mxu0 }
 0x3bd   :  { %v5817_v58 = vadd.f32 %v9669_v48, %v5689_v60  ;;  %v5816_v53 = vadd.f32 %v13276_v42, %v5688_v34  ;;  %v2533_v3 = vadd.f32 %v6502_v46, %v9893_v50  ;;  %v13278_v19 = vsub.f32 0.0, %v13277_v35  ;;  %v13281_v60 = vld [vmem:[#allocation140_spill] sm:$0xff]  ;;  %v6452_v34 = vpop.f32.mrb[124].mxu1  ;;  %v13282_v42 = vld [vmem:[#allocation126_spill] sm:$0xff] }
 0x3be   :  { %v5942_v54 = vmul.f32 0.5, %v6236_v20  ;;  %v5819_v28 = vadd.f32 %v9686_v56, %v5691_v9  ;;  %v13280_v41 = vsub.f32 0.0, %v13279_v38  ;;  %v5500_v6 = vsub.f32 %v13281_v60, %v1841_v13  ;;  %v10137_v49 = vpop.f32.mrb[125].mxu1 }
 0x3bf   :  { %v6239_v48 = vadd.f32 -1.0, %v5817_v58  ;;  %v6238_v2 = vadd.f32 -1.0, %v5816_v53  ;;  %v5690_v12 = vadd.f32 %v5626_v23, %v13278_v19  ;;  %v2733_v4 = vmax.f32 %v2533_v3, 0.0  ;;  %3022 = vmatmul.mubr.bf16.gmra.mrb[164].mxu1 %v10076_v47  ;;  %v10148_v47 = vpop.f32.mrb[205].mxu0 }
 0x3c0   :  { %v5693_v22 = vadd.f32 %v5629_v29, %v13280_v41  ;;  %v6005_v39 = vadd.f32 %v6004_v8, %v5942_v54  ;;  %v6241_v56 = vadd.f32 -1.0, %v5819_v28  ;;  %v5628_v18 = vmul.f32 %v5500_v6, %v5500_v6  ;;  %3031 = vmatprep.mubr.bf16.mxu1 %v13180_v37  ;;  %v10154_v54 = vpop.f32.mrb[126].mxu1  ;;  %v10156_v28 = vpop.f32.mrb[206].mxu0  ;;  %v13286_v41 = vld [vmem:[#allocation143_spill] sm:$0xff] }
 0x3c1   :  { %v5945_v40 = vmul.f32 0.5, %v6239_v48  ;;  %v5944_v15 = vmul.f32 0.5, %v6238_v2  ;;  %v5818_v5 = vadd.f32 %v9676_v31, %v5690_v12  ;;  %v2525_v8 = vadd.f32 %v9893_v50, %v10074_v55  ;;  %v10161_v35 = vpop.f32.mrb[207].mxu0  ;;  %v13285_v12 = vld [vmem:[#allocation127_spill] sm:$0xff] }
 0x3c2   :  { %v5821_v46 = vadd.f32 %v9691_v7, %v5693_v22  ;;  %v6006_v26 = vadd.f32 %v6005_v39, %v5943_v63  ;;  %v5947_v20 = vmul.f32 0.5, %v6241_v56  ;;  %v1856_v31 = vadd.f32 %v10124_v44, %v10079_v51  ;;  %v13284_v51 = vld [vmem:[#allocation144_spill] sm:$0xff] }
 0x3c3   :  { %v6240_v9 = vadd.f32 -1.0, %v5818_v5  ;;  %v2536_v7 = vadd.f32 %v10081_v62, %v9893_v50  ;;  %v13283_v53 = vsub.f32 0.0, %v13282_v42  ;;  %v2731_v29 = vmax.f32 %v2525_v8, 0.0  ;;  %v10159_v62 = vpop.f32.mrb[127].mxu1  ;;  %v13291_v42 = vld [vmem:[#allocation132_spill] sm:$0xff] }
 0x3c4   :  { %v6243_v58 = vadd.f32 -1.0, %v5821_v46  ;;  %v6007_v63 = vadd.f32 %v6006_v26, %v5944_v15  ;;  %v1851_v55 = vadd.f32 %v10124_v44, %v10085_v10  ;;  %v5503_v48 = vsub.f32 %v13284_v51, %v1856_v31  ;;  %v10173_v26 = vpop.f32.mrb[128].mxu1  ;;  %v13290_v31 = vld [vmem:[#allocation148_spill] sm:$0xff] }
 0x3c5   :  { %v5692_v23 = vadd.f32 %v5628_v18, %v13283_v53  ;;  %v5946_v13 = vmul.f32 0.5, %v6240_v9  ;;  %v2734_v2 = vmax.f32 %v2536_v7, 0.0  ;;  %v2528_v10 = vadd.f32 %v9893_v50, %v10087_v52  ;;  %v13287_v18 = vld [vmem:[#allocation134_spill] sm:$0xff] }
 0x3c6   :  { %v5949_v3 = vmul.f32 0.5, %v6243_v58  ;;  %v6008_v19 = vadd.f32 %v6007_v63, %v5945_v40  ;;  %v5502_v22 = vsub.f32 %v13286_v41, %v1851_v55  ;;  %v5631_v39 = vmul.f32 %v5503_v48, %v5503_v48  ;;  %v13289_v58 = vld [vmem:[#allocation149_spill] sm:$0xff] }
 0x3c7   :  { %v5820_v38 = vadd.f32 %v13285_v12, %v5692_v23  ;;  %v10167_v56 = vpack.c.bf16 %v2734_v2, %v2733_v4  ;;  %v1866_v60 = vadd.f32 %v10124_v44, %v10098_v27  ;;  %v1861_v6 = vadd.f32 %v10124_v44, %v10102_v57  ;;  %v10181_v27 = vpop.f32.mrb[129].mxu1  ;;  %v13293_v2 = vld [vmem:[#allocation155_spill] sm:$0xff] }
 0x3c8   :  { %v6009_v15 = vadd.f32 %v6008_v19, %v5946_v13  ;;  %v5630_v46 = vmul.f32 %v5502_v22, %v5502_v22  ;;  %v2732_v40 = vmax.f32 %v2528_v10, 0.0  ;;  %v13288_v8 = vsub.f32 0.0, %v13287_v18  ;;  %v13294_v10 = vld [vmem:[#allocation139_spill] sm:$0xff] }
 0x3c9   :  { %v6242_v5 = vadd.f32 -1.0, %v5820_v38  ;;  %v5505_v52 = vsub.f32 %v13289_v58, %v1866_v60  ;;  %v5504_v4 = vsub.f32 %v13290_v31, %v1861_v6  ;;  %v1876_v7 = vadd.f32 %v10124_v44, %v10114_v21  ;;  %v13299_v18 = vld [vmem:[#allocation159_spill] sm:$0xff] }
 0x3ca   :  { %v5695_v9 = vadd.f32 %v5631_v39, %v13288_v8  ;;  %v6010_v57 = vadd.f32 %v6009_v15, %v5947_v20  ;;  %v13292_v53 = vsub.f32 0.0, %v13291_v42  ;;  %v2787_v55 = vpack.c.bf16 %v2732_v40, %v2731_v29  ;;  %v10191_v20 = vpop.f32.mrb[130].mxu1  ;;  %v13298_v40 = vld [vmem:[#allocation154_spill] sm:$0xff] }
 0x3cb   :  { %v5948_v63 = vmul.f32 0.5, %v6242_v5  ;;  %v5633_v51 = vmul.f32 %v5505_v52, %v5505_v52  ;;  %v5632_v48 = vmul.f32 %v5504_v4, %v5504_v4  ;;  %v5507_v19 = vsub.f32 %v13293_v2, %v1876_v7  ;;  %v10198_v5 = vpop.f32.mrb[131].mxu1  ;;  %v13303_v2 = vld [vmem:[#allocation158_spill] sm:$0xff] }
 0x3cc   :  { %v5694_v23 = vadd.f32 %v5630_v46, %v13292_v53  ;;  %v5823_v13 = vadd.f32 %v9717_v43, %v5695_v9  ;;  %3032 = vmatmul.mubr.bf16.gmra.mrb[168].mxu1 %v2787_v55  ;;  %v1871_v21 = vadd.f32 %v10124_v44, %v10118_v59  ;;  %v1886_v41 = vadd.f32 %v10124_v44, %v6452_v34  ;;  %v13296_v43 = vld [vmem:[#allocation138_spill] sm:$0xff]  ;;  %v10208_v42 = vpop.f32.mrb[132].mxu1 }
 0x3cd   :  { %v6011_v12 = vadd.f32 %v6010_v57, %v5948_v63  ;;  %v13295_v29 = vsub.f32 0.0, %v13294_v10  ;;  %v13297_v60 = vsub.f32 0.0, %v13296_v43  ;;  %v5635_v15 = vmul.f32 %v5507_v19, %v5507_v19  ;;  %3041 = vmatprep.mubr.bf16.mxu1 %v13180_v37  ;;  %v10213_v55 = vpop.f32.mrb[133].mxu1  ;;  %v10220_v19 = vpop.f32.mrb[208].mxu0 }
 0x3ce   :  { %v5822_v38 = vadd.f32 %v9710_v11, %v5694_v23  ;;  %v6245_v22 = vadd.f32 -1.0, %v5823_v13  ;;  %v5506_v59 = vsub.f32 %v13298_v40, %v1871_v21  ;;  %v5509_v34 = vsub.f32 %v13299_v18, %v1886_v41  ;;  %v10222_v41 = vpop.f32.mrb[209].mxu0 }
 0x3cf   :  { %v5697_v39 = vadd.f32 %v5633_v51, %v13295_v29  ;;  %v5696_v6 = vadd.f32 %v5632_v48, %v13297_v60  ;;  %v6012_v46 = vadd.f32 %v6011_v12, %v5949_v3  ;;  %v13300_v52 = vsub.f32 0.0, %v9276_v61  ;;  %v10229_v29 = vpop.f32.mrb[210].mxu0 }
 0x3d0   :  { %v6244_v11 = vadd.f32 -1.0, %v5822_v38  ;;  %v5951_v8 = vmul.f32 0.5, %v6245_v22  ;;  %v5634_v7 = vmul.f32 %v5506_v59, %v5506_v59  ;;  %v5637_v63 = vmul.f32 %v5509_v34, %v5509_v34 }
 0x3d1   :  { %v5825_v9 = vadd.f32 %v9741_v24, %v5697_v39  ;;  %v5824_v58 = vadd.f32 %v9728_v0, %v5696_v6  ;;  %v5699_v31 = vadd.f32 %v5635_v15, %v13300_v52  ;;  %v1881_v57 = vadd.f32 %v10124_v44, %v10137_v49 }
 0x3d2   :  { %v5950_v4 = vmul.f32 0.5, %v6244_v11  ;;  %v2549_v24 = vadd.f32 %v10142_v1, %v9893_v50  ;;  %v13301_v61 = vsub.f32 0.0, %v13101_v16  ;;  %v13302_v51 = vsub.f32 0.0, %v9343_v33  ;;  %v10227_v33 = vpop.f32.mrb[134].mxu1 }
 0x3d3   :  { %v6247_v3 = vadd.f32 -1.0, %v5825_v9  ;;  %v6246_v53 = vadd.f32 -1.0, %v5824_v58  ;;  %v5827_v23 = vadd.f32 %v9759_v36, %v5699_v31  ;;  %v5508_v49 = vsub.f32 %v13303_v2, %v1881_v57  ;;  %v13306_v31 = vld [vmem:[#allocation161_spill] sm:$0xff] }
 0x3d4   :  { %v6013_v0 = vadd.f32 %v6012_v46, %v5950_v4  ;;  %v5698_v13 = vadd.f32 %v5634_v7, %v13301_v61  ;;  %v5701_v48 = vadd.f32 %v5637_v63, %v13302_v51  ;;  %v2737_v36 = vmax.f32 %v2549_v24, 0.0  ;;  %3042 = vmatmul.mubr.bf16.gmra.mrb[172].mxu1 %v10167_v56  ;;  %v10251_v7 = vld [vmem:[#allocation9] ss:$0 sm:$0xff] }
 0x3d5   :  { %v5953_v12 = vmul.f32 0.5, %v6247_v3  ;;  %v5952_v38 = vmul.f32 0.5, %v6246_v53  ;;  %v6249_v21 = vadd.f32 -1.0, %v5827_v23  ;;  %v5636_v16 = vmul.f32 %v5508_v49, %v5508_v49  ;;  %3051 = vmatprep.mubr.bf16.mxu1 %v13180_v37 }
 0x3d6   :  { %v6014_v1 = vadd.f32 %v6013_v0, %v5951_v8  ;;  %v5826_v22 = vadd.f32 %v9752_v17, %v5698_v13  ;;  %v5829_v10 = vadd.f32 %v9773_v30, %v5701_v48  ;;  %v2541_v43 = vadd.f32 %v9893_v50, %v10148_v47  ;;  %v10238_v30 = vpop.f32.mrb[135].mxu1  ;;  %v10240_v17 = vpop.f32.mrb[211].mxu0  ;;  %v13305_v47 = vld [vmem:[#allocation162_spill] sm:$0xff] }
 0x3d7   :  { %v5955_v39 = vmul.f32 0.5, %v6249_v21  ;;  %v1896_v60 = vadd.f32 %v10124_v44, %v10154_v54  ;;  %v2552_v6 = vadd.f32 %v10156_v28, %v9893_v50  ;;  %v13304_v46 = vsub.f32 0.0, %v9317_v25  ;;  %v10259_v53 = vpop.f32.mrb[212].mxu0  ;;  %v13308_v48 = vld [vmem:[#allocation166_spill] sm:$0xff] }
 0x3d8   :  { %v6015_v56 = vadd.f32 %v6014_v1, %v5952_v38  ;;  %v6248_v15 = vadd.f32 -1.0, %v5826_v22  ;;  %v6251_v11 = vadd.f32 -1.0, %v5829_v10  ;;  %v2735_v59 = vmax.f32 %v2541_v43, 0.0  ;;  %v10265_v13 = vpop.f32.mrb[213].mxu0  ;;  %v13310_v38 = vld [vmem:[#allocation153_spill] sm:$0xff]  ;;  %v13312_v1 = vld [vmem:[#allocation167_spill] sm:$0xff] }
 0x3d9   :  { %v5700_v40 = vadd.f32 %v5636_v16, %v13304_v46  ;;  %v5511_v18 = vsub.f32 %v13305_v47, %v1896_v60  ;;  %v2738_v34 = vmax.f32 %v2552_v6, 0.0  ;;  %v1891_v54 = vadd.f32 %v10124_v44, %v10159_v62  ;;  %v13313_v60 = vld [vmem:[#allocation169_spill] sm:$0xff] }
 0x3da   :  { %v5954_v50 = vmul.f32 0.5, %v6248_v15  ;;  %v6016_v28 = vadd.f32 %v6015_v56, %v5953_v12  ;;  %v5957_v8 = vmul.f32 0.5, %v6251_v11  ;;  %v2544_v25 = vadd.f32 %v10251_v7, %v10161_v35  ;;  %v10269_v12 = vpop.f32.mrb[214].mxu0  ;;  %v13314_v15 = vld [vmem:[#allocation133_spill] sm:$0xff] }
 0x3db   :  { %v5828_v9 = vadd.f32 %v9767_v45, %v5700_v40  ;;  %v5639_v58 = vmul.f32 %v5511_v18, %v5511_v18  ;;  %v10248_v52 = vpack.c.bf16 %v2738_v34, %v2737_v36  ;;  %v5510_v4 = vsub.f32 %v13306_v31, %v1891_v54  ;;  %v10275_v10 = vpop.f32.mrb[215].mxu0  ;;  %v13315_v40 = vld [vmem:[#allocation157_spill] sm:$0xff]  ;;  %v13317_v18 = vld [vmem:[#allocation156_spill] sm:$0xff] }
 0x3dc   :  { %v6017_v63 = vadd.f32 %v6016_v28, %v5954_v50  ;;  %v1906_v62 = vadd.f32 %v10124_v44, %v10173_v26  ;;  %v1901_v3 = vadd.f32 %v10124_v44, %v10181_v27  ;;  %v13307_v45 = vsub.f32 0.0, %v9418_v14  ;;  %v13309_v26 = vld [vmem:[#allocation165_spill] sm:$0xff]  ;;  %v13319_v50 = vld [vmem:[#allocation142_spill] sm:$0xff] }
 0x3dd   :  { %v6250_v57 = vadd.f32 -1.0, %v5828_v9  ;;  %v5638_v24 = vmul.f32 %v5510_v4, %v5510_v4  ;;  %v2736_v0 = vmax.f32 %v2544_v25, 0.0  ;;  %v1916_v61 = vadd.f32 %v10124_v44, %v10191_v20  ;;  %v13322_v25 = vld [vmem:[#allocation171_spill] sm:$0xff] }
 0x3de   :  { %v5703_v23 = vadd.f32 %v5639_v58, %v13307_v45  ;;  %v6018_v51 = vadd.f32 %v6017_v63, %v5955_v39  ;;  %v5513_v2 = vsub.f32 %v13308_v48, %v1906_v62  ;;  %v5512_v49 = vsub.f32 %v13309_v26, %v1901_v3  ;;  %v13320_v58 = vld [vmem:[#allocation160_spill] sm:$0xff] }
 0x3df   :  { %v5956_v35 = vmul.f32 0.5, %v6250_v57  ;;  %v13311_v14 = vsub.f32 0.0, %v13310_v38  ;;  %v2789_v36 = vpack.c.bf16 %v2736_v0, %v2735_v59  ;;  %v5515_v22 = vsub.f32 %v13312_v1, %v1916_v61  ;;  %v13323_v57 = vld [vmem:[#allocation172_spill] sm:$0xff] }
 0x3e0   :  { %v5831_v27 = vadd.f32 %v9791_v32, %v5703_v23  ;;  %v5641_v16 = vmul.f32 %v5513_v2, %v5513_v2  ;;  %v5640_v43 = vmul.f32 %v5512_v49, %v5512_v49  ;;  %v1911_v39 = vadd.f32 %v10124_v44, %v10198_v5  ;;  %v6518_v23 = vpop.f32.mrb[216].mxu0  ;;  %v13326_v2 = vld [vmem:[#allocation78_spill] sm:$0xff] }
 0x3e1   :  { %v5702_v21 = vadd.f32 %v5638_v24, %v13311_v14  ;;  %v6019_v20 = vadd.f32 %v6018_v51, %v5956_v35  ;;  %v5643_v56 = vmul.f32 %v5515_v22, %v5515_v22  ;;  %v5771_v32 = vmul.f32 %v13314_v15, %v13314_v15  ;;  %3052 = vmatmul.mubr.bf16.gmra.mrb[176].mxu1 %v2789_v36  ;;  %v2588_v51 = vpop.f32.mrb[217].mxu0  ;;  %v13329_v14 = vld [vmem:[#allocation170_spill] sm:$0xff] }
 0x3e2   :  { %v1926_v11 = vadd.f32 %v10124_v44, %v10208_v42  ;;  %v13316_v59 = vsub.f32 0.0, %v13315_v40  ;;  %v13318_v34 = vsub.f32 0.0, %v13317_v18  ;;  %v5514_v28 = vsub.f32 %v13319_v50, %v1911_v39  ;;  %3061 = vmatprep.mubr.bf16.mxu1 %v13180_v37  ;;  %v6519_v36 = vpop.f32.mrb[218].mxu0 }
 0x3e3   :  { %v5830_v6 = vadd.f32 %v13313_v60, %v5702_v21  ;;  %v6020_v46 = vadd.f32 %v6019_v20, %v5957_v8  ;;  %v6253_v5 = vadd.f32 -1.0, %v5831_v27  ;;  %v13321_v31 = vsub.f32 0.0, %v13320_v58  ;;  %v13324_v8 = vld [vmem:[#allocation22_spill] sm:$0xff]  ;;  %v13328_v27 = vld [vmem:[#allocation23_spill] sm:$0xff]  ;;  %v2591_v39 = vpop.f32.mrb[219].mxu0 }
 0x3e4   :  { %v5705_v47 = vadd.f32 %v5641_v16, %v13316_v59  ;;  %v5704_v54 = vadd.f32 %v5640_v43, %v13318_v34  ;;  %v5517_v63 = vsub.f32 %v13322_v25, %v1926_v11  ;;  %v5642_v3 = vmul.f32 %v5514_v28, %v5514_v28  ;;  %v13330_v20 = vld [vmem:[#allocation163_spill] sm:$0xff]  ;;  %v13335_v59 = vld [vmem:[#allocation168_spill] sm:$0xff] }
 0x3e5   :  { %v6252_v9 = vadd.f32 -1.0, %v5830_v6  ;;  %v5707_v4 = vadd.f32 %v5643_v56, %v13321_v31  ;;  %v1921_v45 = vadd.f32 %v10124_v44, %v10213_v55  ;;  %v2565_v35 = vadd.f32 %v10251_v7, %v10220_v19  ;;  %v13332_v60 = vld [vmem:[#allocation131_spill] sm:$0xff] }
 0x3e6   :  { %v5833_v42 = vadd.f32 %v13323_v57, %v5705_v47  ;;  %v5832_v62 = vadd.f32 %v13324_v8, %v5704_v54  ;;  %v5645_v61 = vmul.f32 %v5517_v63, %v5517_v63  ;;  %v13327_v26 = vsub.f32 0.0, %v13326_v2  ;;  %v13333_v56 = vld [vmem:[#allocation31_spill] sm:$0xff]  ;;  %v13339_v63 = vld [vmem:[#allocation26_spill] sm:$0xff] }
 0x3e7   :  { %v5958_v24 = vmul.f32 0.5, %v6252_v9  ;;  %v10297_v0 = vadd.f32 %v5771_v32, %v5707_v4  ;;  %v5773_v38 = vmul.f32 %v13328_v27, %v13328_v27  ;;  %v5516_v21 = vsub.f32 %v13329_v14, %v1921_v45  ;;  %v13336_v34 = vld [vmem:[#allocation87_spill] sm:$0xff] }
 0x3e8   :  { %v6254_v48 = vadd.f32 -1.0, %v5832_v62  ;;  %v5706_v49 = vadd.f32 %v5642_v3, %v13327_v26  ;;  %v5959_v55 = vmul.f32 0.5, %v6253_v5  ;;  %v6255_v22 = vadd.f32 -1.0, %v5833_v42  ;;  %v13340_v62 = vld [vmem:[#allocation27_spill] sm:$0xff] }
 0x3e9   :  { %13325 = vst [vmem:[#allocation30_spill] sm:$0xff] %v10297_v0  ;;  %v6021_v1 = vadd.f32 %v6020_v46, %v5958_v24  ;;  %v13331_v16 = vsub.f32 0.0, %v13330_v20  ;;  %v5582_v19 = vsub.f32 0.0, %v13332_v60  ;;  %v5644_v32 = vmul.f32 %v5516_v21, %v5516_v21  ;;  %3062 = vmatmul.mubr.bf16.gmra.mrb[180].mxu1 %v10248_v52  ;;  %v13341_v24 = vld [vmem:[#allocation137_spill] sm:$0xff] }
 0x3ea   :  { %v5960_v6 = vmul.f32 0.5, %v6254_v48  ;;  %v5834_v15 = vadd.f32 %v13333_v56, %v5706_v49  ;;  %v5772_v47 = vmul.f32 %v13335_v59, %v13335_v59  ;;  %v2741_v18 = vmax.f32 %v2565_v35, 0.0  ;;  %3071 = vmatprep.mubr.bf16.mxu1 %v13180_v37 }
 0x3eb   :  { %v5709_v43 = vadd.f32 %v5645_v61, %v13331_v16  ;;  %v6022_v11 = vadd.f32 %v6021_v1, %v5959_v55  ;;  %v13337_v54 = vsub.f32 0.0, %v13336_v34  ;;  %v1936_v28 = vadd.f32 %v10124_v44, %v10227_v33  ;;  %v6522_v33 = vpop.f32.mrb[220].mxu0 }
 0x3ec   :  { %v6256_v46 = vadd.f32 -1.0, %v5834_v15  ;;  %v2568_v5 = vadd.f32 %v10251_v7, %v10229_v29  ;;  %v5961_v9 = vmul.f32 0.5, %v6255_v22  ;;  %v2557_v31 = vadd.f32 %v10251_v7, %v10222_v41  ;;  %v2604_v41 = vpop.f32.mrb[221].mxu0 }
 0x3ed   :  { %v10310_v40 = vadd.f32 %v5773_v38, %v5709_v43  ;;  %v5708_v50 = vadd.f32 %v5644_v32, %v13337_v54  ;;  %v6023_v58 = vadd.f32 %v6022_v11, %v5960_v6  ;;  %v1931_v52 = vadd.f32 %v10124_v44, %v10238_v30  ;;  %v6523_v48 = vpop.f32.mrb[222].mxu0 }
 0x3ee   :  { %v5962_v4 = vmul.f32 0.5, %v6256_v46  ;;  %v5519_v57 = vsub.f32 %v13339_v63, %v1936_v28  ;;  %v2742_v42 = vmax.f32 %v2568_v5, 0.0  ;;  %v2560_v3 = vadd.f32 %v10251_v7, %v10240_v17  ;;  %v2607_v38 = vpop.f32.mrb[223].mxu0 }
 0x3ef   :  { %13334 = vst [vmem:[#allocation35_spill] sm:$0xff] %v10310_v40  ;;  %v10326_v25 = vadd.f32 %v5772_v47, %v5708_v50  ;;  %v6024_v8 = vadd.f32 %v6023_v58, %v5961_v9  ;;  %v5518_v29 = vsub.f32 %v13340_v62, %v1931_v52  ;;  %v2581_v45 = vadd.f32 %v10251_v7, %v10259_v53  ;;  %v6526_v11 = vpop.f32.mrb[224].mxu0 }
 0x3f0   :  { %v5583_v61 = vsub.f32 0.0, %v13341_v24  ;;  %v5647_v44 = vmul.f32 %v5519_v57, %v5519_v57  ;;  %v2792_v30 = vpack.c.bf16 %v2742_v42, %v2741_v18  ;;  %v2573_v35 = vadd.f32 %v10251_v7, %v10265_v13 }
 0x3f1   :  { %13338 = vst [vmem:[#allocation21_spill] sm:$0xff] %v10326_v25  ;;  %v10337_v2 = vadd.f32 %v6024_v8, %v5962_v4  ;;  %v2739_v26 = vmax.f32 %v2557_v31, 0.0  ;;  %v5646_v49 = vmul.f32 %v5518_v29, %v5518_v29  ;;  %v2740_v27 = vmax.f32 %v2560_v3, 0.0 }
 0x3f2   :  { %v10339_v14 = vadd.f32 %v5647_v44, %v5583_v61  ;;  %v2745_v17 = vmax.f32 %v2581_v45, 0.0  ;;  %v2743_v21 = vmax.f32 %v2573_v35, 0.0  ;;  %v2584_v53 = vadd.f32 %v10251_v7, %v10269_v12 }
 0x3f3   :  { %13342 = vst [vmem:[#allocation34_spill] sm:$0xff] %v10337_v2  ;;  %v10343_v55 = vadd.f32 %v5646_v49, %v5582_v19  ;;  %v2791_v1 = vpack.c.bf16 %v2740_v27, %v2739_v26  ;;  %v2576_v13 = vadd.f32 %v10251_v7, %v10275_v10  ;;  %v2597_v22 = vadd.f32 %v10251_v7, %v6518_v23 }
 0x3f4   :  { %13343 = vst [vmem:[#allocation145_spill] sm:$0xff] %v10339_v14  ;;  %v2746_v20 = vmax.f32 %v2584_v53, 0.0  ;;  %v2589_v16 = vadd.f32 %v10251_v7, %v2588_v51  ;;  %v2600_v43 = vadd.f32 %v10251_v7, %v6519_v36  ;;  %v2592_v60 = vadd.f32 %v10251_v7, %v2591_v39  ;;  %v2620_v36 = vpop.f32.mrb[225].mxu0 }
 0x3f5   :  { %13344 = vst [vmem:[#allocation146_spill] sm:$0xff] %v10343_v55  ;;  %3072 = vmatmul.mubr.bf16.gmra.mrb[184].mxu1 %v2791_v1  ;;  %v2744_v6 = vmax.f32 %v2576_v13, 0.0  ;;  %v2749_v56 = vmax.f32 %v2597_v22, 0.0  ;;  %v2613_v12 = vadd.f32 %v10251_v7, %v6522_v33  ;;  %v2605_v19 = vadd.f32 %v10251_v7, %v2604_v41  ;;  %v6527_v34 = vpop.f32.mrb[226].mxu0 }
 0x3f6   :  { %v2794_v15 = vpack.c.bf16 %v2746_v20, %v2745_v17  ;;  %v2747_v32 = vmax.f32 %v2589_v16, 0.0  ;;  %3081 = vmatprep.mubr.bf16.mxu1 %v13180_v37  ;;  %v2750_v10 = vmax.f32 %v2600_v43, 0.0  ;;  %v2748_v23 = vmax.f32 %v2592_v60, 0.0  ;;  %v2623_v9 = vpop.f32.mrb[227].mxu0 }
 0x3f7   :  { %v2793_v59 = vpack.c.bf16 %v2744_v6, %v2743_v21  ;;  %v2616_v51 = vadd.f32 %v10251_v7, %v6523_v48  ;;  %v2608_v18 = vadd.f32 %v10251_v7, %v2607_v38  ;;  %v2629_v46 = vadd.f32 %v10251_v7, %v6526_v11  ;;  %v6530_v3 = vpop.f32.mrb[228].mxu0 }
 0x3f8   :  { %v2796_v47 = vpack.c.bf16 %v2750_v10, %v2749_v56  ;;  %v2795_v39 = vpack.c.bf16 %v2748_v23, %v2747_v32  ;;  %v2753_v54 = vmax.f32 %v2613_v12, 0.0  ;;  %v2621_v28 = vadd.f32 %v10251_v7, %v2620_v36  ;;  %v2636_v41 = vpop.f32.mrb[229].mxu0 }
 0x3f9   :  { %v2754_v50 = vmax.f32 %v2616_v51, 0.0  ;;  %v2632_v5 = vadd.f32 %v10251_v7, %v6527_v34  ;;  %v2751_v58 = vmax.f32 %v2605_v19, 0.0  ;;  %v2752_v31 = vmax.f32 %v2608_v18, 0.0  ;;  %v6531_v61 = vpop.f32.mrb[230].mxu0 }
 0x3fa   :  { %v2624_v52 = vadd.f32 %v10251_v7, %v2623_v9  ;;  %v2757_v63 = vmax.f32 %v2629_v46, 0.0  ;;  %v2755_v33 = vmax.f32 %v2621_v28, 0.0  ;;  %v2645_v45 = vadd.f32 %v10251_v7, %v6530_v3  ;;  %v2639_v35 = vpop.f32.mrb[231].mxu0 }
 0x3fb   :  { %v2798_v4 = vpack.c.bf16 %v2754_v50, %v2753_v54  ;;  %v2758_v57 = vmax.f32 %v2632_v5, 0.0  ;;  %v2797_v42 = vpack.c.bf16 %v2752_v31, %v2751_v58  ;;  %v2637_v24 = vadd.f32 %v10251_v7, %v2636_v41 }
 0x3fc   :  { %v2756_v8 = vmax.f32 %v2624_v52, 0.0  ;;  %v2648_v44 = vadd.f32 %v10251_v7, %v6531_v61  ;;  %v2761_v48 = vmax.f32 %v2645_v45, 0.0 }
 0x3fd   :  { %3082 = vmatmul.mubr.bf16.gmra.mrb[188].mxu1 %v2792_v30  ;;  %v10360_v62 = vpack.c.bf16 %v2758_v57, %v2757_v63  ;;  %v2640_v30 = vadd.f32 %v10251_v7, %v2639_v35  ;;  %v2759_v49 = vmax.f32 %v2637_v24, 0.0 }
 0x3fe   :  { %3091 = vmatprep.mubr.bf16.mxu1 %v13180_v37  ;;  %v2799_v29 = vpack.c.bf16 %v2756_v8, %v2755_v33  ;;  %v2762_v26 = vmax.f32 %v2648_v44, 0.0 }
 0x3ff   :  { %v2760_v27 = vmax.f32 %v2640_v30, 0.0 }
 0x400   :  { %v10368_v38 = vpack.c.bf16 %v2762_v26, %v2761_v48 }
 0x401   :  { %v2801_v17 = vpack.c.bf16 %v2760_v27, %v2759_v49 }
 0x403   :  { %v6534_v21 = vpop.f32.mrb[232].mxu0 }
 0x404   :  { %v2661_v53 = vadd.f32 %v10251_v7, %v6534_v21  ;;  %v2652_v1 = vpop.f32.mrb[233].mxu0 }
 0x405   :  { %3092 = vmatmul.mubr.bf16.gmra.mrb[192].mxu1 %v2793_v59  ;;  %v2653_v13 = vadd.f32 %v10251_v7, %v2652_v1  ;;  %v6535_v22 = vpop.f32.mrb[234].mxu0 }
 0x406   :  { %3101 = vmatprep.mubr.bf16.mxu1 %v13180_v37  ;;  %v2664_v20 = vadd.f32 %v10251_v7, %v6535_v22  ;;  %v2655_v16 = vpop.f32.mrb[235].mxu0  ;;  %v2765_v60 = vmax.f32 %v2661_v53, 0.0  ;;  %v2827_v53 = vld [vmem:[%s12675_s12] sm:$0x3]  ;;  %s7848_s12 = smov [#allocation12]  }
 0x407   :  { %v2656_v43 = vadd.f32 %v10251_v7, %v2655_v16  ;;  %v2763_v56 = vmax.f32 %v2653_v13, 0.0  ;;  %s6048_s15 = sshll.u32 %s7848_s12, 4  ;;  %s6049_s15 = int_to_ptr.vmem [resolvable:$true] %s6048_s15 }
 0x408   :  { %v2766_v6 = vmax.f32 %v2664_v20, 0.0  ;;  %s7794_s17 = scalar_lea.vmem %s6049_s15, 16384  ;;  %p7799_p13 = scmp.lt.s32.totalorder %s6049_s15, %s6049_s15 }
 0x409   :  { %v2764_v12 = vmax.f32 %v2656_v43, 0.0  ;;  %p7795_p12 = scmp.ne.s32.totalorder %s6049_s15, %s7794_s17  ;;  %p7800_p0 = scmp.lt.s32.totalorder %s7794_s17, %s7794_s17 }
 0x40a   :  { %v10376_v19 = vpack.c.bf16 %v2766_v6, %v2765_v60 }
 0x40b   :  { %p7801_p1 = por %p7800_p0, %p7799_p13 }
 0x40d   :  { %3102 = vmatmul.mubr.bf16.gmra.mrb[196].mxu1 %v2794_v15  ;;  %v2803_v15 = vpack.c.bf16 %v2764_v12, %v2763_v56  ;;  %p7802_p2 = pnand %p7801_p1, %p7795_p12 }
 0x40e   :  { %3111 = vmatprep.mubr.bf16.mxu1 %v13180_v37 }
 0x413   :  { %v6538_v32 = vpop.f32.mrb[236].mxu0 }
 0x414   :  { %v2677_v10 = vadd.f32 %v10251_v7, %v6538_v32  ;;  %v2668_v23 = vpop.f32.mrb[237].mxu0 }
 0x415   :  { %3112 = vmatmul.mubr.bf16.gmra.mrb[200].mxu1 %v2795_v39  ;;  %v2669_v11 = vadd.f32 %v10251_v7, %v2668_v23  ;;  %v6539_v59 = vpop.f32.mrb[238].mxu0 }
 0x416   :  { %3121 = vmatprep.mubr.bf16.mxu1 %v13180_v37  ;;  %v2680_v51 = vadd.f32 %v10251_v7, %v6539_v59  ;;  %v2671_v36 = vpop.f32.mrb[239].mxu0  ;;  %v2769_v18 = vmax.f32 %v2677_v10, 0.0 }
 0x417   :  { %v2672_v39 = vadd.f32 %v10251_v7, %v2671_v36 }
 0x418   :  { %v2770_v46 = vmax.f32 %v2680_v51, 0.0 }
 0x419   :  { %v2768_v34 = vmax.f32 %v2672_v39, 0.0 }
 0x41a   :  { %v10384_v54 = vpack.c.bf16 %v2770_v46, %v2769_v18 }
 0x41d   :  { %3122 = vmatmul.mubr.bf16.gmra.mrb[204].mxu1 %v2796_v47  ;;  %v2767_v47 = vmax.f32 %v2669_v11, 0.0 }
 0x41e   :  { %3131 = vmatprep.mubr.bf16.mxu1 %v13180_v37 }
 0x41f   :  { %v10386_v50 = vpack.c.bf16 %v2768_v34, %v2767_v47 }
 0x423   :  { %v6542_v28 = vpop.f32.mrb[240].mxu0 }
 0x424   :  { %v2693_v5 = vadd.f32 %v10251_v7, %v6542_v28  ;;  %v2684_v9 = vpop.f32.mrb[241].mxu0 }
 0x425   :  { %3132 = vmatmul.mubr.bf16.gmra.mrb[208].mxu1 %v2797_v42  ;;  %v2685_v58 = vadd.f32 %v10251_v7, %v2684_v9  ;;  %v6543_v31 = vpop.f32.mrb[242].mxu0 }
 0x426   :  { %3141 = vmatprep.mubr.bf16.mxu1 %v13180_v37  ;;  %v2696_v52 = vadd.f32 %v10251_v7, %v6543_v31  ;;  %v2687_v63 = vpop.f32.mrb[243].mxu0  ;;  %v2773_v42 = vmax.f32 %v2693_v5, 0.0 }
 0x427   :  { %v2688_v57 = vadd.f32 %v10251_v7, %v2687_v63 }
 0x428   :  { %v2774_v33 = vmax.f32 %v2696_v52, 0.0 }
 0x429   :  { %v2772_v8 = vmax.f32 %v2688_v57, 0.0 }
 0x42a   :  { %v10394_v3 = vpack.c.bf16 %v2774_v33, %v2773_v42 }
 0x42d   :  { %3142 = vmatmul.mubr.bf16.gmra.mrb[212].mxu1 %v2798_v4  ;;  %v2771_v4 = vmax.f32 %v2685_v58, 0.0 }
 0x42e   :  { %3151 = vmatprep.mubr.bf16.mxu1 %v13180_v37 }
 0x42f   :  { %v10396_v45 = vpack.c.bf16 %v2772_v8, %v2771_v4 }
 0x435   :  { %3152 = vmatmul.mubr.bf16.gmra.mrb[216].mxu1 %v2799_v29 }
 0x436   :  { %3161 = vmatprep.mubr.bf16.mxu1 %v13180_v37 }
 0x43a   :  { %v6546_v29 = vpop.f32.mrb[244].mxu0 }
 0x43b   :  { %v2709_v41 = vadd.f32 %v10251_v7, %v6546_v29  ;;  %v2700_v24 = vpop.f32.mrb[245].mxu0 }
 0x43c   :  { %v2701_v61 = vadd.f32 %v10251_v7, %v2700_v24  ;;  %v6547_v44 = vpop.f32.mrb[246].mxu0 }
 0x43d   :  { %3162 = vmatmul.mubr.bf16.gmra.mrb[220].mxu1 %v10360_v62  ;;  %v2712_v35 = vadd.f32 %v10251_v7, %v6547_v44  ;;  %v2703_v30 = vpop.f32.mrb[247].mxu0  ;;  %v2777_v62 = vmax.f32 %v2709_v41, 0.0 }
 0x43e   :  { %3171 = vmatprep.mubr.bf16.mxu1 %v13180_v37  ;;  %v2704_v48 = vadd.f32 %v10251_v7, %v2703_v30  ;;  %v2775_v49 = vmax.f32 %v2701_v61, 0.0  ;;  %v13345_v7 = vld [vmem:[#allocation19_spill] sm:$0xff] }
 0x43f   :  { %v2778_v26 = vmax.f32 %v2712_v35, 0.0  ;;  %v13346_v1 = vsub.s32 0, %v13345_v7  ;;  %v13347_v13 = vsub.s32 1, %v13345_v7 }
 0x440   :  { %v2776_v27 = vmax.f32 %v2704_v48, 0.0 }
 0x441   :  { %v10421_v22 = vrot.slane %v2827_v53, %v13347_v13 }
 0x442   :  { %v10409_v21 = vpack.c.bf16 %v2776_v27, %v2775_v49 }
 0x445   :  { %3172 = vmatmul.mubr.bf16.gmra.mrb[224].mxu1 %v2801_v17  ;;  %v10407_v17 = vpack.c.bf16 %v2778_v26, %v2777_v62 }
 0x446   :  { %3181 = vmatprep.mubr.bf16.mxu1 %v13180_v37 }
 0x44d   :  { %3182 = vmatmul.mubr.bf16.gmra.mrb[228].mxu1 %v10368_v38  ;;  %v10417_v38 = vrot.slane %v2827_v53, %v13346_v1  ;;  %v2953_v20 = vpop.f32.mrb[136].mxu1 }
 0x44e   :  { %3191 = vmatprep.mubr.bf16.mxu1 %v13180_v37  ;;  %v2955_v43 = vpop.f32.mrb[137].mxu1 }
 0x44f   :  { %v10424_v16 = vadd.f32 %v2953_v20, %v10417_v38  ;;  %v10427_v60 = vadd.f32 %v2955_v43, %v10421_v22  ;;  %v2957_v6 = vpop.f32.mrb[138].mxu1 }
 0x450   :  { %v2959_v12 = vpop.f32.mrb[139].mxu1  ;;  %v10434_v10 = vadd.f32 %v2957_v6, %v10417_v38 }
 0x451   :  { %v3272_v56 = vand.u32 2147483647, %v10424_v16  ;;  %v10437_v23 = vadd.f32 %v2959_v12, %v10421_v22  ;;  %v4552_v20 = vmax.f32 %v10424_v16, 0.0  ;;  %v4553_v6 = vmax.f32 %v10427_v60, 0.0  ;;  %v7557_v12 = vld [vmem:[#allocation2 + $0x8] sm:$0xff] }
 0x452   :  { %v3274_v51 = vand.u32 2147483647, %v10434_v10  ;;  %vm4040_vm1 = vcmp.ge.f32.partialorder %v10424_v16, 0.0  ;;  %vm4041_vm2 = vcmp.ge.f32.partialorder %v10427_v60, 0.0  ;;  %vm4042_vm3 = vcmp.ge.f32.partialorder %v10434_v10, 0.0 }
 0x453   :  { %v3400_v32 = vsub.f32 0.0, %v3272_v56  ;;  %v3275_v39 = vand.u32 2147483647, %v10437_v23  ;;  %vm4043_vm4 = vcmp.ge.f32.partialorder %v10437_v23, 0.0 }
 0x455   :  { %3192 = vmatmul.mubr.bf16.gmra.mrb[232].mxu1 %v2803_v15  ;;  %v3273_v15 = vand.u32 2147483647, %v10427_v60  ;;  %v3528_v59 = vmul.f32 1.442695, %v3400_v32  ;;  %v2963_v18 = vpop.f32.mrb[140].mxu1  ;;  %v3403_v47 = vsub.f32 0.0, %v3275_v39 }
 0x456   :  { %3201 = vmatprep.mubr.bf16.mxu1 %v13180_v37  ;;  %v2965_v46 = vpop.f32.mrb[141].mxu1  ;;  %v10442_v34 = vadd.f32 %v2963_v18, %v10417_v38 }
 0x457   :  { %v3401_v11 = vsub.f32 0.0, %v3273_v15  ;;  %6786 = vpow2.f32 %v3528_v59  ;;  %v10445_v28 = vadd.f32 %v2965_v46, %v10421_v22  ;;  %v2967_v5 = vpop.f32.mrb[142].mxu1  ;;  %v3534_v52 = vmul.f32 1.442695, %v3403_v47  ;;  %v7558_v47 = vld [vmem:[#allocation2 + $0x10] sm:$0xff] }
 0x458   :  { %v10448_v58 = vadd.f32 %v2967_v5, %v10417_v38  ;;  %v2969_v31 = vpop.f32.mrb[143].mxu1  ;;  %v3276_v63 = vand.u32 2147483647, %v10442_v34  ;;  %v10483_v15 = vmul.f32 %v7557_v12, %v10427_v60  ;;  %v10498_v5 = vmul.f32 %v7558_v47, %v10434_v10 }
 0x459   :  { %v3530_v36 = vmul.f32 1.442695, %v3401_v11  ;;  %v3277_v57 = vand.u32 2147483647, %v10445_v28  ;;  %v10456_v29 = vadd.f32 %v2969_v31, %v10421_v22  ;;  %v7559_v31 = vld [vmem:[#allocation2 + $0x18] sm:$0xff]  ;;  %vm4044_vm5 = vcmp.ge.f32.partialorder %v10442_v34, 0.0 }
 0x45a   :  { %v3404_v42 = vsub.f32 0.0, %v3276_v63  ;;  %v3278_v4 = vand.u32 2147483647, %v10448_v58  ;;  %vm4045_vm6 = vcmp.ge.f32.partialorder %v10445_v28, 0.0  ;;  %vm4046_vm7 = vcmp.ge.f32.partialorder %v10448_v58, 0.0 }
 0x45b   :  { %6788 = vpow2.f32 %v3530_v36  ;;  %v3405_v33 = vsub.f32 0.0, %v3277_v57  ;;  %vm4047_vm8 = vcmp.ge.f32.partialorder %v10456_v29, 0.0 }
 0x45c   :  { %v3536_v8 = vmul.f32 1.442695, %v3404_v42  ;;  %v3406_v24 = vsub.f32 0.0, %v3278_v4 }
 0x45d   :  { %3202 = vmatmul.mubr.bf16.gmra.mrb[236].mxu1 %v10376_v19  ;;  %v3402_v19 = vsub.f32 0.0, %v3274_v51  ;;  %v3538_v41 = vmul.f32 1.442695, %v3405_v33 }
 0x45e   :  { %3211 = vmatprep.mubr.bf16.mxu1 %v13180_v37  ;;  %v3540_v35 = vmul.f32 1.442695, %v3406_v24 }
 0x45f   :  { %v3532_v9 = vmul.f32 1.442695, %v3402_v19 }
 0x461   :  { %6790 = vpow2.f32 %v3532_v9  ;;  %v2973_v61 = vpop.f32.mrb[144].mxu1  ;;  %v10459_v44 = vpop.eup %6786 }
 0x462   :  { %6792 = vpow2.f32 %v3534_v52  ;;  %v2975_v30 = vpop.f32.mrb[145].mxu1  ;;  %v3784_v62 = vadd.f32 1.0, %v10459_v44  ;;  %v10466_v26 = vadd.f32 %v2973_v61, %v10417_v38  ;;  %v10502_v52 = vmul.f32 %v7559_v31, %v10437_v23 }
 0x463   :  { %6794 = vpow2.f32 %v3536_v8  ;;  %v2977_v49 = vpop.f32.mrb[146].mxu1  ;;  %v10471_v53 = vadd.f32 %v2975_v30, %v10421_v22 }
 0x464   :  { %6796 = vpow2.f32 %v3538_v41  ;;  %v2979_v7 = vpop.f32.mrb[147].mxu1  ;;  %v3280_v11 = vand.u32 2147483647, %v10466_v26  ;;  %v10492_v18 = vadd.f32 %v2977_v49, %v10417_v38  ;;  %vm4048_vm9 = vcmp.ge.f32.partialorder %v10466_v26, 0.0 }
 0x465   :  { %3212 = vmatmul.mubr.bf16.gmra.mrb[240].mxu1 %v10386_v50  ;;  %v3279_v50 = vand.u32 2147483647, %v10456_v29  ;;  %v10461_v48 = vpop.eup %6788  ;;  %6798 = vpow2.f32 %v3540_v35  ;;  %v3281_v36 = vand.u32 2147483647, %v10471_v53  ;;  %v10495_v19 = vadd.f32 %v2979_v7, %v10421_v22 }
 0x466   :  { %3221 = vmatprep.mubr.bf16.mxu1 %v13180_v37  ;;  %v3785_v27 = vadd.f32 1.0, %v10461_v48  ;;  %6800 = vrcp.f32 %v3784_v62  ;;  %v3408_v42 = vsub.f32 0.0, %v3280_v11  ;;  %v3282_v33 = vand.u32 2147483647, %v10492_v18 }
 0x467   :  { %v3407_v1 = vsub.f32 0.0, %v3279_v50  ;;  %6802 = vlog2.f32 %v3784_v62  ;;  %v3409_v50 = vsub.f32 0.0, %v3281_v36  ;;  %v3283_v61 = vand.u32 2147483647, %v10495_v19 }
 0x468   :  { %6804 = vrcp.f32 %v3785_v27  ;;  %v3410_v62 = vsub.f32 0.0, %v3282_v33  ;;  %v3544_v47 = vmul.f32 1.442695, %v3408_v42  ;;  %vm4049_vm10 = vcmp.ge.f32.partialorder %v10471_v53, 0.0 }
 0x469   :  { %6806 = vlog2.f32 %v3785_v27  ;;  %v3542_v39 = vmul.f32 1.442695, %v3407_v1  ;;  %v2983_v46 = vpop.f32.mrb[148].mxu1  ;;  %v7560_v27 = vld [vmem:[#allocation2 + $0x20] sm:$0xff]  ;;  %v3546_v31 = vmul.f32 1.442695, %v3409_v50 }
 0x46a   :  { %v2985_v63 = vpop.f32.mrb[149].mxu1  ;;  %v10510_v4 = vadd.f32 %v2983_v46, %v10417_v38  ;;  %v10527_v7 = vmul.f32 %v7560_v27, %v10442_v34  ;;  %v3548_v27 = vmul.f32 1.442695, %v3410_v62  ;;  %vm4050_vm11 = vcmp.ge.f32.partialorder %v10492_v18, 0.0 }
 0x46b   :  { %v10473_v13 = vpop.eup %6790  ;;  %v10512_v8 = vpop.f32.mrb[150].mxu1  ;;  %vm4051_vm12 = vcmp.ge.f32.partialorder %v10495_v19, 0.0 }
 0x46c   :  { %v10480_v56 = vpop.eup %6792  ;;  %v3786_v32 = vadd.f32 1.0, %v10473_v13  ;;  %v10519_v35 = vpop.f32.mrb[151].mxu1  ;;  %v3284_v36 = vand.u32 2147483647, %v10510_v4  ;;  %vm4052_vm13 = vcmp.ge.f32.partialorder %v10510_v4, 0.0 }
 0x46d   :  { %3222 = vmatmul.mubr.bf16.gmra.mrb[244].mxu1 %v10384_v54  ;;  %v7556_v54 = vld [vmem:[#allocation2] sm:$0xff]  ;;  %v3787_v51 = vadd.f32 1.0, %v10480_v56  ;;  %v10504_v57 = vpop.eup %6794 }
 0x46e   :  { %3231 = vmatprep.mubr.bf16.mxu1 %v13180_v37  ;;  %v10477_v43 = vmul.f32 %v7556_v54, %v10424_v16  ;;  %6808 = vrcp.f32 %v3786_v32  ;;  %v10514_v41 = vpop.eup %6796  ;;  %v3788_v24 = vadd.f32 1.0, %v10504_v57  ;;  %v3411_v54 = vsub.f32 0.0, %v3283_v61 }
 0x46f   :  { %6810 = vlog2.f32 %v3786_v32  ;;  %v3789_v30 = vadd.f32 1.0, %v10514_v41  ;;  %v10524_v49 = vpop.eup %6798  ;;  %v7561_v32 = vld [vmem:[#allocation2 + $0x28] sm:$0xff]  ;;  %v3412_v1 = vsub.f32 0.0, %v3284_v36 }
 0x470   :  { %6812 = vrcp.f32 %v3787_v51  ;;  %v6801_v12 = vpop.eup %6800  ;;  %v10532_v11 = vmul.f32 %v7561_v32, %v10445_v28  ;;  %v3550_v9 = vmul.f32 1.442695, %v3411_v54  ;;  %v10549_v54 = vadd.f32 %v2985_v63, %v10421_v22 }
 0x471   :  { %6814 = vlog2.f32 %v3787_v51  ;;  %v3790_v51 = vadd.f32 1.0, %v10524_v49  ;;  %v4168_v46 = vmul.f32 %v6801_v12, %v10459_v44  ;;  %v3552_v50 = vmul.f32 1.442695, %v3412_v1 }
 0x472   :  { %6816 = vpow2.f32 %v3542_v39  ;;  %v6803_v39 = vpop.eup %6802  ;;  %v3285_v36 = vand.u32 2147483647, %v10549_v54  ;;  %vm4053_vm14 = vcmp.ge.f32.partialorder %v10549_v54, 0.0 }
 0x473   :  { %6818 = vrcp.f32 %v3788_v24  ;;  %v6805_v33 = vpop.eup %6804  ;;  %v4681_v61 = vmul.f32 0.6931472, %v6803_v39  ;;  %v4296_v32 = vsel %vm4040_vm1, %v6801_v12, %v4168_v46 }
 0x474   :  { %6820 = vlog2.f32 %v3788_v24  ;;  %v6807_v24 = vpop.eup %6806  ;;  %4424 = vst [vmem:[#allocation12] sm:$0xff] %v4296_v32 }
 0x475   :  { %3232 = vmatmul.mubr.bf16.gmra.mrb[248].mxu1 %v10396_v45  ;;  %6822 = vrcp.f32 %v3789_v30  ;;  %v4169_v45 = vmul.f32 %v6805_v33, %v10461_v48  ;;  %v4936_v44 = vadd.f32 %v4681_v61, %v4552_v20  ;;  %v4683_v42 = vmul.f32 0.6931472, %v6807_v24 }
 0x476   :  { %3241 = vmatprep.mubr.bf16.mxu1 %v13180_v37  ;;  %6824 = vlog2.f32 %v3789_v30  ;;  %v10552_v16 = vpop.f32.mrb[152].mxu1  ;;  %v3413_v61 = vsub.f32 0.0, %v3285_v36 }
 0x477   :  { %6826 = vrcp.f32 %v3790_v51  ;;  %v4297_v62 = vsel %vm4041_vm2, %v6805_v33, %v4169_v45  ;;  %v4937_v1 = vadd.f32 %v4683_v42, %v4553_v6  ;;  %v13348_v6 = vmax.f32 %v10434_v10, 0.0 }
 0x478   :  { %v6809_v59 = vpop.eup %6808  ;;  %6828 = vlog2.f32 %v3790_v51  ;;  %4425 = vst [vmem:[#allocation12 + $0x8] sm:$0xff] %v4297_v62  ;;  %v13349_v10 = vmax.f32 %v10437_v23, 0.0  ;;  %v3554_v62 = vmul.f32 1.442695, %v3413_v61  ;;  %v10612_v61 = vadd.f32 %v10512_v8, %v10417_v38 }
 0x479   :  { %v6811_v30 = vpop.eup %6810  ;;  %v4170_v48 = vmul.f32 %v6809_v59, %v10473_v13  ;;  %6830 = vpow2.f32 %v3544_v47  ;;  %v10557_v13 = vpop.f32.mrb[153].mxu1  ;;  %v5193_v60 = vsub.f32 %v4937_v1, %v10483_v15  ;;  %v4559_v8 = vmax.f32 %v10456_v29, 0.0 }
 0x47a   :  { %v6813_v20 = vpop.eup %6812  ;;  %v4685_v45 = vmul.f32 0.6931472, %v6811_v30  ;;  %6832 = vpow2.f32 %v3546_v31  ;;  %v4558_v30 = vmax.f32 %v10448_v58, 0.0  ;;  %vm4054_vm15 = vcmp.ge.f32.partialorder %v10612_v61, 0.0 }
 0x47b   :  { %v6815_v12 = vpop.eup %6814  ;;  %v4298_v63 = vsel %vm4042_vm3, %v6809_v59, %v4170_v48  ;;  %v4171_v51 = vmul.f32 %v6813_v20, %v10480_v56  ;;  %6834 = vpow2.f32 %v3548_v27 }
 0x47c   :  { %v10566_v39 = vpop.eup %6816  ;;  %4426 = vst [vmem:[#allocation12 + $0x10] sm:$0xff] %v4298_v63  ;;  %v4938_v46 = vadd.f32 %v4685_v45, %v13348_v6  ;;  %v4687_v47 = vmul.f32 0.6931472, %v6815_v12  ;;  %6836 = vpow2.f32 %v3550_v9  ;;  %v7562_v12 = vld [vmem:[#allocation2 + $0x30] sm:$0xff] }
 0x47d   :  { %3242 = vmatmul.mubr.bf16.gmra.mrb[252].mxu1 %v10394_v3  ;;  %v5192_v3 = vsub.f32 %v4936_v44, %v10477_v43  ;;  %v10564_v43 = vpop.f32.mrb[154].mxu1  ;;  %v6819_v56 = vpop.eup %6818  ;;  %v4299_v31 = vsel %vm4043_vm4, %v6813_v20, %v4171_v51  ;;  %v3791_v33 = vadd.f32 1.0, %v10566_v39  ;;  %6838 = vpow2.f32 %v3552_v50 }
 0x47e   :  { %3251 = vmatprep.mubr.bf16.mxu1 %v13180_v37  ;;  %v10571_v59 = vpop.f32.mrb[155].mxu1  ;;  %v6821_v27 = vpop.eup %6820  ;;  %v5194_v15 = vsub.f32 %v4938_v46, %v10498_v5  ;;  %4427 = vst [vmem:[#allocation12 + $0x18] sm:$0xff] %v4299_v31  ;;  %v4939_v32 = vadd.f32 %v4687_v47, %v13349_v10  ;;  %v4172_v9 = vmul.f32 %v6819_v56, %v10504_v57  ;;  %v13350_v57 = vmax.f32 %v10442_v34, 0.0 }
 0x47f   :  { %v5320_v24 = vadd.f32 %v5193_v60, %v5192_v3  ;;  %v6823_v44 = vpop.eup %6822  ;;  %v4689_v42 = vmul.f32 0.6931472, %v6821_v27  ;;  %6840 = vrcp.f32 %v3791_v33  ;;  %v5070_v63 = vmul.f32 %v7562_v12, %v10448_v58 }
 0x480   :  { %v6825_v48 = vpop.eup %6824  ;;  %v5195_v50 = vsub.f32 %v4939_v32, %v10502_v52  ;;  %v4300_v3 = vsel %vm4044_vm5, %v6819_v56, %v4172_v9  ;;  %v4173_v5 = vmul.f32 %v6823_v44, %v10514_v41  ;;  %6842 = vlog2.f32 %v3791_v33  ;;  %v10590_v52 = vpop.f32.mrb[156].mxu1 }
 0x481   :  { %v5321_v20 = vadd.f32 %v5320_v24, %v5194_v15  ;;  %v6827_v23 = vpop.eup %6826  ;;  %4428 = vst [vmem:[#allocation12 + $0x20] sm:$0xff] %v4300_v3  ;;  %v4940_v1 = vadd.f32 %v4689_v42, %v13350_v57  ;;  %v4691_v45 = vmul.f32 0.6931472, %v6825_v48  ;;  %6844 = vpow2.f32 %v3554_v62  ;;  %v10595_v60 = vpop.f32.mrb[157].mxu1  ;;  %v7563_v48 = vld [vmem:[#allocation2 + $0x38] sm:$0xff] }
 0x482   :  { %v6829_v51 = vpop.eup %6828  ;;  %v4301_v41 = vsel %vm4045_vm6, %v6823_v44, %v4173_v5  ;;  %v13351_v46 = vmax.f32 %v10445_v28, 0.0  ;;  %v10603_v56 = vpop.f32.mrb[158].mxu1  ;;  %v10616_v28 = vadd.f32 %v10519_v35, %v10421_v22  ;;  %v3286_v35 = vand.u32 2147483647, %v10612_v61 }
 0x483   :  { %v5322_v36 = vadd.f32 %v5321_v20, %v5195_v50  ;;  %v10597_v34 = vpop.eup %6830  ;;  %v5196_v6 = vsub.f32 %v4940_v1, %v10527_v7  ;;  %4429 = vst [vmem:[#allocation12 + $0x28] sm:$0xff] %v4301_v41  ;;  %v4693_v47 = vmul.f32 0.6931472, %v6829_v51  ;;  %v10618_v7 = vpop.f32.mrb[159].mxu1  ;;  %v7564_v20 = vld [vmem:[#allocation2 + $0x40] sm:$0xff]  ;;  %v4561_v57 = vmax.f32 %v10471_v53, 0.0 }
 0x484   :  { %v10605_v31 = vpop.eup %6832  ;;  %v3792_v33 = vadd.f32 1.0, %v10597_v34  ;;  %v10636_v50 = vmul.f32 %v7564_v20, %v10466_v26  ;;  %v3287_v1 = vand.u32 2147483647, %v10616_v28  ;;  %vm4055_vm0 = vcmp.ge.f32.partialorder %v10616_v28, 0.0 }
 0x485   :  { %3252 = vmatmul.mubr.bf16.gmra.mrb[0].mxu1 %v10409_v21  ;;  %v4174_v21 = vmul.f32 %v6827_v23, %v10524_v49  ;;  %v10620_v27 = vpop.eup %6834  ;;  %v5323_v24 = vadd.f32 %v5322_v36, %v5196_v6  ;;  %v4942_v58 = vadd.f32 %v4693_v47, %v4558_v30  ;;  %v3793_v10 = vadd.f32 1.0, %v10605_v31  ;;  %v7565_v36 = vld [vmem:[#allocation2 + $0x48] sm:$0xff] }
 0x486   :  { %3261 = vmatprep.mubr.bf16.mxu1 %v13180_v37  ;;  %v4941_v37 = vadd.f32 %v4691_v45, %v13351_v46  ;;  %v10624_v32 = vpop.eup %6836  ;;  %6846 = vrcp.f32 %v3792_v33  ;;  %v3794_v9 = vadd.f32 1.0, %v10620_v27  ;;  %v4560_v30 = vmax.f32 %v10466_v26, 0.0 }
 0x487   :  { %v4302_v49 = vsel %vm4046_vm7, %v6827_v23, %v4174_v21  ;;  %v10629_v44 = vpop.eup %6838  ;;  %v5198_v62 = vsub.f32 %v4942_v58, %v5070_v63  ;;  %6848 = vlog2.f32 %v3792_v33  ;;  %v3795_v3 = vadd.f32 1.0, %v10624_v32  ;;  %v7566_v33 = vld [vmem:[#allocation2 + $0x50] sm:$0xff] }
 0x488   :  { %v5197_v15 = vsub.f32 %v4941_v37, %v10532_v11  ;;  %4430 = vst [vmem:[#allocation12 + $0x30] sm:$0xff] %v4302_v49  ;;  %v10632_v11 = vmul.f32 %v7563_v48, %v10456_v29  ;;  %6850 = vrcp.f32 %v3793_v10  ;;  %v3796_v12 = vadd.f32 1.0, %v10629_v44 }
 0x489   :  { %v6841_v5 = vpop.eup %6840  ;;  %6852 = vlog2.f32 %v3793_v10  ;;  %v3414_v63 = vsub.f32 0.0, %v3286_v35  ;;  %v10646_v41 = vmul.f32 %v7565_v36, %v10471_v53  ;;  %v3415_v21 = vsub.f32 0.0, %v3287_v1 }
 0x48a   :  { %v5324_v42 = vadd.f32 %v5323_v24, %v5197_v15  ;;  %v4175_v45 = vmul.f32 %v6841_v5, %v10566_v39  ;;  %6854 = vrcp.f32 %v3794_v9  ;;  %v6843_v51 = vpop.eup %6842  ;;  %v10649_v6 = vpop.f32.mrb[160].mxu1  ;;  %v10658_v47 = vadd.f32 %v10552_v16, %v10417_v38 }
 0x48b   :  { %6856 = vlog2.f32 %v3794_v9  ;;  %v10651_v46 = vpop.eup %6844  ;;  %v4695_v37 = vmul.f32 0.6931472, %v6843_v51  ;;  %v10660_v49 = vpop.f32.mrb[161].mxu1  ;;  %v10663_v24 = vmul.f32 %v7566_v33, %v10492_v18  ;;  %v10668_v29 = vadd.f32 %v10557_v13, %v10421_v22 }
 0x48c   :  { %v5325_v23 = vadd.f32 %v5324_v42, %v5198_v62  ;;  %v4303_v39 = vsel %vm4047_vm8, %v6841_v5, %v4175_v45  ;;  %6858 = vrcp.f32 %v3795_v3  ;;  %v3797_v15 = vadd.f32 1.0, %v10651_v46  ;;  %v10670_v58 = vpop.f32.mrb[162].mxu1 }
 0x48d   :  { %3262 = vmatmul.mubr.bf16.gmra.mrb[4].mxu1 %v10407_v17  ;;  %v4562_v17 = vmax.f32 %v10492_v18, 0.0  ;;  %4431 = vst [vmem:[#allocation12 + $0x38] sm:$0xff] %v4303_v39  ;;  %6860 = vlog2.f32 %v3795_v3  ;;  %v4943_v10 = vadd.f32 %v4695_v37, %v4559_v8  ;;  %v3556_v16 = vmul.f32 1.442695, %v3414_v63  ;;  %v10674_v35 = vpop.f32.mrb[163].mxu1  ;;  %v7567_v8 = vld [vmem:[#allocation2 + $0x58] sm:$0xff] }
 0x48e   :  { %6862 = vrcp.f32 %v3796_v12  ;;  %v3288_v9 = vand.u32 2147483647, %v10658_v47  ;;  %v4563_v42 = vmax.f32 %v10495_v19, 0.0  ;;  %v3558_v62 = vmul.f32 1.442695, %v3415_v21 }
 0x48f   :  { %6864 = vlog2.f32 %v3796_v12  ;;  %v3289_v48 = vand.u32 2147483647, %v10668_v29  ;;  %v5199_v13 = vsub.f32 %v4943_v10, %v10632_v11  ;;  %v10681_v3 = vmul.f32 %v7567_v8, %v10495_v19 }
 0x490   :  { %v6847_v20 = vpop.eup %6846  ;;  %6866 = vrcp.f32 %v3797_v15  ;;  %v3416_v5 = vsub.f32 0.0, %v3288_v9  ;;  %v4564_v63 = vmax.f32 %v10510_v4, 0.0  ;;  %v10703_v8 = vadd.f32 %v10564_v43, %v10417_v38 }
 0x491   :  { %v6849_v1 = vpop.eup %6848  ;;  %v4176_v45 = vmul.f32 %v6847_v20, %v10597_v34  ;;  %6868 = vlog2.f32 %v3797_v15  ;;  %v3417_v12 = vsub.f32 0.0, %v3289_v48  ;;  %v5326_v36 = vadd.f32 %v5325_v23, %v5199_v13  ;;  %v7568_v48 = vld [vmem:[#allocation2 + $0x60] sm:$0xff] }
 0x492   :  { %v6851_v51 = vpop.eup %6850  ;;  %v4697_v21 = vmul.f32 0.6931472, %v6849_v1  ;;  %6870 = vpow2.f32 %v3556_v16  ;;  %v3560_v11 = vmul.f32 1.442695, %v3416_v5  ;;  %v10689_v34 = vpop.f32.mrb[164].mxu1  ;;  %v10694_v16 = vmul.f32 %v7568_v48, %v10510_v4 }
 0x493   :  { %v6853_v39 = vpop.eup %6852  ;;  %v4304_v37 = vsel %vm4048_vm9, %v6847_v20, %v4176_v45  ;;  %v4177_v33 = vmul.f32 %v6851_v51, %v10605_v31  ;;  %6872 = vpow2.f32 %v3558_v62  ;;  %v3562_v10 = vmul.f32 1.442695, %v3417_v12  ;;  %v10696_v13 = vpop.f32.mrb[165].mxu1 }
 0x494   :  { %v6855_v9 = vpop.eup %6854  ;;  %4432 = vst [vmem:[#allocation12 + $0x40] sm:$0xff] %v4304_v37  ;;  %v4944_v23 = vadd.f32 %v4697_v21, %v4560_v30  ;;  %v4699_v15 = vmul.f32 0.6931472, %v6853_v39  ;;  %6874 = vpow2.f32 %v3560_v11  ;;  %v10705_v26 = vpop.f32.mrb[166].mxu1  ;;  %v4565_v21 = vmax.f32 %v10549_v54, 0.0 }
 0x495   :  { %v6857_v20 = vpop.eup %6856  ;;  %v4305_v31 = vsel %vm4049_vm10, %v6851_v51, %v4177_v33  ;;  %v4178_v62 = vmul.f32 %v6855_v9, %v10620_v27  ;;  %6876 = vpow2.f32 %v3562_v10  ;;  %v10711_v12 = vpop.f32.mrb[167].mxu1  ;;  %v3290_v11 = vand.u32 2147483647, %v10703_v8 }
 0x496   :  { %v6859_v30 = vpop.eup %6858  ;;  %v5200_v5 = vsub.f32 %v4944_v23, %v10636_v50  ;;  %4433 = vst [vmem:[#allocation12 + $0x48] sm:$0xff] %v4305_v31  ;;  %v4945_v1 = vadd.f32 %v4699_v15, %v4561_v57  ;;  %v4701_v45 = vmul.f32 0.6931472, %v6857_v20  ;;  %v10726_v23 = vadd.f32 %v10571_v59, %v10421_v22  ;;  %v7569_v31 = vld [vmem:[#allocation2 + $0x68] sm:$0xff] }
 0x497   :  { %v6861_v27 = vpop.eup %6860  ;;  %v4306_v51 = vsel %vm4050_vm11, %v6855_v9, %v4178_v62  ;;  %v4179_v43 = vmul.f32 %v6859_v30, %v10624_v32  ;;  %v3418_v32 = vsub.f32 0.0, %v3290_v11  ;;  %v5077_v62 = vmul.f32 %v7569_v31, %v10549_v54 }
 0x498   :  { %v6863_v50 = vpop.eup %6862  ;;  %v5327_v39 = vadd.f32 %v5326_v36, %v5200_v5  ;;  %v5201_v53 = vsub.f32 %v4945_v1, %v10646_v41  ;;  %4434 = vst [vmem:[#allocation12 + $0x50] sm:$0xff] %v4306_v51  ;;  %v4946_v57 = vadd.f32 %v4701_v45, %v4562_v17  ;;  %v4703_v37 = vmul.f32 0.6931472, %v6861_v27 }
 0x499   :  { %v6865_v33 = vpop.eup %6864  ;;  %v4307_v10 = vsel %vm4051_vm12, %v6859_v30, %v4179_v43  ;;  %v4180_v9 = vmul.f32 %v6863_v50, %v10629_v44  ;;  %v3564_v59 = vmul.f32 1.442695, %v3418_v32  ;;  %v3291_v27 = vand.u32 2147483647, %v10726_v23 }
 0x49a   :  { %v6867_v15 = vpop.eup %6866  ;;  %v5328_v36 = vadd.f32 %v5327_v39, %v5201_v53  ;;  %v5202_v41 = vsub.f32 %v4946_v57, %v10663_v24  ;;  %4435 = vst [vmem:[#allocation12 + $0x58] sm:$0xff] %v4307_v10  ;;  %v4947_v18 = vadd.f32 %v4703_v37, %v4563_v42  ;;  %v4705_v17 = vmul.f32 0.6931472, %v6865_v33 }
 0x49b   :  { %v6869_v48 = vpop.eup %6868  ;;  %v4308_v20 = vsel %vm4052_vm13, %v6863_v50, %v4180_v9  ;;  %v4181_v44 = vmul.f32 %v6867_v15, %v10651_v46  ;;  %6878 = vpow2.f32 %v3564_v59  ;;  %v3419_v39 = vsub.f32 0.0, %v3291_v27 }
 0x49c   :  { %v10735_v30 = vpop.eup %6870  ;;  %v5329_v5 = vadd.f32 %v5328_v36, %v5202_v41  ;;  %v5203_v24 = vsub.f32 %v4947_v18, %v10681_v3  ;;  %4436 = vst [vmem:[#allocation12 + $0x60] sm:$0xff] %v4308_v20  ;;  %v4948_v19 = vadd.f32 %v4705_v17, %v4564_v63  ;;  %v4707_v42 = vmul.f32 0.6931472, %v6869_v48  ;;  %v7570_v17 = vld [vmem:[#allocation2 + $0x70] sm:$0xff] }
 0x49d   :  { %v10740_v1 = vpop.eup %6872  ;;  %v4309_v45 = vsel %vm4053_vm14, %v6867_v15, %v4181_v44  ;;  %v3798_v46 = vadd.f32 1.0, %v10735_v30  ;;  %v10766_v9 = vadd.f32 %v10590_v52, %v10417_v38  ;;  %v10770_v32 = vadd.f32 %v10595_v60, %v10421_v22 }
 0x49e   :  { %v10746_v51 = vpop.eup %6874  ;;  %v5330_v43 = vadd.f32 %v5329_v5, %v5203_v24  ;;  %v5204_v3 = vsub.f32 %v4948_v19, %v10694_v16  ;;  %4437 = vst [vmem:[#allocation12 + $0x68] sm:$0xff] %v4309_v45  ;;  %v4949_v11 = vadd.f32 %v4707_v42, %v4565_v21  ;;  %v3799_v4 = vadd.f32 1.0, %v10740_v1 }
 0x49f   :  { %v10750_v63 = vpop.f32.mrb[168].mxu1  ;;  %v10752_v50 = vpop.eup %6876  ;;  %6880 = vrcp.f32 %v3798_v46  ;;  %v3800_v54 = vadd.f32 1.0, %v10746_v51  ;;  %v3566_v15 = vmul.f32 1.442695, %v3419_v39  ;;  %v10774_v36 = vadd.f32 %v10603_v56, %v10417_v38 }
 0x4a0   :  { %v10755_v53 = vpop.f32.mrb[169].mxu1  ;;  %v5331_v57 = vadd.f32 %v5330_v43, %v5204_v3  ;;  %v5205_v37 = vsub.f32 %v4949_v11, %v5077_v62  ;;  %6882 = vlog2.f32 %v3798_v46  ;;  %v3801_v16 = vadd.f32 1.0, %v10752_v50  ;;  %v7571_v62 = vld [vmem:[#allocation2 + $0x78] sm:$0xff] }
 0x4a1   :  { %v10757_v33 = vpop.f32.mrb[170].mxu1  ;;  %6884 = vrcp.f32 %v3799_v4  ;;  %v4566_v41 = vmax.f32 %v10612_v61, 0.0  ;;  %v3292_v18 = vand.u32 2147483647, %v10766_v9  ;;  %v10780_v52 = vmul.f32 %v7570_v17, %v10612_v61 }
 0x4a2   :  { %v10760_v21 = vpop.f32.mrb[171].mxu1  ;;  %v10762_v10 = vadd.f32 %v5331_v57, %v5205_v37  ;;  %6886 = vlog2.f32 %v3799_v4  ;;  %v3293_v60 = vand.u32 2147483647, %v10770_v32  ;;  %v10785_v48 = vadd.f32 %v10618_v7, %v10421_v22  ;;  %v7572_v57 = vld [vmem:[#allocation2 + $0x80] sm:$0xff] }
 0x4a3   :  { %6888 = vrcp.f32 %v3800_v54  ;;  %v4567_v56 = vmax.f32 %v10616_v28, 0.0  ;;  %v3420_v20 = vsub.f32 0.0, %v3292_v18  ;;  %v10794_v59 = vmul.f32 %v7571_v62, %v10616_v28 }
 0x4a4   :  { %6890 = vlog2.f32 %v3800_v54  ;;  %v3421_v5 = vsub.f32 0.0, %v3293_v60  ;;  %v3294_v24 = vand.u32 2147483647, %v10774_v36  ;;  %vm4056_vm1 = vcmp.ge.f32.partialorder %v10658_v47, 0.0 }
 0x4a5   :  { %6892 = vrcp.f32 %v3801_v16  ;;  %v10791_v31 = vpop.eup %6878  ;;  %v3568_v42 = vmul.f32 1.442695, %v3420_v20  ;;  %v10803_v45 = vadd.f32 %v10649_v6, %v10417_v38  ;;  %v4568_v43 = vmax.f32 %v10658_v47, 0.0 }
 0x4a6   :  { %6894 = vlog2.f32 %v3801_v16  ;;  %v3802_v19 = vadd.f32 1.0, %v10791_v31  ;;  %v3570_v3 = vmul.f32 1.442695, %v3421_v5  ;;  %v3422_v11 = vsub.f32 0.0, %v3294_v24 }
 0x4a7   :  { %v10789_v44 = vpop.f32.mrb[172].mxu1  ;;  %6896 = vpow2.f32 %v3566_v15  ;;  %v3295_v4 = vand.u32 2147483647, %v10785_v48  ;;  %v5080_v37 = vmul.f32 %v7572_v57, %v10658_v47  ;;  %vm4057_vm2 = vcmp.ge.f32.partialorder %v10668_v29, 0.0 }
 0x4a8   :  { %v10797_v7 = vpop.f32.mrb[173].mxu1  ;;  %6898 = vrcp.f32 %v3802_v19  ;;  %v3572_v18 = vmul.f32 1.442695, %v3422_v11  ;;  %v4569_v28 = vmax.f32 %v10668_v29, 0.0  ;;  %vm4058_vm3 = vcmp.ge.f32.partialorder %v10703_v8, 0.0 }
 0x4a9   :  { %v10805_v46 = vpop.f32.mrb[174].mxu1  ;;  %v6881_v27 = vpop.eup %6880  ;;  %6900 = vlog2.f32 %v3802_v19  ;;  %v3423_v17 = vsub.f32 0.0, %v3295_v4  ;;  %vm4059_vm4 = vcmp.ge.f32.partialorder %v10726_v23, 0.0  ;;  %vm4060_vm5 = vcmp.ge.f32.partialorder %v10766_v9, 0.0 }
 0x4aa   :  { %v6883_v54 = vpop.eup %6882  ;;  %v4182_v39 = vmul.f32 %v6881_v27, %v10735_v30  ;;  %v10812_v6 = vpop.f32.mrb[175].mxu1  ;;  %6902 = vpow2.f32 %v3568_v42  ;;  %v3296_v30 = vand.u32 2147483647, %v10803_v45  ;;  %vm4061_vm6 = vcmp.ge.f32.partialorder %v10770_v32, 0.0 }
 0x4ab   :  { %v6885_v16 = vpop.eup %6884  ;;  %v4709_v15 = vmul.f32 0.6931472, %v6883_v54  ;;  %6904 = vpow2.f32 %v3570_v3  ;;  %v3574_v2 = vmul.f32 1.442695, %v3423_v17  ;;  %vm4062_vm7 = vcmp.ge.f32.partialorder %v10774_v36, 0.0 }
 0x4ac   :  { %v6887_v60 = vpop.eup %6886  ;;  %v4310_v20 = vsel %vm4054_vm15, %v6881_v27, %v4182_v39  ;;  %v4183_v62 = vmul.f32 %v6885_v16, %v10740_v1  ;;  %6906 = vpow2.f32 %v3572_v18  ;;  %v3424_v61 = vsub.f32 0.0, %v3296_v30 }
 0x4ad   :  { %v6889_v5 = vpop.eup %6888  ;;  %4438 = vst [vmem:[#allocation12 + $0x70] sm:$0xff] %v4310_v20  ;;  %v4950_v24 = vadd.f32 %v4709_v15, %v4566_v41  ;;  %v4711_v57 = vmul.f32 0.6931472, %v6887_v60  ;;  %6908 = vpow2.f32 %v3574_v2  ;;  %v10846_v30 = vadd.f32 %v10670_v58, %v10417_v38 }
 0x4ae   :  { %v6891_v14 = vpop.eup %6890  ;;  %v4311_v19 = vsel %vm4055_vm0, %v6885_v16, %v4183_v62  ;;  %v4184_v11 = vmul.f32 %v6889_v5, %v10746_v51  ;;  %v3576_v39 = vmul.f32 1.442695, %v3424_v61  ;;  %v10842_v62 = vadd.f32 %v10660_v49, %v10421_v22 }
 0x4af   :  { %v6893_v27 = vpop.eup %6892  ;;  %v5206_v1 = vsub.f32 %v4950_v24, %v10780_v52  ;;  %4439 = vst [vmem:[#allocation12 + $0x78] sm:$0xff] %v4311_v19  ;;  %v4951_v42 = vadd.f32 %v4711_v57, %v4567_v56  ;;  %v4713_v4 = vmul.f32 0.6931472, %v6891_v14  ;;  %v10857_v61 = vadd.f32 %v10674_v35, %v10421_v22 }
 0x4b0   :  { %v6895_v54 = vpop.eup %6894  ;;  %v4312_v41 = vsel %vm4056_vm1, %v6889_v5, %v4184_v11  ;;  %v4185_v3 = vmul.f32 %v6893_v27, %v10752_v50  ;;  %6910 = vpow2.f32 %v3576_v39  ;;  %v4570_v11 = vmax.f32 %v10703_v8, 0.0 }
 0x4b1   :  { %v10826_v16 = vpop.eup %6896  ;;  %v5333_v51 = vadd.f32 %v10762_v10, %v5206_v1  ;;  %v5207_v15 = vsub.f32 %v4951_v42, %v10794_v59  ;;  %4440 = vst [vmem:[#allocation12 + $0x80] sm:$0xff] %v4312_v41  ;;  %v4952_v52 = vadd.f32 %v4713_v4, %v4568_v43  ;;  %v4715_v56 = vmul.f32 0.6931472, %v6895_v54  ;;  %v7573_v10 = vld [vmem:[#allocation2 + $0x88] sm:$0xff]  ;;  %v7574_v41 = vld [vmem:[#allocation2 + $0x90] sm:$0xff] }
 0x4b2   :  { %v4313_v2 = vsel %vm4057_vm2, %v6893_v27, %v4185_v3  ;;  %v3803_v47 = vadd.f32 1.0, %v10826_v16  ;;  %v5081_v59 = vmul.f32 %v7573_v10, %v10668_v29  ;;  %v6899_v43 = vpop.eup %6898  ;;  %v5082_v3 = vmul.f32 %v7574_v41, %v10703_v8 }
 0x4b3   :  { %v5334_v18 = vadd.f32 %v5333_v51, %v5207_v15  ;;  %v5208_v17 = vsub.f32 %v4952_v52, %v5080_v37  ;;  %4441 = vst [vmem:[#allocation12 + $0x88] sm:$0xff] %v4313_v2  ;;  %v4953_v60 = vadd.f32 %v4715_v56, %v4569_v28  ;;  %v6901_v37 = vpop.eup %6900  ;;  %v4186_v19 = vmul.f32 %v6899_v43, %v10791_v31  ;;  %v7575_v2 = vld [vmem:[#allocation2 + $0x98] sm:$0xff] }
 0x4b4   :  { %v10830_v14 = vpop.f32.mrb[176].mxu1  ;;  %6912 = vrcp.f32 %v3803_v47  ;;  %v10851_v29 = vpop.eup %6902  ;;  %v4717_v49 = vmul.f32 0.6931472, %v6901_v37  ;;  %v3297_v31 = vand.u32 2147483647, %v10842_v62  ;;  %v4571_v51 = vmax.f32 %v10726_v23, 0.0 }
 0x4b5   :  { %v10835_v50 = vpop.f32.mrb[177].mxu1  ;;  %v5335_v24 = vadd.f32 %v5334_v18, %v5208_v17  ;;  %v5209_v57 = vsub.f32 %v4953_v60, %v5081_v59  ;;  %6914 = vlog2.f32 %v3803_v47  ;;  %v10859_v58 = vpop.eup %6904  ;;  %v4314_v1 = vsel %vm4058_vm3, %v6899_v43, %v4186_v19 }
 0x4b6   :  { %v10838_v20 = vpop.f32.mrb[178].mxu1  ;;  %v3804_v42 = vadd.f32 1.0, %v10851_v29  ;;  %v10863_v4 = vpop.eup %6906  ;;  %4442 = vst [vmem:[#allocation12 + $0x90] sm:$0xff] %v4314_v1  ;;  %v4954_v54 = vadd.f32 %v4717_v49, %v4570_v11  ;;  %v3805_v28 = vadd.f32 1.0, %v10859_v58  ;;  %v3298_v35 = vand.u32 2147483647, %v10846_v30 }
 0x4b7   :  { %v10848_v5 = vpop.f32.mrb[179].mxu1  ;;  %v5336_v27 = vadd.f32 %v5335_v24, %v5209_v57  ;;  %v10868_v39 = vpop.eup %6908  ;;  %v3806_v15 = vadd.f32 1.0, %v10863_v4  ;;  %v10876_v47 = vmul.f32 %v7575_v2, %v10726_v23  ;;  %v3425_v60 = vsub.f32 0.0, %v3297_v31  ;;  %v7576_v24 = vld [vmem:[#allocation2 + $0xa0] sm:$0xff] }
 0x4b8   :  { %6916 = vrcp.f32 %v3804_v42  ;;  %v5210_v56 = vsub.f32 %v4954_v54, %v5082_v3  ;;  %v3807_v17 = vadd.f32 1.0, %v10868_v39  ;;  %v3299_v10 = vand.u32 2147483647, %v10857_v61  ;;  %v7577_v54 = vld [vmem:[#allocation2 + $0xa8] sm:$0xff] }
 0x4b9   :  { %6918 = vlog2.f32 %v3804_v42  ;;  %v10888_v57 = vmul.f32 %v7576_v24, %v10766_v9  ;;  %v3426_v19 = vsub.f32 0.0, %v3298_v35  ;;  %v10900_v41 = vadd.f32 %v10689_v34, %v10417_v38 }
 0x4ba   :  { %6920 = vrcp.f32 %v3805_v28  ;;  %v10885_v43 = vpop.eup %6910  ;;  %v5337_v37 = vadd.f32 %v5336_v27, %v5210_v56  ;;  %v3427_v42 = vsub.f32 0.0, %v3299_v10  ;;  %v10896_v27 = vmul.f32 %v7577_v54, %v10770_v32 }
 0x4bb   :  { %6922 = vlog2.f32 %v3805_v28  ;;  %v3808_v1 = vadd.f32 1.0, %v10885_v43  ;;  %v10904_v3 = vadd.f32 %v10696_v13, %v10421_v22  ;;  %v3578_v2 = vmul.f32 1.442695, %v3425_v60 }
 0x4bc   :  { %v10873_v52 = vpop.f32.mrb[180].mxu1  ;;  %6924 = vrcp.f32 %v3806_v15  ;;  %v3300_v24 = vand.u32 2147483647, %v10900_v41  ;;  %v3582_v13 = vmul.f32 1.442695, %v3427_v42  ;;  %vm4063_vm8 = vcmp.ge.f32.partialorder %v10785_v48, 0.0 }
 0x4bd   :  { %v10879_v18 = vpop.f32.mrb[181].mxu1  ;;  %6926 = vlog2.f32 %v3806_v15  ;;  %v3580_v15 = vmul.f32 1.442695, %v3426_v19  ;;  %v4575_v23 = vmax.f32 %v10785_v48, 0.0  ;;  %vm4064_vm9 = vcmp.ge.f32.partialorder %v10803_v45, 0.0 }
 0x4be   :  { %v10883_v59 = vpop.f32.mrb[182].mxu1  ;;  %v6913_v31 = vpop.eup %6912  ;;  %6928 = vrcp.f32 %v3807_v17  ;;  %v3428_v60 = vsub.f32 0.0, %v3300_v24  ;;  %vm4065_vm10 = vcmp.ge.f32.partialorder %v10842_v62, 0.0  ;;  %vm4066_vm11 = vcmp.ge.f32.partialorder %v10846_v30, 0.0 }
 0x4bf   :  { %v10890_v11 = vpop.f32.mrb[183].mxu1  ;;  %v6915_v28 = vpop.eup %6914  ;;  %v4187_v35 = vmul.f32 %v6913_v31, %v10826_v16  ;;  %6930 = vlog2.f32 %v3807_v17  ;;  %v10915_v16 = vadd.f32 %v10705_v26, %v10417_v38  ;;  %v3301_v17 = vand.u32 2147483647, %v10904_v3 }
 0x4c0   :  { %v4719_v10 = vmul.f32 0.6931472, %v6915_v28  ;;  %6932 = vrcp.f32 %v3808_v1  ;;  %v7578_v28 = vld [vmem:[#allocation2 + $0xb0] sm:$0xff]  ;;  %vm4067_vm12 = vcmp.ge.f32.partialorder %v10857_v61, 0.0  ;;  %vm4068_vm13 = vcmp.ge.f32.partialorder %v10900_v41, 0.0 }
 0x4c1   :  { %v4315_v34 = vsel %vm4059_vm4, %v6913_v31, %v4187_v35  ;;  %6934 = vlog2.f32 %v3808_v1  ;;  %v10919_v56 = vmul.f32 %v7578_v28, %v10774_v36  ;;  %v3584_v1 = vmul.f32 1.442695, %v3428_v60 }
 0x4c2   :  { %4443 = vst [vmem:[#allocation12 + $0x98] sm:$0xff] %v4315_v34  ;;  %v4955_v54 = vadd.f32 %v4719_v10, %v4571_v51  ;;  %v6917_v19 = vpop.eup %6916  ;;  %6936 = vpow2.f32 %v3578_v2  ;;  %v3429_v34 = vsub.f32 0.0, %v3301_v17  ;;  %v3302_v28 = vand.u32 2147483647, %v10915_v16 }
 0x4c3   :  { %v6919_v26 = vpop.eup %6918  ;;  %v4188_v51 = vmul.f32 %v6917_v19, %v10851_v29  ;;  %6938 = vpow2.f32 %v3580_v15  ;;  %vm4069_vm14 = vcmp.ge.f32.partialorder %v10904_v3, 0.0  ;;  %vm4070_vm15 = vcmp.ge.f32.partialorder %v10915_v16, 0.0 }
 0x4c4   :  { %v5211_v31 = vsub.f32 %v4955_v54, %v10876_v47  ;;  %v6921_v10 = vpop.eup %6920  ;;  %v4721_v24 = vmul.f32 0.6931472, %v6919_v26  ;;  %6940 = vpow2.f32 %v3582_v13  ;;  %v13352_v54 = vmax.f32 %v10766_v9, 0.0 }
 0x4c5   :  { %v6923_v2 = vpop.eup %6922  ;;  %v4316_v55 = vsel %vm4060_vm5, %v6917_v19, %v4188_v51  ;;  %v4189_v47 = vmul.f32 %v6921_v10, %v10859_v58  ;;  %6942 = vpow2.f32 %v3584_v1  ;;  %v3586_v17 = vmul.f32 1.442695, %v3429_v34  ;;  %v7579_v19 = vld [vmem:[#allocation2 + $0xb8] sm:$0xff] }
 0x4c6   :  { %v5338_v8 = vadd.f32 %v5337_v37, %v5211_v31  ;;  %v6925_v15 = vpop.eup %6924  ;;  %4444 = vst [vmem:[#allocation12 + $0xa0] sm:$0xff] %v4316_v55  ;;  %v4956_v13 = vadd.f32 %v4721_v24, %v13352_v54  ;;  %v4723_v60 = vmul.f32 0.6931472, %v6923_v2  ;;  %v3430_v26 = vsub.f32 0.0, %v3302_v28 }
 0x4c7   :  { %v6927_v40 = vpop.eup %6926  ;;  %v4317_v37 = vsel %vm4061_vm6, %v6921_v10, %v4189_v47  ;;  %v4190_v31 = vmul.f32 %v6925_v15, %v10863_v4  ;;  %v5087_v58 = vmul.f32 %v7579_v19, %v10785_v48  ;;  %v13353_v9 = vmax.f32 %v10770_v32, 0.0 }
 0x4c8   :  { %v10923_v42 = vpop.f32.mrb[184].mxu1  ;;  %v6929_v51 = vpop.eup %6928  ;;  %v5212_v55 = vsub.f32 %v4956_v13, %v10888_v57  ;;  %4445 = vst [vmem:[#allocation12 + $0xa8] sm:$0xff] %v4317_v37  ;;  %v4725_v24 = vmul.f32 0.6931472, %v6927_v40  ;;  %6944 = vpow2.f32 %v3586_v17  ;;  %v4576_v28 = vmax.f32 %v10803_v45, 0.0 }
 0x4c9   :  { %v10927_v35 = vpop.f32.mrb[185].mxu1  ;;  %v4957_v1 = vadd.f32 %v4723_v60, %v13353_v9  ;;  %v6931_v34 = vpop.eup %6930  ;;  %v4318_v10 = vsel %vm4062_vm7, %v6925_v15, %v4190_v31  ;;  %v4191_v4 = vmul.f32 %v6929_v51, %v10868_v39  ;;  %v3588_v2 = vmul.f32 1.442695, %v3430_v26 }
 0x4ca   :  { %v10930_v49 = vpop.f32.mrb[186].mxu1  ;;  %v6933_v47 = vpop.eup %6932  ;;  %v5339_v54 = vadd.f32 %v5338_v8, %v5212_v55  ;;  %4446 = vst [vmem:[#allocation12 + $0xb0] sm:$0xff] %v4318_v10  ;;  %v13354_v57 = vmax.f32 %v10774_v36, 0.0  ;;  %v4727_v13 = vmul.f32 0.6931472, %v6931_v34  ;;  %v10961_v17 = vadd.f32 %v10711_v12, %v10421_v22 }
 0x4cb   :  { %v10935_v29 = vpop.f32.mrb[187].mxu1  ;;  %v5213_v19 = vsub.f32 %v4957_v1, %v10896_v27  ;;  %v6935_v60 = vpop.eup %6934  ;;  %v4319_v15 = vsel %vm4063_vm8, %v6929_v51, %v4191_v4  ;;  %v4192_v39 = vmul.f32 %v6933_v47, %v10885_v43  ;;  %6946 = vpow2.f32 %v3588_v2  ;;  %v7580_v51 = vld [vmem:[#allocation2 + $0xc0] sm:$0xff] }
 0x4cc   :  { %v4958_v32 = vadd.f32 %v4725_v24, %v13354_v57  ;;  %v10965_v27 = vpop.eup %6936  ;;  %4447 = vst [vmem:[#allocation12 + $0xb8] sm:$0xff] %v4319_v15  ;;  %v4959_v37 = vadd.f32 %v4727_v13, %v4575_v23  ;;  %v4729_v31 = vmul.f32 0.6931472, %v6935_v60  ;;  %v5088_v12 = vmul.f32 %v7580_v51, %v10803_v45 }
 0x4cd   :  { %v5340_v36 = vadd.f32 %v5339_v54, %v5213_v19  ;;  %v10970_v48 = vpop.eup %6938  ;;  %v4320_v43 = vsel %vm4064_vm9, %v6933_v47, %v4192_v39  ;;  %v3809_v9 = vadd.f32 1.0, %v10965_v27  ;;  %v3303_v1 = vand.u32 2147483647, %v10961_v17 }
 0x4ce   :  { %v5214_v26 = vsub.f32 %v4958_v32, %v10919_v56  ;;  %v10979_v56 = vpop.eup %6940  ;;  %v5215_v34 = vsub.f32 %v4959_v37, %v5087_v58  ;;  %4448 = vst [vmem:[#allocation12 + $0xc0] sm:$0xff] %v4320_v43  ;;  %v4960_v10 = vadd.f32 %v4729_v31, %v4576_v28  ;;  %v3810_v4 = vadd.f32 1.0, %v10970_v48  ;;  %v7581_v37 = vld [vmem:[#allocation2 + $0xc8] sm:$0xff] }
 0x4cf   :  { %v10982_v2 = vpop.eup %6942  ;;  %6948 = vrcp.f32 %v3809_v9  ;;  %v3811_v47 = vadd.f32 1.0, %v10979_v56  ;;  %v10988_v57 = vadd.f32 %v10750_v63, %v10417_v38  ;;  %v3431_v32 = vsub.f32 0.0, %v3303_v1 }
 0x4d0   :  { %v10954_v40 = vpop.f32.mrb[188].mxu1  ;;  %v5341_v23 = vadd.f32 %v5340_v36, %v5214_v26  ;;  %v5216_v54 = vsub.f32 %v4960_v10, %v5088_v12  ;;  %6950 = vlog2.f32 %v3809_v9  ;;  %v3812_v19 = vadd.f32 1.0, %v10982_v2  ;;  %v7582_v12 = vld [vmem:[#allocation2 + $0xd0] sm:$0xff] }
 0x4d1   :  { %v10963_v8 = vpop.f32.mrb[189].mxu1  ;;  %6952 = vrcp.f32 %v3810_v4  ;;  %v10996_v13 = vadd.f32 %v10755_v53, %v10421_v22  ;;  %v3304_v63 = vand.u32 2147483647, %v10988_v57  ;;  %v11005_v39 = vadd.f32 %v10757_v33, %v10417_v38 }
 0x4d2   :  { %v10968_v55 = vpop.f32.mrb[190].mxu1  ;;  %v5342_v45 = vadd.f32 %v5341_v23, %v5215_v34  ;;  %v10990_v58 = vpop.eup %6944  ;;  %6954 = vlog2.f32 %v3810_v4  ;;  %v4577_v26 = vmax.f32 %v10842_v62, 0.0  ;;  %v11011_v53 = vmul.f32 %v7581_v37, %v10842_v62 }
 0x4d3   :  { %v10977_v24 = vpop.f32.mrb[191].mxu1  ;;  %6956 = vrcp.f32 %v3811_v47  ;;  %v3813_v15 = vadd.f32 1.0, %v10990_v58  ;;  %v3305_v31 = vand.u32 2147483647, %v10996_v13  ;;  %v11021_v9 = vmul.f32 %v7582_v12, %v10846_v30  ;;  %v7584_v12 = vld [vmem:[#allocation2 + $0xe0] sm:$0xff] }
 0x4d4   :  { %v10992_v28 = vadd.f32 %v5342_v45, %v5216_v54  ;;  %6958 = vlog2.f32 %v3811_v47  ;;  %v3432_v1 = vsub.f32 0.0, %v3304_v63  ;;  %v7583_v47 = vld [vmem:[#allocation2 + $0xd8] sm:$0xff]  ;;  %v3590_v54 = vmul.f32 1.442695, %v3431_v32 }
 0x4d5   :  { %v11016_v51 = vpop.eup %6946  ;;  %6960 = vrcp.f32 %v3812_v19  ;;  %v3433_v4 = vsub.f32 0.0, %v3305_v31  ;;  %v11029_v45 = vmul.f32 %v7583_v47, %v10857_v61  ;;  %v3306_v37 = vand.u32 2147483647, %v11005_v39 }
 0x4d6   :  { %6962 = vlog2.f32 %v3812_v19  ;;  %v3814_v10 = vadd.f32 1.0, %v11016_v51  ;;  %v11034_v33 = vmul.f32 %v7584_v12, %v10900_v41  ;;  %v3592_v19 = vmul.f32 1.442695, %v3432_v1 }
 0x4d7   :  { %6964 = vrcp.f32 %v3813_v15  ;;  %v3594_v31 = vmul.f32 1.442695, %v3433_v4  ;;  %v3434_v25 = vsub.f32 0.0, %v3306_v37  ;;  %v11039_v47 = vadd.f32 %v10760_v21, %v10421_v22 }
 0x4d8   :  { %v10998_v60 = vpop.f32.mrb[192].mxu1  ;;  %6966 = vlog2.f32 %v3813_v15  ;;  %vm4071_vm0 = vcmp.ge.f32.partialorder %v10961_v17, 0.0  ;;  %vm4072_vm1 = vcmp.ge.f32.partialorder %v10988_v57, 0.0  ;;  %vm4073_vm2 = vcmp.ge.f32.partialorder %v10996_v13, 0.0 }
 0x4d9   :  { %v11007_v36 = vpop.f32.mrb[193].mxu1  ;;  %v6949_v34 = vpop.eup %6948  ;;  %6968 = vrcp.f32 %v3814_v10  ;;  %v3596_v4 = vmul.f32 1.442695, %v3434_v25  ;;  %v3307_v21 = vand.u32 2147483647, %v11039_v47  ;;  %vm4074_vm3 = vcmp.ge.f32.partialorder %v11005_v39, 0.0 }
 0x4da   :  { %13355 = vst [vmem:[#allocation25_spill] sm:$0xff] %v11007_v36  ;;  %v11014_v43 = vpop.f32.mrb[194].mxu1  ;;  %v6951_v32 = vpop.eup %6950  ;;  %v4193_v0 = vmul.f32 %v6949_v34, %v10965_v27  ;;  %6970 = vlog2.f32 %v3814_v10  ;;  %vm4075_vm4 = vcmp.ge.f32.partialorder %v11039_v47, 0.0 }
 0x4db   :  { %13356 = vst [vmem:[#allocation39_spill] sm:$0xff] %v11014_v43  ;;  %v11023_v23 = vpop.f32.mrb[195].mxu1  ;;  %v6953_v1 = vpop.eup %6952  ;;  %v4731_v43 = vmul.f32 0.6931472, %v6951_v32  ;;  %6972 = vpow2.f32 %v3590_v54  ;;  %v3435_v25 = vsub.f32 0.0, %v3307_v21 }
 0x4dc   :  { %13357 = vst [vmem:[#allocation24_spill] sm:$0xff] %v11023_v23  ;;  %v7585_v23 = vld [vmem:[#allocation2 + $0xe8] sm:$0xff]  ;;  %v6955_v37 = vpop.eup %6954  ;;  %v4321_v27 = vsel %vm4065_vm10, %v6949_v34, %v4193_v0  ;;  %v4194_v63 = vmul.f32 %v6953_v1, %v10970_v48  ;;  %6974 = vpow2.f32 %v3592_v19 }
 0x4dd   :  { %v11044_v12 = vmul.f32 %v7585_v23, %v10904_v3  ;;  %v11055_v23 = vadd.f32 %v10789_v44, %v10417_v38  ;;  %v6957_v32 = vpop.eup %6956  ;;  %4449 = vst [vmem:[#allocation12 + $0xc8] sm:$0xff] %v4321_v27  ;;  %v4733_v54 = vmul.f32 0.6931472, %v6955_v37  ;;  %6976 = vpow2.f32 %v3594_v31 }
 0x4de   :  { %v6959_v0 = vpop.eup %6958  ;;  %v4322_v62 = vsel %vm4066_vm11, %v6953_v1, %v4194_v63  ;;  %v4195_v48 = vmul.f32 %v6957_v32, %v10979_v56  ;;  %v4582_v44 = vmax.f32 %v10915_v16, 0.0  ;;  %6978 = vpow2.f32 %v3596_v4  ;;  %v7586_v1 = vld [vmem:[#allocation2 + $0xf0] sm:$0xff] }
 0x4df   :  { %v6961_v19 = vpop.eup %6960  ;;  %4450 = vst [vmem:[#allocation12 + $0xd0] sm:$0xff] %v4322_v62  ;;  %v4735_v21 = vmul.f32 0.6931472, %v6959_v0  ;;  %v3598_v37 = vmul.f32 1.442695, %v3435_v25  ;;  %v5094_v4 = vmul.f32 %v7586_v1, %v10915_v16  ;;  %vm4076_vm5 = vcmp.ge.f32.partialorder %v11055_v23, 0.0 }
 0x4e0   :  { %v11046_v15 = vpop.f32.mrb[196].mxu1  ;;  %v6963_v27 = vpop.eup %6962  ;;  %v4323_v63 = vsel %vm4067_vm12, %v6957_v32, %v4195_v48  ;;  %v4196_v56 = vmul.f32 %v6961_v19, %v10982_v2 }
 0x4e1   :  { %13358 = vst [vmem:[#allocation38_spill] sm:$0xff] %v11046_v15  ;;  %v11057_v10 = vpop.f32.mrb[197].mxu1  ;;  %v4961_v15 = vadd.f32 %v4731_v43, %v4577_v26  ;;  %v13361_v43 = vmax.f32 %v10846_v30, 0.0  ;;  %4451 = vst [vmem:[#allocation12 + $0xd8] sm:$0xff] %v4323_v63  ;;  %v13362_v30 = vmax.f32 %v10857_v61, 0.0  ;;  %6980 = vpow2.f32 %v3598_v37 }
 0x4e2   :  { %v11060_v36 = vpop.f32.mrb[198].mxu1  ;;  %v4737_v25 = vmul.f32 0.6931472, %v6963_v27  ;;  %v4324_v32 = vsel %vm4068_vm13, %v6961_v19, %v4196_v56  ;;  %v11095_v37 = vadd.f32 %v10797_v7, %v10421_v22  ;;  %v13364_v56 = vmax.f32 %v10904_v3, 0.0 }
 0x4e3   :  { %13359 = vst [vmem:[#allocation150_spill] sm:$0xff] %v11060_v36  ;;  %v11066_v34 = vpop.f32.mrb[199].mxu1  ;;  %v5217_v26 = vsub.f32 %v4961_v15, %v11011_v53  ;;  %v4962_v31 = vadd.f32 %v4733_v54, %v13361_v43  ;;  %v6965_v36 = vpop.eup %6964  ;;  %v4963_v54 = vadd.f32 %v4735_v21, %v13362_v30  ;;  %4452 = vst [vmem:[#allocation12 + $0xe0] sm:$0xff] %v4324_v32 }
 0x4e4   :  { %13360 = vst [vmem:[#allocation147_spill] sm:$0xff] %v11066_v34  ;;  %v3308_v34 = vand.u32 2147483647, %v11055_v23  ;;  %v6967_v0 = vpop.eup %6966  ;;  %v4197_v2 = vmul.f32 %v6965_v36, %v10990_v58  ;;  %vm4077_vm6 = vcmp.ge.f32.partialorder %v11095_v37, 0.0 }
 0x4e5   :  { %v5344_v53 = vadd.f32 %v10992_v28, %v5217_v26  ;;  %v5218_v15 = vsub.f32 %v4962_v31, %v11021_v9  ;;  %v6969_v43 = vpop.eup %6968  ;;  %v5219_v28 = vsub.f32 %v4963_v54, %v11029_v45  ;;  %v13363_v9 = vmax.f32 %v10900_v41, 0.0 }
 0x4e6   :  { %v3436_v62 = vsub.f32 0.0, %v3308_v34  ;;  %v4739_v26 = vmul.f32 0.6931472, %v6967_v0  ;;  %v6971_v21 = vpop.eup %6970  ;;  %v4325_v19 = vsel %vm4069_vm14, %v6965_v36, %v4197_v2  ;;  %v4198_v58 = vmul.f32 %v6969_v43, %v11016_v51 }
 0x4e7   :  { %v5345_v1 = vadd.f32 %v5344_v53, %v5218_v15  ;;  %v4964_v61 = vadd.f32 %v4737_v25, %v13363_v9  ;;  %v11099_v45 = vpop.eup %6972  ;;  %4453 = vst [vmem:[#allocation12 + $0xe8] sm:$0xff] %v4325_v19  ;;  %v4741_v15 = vmul.f32 0.6931472, %v6971_v21  ;;  %v11113_v54 = vadd.f32 %v10805_v46, %v10417_v38 }
 0x4e8   :  { %v11083_v48 = vpop.f32.mrb[200].mxu1  ;;  %v3600_v34 = vmul.f32 1.442695, %v3436_v62  ;;  %v4965_v53 = vadd.f32 %v4739_v26, %v13364_v56  ;;  %v11106_v51 = vpop.eup %6974  ;;  %v4326_v7 = vsel %vm4070_vm15, %v6969_v43, %v4198_v58  ;;  %v3815_v30 = vadd.f32 1.0, %v11099_v45  ;;  %v7587_v26 = vld [vmem:[#allocation2 + $0xf8] sm:$0xff] }
 0x4e9   :  { %v11088_v31 = vpop.f32.mrb[201].mxu1  ;;  %v5346_v41 = vadd.f32 %v5345_v1, %v5219_v28  ;;  %v5220_v63 = vsub.f32 %v4964_v61, %v11034_v33  ;;  %v11115_v33 = vpop.eup %6976  ;;  %4454 = vst [vmem:[#allocation12 + $0xf0] sm:$0xff] %v4326_v7  ;;  %v4966_v0 = vadd.f32 %v4741_v15, %v4582_v44  ;;  %v3816_v32 = vadd.f32 1.0, %v11106_v51  ;;  %v7588_v15 = vld [vmem:[#allocation2 + $0x100] sm:$0xff] }
 0x4ea   :  { %v11097_v27 = vpop.f32.mrb[202].mxu1  ;;  %6982 = vpow2.f32 %v3600_v34  ;;  %v5221_v3 = vsub.f32 %v4965_v53, %v11044_v12  ;;  %v11119_v2 = vpop.eup %6978  ;;  %v3817_v16 = vadd.f32 1.0, %v11115_v33  ;;  %v3309_v62 = vand.u32 2147483647, %v11095_v37 }
 0x4eb   :  { %v11104_v36 = vpop.f32.mrb[203].mxu1  ;;  %v5347_v25 = vadd.f32 %v5346_v41, %v5220_v63  ;;  %6984 = vrcp.f32 %v3815_v30  ;;  %v5222_v1 = vsub.f32 %v4966_v0, %v5094_v4  ;;  %v3818_v46 = vadd.f32 1.0, %v11119_v2  ;;  %v11127_v44 = vpop.eup %6980 }
 0x4ec   :  { %13365 = vst [vmem:[#allocation29_spill] sm:$0xff] %v11104_v36  ;;  %6986 = vlog2.f32 %v3815_v30  ;;  %v3437_v28 = vsub.f32 0.0, %v3309_v62  ;;  %v3310_v12 = vand.u32 2147483647, %v11113_v54  ;;  %v4583_v61 = vmax.f32 %v10961_v17, 0.0 }
 0x4ed   :  { %v5348_v43 = vadd.f32 %v5347_v25, %v5221_v3  ;;  %6988 = vrcp.f32 %v3816_v32  ;;  %v11132_v21 = vmul.f32 %v7587_v26, %v10961_v17  ;;  %v3819_v58 = vadd.f32 1.0, %v11127_v44  ;;  %v7589_v25 = vld [vmem:[#allocation2 + $0x108] sm:$0xff] }
 0x4ee   :  { %6990 = vlog2.f32 %v3816_v32  ;;  %v3438_v34 = vsub.f32 0.0, %v3310_v12  ;;  %v3602_v63 = vmul.f32 1.442695, %v3437_v28  ;;  %v11143_v56 = vadd.f32 %v10812_v6, %v10421_v22  ;;  %v7590_v28 = vld [vmem:[#allocation2 + $0x110] sm:$0xff] }
 0x4ef   :  { %v11124_v9 = vadd.f32 %v5348_v43, %v5222_v1  ;;  %6992 = vrcp.f32 %v3817_v16  ;;  %v11147_v53 = vadd.f32 %v10830_v14, %v10417_v38  ;;  %v11150_v7 = vmul.f32 %v7588_v15, %v10988_v57 }
 0x4f0   :  { %v11134_v4 = vpop.f32.mrb[204].mxu1  ;;  %6994 = vlog2.f32 %v3817_v16  ;;  %v11154_v3 = vmul.f32 %v7589_v25, %v10996_v13  ;;  %v3311_v14 = vand.u32 2147483647, %v11143_v56  ;;  %v11165_v16 = vadd.f32 %v10835_v50, %v10421_v22 }
 0x4f1   :  { %13366 = vst [vmem:[#allocation28_spill] sm:$0xff] %v11134_v4  ;;  %v11138_v41 = vpop.f32.mrb[205].mxu1  ;;  %6996 = vrcp.f32 %v3818_v46  ;;  %v3604_v43 = vmul.f32 1.442695, %v3438_v34  ;;  %v3312_v1 = vand.u32 2147483647, %v11147_v53  ;;  %v11171_v12 = vmul.f32 %v7590_v28, %v11005_v39 }
 0x4f2   :  { %13367 = vst [vmem:[#allocation152_spill] sm:$0xff] %v11138_v41  ;;  %6998 = vlog2.f32 %v3818_v46  ;;  %v11156_v0 = vpop.f32.mrb[206].mxu1  ;;  %v3439_v15 = vsub.f32 0.0, %v3311_v14  ;;  %v11190_v17 = vadd.f32 %v10838_v20, %v10417_v38  ;;  %v4588_v20 = vmax.f32 %v11055_v23, 0.0 }
 0x4f3   :  { %13368 = vst [vmem:[#allocation45_spill] sm:$0xff] %v11156_v0  ;;  %7000 = vrcp.f32 %v3819_v58  ;;  %v3440_v34 = vsub.f32 0.0, %v3312_v1  ;;  %v3313_v0 = vand.u32 2147483647, %v11165_v16  ;;  %vm4078_vm7 = vcmp.ge.f32.partialorder %v11113_v54, 0.0 }
 0x4f4   :  { %v11158_v32 = vpop.eup %6982  ;;  %7002 = vlog2.f32 %v3819_v58  ;;  %v7591_v58 = vld [vmem:[#allocation2 + $0x118] sm:$0xff]  ;;  %v3606_v28 = vmul.f32 1.442695, %v3439_v15  ;;  %vm4079_vm8 = vcmp.ge.f32.partialorder %v11143_v56, 0.0  ;;  %vm4080_vm9 = vcmp.ge.f32.partialorder %v11147_v53, 0.0 }
 0x4f5   :  { %v3820_v62 = vadd.f32 1.0, %v11158_v32  ;;  %v6985_v46 = vpop.eup %6984  ;;  %7004 = vpow2.f32 %v3602_v63  ;;  %v11176_v6 = vmul.f32 %v7591_v58, %v11039_v47  ;;  %v3608_v14 = vmul.f32 1.442695, %v3440_v34  ;;  %v11183_v58 = vpop.f32.mrb[207].mxu1 }
 0x4f6   :  { %v6987_v25 = vpop.eup %6986  ;;  %v4199_v50 = vmul.f32 %v6985_v46, %v11099_v45  ;;  %v3441_v4 = vsub.f32 0.0, %v3313_v0  ;;  %vm4081_vm10 = vcmp.ge.f32.partialorder %v11165_v16, 0.0  ;;  %vm4082_vm11 = vcmp.ge.f32.partialorder %v11190_v17, 0.0 }
 0x4f7   :  { %7006 = vrcp.f32 %v3820_v62  ;;  %v6989_v30 = vpop.eup %6988  ;;  %v4743_v19 = vmul.f32 0.6931472, %v6987_v25 }
 0x4f8   :  { %7008 = vlog2.f32 %v3820_v62  ;;  %v6991_v26 = vpop.eup %6990  ;;  %v4327_v63 = vsel %vm4071_vm0, %v6985_v46, %v4199_v50  ;;  %v4200_v45 = vmul.f32 %v6989_v30, %v11106_v51  ;;  %v3610_v0 = vmul.f32 1.442695, %v3441_v4 }
 0x4f9   :  { %7010 = vpow2.f32 %v3604_v43  ;;  %v6993_v41 = vpop.eup %6992  ;;  %4455 = vst [vmem:[#allocation12 + $0xf8] sm:$0xff] %v4327_v63  ;;  %v4967_v1 = vadd.f32 %v4743_v19, %v4583_v61  ;;  %v4745_v25 = vmul.f32 0.6931472, %v6991_v26  ;;  %v13369_v61 = vmax.f32 %v10988_v57, 0.0 }
 0x4fa   :  { %7012 = vpow2.f32 %v3606_v28  ;;  %v6995_v62 = vpop.eup %6994  ;;  %v4328_v15 = vsel %vm4072_vm1, %v6989_v30, %v4200_v45  ;;  %v4201_v36 = vmul.f32 %v6993_v41, %v11115_v33  ;;  %v13370_v57 = vmax.f32 %v10996_v13, 0.0 }
 0x4fb   :  { %7014 = vpow2.f32 %v3608_v14  ;;  %v6997_v51 = vpop.eup %6996  ;;  %v5223_v43 = vsub.f32 %v4967_v1, %v11132_v21  ;;  %4456 = vst [vmem:[#allocation12 + $0x100] sm:$0xff] %v4328_v15  ;;  %v4968_v19 = vadd.f32 %v4745_v25, %v13369_v61  ;;  %v4747_v46 = vmul.f32 0.6931472, %v6995_v62  ;;  %v11213_v25 = vpop.f32.mrb[208].mxu1 }
 0x4fc   :  { %v6999_v26 = vpop.eup %6998  ;;  %v4329_v30 = vsel %vm4073_vm2, %v6993_v41, %v4201_v36  ;;  %v4202_v33 = vmul.f32 %v6997_v51, %v11119_v2  ;;  %7016 = vpow2.f32 %v3610_v0  ;;  %v3314_v41 = vand.u32 2147483647, %v11190_v17  ;;  %v11222_v61 = vpop.f32.mrb[209].mxu1 }
 0x4fd   :  { %v7001_v50 = vpop.eup %7000  ;;  %v5350_v34 = vadd.f32 %v11124_v9, %v5223_v43  ;;  %v5224_v21 = vsub.f32 %v4968_v19, %v11150_v7  ;;  %4457 = vst [vmem:[#allocation12 + $0x108] sm:$0xff] %v4329_v30  ;;  %v4969_v28 = vadd.f32 %v4747_v46, %v13370_v57  ;;  %v4749_v4 = vmul.f32 0.6931472, %v6999_v26 }
 0x4fe   :  { %v7003_v63 = vpop.eup %7002  ;;  %v4330_v36 = vsel %vm4074_vm3, %v6997_v51, %v4202_v33  ;;  %v4203_v2 = vmul.f32 %v7001_v50, %v11127_v44  ;;  %v13371_v7 = vmax.f32 %v11005_v39, 0.0  ;;  %v3442_v51 = vsub.f32 0.0, %v3314_v41 }
 0x4ff   :  { %v11208_v45 = vpop.eup %7004  ;;  %v5351_v14 = vadd.f32 %v5350_v34, %v5224_v21  ;;  %v5225_v9 = vsub.f32 %v4969_v28, %v11154_v3  ;;  %4458 = vst [vmem:[#allocation12 + $0x110] sm:$0xff] %v4330_v36  ;;  %v4751_v1 = vmul.f32 0.6931472, %v7003_v63  ;;  %v11220_v43 = vadd.f32 %v10848_v5, %v10421_v22 }
 0x500   :  { %v4970_v13 = vadd.f32 %v4749_v4, %v13371_v7  ;;  %v4331_v15 = vsel %vm4075_vm4, %v7001_v50, %v4203_v2  ;;  %v3821_v44 = vadd.f32 1.0, %v11208_v45  ;;  %v13372_v46 = vmax.f32 %v11039_v47, 0.0  ;;  %v7592_v50 = vld [vmem:[#allocation2 + $0x120] sm:$0xff]  ;;  %v11236_v47 = vpop.f32.mrb[210].mxu1 }
 0x501   :  { %v7007_v62 = vpop.eup %7006  ;;  %v5352_v19 = vadd.f32 %v5351_v14, %v5225_v9  ;;  %4459 = vst [vmem:[#allocation12 + $0x118] sm:$0xff] %v4331_v15  ;;  %v5100_v34 = vmul.f32 %v7592_v50, %v11055_v23  ;;  %v3612_v5 = vmul.f32 1.442695, %v3442_v51  ;;  %v3315_v41 = vand.u32 2147483647, %v11220_v43  ;;  %v7593_v15 = vld [vmem:[#allocation2 + $0x128] sm:$0xff] }
 0x502   :  { %v7009_v3 = vpop.eup %7008  ;;  %v5226_v39 = vsub.f32 %v4970_v13, %v11171_v12  ;;  %v4971_v0 = vadd.f32 %v4751_v1, %v13372_v46  ;;  %v4204_v26 = vmul.f32 %v7007_v62, %v11158_v32  ;;  %7018 = vrcp.f32 %v3821_v44  ;;  %v7595_v50 = vld [vmem:[#allocation2 + $0x138] sm:$0xff] }
 0x503   :  { %v11228_v30 = vpop.eup %7010  ;;  %v4753_v33 = vmul.f32 0.6931472, %v7009_v3  ;;  %7020 = vlog2.f32 %v3821_v44  ;;  %v3443_v9 = vsub.f32 0.0, %v3315_v41  ;;  %v11256_v1 = vadd.f32 %v10879_v18, %v10421_v22  ;;  %v11265_v3 = vpop.f32.mrb[211].mxu1 }
 0x504   :  { %v11231_v21 = vpop.eup %7012  ;;  %v5353_v57 = vadd.f32 %v5352_v19, %v5226_v39  ;;  %v5227_v28 = vsub.f32 %v4971_v0, %v11176_v6  ;;  %v4332_v12 = vsel %vm4076_vm5, %v7007_v62, %v4204_v26  ;;  %v3822_v63 = vadd.f32 1.0, %v11228_v30  ;;  %v7594_v39 = vld [vmem:[#allocation2 + $0x130] sm:$0xff] }
 0x505   :  { %v11238_v32 = vpop.eup %7014  ;;  %4460 = vst [vmem:[#allocation12 + $0x120] sm:$0xff] %v4332_v12  ;;  %v4972_v4 = vadd.f32 %v4753_v33, %v4588_v20  ;;  %v3823_v36 = vadd.f32 1.0, %v11231_v21  ;;  %7022 = vpow2.f32 %v3612_v5  ;;  %v4589_v6 = vmax.f32 %v11095_v37, 0.0 }
 0x506   :  { %v5354_v2 = vadd.f32 %v5353_v57, %v5227_v28  ;;  %7024 = vrcp.f32 %v3822_v63  ;;  %v3824_v23 = vadd.f32 1.0, %v11238_v32  ;;  %v11248_v20 = vadd.f32 %v10873_v52, %v10417_v38  ;;  %v11250_v7 = vpop.eup %7016 }
 0x507   :  { %v5228_v14 = vsub.f32 %v4972_v4, %v5100_v34  ;;  %7026 = vlog2.f32 %v3822_v63  ;;  %v11260_v62 = vadd.f32 %v10883_v59, %v10417_v38  ;;  %v5101_v44 = vmul.f32 %v7593_v15, %v11095_v37 }
 0x508   :  { %7028 = vrcp.f32 %v3823_v36  ;;  %v3825_v52 = vadd.f32 1.0, %v11250_v7  ;;  %v3316_v51 = vand.u32 2147483647, %v11248_v20  ;;  %v4590_v19 = vmax.f32 %v11113_v54, 0.0 }
 0x509   :  { %v11252_v13 = vadd.f32 %v5354_v2, %v5228_v14  ;;  %7030 = vlog2.f32 %v3823_v36  ;;  %v3614_v18 = vmul.f32 1.442695, %v3443_v9  ;;  %v11270_v59 = vmul.f32 %v7594_v39, %v11113_v54 }
 0x50a   :  { %7032 = vrcp.f32 %v3824_v23  ;;  %v3444_v46 = vsub.f32 0.0, %v3316_v51  ;;  %v3317_v0 = vand.u32 2147483647, %v11256_v1  ;;  %v4591_v33 = vmax.f32 %v11143_v56, 0.0 }
 0x50b   :  { %7034 = vlog2.f32 %v3824_v23  ;;  %v11276_v34 = vmul.f32 %v7595_v50, %v11143_v56  ;;  %v3318_v5 = vand.u32 2147483647, %v11260_v62  ;;  %v4592_v15 = vmax.f32 %v11147_v53, 0.0 }
 0x50c   :  { %v7019_v26 = vpop.eup %7018  ;;  %7036 = vrcp.f32 %v3825_v52  ;;  %v3616_v12 = vmul.f32 1.442695, %v3444_v46  ;;  %v3445_v4 = vsub.f32 0.0, %v3317_v0  ;;  %v11294_v37 = vadd.f32 %v10890_v11, %v10421_v22 }
 0x50d   :  { %v7021_v57 = vpop.eup %7020  ;;  %v4205_v28 = vmul.f32 %v7019_v26, %v11208_v45  ;;  %7038 = vlog2.f32 %v3825_v52  ;;  %v3446_v2 = vsub.f32 0.0, %v3318_v5  ;;  %v7596_v52 = vld [vmem:[#allocation2 + $0x140] sm:$0xff]  ;;  %v4593_v50 = vmax.f32 %v11165_v16, 0.0 }
 0x50e   :  { %v4755_v36 = vmul.f32 0.6931472, %v7021_v57  ;;  %7040 = vpow2.f32 %v3614_v18  ;;  %v3618_v23 = vmul.f32 1.442695, %v3445_v4  ;;  %v11288_v51 = vmul.f32 %v7596_v52, %v11147_v53 }
 0x50f   :  { %v11280_v63 = vpop.eup %7022  ;;  %v4333_v41 = vsel %vm4077_vm6, %v7019_v26, %v4205_v28  ;;  %7042 = vpow2.f32 %v3616_v12  ;;  %v3620_v39 = vmul.f32 1.442695, %v3446_v2  ;;  %vm4083_vm12 = vcmp.ge.f32.partialorder %v11220_v43, 0.0 }
 0x510   :  { %v3826_v14 = vadd.f32 1.0, %v11280_v63  ;;  %v7025_v9 = vpop.eup %7024  ;;  %4461 = vst [vmem:[#allocation12 + $0x128] sm:$0xff] %v4333_v41  ;;  %v4973_v45 = vadd.f32 %v4755_v36, %v4589_v6  ;;  %vm4084_vm13 = vcmp.ge.f32.partialorder %v11248_v20, 0.0  ;;  %vm4085_vm14 = vcmp.ge.f32.partialorder %v11256_v1, 0.0 }
 0x511   :  { %v7027_v46 = vpop.eup %7026  ;;  %v4206_v18 = vmul.f32 %v7025_v9, %v11228_v30  ;;  %v3319_v30 = vand.u32 2147483647, %v11294_v37  ;;  %vm4086_vm15 = vcmp.ge.f32.partialorder %v11260_v62, 0.0  ;;  %vm4087_vm0 = vcmp.ge.f32.partialorder %v11294_v37, 0.0 }
 0x512   :  { %7044 = vrcp.f32 %v3826_v14  ;;  %v7029_v0 = vpop.eup %7028  ;;  %v5229_v26 = vsub.f32 %v4973_v45, %v5101_v44  ;;  %v4757_v6 = vmul.f32 0.6931472, %v7027_v46 }
 0x513   :  { %7046 = vlog2.f32 %v3826_v14  ;;  %v7031_v5 = vpop.eup %7030  ;;  %v4334_v57 = vsel %vm4078_vm7, %v7025_v9, %v4206_v18  ;;  %v4207_v28 = vmul.f32 %v7029_v0, %v11231_v21  ;;  %v3447_v54 = vsub.f32 0.0, %v3319_v30 }
 0x514   :  { %7048 = vpow2.f32 %v3618_v23  ;;  %v7033_v12 = vpop.eup %7032  ;;  %v5356_v4 = vadd.f32 %v11252_v13, %v5229_v26  ;;  %4462 = vst [vmem:[#allocation12 + $0x130] sm:$0xff] %v4334_v57  ;;  %v4974_v11 = vadd.f32 %v4757_v6, %v4590_v19  ;;  %v4759_v36 = vmul.f32 0.6931472, %v7031_v5  ;;  %v7597_v19 = vld [vmem:[#allocation2 + $0x148] sm:$0xff] }
 0x515   :  { %7050 = vpow2.f32 %v3620_v39  ;;  %v7035_v44 = vpop.eup %7034  ;;  %v4335_v2 = vsel %vm4079_vm8, %v7029_v0, %v4207_v28  ;;  %v4208_v41 = vmul.f32 %v7033_v12, %v11238_v32  ;;  %v11307_v21 = vadd.f32 %v10923_v42, %v10417_v38  ;;  %v11315_v42 = vpop.f32.mrb[212].mxu1 }
 0x516   :  { %v7037_v14 = vpop.eup %7036  ;;  %v5230_v23 = vsub.f32 %v4974_v11, %v11270_v59  ;;  %4463 = vst [vmem:[#allocation12 + $0x138] sm:$0xff] %v4335_v2  ;;  %v4975_v13 = vadd.f32 %v4759_v36, %v4591_v33  ;;  %v4761_v9 = vmul.f32 0.6931472, %v7035_v44  ;;  %v5105_v45 = vmul.f32 %v7597_v19, %v11165_v16  ;;  %v11320_v26 = vpop.f32.mrb[213].mxu1 }
 0x517   :  { %v7039_v52 = vpop.eup %7038  ;;  %v4336_v56 = vsel %vm4080_vm9, %v7033_v12, %v4208_v41  ;;  %v4209_v32 = vmul.f32 %v7037_v14, %v11250_v7  ;;  %v3622_v39 = vmul.f32 1.442695, %v3447_v54  ;;  %v3320_v5 = vand.u32 2147483647, %v11307_v21  ;;  %v11328_v57 = vpop.f32.mrb[214].mxu1 }
 0x518   :  { %v11317_v46 = vpop.eup %7040  ;;  %v5357_v59 = vadd.f32 %v5356_v4, %v5230_v23  ;;  %v5231_v33 = vsub.f32 %v4975_v13, %v11276_v34  ;;  %4464 = vst [vmem:[#allocation12 + $0x140] sm:$0xff] %v4336_v56  ;;  %v4976_v18 = vadd.f32 %v4761_v9, %v4592_v15  ;;  %v4763_v0 = vmul.f32 0.6931472, %v7039_v52  ;;  %v11332_v12 = vpop.f32.mrb[215].mxu1 }
 0x519   :  { %v11322_v6 = vpop.eup %7042  ;;  %v4337_v53 = vsel %vm4081_vm10, %v7037_v14, %v4209_v32  ;;  %v3827_v7 = vadd.f32 1.0, %v11317_v46  ;;  %7052 = vpow2.f32 %v3622_v39  ;;  %v4594_v16 = vmax.f32 %v11190_v17, 0.0  ;;  %v7598_v14 = vld [vmem:[#allocation2 + $0x150] sm:$0xff]  ;;  %v11352_v39 = vpop.f32.mrb[216].mxu1 }
 0x51a   :  { %v5358_v28 = vadd.f32 %v5357_v59, %v5231_v33  ;;  %v5232_v34 = vsub.f32 %v4976_v18, %v11288_v51  ;;  %4465 = vst [vmem:[#allocation12 + $0x148] sm:$0xff] %v4337_v53  ;;  %v4977_v15 = vadd.f32 %v4763_v0, %v4593_v50  ;;  %v3828_v30 = vadd.f32 1.0, %v11322_v6  ;;  %v11358_v18 = vpop.f32.mrb[217].mxu1  ;;  %v7599_v0 = vld [vmem:[#allocation2 + $0x158] sm:$0xff] }
 0x51b   :  { %7054 = vrcp.f32 %v3827_v7  ;;  %v3448_v11 = vsub.f32 0.0, %v3320_v5  ;;  %v11337_v36 = vadd.f32 %v10927_v35, %v10421_v22  ;;  %v5106_v23 = vmul.f32 %v7598_v14, %v11190_v17  ;;  %v7601_v14 = vld [vmem:[#allocation2 + $0x168] sm:$0xff] }
 0x51c   :  { %v7045_v4 = vpop.eup %7044  ;;  %v5359_v2 = vadd.f32 %v5358_v28, %v5232_v34  ;;  %v5233_v41 = vsub.f32 %v4977_v15, %v5105_v45  ;;  %7056 = vlog2.f32 %v3827_v7  ;;  %v4595_v32 = vmax.f32 %v11220_v43, 0.0 }
 0x51d   :  { %v7047_v44 = vpop.eup %7046  ;;  %v4210_v51 = vmul.f32 %v7045_v4, %v11280_v63  ;;  %7058 = vrcp.f32 %v3828_v30  ;;  %v3624_v13 = vmul.f32 1.442695, %v3448_v11  ;;  %v3321_v56 = vand.u32 2147483647, %v11337_v36 }
 0x51e   :  { %v11340_v50 = vpop.eup %7048  ;;  %v4765_v54 = vmul.f32 0.6931472, %v7047_v44  ;;  %v5360_v19 = vadd.f32 %v5359_v2, %v5233_v41  ;;  %7060 = vlog2.f32 %v3828_v30  ;;  %v11356_v33 = vadd.f32 %v10930_v49, %v10417_v38  ;;  %v7600_v30 = vld [vmem:[#allocation2 + $0x160] sm:$0xff] }
 0x51f   :  { %v11343_v9 = vpop.eup %7050  ;;  %v4338_v35 = vsel %vm4082_vm11, %v7045_v4, %v4210_v51  ;;  %v3829_v45 = vadd.f32 1.0, %v11340_v50  ;;  %7062 = vpow2.f32 %v3624_v13  ;;  %v3449_v17 = vsub.f32 0.0, %v3321_v56 }
 0x520   :  { %4466 = vst [vmem:[#allocation12 + $0x150] sm:$0xff] %v4338_v35  ;;  %v4978_v63 = vadd.f32 %v4765_v54, %v4594_v16  ;;  %v3830_v52 = vadd.f32 1.0, %v11343_v9  ;;  %v5107_v53 = vmul.f32 %v7599_v0, %v11220_v43  ;;  %v11364_v7 = vadd.f32 %v10935_v29, %v10421_v22 }
 0x521   :  { %7064 = vrcp.f32 %v3829_v45  ;;  %v3626_v34 = vmul.f32 1.442695, %v3449_v17  ;;  %v3322_v49 = vand.u32 2147483647, %v11356_v33  ;;  %v4596_v15 = vmax.f32 %v11248_v20, 0.0 }
 0x522   :  { %v5234_v59 = vsub.f32 %v4978_v63, %v5106_v23  ;;  %7066 = vlog2.f32 %v3829_v45  ;;  %v5108_v4 = vmul.f32 %v7600_v30, %v11248_v20  ;;  %v11374_v11 = vadd.f32 %v10954_v40, %v10417_v38 }
 0x523   :  { %7068 = vrcp.f32 %v3830_v52  ;;  %v11366_v5 = vpop.eup %7052  ;;  %v3450_v44 = vsub.f32 0.0, %v3322_v49  ;;  %v3323_v2 = vand.u32 2147483647, %v11364_v7  ;;  %v4597_v54 = vmax.f32 %v11256_v1, 0.0 }
 0x524   :  { %v5361_v28 = vadd.f32 %v5360_v19, %v5234_v59  ;;  %7070 = vlog2.f32 %v3830_v52  ;;  %v3831_v16 = vadd.f32 1.0, %v11366_v5  ;;  %v11381_v23 = vmul.f32 %v7601_v14, %v11256_v1 }
 0x525   :  { %v7055_v29 = vpop.eup %7054  ;;  %7072 = vpow2.f32 %v3626_v34  ;;  %v3628_v19 = vmul.f32 1.442695, %v3450_v44  ;;  %v3451_v35 = vsub.f32 0.0, %v3323_v2  ;;  %v11390_v34 = vpop.f32.mrb[218].mxu1  ;;  %v4598_v14 = vmax.f32 %v11260_v62, 0.0 }
 0x526   :  { %v7057_v41 = vpop.eup %7056  ;;  %v4211_v51 = vmul.f32 %v7055_v29, %v11317_v46  ;;  %7074 = vrcp.f32 %v3831_v16  ;;  %v3324_v46 = vand.u32 2147483647, %v11374_v11  ;;  %vm4088_vm1 = vcmp.ge.f32.partialorder %v11307_v21, 0.0 }
 0x527   :  { %v7059_v13 = vpop.eup %7058  ;;  %v4767_v40 = vmul.f32 0.6931472, %v7057_v41  ;;  %7076 = vlog2.f32 %v3831_v16  ;;  %v3630_v0 = vmul.f32 1.442695, %v3451_v35  ;;  %v11397_v16 = vadd.f32 %v10963_v8, %v10421_v22 }
 0x528   :  { %v7061_v45 = vpop.eup %7060  ;;  %v4339_v63 = vsel %vm4083_vm12, %v7055_v29, %v4211_v51  ;;  %v4212_v52 = vmul.f32 %v7059_v13, %v11322_v6  ;;  %7078 = vpow2.f32 %v3628_v19  ;;  %v3452_v6 = vsub.f32 0.0, %v3324_v46 }
 0x529   :  { %v11388_v56 = vpop.eup %7062  ;;  %4467 = vst [vmem:[#allocation12 + $0x158] sm:$0xff] %v4339_v63  ;;  %v4979_v59 = vadd.f32 %v4767_v40, %v4595_v32  ;;  %v4769_v17 = vmul.f32 0.6931472, %v7061_v45  ;;  %7080 = vpow2.f32 %v3630_v0  ;;  %v3325_v45 = vand.u32 2147483647, %v11397_v16 }
 0x52a   :  { %v4340_v43 = vsel %vm4084_vm13, %v7059_v13, %v4212_v52  ;;  %v3832_v30 = vadd.f32 1.0, %v11388_v56  ;;  %v3632_v20 = vmul.f32 1.442695, %v3452_v6  ;;  %vm4089_vm2 = vcmp.ge.f32.partialorder %v11337_v36, 0.0 }
 0x52b   :  { %v7065_v49 = vpop.eup %7064  ;;  %v5235_v44 = vsub.f32 %v4979_v59, %v5107_v53  ;;  %4468 = vst [vmem:[#allocation12 + $0x160] sm:$0xff] %v4340_v43  ;;  %v4980_v32 = vadd.f32 %v4769_v17, %v4596_v15  ;;  %v11404_v53 = vpop.f32.mrb[219].mxu1  ;;  %v3453_v17 = vsub.f32 0.0, %v3325_v45  ;;  %v4599_v43 = vmax.f32 %v11294_v37, 0.0 }
 0x52c   :  { %v7067_v29 = vpop.eup %7066  ;;  %v4213_v2 = vmul.f32 %v7065_v49, %v11340_v50  ;;  %7082 = vrcp.f32 %v3832_v30  ;;  %vm4090_vm3 = vcmp.ge.f32.partialorder %v11356_v33, 0.0  ;;  %vm4091_vm4 = vcmp.ge.f32.partialorder %v11364_v7, 0.0 }
 0x52d   :  { %v7069_v41 = vpop.eup %7068  ;;  %v4771_v51 = vmul.f32 0.6931472, %v7067_v29  ;;  %v5362_v40 = vadd.f32 %v5361_v28, %v5235_v44  ;;  %v5236_v19 = vsub.f32 %v4980_v32, %v5108_v4  ;;  %7084 = vlog2.f32 %v3832_v30  ;;  %v7602_v4 = vld [vmem:[#allocation2 + $0x170] sm:$0xff] }
 0x52e   :  { %v7071_v13 = vpop.eup %7070  ;;  %v4341_v8 = vsel %vm4085_vm14, %v7065_v49, %v4213_v2  ;;  %v4214_v35 = vmul.f32 %v7069_v41, %v11343_v9  ;;  %v5110_v1 = vmul.f32 %v7602_v4, %v11260_v62  ;;  %7086 = vpow2.f32 %v3632_v20 }
 0x52f   :  { %4469 = vst [vmem:[#allocation12 + $0x168] sm:$0xff] %v4341_v8  ;;  %v4981_v15 = vadd.f32 %v4771_v51, %v4597_v54  ;;  %v4773_v50 = vmul.f32 0.6931472, %v7071_v13  ;;  %v11407_v63 = vpop.eup %7072  ;;  %v5363_v52 = vadd.f32 %v5362_v40, %v5236_v19  ;;  %v11419_v30 = vadd.f32 %v10968_v55, %v10417_v38 }
 0x530   :  { %v4342_v28 = vsel %vm4086_vm15, %v7069_v41, %v4214_v35  ;;  %v7075_v46 = vpop.eup %7074  ;;  %v3833_v54 = vadd.f32 1.0, %v11407_v63  ;;  %v3634_v32 = vmul.f32 1.442695, %v3453_v17  ;;  %v11424_v41 = vpop.f32.mrb[220].mxu1  ;;  %v4600_v19 = vmax.f32 %v11307_v21, 0.0 }
 0x531   :  { %v5237_v9 = vsub.f32 %v4981_v15, %v11381_v23  ;;  %4470 = vst [vmem:[#allocation12 + $0x170] sm:$0xff] %v4342_v28  ;;  %v4982_v59 = vadd.f32 %v4773_v50, %v4598_v14  ;;  %v7077_v0 = vpop.eup %7076  ;;  %v4215_v49 = vmul.f32 %v7075_v46, %v11366_v5  ;;  %v3326_v2 = vand.u32 2147483647, %v11419_v30  ;;  %v7603_v14 = vld [vmem:[#allocation2 + $0x178] sm:$0xff]  ;;  %v11428_v13 = vpop.f32.mrb[221].mxu1 }
 0x532   :  { %v4775_v29 = vmul.f32 0.6931472, %v7077_v0  ;;  %7088 = vrcp.f32 %v3833_v54  ;;  %v11421_v23 = vpop.eup %7078  ;;  %v5111_v55 = vmul.f32 %v7603_v14, %v11294_v37  ;;  %v11434_v35 = vpop.f32.mrb[222].mxu1  ;;  %v11439_v37 = vadd.f32 %v10977_v24, %v10421_v22 }
 0x533   :  { %v5364_v62 = vadd.f32 %v5363_v52, %v5237_v9  ;;  %v5238_v6 = vsub.f32 %v4982_v59, %v5110_v1  ;;  %v4343_v44 = vsel %vm4087_vm0, %v7075_v46, %v4215_v49  ;;  %7090 = vlog2.f32 %v3833_v54  ;;  %v11430_v40 = vpop.eup %7080  ;;  %v7604_v9 = vld [vmem:[#allocation2 + $0x180] sm:$0xff] }
 0x534   :  { %4471 = vst [vmem:[#allocation12 + $0x178] sm:$0xff] %v4343_v44  ;;  %v4983_v51 = vadd.f32 %v4775_v29, %v4599_v43  ;;  %v3834_v20 = vadd.f32 1.0, %v11421_v23  ;;  %7092 = vpow2.f32 %v3634_v32  ;;  %v3454_v8 = vsub.f32 0.0, %v3326_v2  ;;  %v11455_v43 = vpop.f32.mrb[223].mxu1 }
 0x535   :  { %v5365_v5 = vadd.f32 %v5364_v62, %v5238_v6  ;;  %v3835_v45 = vadd.f32 1.0, %v11430_v40  ;;  %v11444_v4 = vadd.f32 %v10998_v60, %v10417_v38  ;;  %v5112_v59 = vmul.f32 %v7604_v9, %v11307_v21  ;;  %v7605_v6 = vld [vmem:[#allocation2 + $0x188] sm:$0xff] }
 0x536   :  { %v7083_v15 = vpop.eup %7082  ;;  %v5239_v50 = vsub.f32 %v4983_v51, %v5111_v55  ;;  %7094 = vrcp.f32 %v3834_v20  ;;  %v3636_v28 = vmul.f32 1.442695, %v3454_v8  ;;  %v3327_v54 = vand.u32 2147483647, %v11439_v37 }
 0x537   :  { %v4216_v52 = vmul.f32 %v7083_v15, %v11388_v56  ;;  %7096 = vlog2.f32 %v3834_v20  ;;  %v7085_v1 = vpop.eup %7084  ;;  %v4601_v60 = vmax.f32 %v11337_v36, 0.0  ;;  %v5113_v29 = vmul.f32 %v7605_v6, %v11337_v36  ;;  %v13375_v36 = vld [vmem:[#allocation24_spill] sm:$0xff] }
 0x538   :  { %v5366_v46 = vadd.f32 %v5365_v5, %v5239_v50  ;;  %7098 = vrcp.f32 %v3835_v45  ;;  %v11448_v17 = vpop.eup %7086  ;;  %v4777_v56 = vmul.f32 0.6931472, %v7085_v1  ;;  %v3455_v49 = vsub.f32 0.0, %v3327_v54  ;;  %v13373_v5 = vld [vmem:[#allocation25_spill] sm:$0xff] }
 0x539   :  { %v4344_v24 = vsel %vm4088_vm1, %v7083_v15, %v4216_v52  ;;  %7100 = vlog2.f32 %v3835_v45  ;;  %v3836_v0 = vadd.f32 1.0, %v11448_v17  ;;  %v3328_v21 = vand.u32 2147483647, %v11444_v4  ;;  %v7606_v15 = vld [vmem:[#allocation2 + $0x190] sm:$0xff] }
 0x53a   :  { %4472 = vst [vmem:[#allocation12 + $0x180] sm:$0xff] %v4344_v24  ;;  %7102 = vpow2.f32 %v3636_v28  ;;  %v4984_v62 = vadd.f32 %v4777_v56, %v4600_v19  ;;  %v4602_v32 = vmax.f32 %v11356_v33, 0.0  ;;  %v3638_v2 = vmul.f32 1.442695, %v3455_v49 }
 0x53b   :  { %7104 = vrcp.f32 %v3836_v0  ;;  %v11463_v51 = vadd.f32 %v13373_v5, %v10421_v22  ;;  %v3456_v19 = vsub.f32 0.0, %v3328_v21  ;;  %v5114_v50 = vmul.f32 %v7606_v15, %v11356_v33 }
 0x53c   :  { %v7089_v44 = vpop.eup %7088  ;;  %v5240_v55 = vsub.f32 %v4984_v62, %v5112_v59  ;;  %7106 = vlog2.f32 %v3836_v0  ;;  %v4603_v54 = vmax.f32 %v11364_v7, 0.0  ;;  %v11482_v6 = vadd.f32 %v13375_v36, %v10421_v22 }
 0x53d   :  { %v7091_v14 = vpop.eup %7090  ;;  %v4217_v20 = vmul.f32 %v7089_v44, %v11407_v63  ;;  %7108 = vpow2.f32 %v3638_v2  ;;  %v3329_v45 = vand.u32 2147483647, %v11463_v51  ;;  %v3640_v9 = vmul.f32 1.442695, %v3456_v19 }
 0x53e   :  { %v4779_v8 = vmul.f32 0.6931472, %v7091_v14  ;;  %v11468_v52 = vpop.eup %7092  ;;  %v5367_v28 = vadd.f32 %v5366_v46, %v5240_v55  ;;  %v13374_v46 = vld [vmem:[#allocation39_spill] sm:$0xff]  ;;  %vm4092_vm5 = vcmp.ge.f32.partialorder %v11374_v11, 0.0  ;;  %vm4093_vm6 = vcmp.ge.f32.partialorder %v11397_v16, 0.0 }
 0x53f   :  { %v4345_v1 = vsel %vm4089_vm2, %v7089_v44, %v4217_v20  ;;  %v3837_v24 = vadd.f32 1.0, %v11468_v52  ;;  %v3457_v56 = vsub.f32 0.0, %v3329_v45  ;;  %7110 = vpow2.f32 %v3640_v9  ;;  %v7607_v45 = vld [vmem:[#allocation2 + $0x198] sm:$0xff] }
 0x540   :  { %v7095_v59 = vpop.eup %7094  ;;  %4473 = vst [vmem:[#allocation12 + $0x188] sm:$0xff] %v4345_v1  ;;  %v4985_v63 = vadd.f32 %v4779_v8, %v4601_v60  ;;  %v11478_v62 = vadd.f32 %v13374_v46, %v10417_v38  ;;  %v5115_v1 = vmul.f32 %v7607_v45, %v11364_v7  ;;  %v3331_v7 = vand.u32 2147483647, %v11482_v6 }
 0x541   :  { %v7097_v0 = vpop.eup %7096  ;;  %v4218_v49 = vmul.f32 %v7095_v59, %v11421_v23  ;;  %7112 = vrcp.f32 %v3837_v24  ;;  %v3642_v2 = vmul.f32 1.442695, %v3457_v56  ;;  %vm4094_vm7 = vcmp.ge.f32.partialorder %v11419_v30, 0.0 }
 0x542   :  { %v7099_v21 = vpop.eup %7098  ;;  %v5241_v44 = vsub.f32 %v4985_v63, %v5113_v29  ;;  %v4781_v60 = vmul.f32 0.6931472, %v7097_v0  ;;  %7114 = vlog2.f32 %v3837_v24  ;;  %v3330_v55 = vand.u32 2147483647, %v11478_v62 }
 0x543   :  { %v7101_v5 = vpop.eup %7100  ;;  %v4346_v14 = vsel %vm4090_vm3, %v7095_v59, %v4218_v49  ;;  %v4219_v23 = vmul.f32 %v7099_v21, %v11430_v40  ;;  %7116 = vpow2.f32 %v3642_v2  ;;  %v3459_v2 = vsub.f32 0.0, %v3331_v7 }
 0x544   :  { %v11488_v20 = vpop.eup %7102  ;;  %v5368_v19 = vadd.f32 %v5367_v28, %v5241_v44  ;;  %4474 = vst [vmem:[#allocation12 + $0x190] sm:$0xff] %v4346_v14  ;;  %v4986_v8 = vadd.f32 %v4781_v60, %v4602_v32  ;;  %v4783_v15 = vmul.f32 0.6931472, %v7101_v5  ;;  %v3458_v9 = vsub.f32 0.0, %v3330_v55  ;;  %v11496_v32 = vpop.f32.mrb[224].mxu1 }
 0x545   :  { %v4347_v29 = vsel %vm4091_vm4, %v7099_v21, %v4219_v23  ;;  %v3838_v33 = vadd.f32 1.0, %v11488_v20  ;;  %v7105_v40 = vpop.eup %7104  ;;  %v4604_v28 = vmax.f32 %v11374_v11, 0.0  ;;  %v11500_v49 = vpop.f32.mrb[225].mxu1  ;;  %v7608_v23 = vld [vmem:[#allocation2 + $0x1a0] sm:$0xff]  ;;  %vm4095_vm8 = vcmp.ge.f32.partialorder %v11439_v37, 0.0 }
 0x546   :  { %v5242_v59 = vsub.f32 %v4986_v8, %v5114_v50  ;;  %4475 = vst [vmem:[#allocation12 + $0x198] sm:$0xff] %v4347_v29  ;;  %v4987_v63 = vadd.f32 %v4783_v15, %v4603_v54  ;;  %v7107_v24 = vpop.eup %7106  ;;  %v4220_v56 = vmul.f32 %v7105_v40, %v11448_v17  ;;  %v3644_v0 = vmul.f32 1.442695, %v3458_v9  ;;  %v11504_v21 = vpop.f32.mrb[226].mxu1  ;;  %v13377_v29 = vld [vmem:[#allocation38_spill] sm:$0xff] }
 0x547   :  { %7118 = vrcp.f32 %v3838_v33  ;;  %v11502_v46 = vpop.eup %7108  ;;  %v4785_v54 = vmul.f32 0.6931472, %v7107_v24  ;;  %v11507_v17 = vpop.f32.mrb[227].mxu1  ;;  %v5116_v55 = vmul.f32 %v7608_v23, %v11374_v11  ;;  %v4605_v8 = vmax.f32 %v11397_v16, 0.0 }
 0x548   :  { %v5369_v50 = vadd.f32 %v5368_v19, %v5242_v59  ;;  %v5243_v36 = vsub.f32 %v4987_v63, %v5115_v1  ;;  %7120 = vlog2.f32 %v3838_v33  ;;  %v4348_v44 = vsel %vm4092_vm5, %v7105_v40, %v4220_v56  ;;  %13376 = vst [vmem:[#allocation151_spill] sm:$0xff] %v11507_v17  ;;  %v7609_v63 = vld [vmem:[#allocation2 + $0x1a8] sm:$0xff] }
 0x549   :  { %v3839_v60 = vadd.f32 1.0, %v11502_v46  ;;  %7122 = vpow2.f32 %v3644_v0  ;;  %4476 = vst [vmem:[#allocation12 + $0x1a0] sm:$0xff] %v4348_v44  ;;  %v4988_v14 = vadd.f32 %v4785_v54, %v4604_v28  ;;  %v11511_v19 = vpop.eup %7110  ;;  %v3646_v15 = vmul.f32 1.442695, %v3459_v2  ;;  %v7610_v44 = vld [vmem:[#allocation2 + $0x1b0] sm:$0xff] }
 0x54a   :  { %v5370_v5 = vadd.f32 %v5369_v50, %v5243_v36  ;;  %v11516_v45 = vadd.f32 %v13377_v29, %v10417_v38  ;;  %v3840_v9 = vadd.f32 1.0, %v11511_v19  ;;  %v11521_v11 = vadd.f32 %v11057_v10, %v10421_v22 }
 0x54b   :  { %7124 = vrcp.f32 %v3839_v60  ;;  %v7113_v1 = vpop.eup %7112  ;;  %v5244_v33 = vsub.f32 %v4988_v14, %v5116_v55  ;;  %v5117_v28 = vmul.f32 %v7609_v63, %v11397_v16  ;;  %v4606_v54 = vmax.f32 %v11419_v30, 0.0  ;;  %v11548_v63 = vpop.f32.mrb[228].mxu1 }
 0x54c   :  { %7126 = vlog2.f32 %v3839_v60  ;;  %v7115_v40 = vpop.eup %7114  ;;  %v4221_v59 = vmul.f32 %v7113_v1, %v11468_v52  ;;  %v3332_v24 = vand.u32 2147483647, %v11516_v45  ;;  %v5118_v60 = vmul.f32 %v7610_v44, %v11419_v30  ;;  %13380 = vst [vmem:[#allocation44_spill] sm:$0xff] %v11548_v63 }
 0x54d   :  { %7128 = vpow2.f32 %v3646_v15  ;;  %v11526_v56 = vpop.eup %7116  ;;  %v5371_v0 = vadd.f32 %v5370_v5, %v5244_v33  ;;  %v4787_v7 = vmul.f32 0.6931472, %v7115_v40  ;;  %v3333_v2 = vand.u32 2147483647, %v11521_v11  ;;  %v13378_v33 = vld [vmem:[#allocation150_spill] sm:$0xff]  ;;  %v13379_v40 = vld [vmem:[#allocation147_spill] sm:$0xff] }
 0x54e   :  { %7130 = vrcp.f32 %v3840_v9  ;;  %v4349_v10 = vsel %vm4093_vm6, %v7113_v1, %v4221_v59  ;;  %v3841_v50 = vadd.f32 1.0, %v11526_v56  ;;  %v3460_v52 = vsub.f32 0.0, %v3332_v24 }
 0x54f   :  { %7132 = vlog2.f32 %v3840_v9  ;;  %4477 = vst [vmem:[#allocation12 + $0x1a8] sm:$0xff] %v4349_v10  ;;  %v4989_v36 = vadd.f32 %v4787_v7, %v4605_v8  ;;  %v4607_v14 = vmax.f32 %v11439_v37, 0.0  ;;  %v3461_v8 = vsub.f32 0.0, %v3333_v2  ;;  %v11553_v10 = vpop.f32.mrb[229].mxu1 }
 0x550   :  { %7134 = vrcp.f32 %v3841_v50  ;;  %v3648_v16 = vmul.f32 1.442695, %v3460_v52  ;;  %v11542_v9 = vadd.f32 %v13378_v33, %v10417_v38  ;;  %v11546_v59 = vadd.f32 %v13379_v40, %v10421_v22  ;;  %13381 = vst [vmem:[#allocation51_spill] sm:$0xff] %v11553_v10 }
 0x551   :  { %v7119_v5 = vpop.eup %7118  ;;  %v5245_v55 = vsub.f32 %v4989_v36, %v5117_v28  ;;  %7136 = vlog2.f32 %v3841_v50  ;;  %v3650_v7 = vmul.f32 1.442695, %v3461_v8  ;;  %v7611_v36 = vld [vmem:[#allocation2 + $0x1b8] sm:$0xff]  ;;  %vm4096_vm9 = vcmp.ge.f32.partialorder %v11444_v4, 0.0 }
 0x552   :  { %v7121_v23 = vpop.eup %7120  ;;  %v4222_v15 = vmul.f32 %v7119_v5, %v11488_v20  ;;  %7138 = vpow2.f32 %v3648_v16  ;;  %v5119_v44 = vmul.f32 %v7611_v36, %v11439_v37  ;;  %v3334_v2 = vand.u32 2147483647, %v11542_v9 }
 0x553   :  { %v11538_v29 = vpop.eup %7122  ;;  %v4789_v1 = vmul.f32 0.6931472, %v7121_v23  ;;  %v5372_v24 = vadd.f32 %v5371_v0, %v5245_v55  ;;  %v4608_v30 = vmax.f32 %v11444_v4, 0.0  ;;  %vm4097_vm10 = vcmp.ge.f32.partialorder %v11463_v51, 0.0 }
 0x554   :  { %v4350_v20 = vsel %vm4094_vm7, %v7119_v5, %v4222_v15  ;;  %v3842_v28 = vadd.f32 1.0, %v11538_v29  ;;  %v3335_v5 = vand.u32 2147483647, %v11546_v59  ;;  %vm4098_vm11 = vcmp.ge.f32.partialorder %v11478_v62, 0.0 }
 0x555   :  { %v7125_v50 = vpop.eup %7124  ;;  %4478 = vst [vmem:[#allocation12 + $0x1b0] sm:$0xff] %v4350_v20  ;;  %v4990_v52 = vadd.f32 %v4789_v1, %v4606_v54  ;;  %v3462_v54 = vsub.f32 0.0, %v3334_v2  ;;  %v11568_v2 = vpop.f32.mrb[230].mxu1  ;;  %vm4099_vm12 = vcmp.ge.f32.partialorder %v11482_v6, 0.0  ;;  %vm4100_vm13 = vcmp.ge.f32.partialorder %v11516_v45, 0.0 }
 0x556   :  { %v7127_v16 = vpop.eup %7126  ;;  %v4223_v0 = vmul.f32 %v7125_v50, %v11502_v46  ;;  %7140 = vrcp.f32 %v3842_v28  ;;  %v3463_v40 = vsub.f32 0.0, %v3335_v5  ;;  %vm4101_vm14 = vcmp.ge.f32.partialorder %v11521_v11, 0.0 }
 0x557   :  { %v11561_v23 = vpop.eup %7128  ;;  %v5246_v55 = vsub.f32 %v4990_v52, %v5118_v60  ;;  %v4791_v15 = vmul.f32 0.6931472, %v7127_v16  ;;  %7142 = vlog2.f32 %v3842_v28  ;;  %v3652_v63 = vmul.f32 1.442695, %v3462_v54  ;;  %v7612_v60 = vld [vmem:[#allocation2 + $0x1c0] sm:$0xff] }
 0x558   :  { %v7131_v8 = vpop.eup %7130  ;;  %v4351_v1 = vsel %vm4095_vm8, %v7125_v50, %v4223_v0  ;;  %v3843_v33 = vadd.f32 1.0, %v11561_v23  ;;  %7144 = vpow2.f32 %v3650_v7  ;;  %v5120_v28 = vmul.f32 %v7612_v60, %v11444_v4 }
 0x559   :  { %v7133_v46 = vpop.eup %7132  ;;  %v5373_v20 = vadd.f32 %v5372_v24, %v5246_v55  ;;  %4479 = vst [vmem:[#allocation12 + $0x1b8] sm:$0xff] %v4351_v1  ;;  %v4991_v36 = vadd.f32 %v4791_v15, %v4607_v14  ;;  %v4224_v10 = vmul.f32 %v7131_v8, %v11511_v19  ;;  %v3654_v52 = vmul.f32 1.442695, %v3463_v40 }
 0x55a   :  { %v4793_v17 = vmul.f32 0.6931472, %v7133_v46  ;;  %7146 = vrcp.f32 %v3843_v33  ;;  %v7135_v37 = vpop.eup %7134  ;;  %v4609_v16 = vmax.f32 %v11463_v51, 0.0  ;;  %v11579_v4 = vadd.f32 %v11083_v48, %v10417_v38 }
 0x55b   :  { %v5247_v50 = vsub.f32 %v4991_v36, %v5119_v44  ;;  %v4352_v7 = vsel %vm4096_vm9, %v7131_v8, %v4224_v10  ;;  %7148 = vlog2.f32 %v3843_v33  ;;  %v7137_v14 = vpop.eup %7136  ;;  %v4225_v24 = vmul.f32 %v7135_v37, %v11526_v56  ;;  %v11581_v10 = vpop.f32.mrb[231].mxu1 }
 0x55c   :  { %4480 = vst [vmem:[#allocation12 + $0x1c0] sm:$0xff] %v4352_v7  ;;  %v4992_v19 = vadd.f32 %v4793_v17, %v4608_v30  ;;  %7150 = vpow2.f32 %v3652_v63  ;;  %v11575_v0 = vpop.eup %7138  ;;  %v4795_v55 = vmul.f32 0.6931472, %v7137_v14  ;;  %v11586_v56 = vadd.f32 %v11088_v31, %v10421_v22  ;;  %v7613_v30 = vld [vmem:[#allocation2 + $0x1c8] sm:$0xff] }
 0x55d   :  { %v5374_v5 = vadd.f32 %v5373_v20, %v5247_v50  ;;  %7152 = vpow2.f32 %v3654_v52  ;;  %v4353_v15 = vsel %vm4097_vm10, %v7135_v37, %v4225_v24  ;;  %v3844_v17 = vadd.f32 1.0, %v11575_v0  ;;  %v11601_v24 = vpop.f32.mrb[232].mxu1 }
 0x55e   :  { %v5248_v44 = vsub.f32 %v4992_v19, %v5120_v28  ;;  %4481 = vst [vmem:[#allocation12 + $0x1c8] sm:$0xff] %v4353_v15  ;;  %v4993_v63 = vadd.f32 %v4795_v55, %v4609_v16  ;;  %v5121_v54 = vmul.f32 %v7613_v30, %v11463_v51  ;;  %v3336_v48 = vand.u32 2147483647, %v11579_v4  ;;  %v7614_v28 = vld [vmem:[#allocation2 + $0x1d0] sm:$0xff]  ;;  %v11608_v15 = vpop.f32.mrb[233].mxu1 }
 0x55f   :  { %v4610_v33 = vmax.f32 %v11478_v62, 0.0  ;;  %7154 = vrcp.f32 %v3844_v17  ;;  %v3337_v40 = vand.u32 2147483647, %v11586_v56  ;;  %v5122_v52 = vmul.f32 %v7614_v28, %v11478_v62 }
 0x560   :  { %v7141_v8 = vpop.eup %7140  ;;  %v5375_v1 = vadd.f32 %v5374_v5, %v5248_v44  ;;  %v5249_v20 = vsub.f32 %v4993_v63, %v5121_v54  ;;  %7156 = vlog2.f32 %v3844_v17  ;;  %v3464_v36 = vsub.f32 0.0, %v3336_v48  ;;  %v7615_v63 = vld [vmem:[#allocation2 + $0x1d8] sm:$0xff] }
 0x561   :  { %v7143_v46 = vpop.eup %7142  ;;  %v4226_v31 = vmul.f32 %v7141_v8, %v11538_v29  ;;  %v3465_v37 = vsub.f32 0.0, %v3337_v40  ;;  %v4611_v5 = vmax.f32 %v11482_v6, 0.0  ;;  %v11606_v44 = vadd.f32 %v11097_v27, %v10417_v38  ;;  %v13382_v54 = vld [vmem:[#allocation29_spill] sm:$0xff] }
 0x562   :  { %v11594_v60 = vpop.eup %7144  ;;  %v4797_v51 = vmul.f32 0.6931472, %v7143_v46  ;;  %v5376_v50 = vadd.f32 %v5375_v1, %v5249_v20  ;;  %v3656_v19 = vmul.f32 1.442695, %v3464_v36  ;;  %v5123_v30 = vmul.f32 %v7615_v63, %v11482_v6  ;;  %v11635_v63 = vpop.f32.mrb[234].mxu1 }
 0x563   :  { %v4354_v7 = vsel %vm4098_vm11, %v7141_v8, %v4226_v31  ;;  %v3845_v14 = vadd.f32 1.0, %v11594_v60  ;;  %v3658_v55 = vmul.f32 1.442695, %v3465_v37  ;;  %v11614_v48 = vadd.f32 %v13382_v54, %v10421_v22  ;;  %13384 = vst [vmem:[#allocation33_spill] sm:$0xff] %v11635_v63 }
 0x564   :  { %v7147_v29 = vpop.eup %7146  ;;  %4482 = vst [vmem:[#allocation12 + $0x1d0] sm:$0xff] %v4354_v7  ;;  %v4994_v16 = vadd.f32 %v4797_v51, %v4610_v33  ;;  %v3338_v27 = vand.u32 2147483647, %v11606_v44  ;;  %v4612_v51 = vmax.f32 %v11516_v45, 0.0  ;;  %v4613_v54 = vmax.f32 %v11521_v11, 0.0 }
 0x565   :  { %v7149_v17 = vpop.eup %7148  ;;  %v4227_v62 = vmul.f32 %v7147_v29, %v11561_v23  ;;  %7158 = vrcp.f32 %v3845_v14  ;;  %vm4102_vm15 = vcmp.ge.f32.partialorder %v11542_v9, 0.0  ;;  %vm4103_vm0 = vcmp.ge.f32.partialorder %v11546_v59, 0.0 }
 0x566   :  { %v11616_v8 = vpop.eup %7150  ;;  %v5250_v1 = vsub.f32 %v4994_v16, %v5122_v52  ;;  %v4799_v33 = vmul.f32 0.6931472, %v7149_v17  ;;  %7160 = vlog2.f32 %v3845_v14  ;;  %v3466_v28 = vsub.f32 0.0, %v3338_v27  ;;  %v13383_v52 = vld [vmem:[#allocation28_spill] sm:$0xff]  ;;  %v7616_v14 = vld [vmem:[#allocation2 + $0x1e0] sm:$0xff] }
 0x567   :  { %v11619_v40 = vpop.eup %7152  ;;  %v4355_v23 = vsel %vm4099_vm12, %v7147_v29, %v4227_v62  ;;  %v3846_v46 = vadd.f32 1.0, %v11616_v8  ;;  %7162 = vpow2.f32 %v3656_v19  ;;  %v11629_v37 = vadd.f32 %v13383_v52, %v10417_v38 }
 0x568   :  { %v5377_v20 = vadd.f32 %v5376_v50, %v5250_v1  ;;  %4483 = vst [vmem:[#allocation12 + $0x1d8] sm:$0xff] %v4355_v23  ;;  %v4995_v31 = vadd.f32 %v4799_v33, %v4611_v5  ;;  %v3847_v36 = vadd.f32 1.0, %v11619_v40  ;;  %7164 = vpow2.f32 %v3658_v55  ;;  %v7617_v33 = vld [vmem:[#allocation2 + $0x1e8] sm:$0xff] }
 0x569   :  { %7166 = vrcp.f32 %v3846_v46  ;;  %v7155_v6 = vpop.eup %7154  ;;  %v5124_v29 = vmul.f32 %v7616_v14, %v11516_v45  ;;  %v3339_v50 = vand.u32 2147483647, %v11614_v48  ;;  %v3660_v5 = vmul.f32 1.442695, %v3466_v28  ;;  %v11649_v28 = vpop.f32.mrb[235].mxu1 }
 0x56a   :  { %v5251_v7 = vsub.f32 %v4995_v31, %v5123_v30  ;;  %7168 = vlog2.f32 %v3846_v46  ;;  %v7157_v19 = vpop.eup %7156  ;;  %v4228_v16 = vmul.f32 %v7155_v6, %v11575_v0  ;;  %v3340_v1 = vand.u32 2147483647, %v11629_v37  ;;  %v13385_v31 = vld [vmem:[#allocation152_spill] sm:$0xff]  ;;  %13386 = vst [vmem:[#allocation50_spill] sm:$0xff] %v11649_v28 }
 0x56b   :  { %7170 = vrcp.f32 %v3847_v36  ;;  %v4801_v17 = vmul.f32 0.6931472, %v7157_v19  ;;  %v3467_v62 = vsub.f32 0.0, %v3339_v50  ;;  %v5125_v27 = vmul.f32 %v7617_v33, %v11521_v11 }
 0x56c   :  { %v5378_v55 = vadd.f32 %v5377_v20, %v5251_v7  ;;  %7172 = vlog2.f32 %v3847_v36  ;;  %v4356_v30 = vsel %vm4100_vm13, %v7155_v6, %v4228_v16  ;;  %v4614_v20 = vmax.f32 %v11542_v9, 0.0  ;;  %v13387_v7 = vld [vmem:[#allocation45_spill] sm:$0xff] }
 0x56d   :  { %7174 = vpow2.f32 %v3660_v5  ;;  %4484 = vst [vmem:[#allocation12 + $0x1e0] sm:$0xff] %v4356_v30  ;;  %v4996_v0 = vadd.f32 %v4801_v17, %v4612_v51  ;;  %v3662_v23 = vmul.f32 1.442695, %v3467_v62  ;;  %v3468_v45 = vsub.f32 0.0, %v3340_v1  ;;  %v7618_v16 = vld [vmem:[#allocation2 + $0x1f0] sm:$0xff] }
 0x56e   :  { %v11647_v36 = vadd.f32 %v13385_v31, %v10421_v22  ;;  %v11654_v14 = vadd.f32 %v13387_v7, %v10417_v38  ;;  %v5126_v5 = vmul.f32 %v7618_v16, %v11542_v9  ;;  %v11671_v11 = vadd.f32 %v11183_v58, %v10421_v22 }
 0x56f   :  { %v7159_v46 = vpop.eup %7158  ;;  %v5252_v51 = vsub.f32 %v4996_v0, %v5124_v29  ;;  %7176 = vpow2.f32 %v3662_v23  ;;  %v3664_v17 = vmul.f32 1.442695, %v3468_v45  ;;  %v4615_v29 = vmax.f32 %v11546_v59, 0.0 }
 0x570   :  { %v7161_v52 = vpop.eup %7160  ;;  %v4229_v6 = vmul.f32 %v7159_v46, %v11594_v60  ;;  %v3341_v62 = vand.u32 2147483647, %v11647_v36  ;;  %vm4104_vm1 = vcmp.ge.f32.partialorder %v11579_v4, 0.0  ;;  %vm4105_vm2 = vcmp.ge.f32.partialorder %v11586_v56, 0.0 }
 0x571   :  { %v11656_v50 = vpop.eup %7162  ;;  %v4803_v19 = vmul.f32 0.6931472, %v7161_v52  ;;  %v5379_v1 = vadd.f32 %v5378_v55, %v5252_v51  ;;  %7178 = vpow2.f32 %v3664_v17  ;;  %v3342_v55 = vand.u32 2147483647, %v11654_v14 }
 0x572   :  { %v11660_v30 = vpop.eup %7164  ;;  %v4357_v60 = vsel %vm4101_vm14, %v7159_v46, %v4229_v6  ;;  %v3848_v0 = vadd.f32 1.0, %v11656_v50  ;;  %v3469_v52 = vsub.f32 0.0, %v3341_v62  ;;  %v11676_v62 = vpop.f32.mrb[236].mxu1  ;;  %vm4106_vm3 = vcmp.ge.f32.partialorder %v11606_v44, 0.0 }
 0x573   :  { %v7167_v33 = vpop.eup %7166  ;;  %4485 = vst [vmem:[#allocation12 + $0x1e8] sm:$0xff] %v4357_v60  ;;  %v4997_v23 = vadd.f32 %v4803_v19, %v4613_v54  ;;  %v3849_v31 = vadd.f32 1.0, %v11660_v30  ;;  %vm4107_vm4 = vcmp.ge.f32.partialorder %v11614_v48, 0.0  ;;  %vm4108_vm5 = vcmp.ge.f32.partialorder %v11629_v37, 0.0 }
 0x574   :  { %v7169_v45 = vpop.eup %7168  ;;  %v4230_v7 = vmul.f32 %v7167_v33, %v11616_v8  ;;  %7180 = vrcp.f32 %v3848_v0  ;;  %v3666_v16 = vmul.f32 1.442695, %v3469_v52  ;;  %v3470_v8 = vsub.f32 0.0, %v3342_v55  ;;  %v7619_v52 = vld [vmem:[#allocation2 + $0x1f8] sm:$0xff] }
 0x575   :  { %v7171_v46 = vpop.eup %7170  ;;  %v5253_v51 = vsub.f32 %v4997_v23, %v5125_v27  ;;  %v4805_v6 = vmul.f32 0.6931472, %v7169_v45  ;;  %7182 = vlog2.f32 %v3848_v0  ;;  %v5127_v45 = vmul.f32 %v7619_v52, %v11546_v59 }
 0x576   :  { %v7173_v54 = vpop.eup %7172  ;;  %v4358_v19 = vsel %vm4102_vm15, %v7167_v33, %v4230_v7  ;;  %v4231_v17 = vmul.f32 %v7171_v46, %v11619_v40  ;;  %7184 = vrcp.f32 %v3849_v31  ;;  %v3668_v9 = vmul.f32 1.442695, %v3470_v8  ;;  %v11683_v33 = vpop.f32.mrb[237].mxu1 }
 0x577   :  { %v11678_v60 = vpop.eup %7174  ;;  %v5380_v28 = vadd.f32 %v5379_v1, %v5253_v51  ;;  %4486 = vst [vmem:[#allocation12 + $0x1f0] sm:$0xff] %v4358_v19  ;;  %v4998_v58 = vadd.f32 %v4805_v6, %v4614_v20  ;;  %v4807_v63 = vmul.f32 0.6931472, %v7173_v54  ;;  %7186 = vlog2.f32 %v3849_v31  ;;  %v7620_v31 = vld [vmem:[#allocation2 + $0x200] sm:$0xff] }
 0x578   :  { %v4359_v27 = vsel %vm4103_vm0, %v7171_v46, %v4231_v17  ;;  %v3850_v0 = vadd.f32 1.0, %v11678_v60  ;;  %7188 = vpow2.f32 %v3666_v16  ;;  %v4616_v1 = vmax.f32 %v11579_v4, 0.0  ;;  %v11694_v46 = vpop.f32.mrb[238].mxu1  ;;  %v7621_v17 = vld [vmem:[#allocation2 + $0x208] sm:$0xff] }
 0x579   :  { %v5254_v40 = vsub.f32 %v4998_v58, %v5126_v5  ;;  %4487 = vst [vmem:[#allocation12 + $0x1f8] sm:$0xff] %v4359_v27  ;;  %v4999_v23 = vadd.f32 %v4807_v63, %v4615_v29  ;;  %v11687_v20 = vpop.eup %7176  ;;  %v11691_v7 = vmul.f32 %v7620_v31, %v11579_v4  ;;  %v3343_v55 = vand.u32 2147483647, %v11671_v11  ;;  %13388 = vst [vmem:[#allocation32_spill] sm:$0xff] %v11694_v46  ;;  %v11720_v31 = vpop.f32.mrb[239].mxu1  ;;  %v7622_v46 = vld [vmem:[#allocation2 + $0x210] sm:$0xff] }
 0x57a   :  { %7190 = vrcp.f32 %v3850_v0  ;;  %v3851_v59 = vadd.f32 1.0, %v11687_v20  ;;  %v4617_v29 = vmax.f32 %v11586_v56, 0.0  ;;  %v11703_v54 = vadd.f32 %v11213_v25, %v10417_v38  ;;  %13389 = vst [vmem:[#allocation42_spill] sm:$0xff] %v11720_v31 }
 0x57b   :  { %v5381_v5 = vadd.f32 %v5380_v28, %v5254_v40  ;;  %v5255_v63 = vsub.f32 %v4999_v23, %v5127_v45  ;;  %7192 = vlog2.f32 %v3850_v0  ;;  %v3471_v51 = vsub.f32 0.0, %v3343_v55  ;;  %v11699_v6 = vpop.eup %7178 }
 0x57c   :  { %7194 = vpow2.f32 %v3668_v9  ;;  %v11707_v28 = vadd.f32 %v11222_v61, %v10421_v22  ;;  %v5129_v8 = vmul.f32 %v7621_v17, %v11586_v56  ;;  %v3852_v58 = vadd.f32 1.0, %v11699_v6 }
 0x57d   :  { %v5382_v16 = vadd.f32 %v5381_v5, %v5255_v63  ;;  %7196 = vrcp.f32 %v3851_v59  ;;  %v3670_v27 = vmul.f32 1.442695, %v3471_v51  ;;  %v4618_v25 = vmax.f32 %v11606_v44, 0.0 }
 0x57e   :  { %v7181_v19 = vpop.eup %7180  ;;  %7198 = vlog2.f32 %v3851_v59  ;;  %v3344_v40 = vand.u32 2147483647, %v11703_v54  ;;  %v3345_v52 = vand.u32 2147483647, %v11707_v28  ;;  %v11718_v45 = vadd.f32 %v11236_v47, %v10417_v38 }
 0x57f   :  { %v7183_v0 = vpop.eup %7182  ;;  %v4232_v9 = vmul.f32 %v7181_v19, %v11656_v50  ;;  %7200 = vrcp.f32 %v3852_v58  ;;  %v5130_v31 = vmul.f32 %v7622_v46, %v11606_v44  ;;  %v4619_v56 = vmax.f32 %v11614_v48, 0.0 }
 0x580   :  { %v7185_v23 = vpop.eup %7184  ;;  %v4809_v61 = vmul.f32 0.6931472, %v7183_v0  ;;  %7202 = vlog2.f32 %v3852_v58  ;;  %v3472_v63 = vsub.f32 0.0, %v3344_v40  ;;  %v3473_v0 = vsub.f32 0.0, %v3345_v52 }
 0x581   :  { %v7187_v55 = vpop.eup %7186  ;;  %v4360_v50 = vsel %vm4104_vm1, %v7181_v19, %v4232_v9  ;;  %v4233_v5 = vmul.f32 %v7185_v23, %v11660_v30  ;;  %7204 = vpow2.f32 %v3670_v27  ;;  %vm4109_vm6 = vcmp.ge.f32.partialorder %v11647_v36, 0.0 }
 0x582   :  { %v11725_v59 = vpop.eup %7188  ;;  %4488 = vst [vmem:[#allocation12 + $0x200] sm:$0xff] %v4360_v50  ;;  %v5000_v51 = vadd.f32 %v4809_v61, %v4616_v1  ;;  %v4811_v17 = vmul.f32 0.6931472, %v7187_v55  ;;  %v3672_v19 = vmul.f32 1.442695, %v3472_v63  ;;  %vm4110_vm7 = vcmp.ge.f32.partialorder %v11654_v14, 0.0 }
 0x583   :  { %v4361_v47 = vsel %vm4105_vm2, %v7185_v23, %v4233_v5  ;;  %v3853_v4 = vadd.f32 1.0, %v11725_v59  ;;  %v3674_v1 = vmul.f32 1.442695, %v3473_v0  ;;  %v3346_v23 = vand.u32 2147483647, %v11718_v45  ;;  %v11742_v0 = vpop.f32.mrb[240].mxu1 }
 0x584   :  { %v7191_v9 = vpop.eup %7190  ;;  %v5256_v30 = vsub.f32 %v5000_v51, %v11691_v7  ;;  %4489 = vst [vmem:[#allocation12 + $0x208] sm:$0xff] %v4361_v47  ;;  %v5001_v58 = vadd.f32 %v4811_v17, %v4617_v29  ;;  %vm4111_vm8 = vcmp.ge.f32.partialorder %v11671_v11, 0.0  ;;  %vm4112_vm9 = vcmp.ge.f32.partialorder %v11703_v54, 0.0 }
 0x585   :  { %v7193_v40 = vpop.eup %7192  ;;  %v4234_v27 = vmul.f32 %v7191_v9, %v11678_v60  ;;  %7206 = vrcp.f32 %v3853_v4  ;;  %v3474_v5 = vsub.f32 0.0, %v3346_v23  ;;  %vm4113_vm10 = vcmp.ge.f32.partialorder %v11707_v28, 0.0 }
 0x586   :  { %v11736_v46 = vpop.eup %7194  ;;  %v5383_v61 = vadd.f32 %v5382_v16, %v5256_v30  ;;  %v5257_v52 = vsub.f32 %v5001_v58, %v5129_v8  ;;  %v4813_v55 = vmul.f32 0.6931472, %v7193_v40  ;;  %7208 = vlog2.f32 %v3853_v4  ;;  %v7623_v8 = vld [vmem:[#allocation2 + $0x218] sm:$0xff]  ;;  %v11745_v4 = vpop.f32.mrb[241].mxu1 }
 0x587   :  { %v7197_v7 = vpop.eup %7196  ;;  %v4362_v29 = vsel %vm4106_vm3, %v7191_v9, %v4234_v27  ;;  %v3854_v50 = vadd.f32 1.0, %v11736_v46  ;;  %7210 = vpow2.f32 %v3672_v19  ;;  %v5131_v47 = vmul.f32 %v7623_v8, %v11614_v48  ;;  %v11752_v40 = vpop.f32.mrb[242].mxu1 }
 0x588   :  { %v7199_v60 = vpop.eup %7198  ;;  %v5384_v63 = vadd.f32 %v5383_v61, %v5257_v52  ;;  %4490 = vst [vmem:[#allocation12 + $0x210] sm:$0xff] %v4362_v29  ;;  %v5002_v51 = vadd.f32 %v4813_v55, %v4618_v25  ;;  %v4235_v17 = vmul.f32 %v7197_v7, %v11687_v20  ;;  %7212 = vpow2.f32 %v3674_v1 }
 0x589   :  { %v4815_v16 = vmul.f32 0.6931472, %v7199_v60  ;;  %7214 = vrcp.f32 %v3854_v50  ;;  %v3676_v44 = vmul.f32 1.442695, %v3474_v5  ;;  %v7201_v9 = vpop.eup %7200  ;;  %v4620_v1 = vmax.f32 %v11629_v37, 0.0 }
 0x58a   :  { %v5258_v19 = vsub.f32 %v5002_v51, %v5130_v31  ;;  %v4363_v30 = vsel %vm4107_vm4, %v7197_v7, %v4235_v17  ;;  %7216 = vlog2.f32 %v3854_v50  ;;  %v7203_v20 = vpop.eup %7202  ;;  %v4236_v58 = vmul.f32 %v7201_v9, %v11699_v6  ;;  %v7624_v7 = vld [vmem:[#allocation2 + $0x220] sm:$0xff]  ;;  %v7625_v50 = vld [vmem:[#allocation2 + $0x228] sm:$0xff] }
 0x58b   :  { %4491 = vst [vmem:[#allocation12 + $0x218] sm:$0xff] %v4363_v30  ;;  %v5003_v25 = vadd.f32 %v4815_v16, %v4619_v56  ;;  %7218 = vpow2.f32 %v3676_v44  ;;  %v11754_v27 = vpop.eup %7204  ;;  %v4817_v31 = vmul.f32 0.6931472, %v7203_v20  ;;  %v11758_v48 = vadd.f32 %v11265_v3, %v10421_v22  ;;  %v11768_v3 = vpop.f32.mrb[243].mxu1 }
 0x58c   :  { %v5385_v23 = vadd.f32 %v5384_v63, %v5258_v19  ;;  %v11762_v61 = vadd.f32 %v11315_v42, %v10417_v38  ;;  %v4364_v52 = vsel %vm4108_vm5, %v7201_v9, %v4236_v58  ;;  %v3855_v6 = vadd.f32 1.0, %v11754_v27 }
 0x58d   :  { %v5259_v56 = vsub.f32 %v5003_v25, %v5131_v47  ;;  %4492 = vst [vmem:[#allocation12 + $0x220] sm:$0xff] %v4364_v52  ;;  %v5004_v55 = vadd.f32 %v4817_v31, %v4620_v1  ;;  %v5132_v29 = vmul.f32 %v7624_v7, %v11629_v37  ;;  %v5133_v5 = vmul.f32 %v7625_v50, %v11647_v36 }
 0x58e   :  { %v3347_v60 = vand.u32 2147483647, %v11758_v48  ;;  %7220 = vrcp.f32 %v3855_v6  ;;  %v3348_v42 = vand.u32 2147483647, %v11762_v61  ;;  %v11775_v37 = vadd.f32 %v11320_v26, %v10421_v22 }
 0x58f   :  { %v7207_v63 = vpop.eup %7206  ;;  %v5386_v51 = vadd.f32 %v5385_v23, %v5259_v56  ;;  %v5260_v16 = vsub.f32 %v5004_v55, %v5132_v29  ;;  %7222 = vlog2.f32 %v3855_v6  ;;  %v4621_v44 = vmax.f32 %v11647_v36, 0.0  ;;  %v7626_v23 = vld [vmem:[#allocation2 + $0x230] sm:$0xff] }
 0x590   :  { %v7209_v17 = vpop.eup %7208  ;;  %v4237_v8 = vmul.f32 %v7207_v63, %v11725_v59  ;;  %v3475_v19 = vsub.f32 0.0, %v3347_v60  ;;  %v4622_v58 = vmax.f32 %v11654_v14, 0.0  ;;  %v5134_v31 = vmul.f32 %v7626_v23, %v11654_v14 }
 0x591   :  { %v11777_v47 = vpop.eup %7210  ;;  %v4819_v9 = vmul.f32 0.6931472, %v7209_v17  ;;  %v5387_v20 = vadd.f32 %v5386_v51, %v5260_v16  ;;  %v3476_v56 = vsub.f32 0.0, %v3348_v42  ;;  %v3349_v55 = vand.u32 2147483647, %v11775_v37 }
 0x592   :  { %v11781_v30 = vpop.eup %7212  ;;  %v4365_v25 = vsel %vm4109_vm6, %v7207_v63, %v4237_v8  ;;  %v3856_v59 = vadd.f32 1.0, %v11777_v47  ;;  %v3678_v60 = vmul.f32 1.442695, %v3475_v19  ;;  %v11795_v8 = vpop.f32.mrb[244].mxu1  ;;  %vm4114_vm11 = vcmp.ge.f32.partialorder %v11718_v45, 0.0 }
 0x593   :  { %v7215_v1 = vpop.eup %7214  ;;  %4493 = vst [vmem:[#allocation12 + $0x228] sm:$0xff] %v4365_v25  ;;  %v5005_v26 = vadd.f32 %v4819_v9, %v4621_v44  ;;  %v3857_v36 = vadd.f32 1.0, %v11781_v30  ;;  %v3477_v42 = vsub.f32 0.0, %v3349_v55  ;;  %v3680_v16 = vmul.f32 1.442695, %v3476_v56  ;;  %v11802_v14 = vpop.f32.mrb[245].mxu1 }
 0x594   :  { %v7217_v52 = vpop.eup %7216  ;;  %v4238_v6 = vmul.f32 %v7215_v1, %v11736_v46  ;;  %7224 = vrcp.f32 %v3856_v59  ;;  %v4623_v44 = vmax.f32 %v11671_v11, 0.0  ;;  %v11800_v9 = vadd.f32 %v11328_v57, %v10417_v38 }
 0x595   :  { %v11790_v7 = vpop.eup %7218  ;;  %v5261_v29 = vsub.f32 %v5005_v26, %v5133_v5  ;;  %v4821_v50 = vmul.f32 0.6931472, %v7217_v52  ;;  %7226 = vlog2.f32 %v3856_v59  ;;  %v3682_v5 = vmul.f32 1.442695, %v3477_v42  ;;  %v7627_v59 = vld [vmem:[#allocation2 + $0x238] sm:$0xff] }
 0x596   :  { %v4366_v63 = vsel %vm4110_vm7, %v7215_v1, %v4238_v6  ;;  %7228 = vrcp.f32 %v3857_v36  ;;  %v3858_v51 = vadd.f32 1.0, %v11790_v7  ;;  %v3350_v23 = vand.u32 2147483647, %v11800_v9  ;;  %v7628_v6 = vld [vmem:[#allocation2 + $0x240] sm:$0xff] }
 0x597   :  { %v5388_v17 = vadd.f32 %v5387_v20, %v5261_v29  ;;  %4494 = vst [vmem:[#allocation12 + $0x230] sm:$0xff] %v4366_v63  ;;  %v5006_v46 = vadd.f32 %v4821_v50, %v4622_v58  ;;  %7230 = vlog2.f32 %v3857_v36  ;;  %v5135_v20 = vmul.f32 %v7627_v59, %v11671_v11 }
 0x598   :  { %7232 = vrcp.f32 %v3858_v51  ;;  %v7221_v19 = vpop.eup %7220  ;;  %v11807_v58 = vadd.f32 %v11332_v12, %v10421_v22  ;;  %v11813_v57 = vadd.f32 %v11352_v39, %v10417_v38  ;;  %v4624_v12 = vmax.f32 %v11703_v54, 0.0 }
 0x599   :  { %v5262_v25 = vsub.f32 %v5006_v46, %v5134_v31  ;;  %7234 = vlog2.f32 %v3858_v51  ;;  %v7223_v1 = vpop.eup %7222  ;;  %v4239_v26 = vmul.f32 %v7221_v19, %v11754_v27  ;;  %v3478_v52 = vsub.f32 0.0, %v3350_v23 }
 0x59a   :  { %7236 = vpow2.f32 %v3678_v60  ;;  %v4823_v31 = vmul.f32 0.6931472, %v7223_v1  ;;  %v5136_v55 = vmul.f32 %v7628_v6, %v11703_v54  ;;  %v3351_v39 = vand.u32 2147483647, %v11807_v58  ;;  %v7629_v60 = vld [vmem:[#allocation2 + $0x248] sm:$0xff] }
 0x59b   :  { %v5389_v36 = vadd.f32 %v5388_v17, %v5262_v25  ;;  %7238 = vpow2.f32 %v3680_v16  ;;  %v4367_v56 = vsel %vm4111_vm8, %v7221_v19, %v4239_v26  ;;  %v4625_v50 = vmax.f32 %v11707_v28, 0.0 }
 0x59c   :  { %7240 = vpow2.f32 %v3682_v5  ;;  %4495 = vst [vmem:[#allocation12 + $0x238] sm:$0xff] %v4367_v56  ;;  %v5007_v27 = vadd.f32 %v4823_v31, %v4623_v44  ;;  %v5137_v11 = vmul.f32 %v7629_v60, %v11707_v28  ;;  %v3684_v63 = vmul.f32 1.442695, %v3478_v52  ;;  %v11830_v5 = vpop.f32.mrb[246].mxu1 }
 0x59d   :  { %v3352_v51 = vand.u32 2147483647, %v11813_v57  ;;  %v3479_v16 = vsub.f32 0.0, %v3351_v39  ;;  %v11828_v44 = vadd.f32 %v11358_v18, %v10421_v22  ;;  %v4626_v52 = vmax.f32 %v11718_v45, 0.0 }
 0x59e   :  { %v7225_v29 = vpop.eup %7224  ;;  %v5263_v17 = vsub.f32 %v5007_v27, %v5135_v20  ;;  %7242 = vpow2.f32 %v3684_v63  ;;  %vm4115_vm12 = vcmp.ge.f32.partialorder %v11758_v48, 0.0  ;;  %vm4116_vm13 = vcmp.ge.f32.partialorder %v11762_v61, 0.0 }
 0x59f   :  { %v7227_v42 = vpop.eup %7226  ;;  %v4240_v46 = vmul.f32 %v7225_v29, %v11777_v47  ;;  %v3480_v59 = vsub.f32 0.0, %v3352_v51  ;;  %v3686_v23 = vmul.f32 1.442695, %v3479_v16  ;;  %v3353_v54 = vand.u32 2147483647, %v11828_v44 }
 0x5a0   :  { %v7229_v19 = vpop.eup %7228  ;;  %v4825_v25 = vmul.f32 0.6931472, %v7227_v42  ;;  %v5390_v26 = vadd.f32 %v5389_v36, %v5263_v17  ;;  %v7630_v42 = vld [vmem:[#allocation2 + $0x250] sm:$0xff]  ;;  %vm4117_vm14 = vcmp.ge.f32.partialorder %v11775_v37, 0.0  ;;  %vm4118_vm15 = vcmp.ge.f32.partialorder %v11800_v9, 0.0 }
 0x5a1   :  { %v7231_v1 = vpop.eup %7230  ;;  %v4368_v20 = vsel %vm4112_vm9, %v7225_v29, %v4240_v46  ;;  %v4241_v47 = vmul.f32 %v7229_v19, %v11781_v30  ;;  %v3688_v27 = vmul.f32 1.442695, %v3480_v59  ;;  %7244 = vpow2.f32 %v3686_v23 }
 0x5a2   :  { %v7233_v31 = vpop.eup %7232  ;;  %4496 = vst [vmem:[#allocation12 + $0x240] sm:$0xff] %v4368_v20  ;;  %v5008_v18 = vadd.f32 %v4825_v25, %v4624_v12  ;;  %v4827_v56 = vmul.f32 0.6931472, %v7231_v1  ;;  %v11843_v12 = vpop.f32.mrb[247].mxu1  ;;  %v3481_v59 = vsub.f32 0.0, %v3353_v54  ;;  %v4628_v54 = vmax.f32 %v11762_v61, 0.0 }
 0x5a3   :  { %v7235_v6 = vpop.eup %7234  ;;  %v4369_v39 = vsel %vm4113_vm10, %v7229_v19, %v4241_v47  ;;  %v4242_v60 = vmul.f32 %v7233_v31, %v11790_v7  ;;  %7246 = vpow2.f32 %v3688_v27  ;;  %13390 = vst [vmem:[#allocation37_spill] sm:$0xff] %v11843_v12  ;;  %v5138_v7 = vmul.f32 %v7630_v42, %v11718_v45 }
 0x5a4   :  { %v11841_v36 = vpop.eup %7236  ;;  %v5264_v30 = vsub.f32 %v5008_v18, %v5136_v55  ;;  %4497 = vst [vmem:[#allocation12 + $0x248] sm:$0xff] %v4369_v39  ;;  %v5009_v29 = vadd.f32 %v4827_v56, %v4625_v50  ;;  %v4829_v63 = vmul.f32 0.6931472, %v7235_v6  ;;  %v11857_v45 = vadd.f32 %v11390_v34, %v10417_v38  ;;  %v11872_v18 = vpop.f32.mrb[248].mxu1 }
 0x5a5   :  { %v11845_v51 = vpop.eup %7238  ;;  %v4370_v28 = vsel %vm4114_vm11, %v7233_v31, %v4242_v60  ;;  %v3859_v17 = vadd.f32 1.0, %v11841_v36  ;;  %13391 = vst [vmem:[#allocation40_spill] sm:$0xff] %v11872_v18  ;;  %v4627_v34 = vmax.f32 %v11758_v48, 0.0  ;;  %v3690_v56 = vmul.f32 1.442695, %v3481_v59 }
 0x5a6   :  { %v11851_v46 = vpop.eup %7240  ;;  %v5391_v16 = vadd.f32 %v5390_v26, %v5264_v30  ;;  %v5265_v55 = vsub.f32 %v5009_v29, %v5137_v11  ;;  %4498 = vst [vmem:[#allocation12 + $0x250] sm:$0xff] %v4370_v28  ;;  %v5010_v50 = vadd.f32 %v4829_v63, %v4626_v52  ;;  %v3860_v19 = vadd.f32 1.0, %v11845_v51  ;;  %v11877_v52 = vpop.f32.mrb[249].mxu1  ;;  %v7632_v28 = vld [vmem:[#allocation2 + $0x260] sm:$0xff] }
 0x5a7   :  { %7248 = vrcp.f32 %v3859_v17  ;;  %v3861_v25 = vadd.f32 1.0, %v11851_v46  ;;  %v11861_v26 = vadd.f32 %v11404_v53, %v10421_v22  ;;  %v11865_v11 = vadd.f32 %v11424_v41, %v10417_v38  ;;  %13392 = vst [vmem:[#allocation48_spill] sm:$0xff] %v11877_v52  ;;  %v7631_v41 = vld [vmem:[#allocation2 + $0x258] sm:$0xff] }
 0x5a8   :  { %v5392_v1 = vadd.f32 %v5391_v16, %v5265_v55  ;;  %v5266_v20 = vsub.f32 %v5010_v50, %v5138_v7  ;;  %7250 = vlog2.f32 %v3859_v17  ;;  %v11867_v47 = vpop.eup %7242  ;;  %v3354_v31 = vand.u32 2147483647, %v11857_v45  ;;  %v11898_v16 = vpop.f32.mrb[250].mxu1 }
 0x5a9   :  { %7252 = vrcp.f32 %v3860_v19  ;;  %v3862_v53 = vadd.f32 1.0, %v11867_v47  ;;  %v11880_v27 = vmul.f32 %v7631_v41, %v11758_v48  ;;  %v3355_v39 = vand.u32 2147483647, %v11861_v26  ;;  %13393 = vst [vmem:[#allocation36_spill] sm:$0xff] %v11898_v16 }
 0x5aa   :  { %v11869_v23 = vadd.f32 %v5392_v1, %v5266_v20  ;;  %7254 = vlog2.f32 %v3860_v19  ;;  %v3482_v6 = vsub.f32 0.0, %v3354_v31  ;;  %v3356_v30 = vand.u32 2147483647, %v11865_v11  ;;  %v7633_v19 = vld [vmem:[#allocation2 + $0x268] sm:$0xff] }
 0x5ab   :  { %7256 = vrcp.f32 %v3861_v25  ;;  %v11883_v60 = vpop.eup %7244  ;;  %v11890_v29 = vadd.f32 %v11428_v13, %v10421_v22  ;;  %v11895_v42 = vmul.f32 %v7632_v28, %v11762_v61  ;;  %v3483_v17 = vsub.f32 0.0, %v3355_v39  ;;  %v7634_v39 = vld [vmem:[#allocation2 + $0x270] sm:$0xff] }
 0x5ac   :  { %7258 = vlog2.f32 %v3861_v25  ;;  %v3863_v7 = vadd.f32 1.0, %v11883_v60  ;;  %v3484_v50 = vsub.f32 0.0, %v3356_v30  ;;  %v4629_v13 = vmax.f32 %v11775_v37, 0.0 }
 0x5ad   :  { %7260 = vrcp.f32 %v3862_v53  ;;  %v11892_v63 = vpop.eup %7246  ;;  %v11904_v25 = vmul.f32 %v7633_v19, %v11775_v37  ;;  %v3692_v59 = vmul.f32 1.442695, %v3482_v6  ;;  %v4630_v20 = vmax.f32 %v11800_v9, 0.0 }
 0x5ae   :  { %7262 = vlog2.f32 %v3862_v53  ;;  %v3864_v55 = vadd.f32 1.0, %v11892_v63  ;;  %v3694_v31 = vmul.f32 1.442695, %v3483_v17  ;;  %v3357_v53 = vand.u32 2147483647, %v11890_v29 }
 0x5af   :  { %7264 = vpow2.f32 %v3690_v56  ;;  %v11911_v30 = vmul.f32 %v7634_v39, %v11800_v9  ;;  %v3696_v28 = vmul.f32 1.442695, %v3484_v50  ;;  %v11915_v52 = vadd.f32 %v11434_v35, %v10417_v38 }
 0x5b0   :  { %7266 = vrcp.f32 %v3863_v7  ;;  %v3485_v16 = vsub.f32 0.0, %v3357_v53  ;;  %vm4119_vm0 = vcmp.ge.f32.partialorder %v11807_v58, 0.0  ;;  %v4631_v39 = vmax.f32 %v11807_v58, 0.0 }
 0x5b1   :  { %v7249_v1 = vpop.eup %7248  ;;  %7268 = vlog2.f32 %v3863_v7  ;;  %vm4120_vm1 = vcmp.ge.f32.partialorder %v11813_v57, 0.0  ;;  %vm4121_vm2 = vcmp.ge.f32.partialorder %v11828_v44, 0.0  ;;  %vm4122_vm3 = vcmp.ge.f32.partialorder %v11857_v45, 0.0 }
 0x5b2   :  { %v7251_v41 = vpop.eup %7250  ;;  %v4243_v56 = vmul.f32 %v7249_v1, %v11841_v36  ;;  %7270 = vrcp.f32 %v3864_v55  ;;  %v3698_v53 = vmul.f32 1.442695, %v3485_v16  ;;  %vm4123_vm4 = vcmp.ge.f32.partialorder %v11861_v26, 0.0 }
 0x5b3   :  { %v7253_v19 = vpop.eup %7252  ;;  %v4831_v6 = vmul.f32 0.6931472, %v7251_v41  ;;  %7272 = vlog2.f32 %v3864_v55  ;;  %vm4124_vm5 = vcmp.ge.f32.partialorder %v11865_v11, 0.0  ;;  %vm4125_vm6 = vcmp.ge.f32.partialorder %v11890_v29, 0.0 }
 0x5b4   :  { %v7255_v7 = vpop.eup %7254  ;;  %v4371_v17 = vsel %vm4115_vm12, %v7249_v1, %v4243_v56  ;;  %v4244_v36 = vmul.f32 %v7253_v19, %v11845_v51  ;;  %7274 = vpow2.f32 %v3692_v59  ;;  %v3358_v51 = vand.u32 2147483647, %v11915_v52 }
 0x5b5   :  { %v7257_v50 = vpop.eup %7256  ;;  %4499 = vst [vmem:[#allocation12 + $0x258] sm:$0xff] %v4371_v17  ;;  %v5011_v41 = vadd.f32 %v4831_v6, %v4627_v34  ;;  %v4833_v55 = vmul.f32 0.6931472, %v7255_v7  ;;  %7276 = vpow2.f32 %v3694_v31  ;;  %v11927_v34 = vpop.f32.mrb[251].mxu1  ;;  %v7635_v17 = vld [vmem:[#allocation2 + $0x278] sm:$0xff]  ;;  %vm4126_vm7 = vcmp.ge.f32.partialorder %v11915_v52, 0.0 }
 0x5b6   :  { %v7259_v18 = vpop.eup %7258  ;;  %v4372_v35 = vsel %vm4116_vm13, %v7253_v19, %v4244_v36  ;;  %v4245_v48 = vmul.f32 %v7257_v50, %v11851_v46  ;;  %7278 = vpow2.f32 %v3696_v28  ;;  %v3486_v19 = vsub.f32 0.0, %v3358_v51 }
 0x5b7   :  { %v7261_v1 = vpop.eup %7260  ;;  %v5267_v56 = vsub.f32 %v5011_v41, %v11880_v27  ;;  %4500 = vst [vmem:[#allocation12 + $0x260] sm:$0xff] %v4372_v35  ;;  %v5012_v59 = vadd.f32 %v4833_v55, %v4628_v54  ;;  %v4835_v12 = vmul.f32 0.6931472, %v7259_v18  ;;  %7280 = vpow2.f32 %v3698_v53 }
 0x5b8   :  { %v7263_v31 = vpop.eup %7262  ;;  %v4373_v16 = vsel %vm4117_vm14, %v7257_v50, %v4245_v48  ;;  %v4246_v61 = vmul.f32 %v7261_v1, %v11867_v47  ;;  %v11934_v46 = vadd.f32 %v11455_v43, %v10421_v22  ;;  %v5143_v47 = vmul.f32 %v7635_v17, %v11807_v58 }
 0x5b9   :  { %v11936_v28 = vpop.eup %7264  ;;  %v5394_v27 = vadd.f32 %v11869_v23, %v5267_v56  ;;  %v5268_v18 = vsub.f32 %v5012_v59, %v11895_v42  ;;  %4501 = vst [vmem:[#allocation12 + $0x268] sm:$0xff] %v4373_v16  ;;  %v5013_v54 = vadd.f32 %v4835_v12, %v4629_v13  ;;  %v4837_v6 = vmul.f32 0.6931472, %v7263_v31 }
 0x5ba   :  { %v7267_v7 = vpop.eup %7266  ;;  %v4374_v37 = vsel %vm4118_vm15, %v7261_v1, %v4246_v61  ;;  %v3865_v36 = vadd.f32 1.0, %v11936_v28  ;;  %v3700_v43 = vmul.f32 1.442695, %v3486_v19  ;;  %v3359_v9 = vand.u32 2147483647, %v11934_v46  ;;  %v11952_v1 = vpop.f32.mrb[252].mxu1 }
 0x5bb   :  { %v7269_v50 = vpop.eup %7268  ;;  %v5395_v41 = vadd.f32 %v5394_v27, %v5268_v18  ;;  %v5269_v55 = vsub.f32 %v5013_v54, %v11904_v25  ;;  %4502 = vst [vmem:[#allocation12 + $0x270] sm:$0xff] %v4374_v37  ;;  %v5014_v23 = vadd.f32 %v4837_v6, %v4630_v20  ;;  %v4247_v42 = vmul.f32 %v7267_v7, %v11883_v60  ;;  %v11957_v31 = vpop.f32.mrb[253].mxu1  ;;  %v7636_v18 = vld [vmem:[#allocation2 + $0x280] sm:$0xff] }
 0x5bc   :  { %v7271_v12 = vpop.eup %7270  ;;  %v4839_v13 = vmul.f32 0.6931472, %v7269_v50  ;;  %7282 = vrcp.f32 %v3865_v36  ;;  %v4632_v56 = vmax.f32 %v11813_v57, 0.0  ;;  %v11964_v61 = vpop.f32.mrb[254].mxu1  ;;  %v5144_v54 = vmul.f32 %v7636_v18, %v11813_v57 }
 0x5bd   :  { %v7273_v53 = vpop.eup %7272  ;;  %v5396_v35 = vadd.f32 %v5395_v41, %v5269_v55  ;;  %v5270_v48 = vsub.f32 %v5014_v23, %v11911_v30  ;;  %v4375_v51 = vsel %vm4119_vm0, %v7267_v7, %v4247_v42  ;;  %v4248_v25 = vmul.f32 %v7271_v12, %v11892_v63  ;;  %v11970_v7 = vpop.f32.mrb[255].mxu1  ;;  %v7637_v42 = vld [vmem:[#allocation2 + $0x288] sm:$0xff] }
 0x5be   :  { %v11954_v20 = vpop.eup %7274  ;;  %4503 = vst [vmem:[#allocation12 + $0x278] sm:$0xff] %v4375_v51  ;;  %v5015_v60 = vadd.f32 %v4839_v13, %v4631_v39  ;;  %v4841_v59 = vmul.f32 0.6931472, %v7273_v53  ;;  %7284 = vlog2.f32 %v3865_v36  ;;  %v3487_v36 = vsub.f32 0.0, %v3359_v9 }
 0x5bf   :  { %v11959_v16 = vpop.eup %7276  ;;  %v5397_v30 = vadd.f32 %v5396_v35, %v5270_v48  ;;  %v4376_v58 = vsel %vm4120_vm1, %v7271_v12, %v4248_v25  ;;  %v3866_v63 = vadd.f32 1.0, %v11954_v20  ;;  %7286 = vpow2.f32 %v3700_v43 }
 0x5c0   :  { %v11966_v19 = vpop.eup %7278  ;;  %v5271_v39 = vsub.f32 %v5015_v60, %v5143_v47  ;;  %4504 = vst [vmem:[#allocation12 + $0x280] sm:$0xff] %v4376_v58  ;;  %v5016_v27 = vadd.f32 %v4841_v59, %v4632_v56  ;;  %v3867_v6 = vadd.f32 1.0, %v11959_v16  ;;  %v4633_v47 = vmax.f32 %v11828_v44, 0.0  ;;  %v7639_v56 = vld [vmem:[#allocation2 + $0x298] sm:$0xff] }
 0x5c1   :  { %v11972_v37 = vpop.eup %7280  ;;  %7288 = vrcp.f32 %v3866_v63  ;;  %v3868_v17 = vadd.f32 1.0, %v11966_v19  ;;  %v11980_v41 = vadd.f32 %v11496_v32, %v10417_v38  ;;  %v11984_v55 = vadd.f32 %v11500_v49, %v10421_v22  ;;  %v7638_v49 = vld [vmem:[#allocation2 + $0x290] sm:$0xff] }
 0x5c2   :  { %v5398_v43 = vadd.f32 %v5397_v30, %v5271_v39  ;;  %v5272_v50 = vsub.f32 %v5016_v27, %v5144_v54  ;;  %7290 = vlog2.f32 %v3866_v63  ;;  %v3869_v57 = vadd.f32 1.0, %v11972_v37  ;;  %v13394_v27 = vld [vmem:[#allocation151_spill] sm:$0xff] }
 0x5c3   :  { %7292 = vrcp.f32 %v3867_v6  ;;  %v5145_v12 = vmul.f32 %v7637_v42, %v11828_v44  ;;  %v11989_v13 = vadd.f32 %v11504_v21, %v10417_v38  ;;  %v4634_v9 = vmax.f32 %v11857_v45, 0.0  ;;  %v11999_v21 = vpop.f32.mrb[0].mxu1 }
 0x5c4   :  { %v5399_v23 = vadd.f32 %v5398_v43, %v5272_v50  ;;  %7294 = vlog2.f32 %v3867_v6  ;;  %v3702_v32 = vmul.f32 1.442695, %v3487_v36  ;;  %v3360_v53 = vand.u32 2147483647, %v11980_v41 }
 0x5c5   :  { %7296 = vrcp.f32 %v3868_v17  ;;  %v11995_v48 = vmul.f32 %v7638_v49, %v11857_v45  ;;  %v4635_v51 = vmax.f32 %v11861_v26, 0.0  ;;  %v3361_v25 = vand.u32 2147483647, %v11984_v55  ;;  %v7640_v49 = vld [vmem:[#allocation2 + $0x2a0] sm:$0xff] }
 0x5c6   :  { %v7283_v35 = vpop.eup %7282  ;;  %7298 = vlog2.f32 %v3868_v17  ;;  %v12004_v59 = vmul.f32 %v7639_v56, %v11861_v26  ;;  %v3488_v30 = vsub.f32 0.0, %v3360_v53  ;;  %v3362_v39 = vand.u32 2147483647, %v11989_v13 }
 0x5c7   :  { %v4249_v60 = vmul.f32 %v7283_v35, %v11936_v28  ;;  %7300 = vrcp.f32 %v3869_v57  ;;  %v3489_v63 = vsub.f32 0.0, %v3361_v25  ;;  %v12009_v18 = vadd.f32 %v13394_v27, %v10421_v22 }
 0x5c8   :  { %v7285_v58 = vpop.eup %7284  ;;  %7302 = vlog2.f32 %v3869_v57  ;;  %v3704_v17 = vmul.f32 1.442695, %v3488_v30  ;;  %v3490_v50 = vsub.f32 0.0, %v3362_v39  ;;  %v4636_v53 = vmax.f32 %v11865_v11, 0.0 }
 0x5c9   :  { %v12011_v54 = vpop.eup %7286  ;;  %v4377_v28 = vsel %vm4121_vm2, %v7283_v35, %v4249_v60  ;;  %v4843_v6 = vmul.f32 0.6931472, %v7285_v58  ;;  %7304 = vpow2.f32 %v3702_v32  ;;  %v3706_v43 = vmul.f32 1.442695, %v3489_v63 }
 0x5ca   :  { %4505 = vst [vmem:[#allocation12 + $0x288] sm:$0xff] %v4377_v28  ;;  %v3870_v36 = vadd.f32 1.0, %v12011_v54  ;;  %v12019_v25 = vmul.f32 %v7640_v49, %v11865_v11  ;;  %7306 = vpow2.f32 %v3704_v17  ;;  %v3708_v35 = vmul.f32 1.442695, %v3490_v50 }
 0x5cb   :  { %v7289_v57 = vpop.eup %7288  ;;  %v5017_v42 = vadd.f32 %v4843_v6, %v4633_v47  ;;  %v3363_v60 = vand.u32 2147483647, %v12009_v18  ;;  %v12024_v47 = vpop.f32.mrb[1].mxu1  ;;  %v4637_v49 = vmax.f32 %v11890_v29, 0.0  ;;  %vm4127_vm8 = vcmp.ge.f32.partialorder %v11934_v46, 0.0 }
 0x5cc   :  { %v7291_v44 = vpop.eup %7290  ;;  %v4250_v32 = vmul.f32 %v7289_v57, %v11954_v20  ;;  %7308 = vrcp.f32 %v3870_v36  ;;  %vm4128_vm9 = vcmp.ge.f32.partialorder %v11980_v41, 0.0  ;;  %vm4129_vm10 = vcmp.ge.f32.partialorder %v11984_v55, 0.0 }
 0x5cd   :  { %v7293_v56 = vpop.eup %7292  ;;  %v5273_v30 = vsub.f32 %v5017_v42, %v5145_v12  ;;  %v4845_v58 = vmul.f32 0.6931472, %v7291_v44  ;;  %7310 = vlog2.f32 %v3870_v36  ;;  %v3491_v20 = vsub.f32 0.0, %v3363_v60  ;;  %v13395_v60 = vld [vmem:[#allocation44_spill] sm:$0xff] }
 0x5ce   :  { %v7295_v63 = vpop.eup %7294  ;;  %v4378_v39 = vsel %vm4122_vm3, %v7289_v57, %v4250_v32  ;;  %v4251_v27 = vmul.f32 %v7293_v56, %v11959_v16  ;;  %7312 = vpow2.f32 %v3706_v43  ;;  %v12035_v32 = vpop.f32.mrb[2].mxu1  ;;  %vm4130_vm11 = vcmp.ge.f32.partialorder %v11989_v13, 0.0 }
 0x5cf   :  { %v7297_v28 = vpop.eup %7296  ;;  %v5400_v6 = vadd.f32 %v5399_v23, %v5273_v30  ;;  %4506 = vst [vmem:[#allocation12 + $0x290] sm:$0xff] %v4378_v39  ;;  %v5018_v17 = vadd.f32 %v4845_v58, %v4634_v9  ;;  %v4847_v50 = vmul.f32 0.6931472, %v7295_v63  ;;  %7314 = vpow2.f32 %v3708_v35  ;;  %v7641_v23 = vld [vmem:[#allocation2 + $0x2a8] sm:$0xff]  ;;  %v12047_v39 = vpop.f32.mrb[3].mxu1 }
 0x5d0   :  { %v7299_v12 = vpop.eup %7298  ;;  %v4379_v36 = vsel %vm4123_vm4, %v7293_v56, %v4251_v27  ;;  %v4252_v42 = vmul.f32 %v7297_v28, %v11966_v19  ;;  %v3710_v45 = vmul.f32 1.442695, %v3491_v20  ;;  %v5149_v9 = vmul.f32 %v7641_v23, %v11890_v29 }
 0x5d1   :  { %v7301_v57 = vpop.eup %7300  ;;  %v5274_v16 = vsub.f32 %v5018_v17, %v11995_v48  ;;  %4507 = vst [vmem:[#allocation12 + $0x298] sm:$0xff] %v4379_v36  ;;  %v5019_v43 = vadd.f32 %v4847_v50, %v4635_v51  ;;  %v4849_v44 = vmul.f32 0.6931472, %v7299_v12  ;;  %v12042_v56 = vadd.f32 %v13395_v60, %v10417_v38  ;;  %v7642_v50 = vld [vmem:[#allocation2 + $0x2b0] sm:$0xff] }
 0x5d2   :  { %v7303_v35 = vpop.eup %7302  ;;  %v4380_v26 = vsel %vm4124_vm5, %v7297_v28, %v4252_v42  ;;  %v4253_v19 = vmul.f32 %v7301_v57, %v11972_v37  ;;  %7316 = vpow2.f32 %v3710_v45  ;;  %v5150_v29 = vmul.f32 %v7642_v50, %v11915_v52 }
 0x5d3   :  { %v12044_v48 = vpop.eup %7304  ;;  %v5401_v51 = vadd.f32 %v5400_v6, %v5274_v16  ;;  %v5275_v30 = vsub.f32 %v5019_v43, %v12004_v59  ;;  %4508 = vst [vmem:[#allocation12 + $0x2a0] sm:$0xff] %v4380_v26  ;;  %v5020_v58 = vadd.f32 %v4849_v44, %v4636_v53  ;;  %v4851_v63 = vmul.f32 0.6931472, %v7303_v35  ;;  %v13396_v44 = vld [vmem:[#allocation51_spill] sm:$0xff] }
 0x5d4   :  { %v4381_v11 = vsel %vm4125_vm6, %v7301_v57, %v4253_v19  ;;  %v3871_v37 = vadd.f32 1.0, %v12044_v48  ;;  %v3364_v27 = vand.u32 2147483647, %v12042_v56  ;;  %v12054_v20 = vpop.eup %7306  ;;  %v4638_v53 = vmax.f32 %v11915_v52, 0.0 }
 0x5d5   :  { %v5402_v28 = vadd.f32 %v5401_v51, %v5275_v30  ;;  %v5276_v6 = vsub.f32 %v5020_v58, %v12019_v25  ;;  %4509 = vst [vmem:[#allocation12 + $0x2a8] sm:$0xff] %v4381_v11  ;;  %v5021_v59 = vadd.f32 %v4851_v63, %v4637_v49  ;;  %v3872_v12 = vadd.f32 1.0, %v12054_v20  ;;  %v7643_v63 = vld [vmem:[#allocation2 + $0x2b8] sm:$0xff] }
 0x5d6   :  { %v7309_v17 = vpop.eup %7308  ;;  %7318 = vrcp.f32 %v3871_v37  ;;  %v3492_v36 = vsub.f32 0.0, %v3364_v27  ;;  %v12065_v23 = vadd.f32 %v13396_v44, %v10421_v22  ;;  %v4639_v58 = vmax.f32 %v11934_v46, 0.0 }
 0x5d7   :  { %v7311_v42 = vpop.eup %7310  ;;  %v5403_v45 = vadd.f32 %v5402_v28, %v5276_v6  ;;  %v5277_v57 = vsub.f32 %v5021_v59, %v5149_v9  ;;  %v4254_v16 = vmul.f32 %v7309_v17, %v12011_v54  ;;  %7320 = vlog2.f32 %v3871_v37  ;;  %v12072_v54 = vpop.f32.mrb[4].mxu1 }
 0x5d8   :  { %v12061_v43 = vpop.eup %7312  ;;  %v4853_v25 = vmul.f32 0.6931472, %v7311_v42  ;;  %7322 = vrcp.f32 %v3872_v12  ;;  %v3712_v49 = vmul.f32 1.442695, %v3492_v36  ;;  %v3365_v30 = vand.u32 2147483647, %v12065_v23 }
 0x5d9   :  { %v12067_v35 = vpop.eup %7314  ;;  %v5404_v26 = vadd.f32 %v5403_v45, %v5277_v57  ;;  %v4382_v19 = vsel %vm4126_vm7, %v7309_v17, %v4254_v16  ;;  %7324 = vlog2.f32 %v3872_v12  ;;  %v3873_v9 = vadd.f32 1.0, %v12061_v43  ;;  %v12089_v59 = vpop.f32.mrb[5].mxu1  ;;  %v7645_v16 = vld [vmem:[#allocation2 + $0x2c8] sm:$0xff] }
 0x5da   :  { %4510 = vst [vmem:[#allocation12 + $0x2b0] sm:$0xff] %v4382_v19  ;;  %v5022_v60 = vadd.f32 %v4853_v25, %v4638_v53  ;;  %v3874_v51 = vadd.f32 1.0, %v12067_v35  ;;  %7326 = vpow2.f32 %v3712_v49  ;;  %v12079_v52 = vmul.f32 %v7643_v63, %v11934_v46  ;;  %v7644_v53 = vld [vmem:[#allocation2 + $0x2c0] sm:$0xff] }
 0x5db   :  { %v4640_v11 = vmax.f32 %v11980_v41, 0.0  ;;  %7328 = vrcp.f32 %v3873_v9  ;;  %v3493_v28 = vsub.f32 0.0, %v3365_v30  ;;  %v12087_v6 = vadd.f32 %v11568_v2, %v10417_v38 }
 0x5dc   :  { %v12082_v37 = vpop.eup %7316  ;;  %v5278_v27 = vsub.f32 %v5022_v60, %v5150_v29  ;;  %7330 = vlog2.f32 %v3873_v9  ;;  %v12092_v17 = vmul.f32 %v7644_v53, %v11980_v41  ;;  %v12097_v29 = vadd.f32 %v11581_v10, %v10421_v22  ;;  %v7646_v60 = vld [vmem:[#allocation2 + $0x2d0] sm:$0xff] }
 0x5dd   :  { %7332 = vrcp.f32 %v3874_v51  ;;  %v3875_v50 = vadd.f32 1.0, %v12082_v37  ;;  %v3714_v36 = vmul.f32 1.442695, %v3493_v28  ;;  %v3366_v42 = vand.u32 2147483647, %v12087_v6 }
 0x5de   :  { %v5405_v12 = vadd.f32 %v5404_v26, %v5278_v27  ;;  %7334 = vlog2.f32 %v3874_v51  ;;  %v4641_v2 = vmax.f32 %v11984_v55, 0.0  ;;  %v12104_v45 = vadd.f32 %v11601_v24, %v10417_v38 }
 0x5df   :  { %7336 = vrcp.f32 %v3875_v50  ;;  %v12107_v25 = vmul.f32 %v7645_v16, %v11984_v55  ;;  %v3494_v10 = vsub.f32 0.0, %v3366_v42  ;;  %v3367_v49 = vand.u32 2147483647, %v12097_v29 }
 0x5e0   :  { %v7319_v57 = vpop.eup %7318  ;;  %7338 = vlog2.f32 %v3875_v50  ;;  %v4642_v19 = vmax.f32 %v11989_v13, 0.0  ;;  %v12114_v51 = vmul.f32 %v7646_v60, %v11989_v13  ;;  %vm4131_vm12 = vcmp.ge.f32.partialorder %v12009_v18, 0.0 }
 0x5e1   :  { %v7321_v44 = vpop.eup %7320  ;;  %v4255_v26 = vmul.f32 %v7319_v57, %v12044_v48  ;;  %7340 = vpow2.f32 %v3714_v36  ;;  %v3716_v30 = vmul.f32 1.442695, %v3494_v10  ;;  %v3495_v63 = vsub.f32 0.0, %v3367_v49 }
 0x5e2   :  { %v7323_v9 = vpop.eup %7322  ;;  %v4855_v24 = vmul.f32 0.6931472, %v7321_v44  ;;  %v3368_v48 = vand.u32 2147483647, %v12104_v45  ;;  %v12123_v44 = vpop.f32.mrb[6].mxu1  ;;  %vm4132_vm13 = vcmp.ge.f32.partialorder %v12042_v56, 0.0 }
 0x5e3   :  { %v7325_v27 = vpop.eup %7324  ;;  %v4383_v28 = vsel %vm4127_vm8, %v7319_v57, %v4255_v26  ;;  %v4256_v53 = vmul.f32 %v7323_v9, %v12054_v20  ;;  %7342 = vpow2.f32 %v3716_v30  ;;  %v3718_v16 = vmul.f32 1.442695, %v3495_v63  ;;  %v12129_v26 = vpop.f32.mrb[7].mxu1 }
 0x5e4   :  { %v12121_v50 = vpop.eup %7326  ;;  %4511 = vst [vmem:[#allocation12 + $0x2b8] sm:$0xff] %v4383_v28  ;;  %v5023_v36 = vadd.f32 %v4855_v24, %v4639_v58  ;;  %v4857_v42 = vmul.f32 0.6931472, %v7325_v27  ;;  %v4643_v57 = vmax.f32 %v12009_v18, 0.0  ;;  %v3496_v49 = vsub.f32 0.0, %v3368_v48 }
 0x5e5   :  { %v7329_v10 = vpop.eup %7328  ;;  %v4384_v46 = vsel %vm4128_vm9, %v7323_v9, %v4256_v53  ;;  %v3876_v20 = vadd.f32 1.0, %v12121_v50  ;;  %7344 = vpow2.f32 %v3718_v16  ;;  %v12135_v9 = vadd.f32 %v11608_v15, %v10421_v22 }
 0x5e6   :  { %v7331_v60 = vpop.eup %7330  ;;  %v5279_v28 = vsub.f32 %v5023_v36, %v12079_v52  ;;  %4512 = vst [vmem:[#allocation12 + $0x2c0] sm:$0xff] %v4384_v46  ;;  %v5024_v58 = vadd.f32 %v4857_v42, %v4640_v11  ;;  %v4257_v24 = vmul.f32 %v7329_v10, %v12061_v43  ;;  %v3720_v41 = vmul.f32 1.442695, %v3496_v49 }
 0x5e7   :  { %v7333_v30 = vpop.eup %7332  ;;  %v4859_v63 = vmul.f32 0.6931472, %v7331_v60  ;;  %7346 = vrcp.f32 %v3876_v20  ;;  %v3369_v16 = vand.u32 2147483647, %v12135_v9  ;;  %v7647_v60 = vld [vmem:[#allocation2 + $0x2d8] sm:$0xff]  ;;  %vm4133_vm14 = vcmp.ge.f32.partialorder %v12065_v23, 0.0 }
 0x5e8   :  { %v7335_v27 = vpop.eup %7334  ;;  %v5406_v53 = vadd.f32 %v5405_v12, %v5279_v28  ;;  %v5280_v48 = vsub.f32 %v5024_v58, %v12092_v17  ;;  %v4385_v52 = vsel %vm4129_vm10, %v7329_v10, %v4257_v24  ;;  %v4258_v11 = vmul.f32 %v7333_v30, %v12067_v35 }
 0x5e9   :  { %v7337_v36 = vpop.eup %7336  ;;  %4513 = vst [vmem:[#allocation12 + $0x2c8] sm:$0xff] %v4385_v52  ;;  %v5025_v43 = vadd.f32 %v4859_v63, %v4641_v2  ;;  %v4861_v42 = vmul.f32 0.6931472, %v7335_v27  ;;  %7348 = vlog2.f32 %v3876_v20  ;;  %v3497_v2 = vsub.f32 0.0, %v3369_v16 }
 0x5ea   :  { %v7339_v46 = vpop.eup %7338  ;;  %v5407_v49 = vadd.f32 %v5406_v53, %v5280_v48  ;;  %v4386_v15 = vsel %vm4130_vm11, %v7333_v30, %v4258_v11  ;;  %v4259_v12 = vmul.f32 %v7337_v36, %v12082_v37  ;;  %7350 = vpow2.f32 %v3720_v41  ;;  %v13398_v41 = vld [vmem:[#allocation50_spill] sm:$0xff] }
 0x5eb   :  { %v12145_v17 = vpop.eup %7340  ;;  %v5281_v55 = vsub.f32 %v5025_v43, %v12107_v25  ;;  %4514 = vst [vmem:[#allocation12 + $0x2d0] sm:$0xff] %v4386_v15  ;;  %v5026_v35 = vadd.f32 %v4861_v42, %v4642_v19  ;;  %v4863_v10 = vmul.f32 0.6931472, %v7339_v46  ;;  %v5155_v28 = vmul.f32 %v7647_v60, %v12009_v18  ;;  %v13397_v25 = vld [vmem:[#allocation33_spill] sm:$0xff] }
 0x5ec   :  { %v4387_v20 = vsel %vm4131_vm12, %v7337_v36, %v4259_v12  ;;  %v3877_v13 = vadd.f32 1.0, %v12145_v17  ;;  %v3722_v30 = vmul.f32 1.442695, %v3497_v2  ;;  %v12157_v19 = vadd.f32 %v13397_v25, %v10417_v38 }
 0x5ed   :  { %v5408_v58 = vadd.f32 %v5407_v49, %v5281_v55  ;;  %v5282_v37 = vsub.f32 %v5026_v35, %v12114_v51  ;;  %4515 = vst [vmem:[#allocation12 + $0x2d8] sm:$0xff] %v4387_v20  ;;  %v5027_v24 = vadd.f32 %v4863_v10, %v4643_v57  ;;  %v12153_v63 = vpop.eup %7342  ;;  %v12161_v27 = vadd.f32 %v13398_v41, %v10421_v22  ;;  %v13399_v57 = vld [vmem:[#allocation30_spill] sm:$0xff] }
 0x5ee   :  { %7352 = vrcp.f32 %v3877_v13  ;;  %v3878_v48 = vadd.f32 1.0, %v12153_v63  ;;  %v12167_v52 = vadd.f32 -1.0, %v13399_v57  ;;  %v3370_v11 = vand.u32 2147483647, %v12157_v19  ;;  %v7648_v55 = vld [vmem:[#allocation2 + $0x2e0] sm:$0xff] }
 0x5ef   :  { %v5409_v18 = vadd.f32 %v5408_v58, %v5282_v37  ;;  %v5283_v53 = vsub.f32 %v5027_v24, %v5155_v28  ;;  %7354 = vlog2.f32 %v3877_v13  ;;  %v12164_v51 = vpop.eup %7344  ;;  %v3371_v49 = vand.u32 2147483647, %v12161_v27  ;;  %v7649_v24 = vld [vmem:[#allocation2 + $0x2e8] sm:$0xff] }
 0x5f0   :  { %7356 = vpow2.f32 %v3722_v30  ;;  %v3879_v42 = vadd.f32 1.0, %v12164_v51  ;;  %v3498_v46 = vsub.f32 0.0, %v3370_v11  ;;  %v4644_v12 = vmax.f32 %v12042_v56, 0.0 }
 0x5f1   :  { %v7347_v36 = vpop.eup %7346  ;;  %v5410_v43 = vadd.f32 %v5409_v18, %v5283_v53  ;;  %7358 = vrcp.f32 %v3878_v48  ;;  %v5156_v35 = vmul.f32 %v7648_v55, %v12042_v56  ;;  %v3499_v28 = vsub.f32 0.0, %v3371_v49 }
 0x5f2   :  { %v4260_v16 = vmul.f32 %v7347_v36, %v12121_v50  ;;  %7360 = vlog2.f32 %v3878_v48  ;;  %v3724_v60 = vmul.f32 1.442695, %v3498_v46  ;;  %v12182_v13 = vadd.f32 %v11676_v62, %v10417_v38 }
 0x5f3   :  { %v7349_v15 = vpop.eup %7348  ;;  %7362 = vrcp.f32 %v3879_v42  ;;  %v12186_v56 = vadd.f32 %v11683_v33, %v10421_v22  ;;  %v4645_v37 = vmax.f32 %v12065_v23, 0.0  ;;  %v5157_v30 = vmul.f32 %v7649_v24, %v12065_v23  ;;  %v13400_v33 = vld [vmem:[#allocation32_spill] sm:$0xff]  ;;  %v13401_v23 = vld [vmem:[#allocation42_spill] sm:$0xff] }
 0x5f4   :  { %v12177_v10 = vpop.eup %7350  ;;  %v4388_v2 = vsel %vm4132_vm13, %v7347_v36, %v4260_v16  ;;  %v4865_v20 = vmul.f32 0.6931472, %v7349_v15  ;;  %7364 = vlog2.f32 %v3879_v42  ;;  %vm4134_vm15 = vcmp.ge.f32.partialorder %v12087_v6, 0.0  ;;  %v7650_v15 = vld [vmem:[#allocation2 + $0x2f0] sm:$0xff] }
 0x5f5   :  { %4516 = vst [vmem:[#allocation12 + $0x2e0] sm:$0xff] %v4388_v2  ;;  %v3880_v50 = vadd.f32 1.0, %v12177_v10  ;;  %7366 = vpow2.f32 %v3724_v60  ;;  %v3726_v25 = vmul.f32 1.442695, %v3499_v28  ;;  %v3372_v41 = vand.u32 2147483647, %v12182_v13 }
 0x5f6   :  { %v5028_v58 = vadd.f32 %v4865_v20, %v4644_v12  ;;  %v4646_v53 = vmax.f32 %v12087_v6, 0.0  ;;  %v12195_v48 = vadd.f32 %v13400_v33, %v10417_v38  ;;  %v3373_v42 = vand.u32 2147483647, %v12186_v56 }
 0x5f7   :  { %7368 = vrcp.f32 %v3880_v50  ;;  %v3500_v36 = vsub.f32 0.0, %v3372_v41  ;;  %v5158_v12 = vmul.f32 %v7650_v15, %v12087_v6  ;;  %vm4135_vm0 = vcmp.ge.f32.partialorder %v12097_v29, 0.0 }
 0x5f8   :  { %v7353_v18 = vpop.eup %7352  ;;  %v5284_v62 = vsub.f32 %v5028_v58, %v5156_v35  ;;  %7370 = vlog2.f32 %v3880_v50  ;;  %v3501_v20 = vsub.f32 0.0, %v3373_v42  ;;  %v3374_v58 = vand.u32 2147483647, %v12195_v48 }
 0x5f9   :  { %v7355_v57 = vpop.eup %7354  ;;  %v4261_v11 = vmul.f32 %v7353_v18, %v12145_v17  ;;  %7372 = vpow2.f32 %v3726_v25  ;;  %v3728_v17 = vmul.f32 1.442695, %v3500_v36  ;;  %vm4136_vm1 = vcmp.ge.f32.partialorder %v12104_v45, 0.0 }
 0x5fa   :  { %v12199_v16 = vpop.eup %7356  ;;  %v5411_v46 = vadd.f32 %v5410_v43, %v5284_v62  ;;  %v4867_v49 = vmul.f32 0.6931472, %v7355_v57  ;;  %v4647_v43 = vmax.f32 %v12097_v29, 0.0  ;;  %v3730_v41 = vmul.f32 1.442695, %v3501_v20 }
 0x5fb   :  { %v7359_v55 = vpop.eup %7358  ;;  %v4389_v35 = vsel %vm4133_vm14, %v7353_v18, %v4261_v11  ;;  %v3881_v2 = vadd.f32 1.0, %v12199_v16  ;;  %v12211_v18 = vadd.f32 %v13401_v23, %v10421_v22  ;;  %v3502_v36 = vsub.f32 0.0, %v3374_v58  ;;  %v7652_v23 = vld [vmem:[#allocation2 + $0x300] sm:$0xff] }
 0x5fc   :  { %v7361_v60 = vpop.eup %7360  ;;  %4517 = vst [vmem:[#allocation12 + $0x2e8] sm:$0xff] %v4389_v35  ;;  %v5029_v50 = vadd.f32 %v4867_v49, %v4645_v37  ;;  %v4262_v28 = vmul.f32 %v7359_v55, %v12153_v63  ;;  %v7651_v35 = vld [vmem:[#allocation2 + $0x2f8] sm:$0xff]  ;;  %vm4137_vm2 = vcmp.ge.f32.partialorder %v12135_v9, 0.0  ;;  %vm4138_vm3 = vcmp.ge.f32.partialorder %v12157_v19, 0.0 }
 0x5fd   :  { %v7363_v24 = vpop.eup %7362  ;;  %v4869_v25 = vmul.f32 0.6931472, %v7361_v60  ;;  %7374 = vrcp.f32 %v3881_v2  ;;  %v3375_v60 = vand.u32 2147483647, %v12211_v18  ;;  %vm4139_vm4 = vcmp.ge.f32.partialorder %v12161_v27, 0.0 }
 0x5fe   :  { %v7365_v62 = vpop.eup %7364  ;;  %v5285_v33 = vsub.f32 %v5029_v50, %v5157_v30  ;;  %v4390_v57 = vsel %vm4134_vm15, %v7359_v55, %v4262_v28  ;;  %v4263_v37 = vmul.f32 %v7363_v24, %v12164_v51  ;;  %7376 = vlog2.f32 %v3881_v2 }
 0x5ff   :  { %4518 = vst [vmem:[#allocation12 + $0x2f0] sm:$0xff] %v4390_v57  ;;  %v5030_v63 = vadd.f32 %v4869_v25, %v4646_v53  ;;  %v4871_v11 = vmul.f32 0.6931472, %v7365_v62  ;;  %7378 = vpow2.f32 %v3728_v17  ;;  %v12216_v42 = vpop.eup %7366  ;;  %v5159_v30 = vmul.f32 %v7651_v35, %v12097_v29 }
 0x600   :  { %v5412_v49 = vadd.f32 %v5411_v46, %v5285_v33  ;;  %v4391_v15 = vsel %vm4135_vm0, %v7363_v24, %v4263_v37  ;;  %7380 = vpow2.f32 %v3730_v41  ;;  %v3882_v2 = vadd.f32 1.0, %v12216_v42 }
 0x601   :  { %v7369_v6 = vpop.eup %7368  ;;  %v5286_v55 = vsub.f32 %v5030_v63, %v5158_v12  ;;  %4519 = vst [vmem:[#allocation12 + $0x2f8] sm:$0xff] %v4391_v15  ;;  %v5031_v51 = vadd.f32 %v4871_v11, %v4647_v43  ;;  %v3732_v53 = vmul.f32 1.442695, %v3502_v36  ;;  %v4648_v46 = vmax.f32 %v12104_v45, 0.0 }
 0x602   :  { %v7371_v20 = vpop.eup %7370  ;;  %v4264_v17 = vmul.f32 %v7369_v6, %v12177_v10  ;;  %7382 = vrcp.f32 %v3882_v2  ;;  %v3503_v24 = vsub.f32 0.0, %v3375_v60  ;;  %v5160_v10 = vmul.f32 %v7652_v23, %v12104_v45 }
 0x603   :  { %v12226_v50 = vpop.eup %7372  ;;  %v5413_v29 = vadd.f32 %v5412_v49, %v5286_v55  ;;  %v5287_v28 = vsub.f32 %v5031_v51, %v5159_v30  ;;  %v4873_v58 = vmul.f32 0.6931472, %v7371_v20  ;;  %7384 = vlog2.f32 %v3882_v2  ;;  %v7653_v49 = vld [vmem:[#allocation2 + $0x308] sm:$0xff] }
 0x604   :  { %v4392_v12 = vsel %vm4136_vm1, %v7369_v6, %v4264_v17  ;;  %v3883_v43 = vadd.f32 1.0, %v12226_v50  ;;  %7386 = vpow2.f32 %v3732_v53  ;;  %v3734_v62 = vmul.f32 1.442695, %v3503_v24 }
 0x605   :  { %v5414_v25 = vadd.f32 %v5413_v29, %v5287_v28  ;;  %4520 = vst [vmem:[#allocation12 + $0x300] sm:$0xff] %v4392_v12  ;;  %v5032_v41 = vadd.f32 %v4873_v58, %v4648_v46  ;;  %v12233_v33 = vadd.f32 %v11742_v0, %v10417_v38  ;;  %v4649_v63 = vmax.f32 %v12135_v9, 0.0  ;;  %v7654_v46 = vld [vmem:[#allocation2 + $0x310] sm:$0xff] }
 0x606   :  { %7388 = vrcp.f32 %v3883_v43  ;;  %v12238_v11 = vadd.f32 %v11745_v4, %v10421_v22  ;;  %v5161_v15 = vmul.f32 %v7653_v49, %v12135_v9  ;;  %v12248_v55 = vadd.f32 %v11752_v40, %v10417_v38 }
 0x607   :  { %v7375_v57 = vpop.eup %7374  ;;  %v5288_v37 = vsub.f32 %v5032_v41, %v5160_v10  ;;  %7390 = vlog2.f32 %v3883_v43  ;;  %v3376_v35 = vand.u32 2147483647, %v12233_v33  ;;  %v4650_v17 = vmax.f32 %v12157_v19, 0.0  ;;  %v7655_v41 = vld [vmem:[#allocation2 + $0x318] sm:$0xff] }
 0x608   :  { %v7377_v36 = vpop.eup %7376  ;;  %v4265_v45 = vmul.f32 %v7375_v57, %v12199_v16  ;;  %7392 = vpow2.f32 %v3734_v62  ;;  %v3377_v53 = vand.u32 2147483647, %v12238_v11  ;;  %v5162_v60 = vmul.f32 %v7654_v46, %v12157_v19  ;;  %v7656_v46 = vld [vmem:[#allocation2 + $0x320] sm:$0xff] }
 0x609   :  { %v12243_v0 = vpop.eup %7378  ;;  %v5415_v30 = vadd.f32 %v5414_v25, %v5288_v37  ;;  %v4875_v6 = vmul.f32 0.6931472, %v7377_v36  ;;  %v3504_v2 = vsub.f32 0.0, %v3376_v35  ;;  %v4651_v12 = vmax.f32 %v12161_v27, 0.0 }
 0x60a   :  { %v12250_v4 = vpop.eup %7380  ;;  %v4393_v16 = vsel %vm4137_vm2, %v7375_v57, %v4265_v45  ;;  %v3884_v51 = vadd.f32 1.0, %v12243_v0  ;;  %v3505_v9 = vsub.f32 0.0, %v3377_v53  ;;  %v3378_v43 = vand.u32 2147483647, %v12248_v55 }
 0x60b   :  { %4521 = vst [vmem:[#allocation12 + $0x308] sm:$0xff] %v4393_v16  ;;  %v5033_v20 = vadd.f32 %v4875_v6, %v4649_v63  ;;  %v3885_v40 = vadd.f32 1.0, %v12250_v4  ;;  %v3736_v29 = vmul.f32 1.442695, %v3504_v2  ;;  %v5163_v23 = vmul.f32 %v7655_v41, %v12161_v27 }
 0x60c   :  { %7394 = vrcp.f32 %v3884_v51  ;;  %v7383_v28 = vpop.eup %7382  ;;  %v3738_v10 = vmul.f32 1.442695, %v3505_v9  ;;  %v3506_v63 = vsub.f32 0.0, %v3378_v43  ;;  %vm4140_vm5 = vcmp.ge.f32.partialorder %v12182_v13, 0.0  ;;  %v7657_v43 = vld [vmem:[#allocation2 + $0x328] sm:$0xff] }
 0x60d   :  { %v5289_v58 = vsub.f32 %v5033_v20, %v5161_v15  ;;  %7396 = vlog2.f32 %v3884_v51  ;;  %v7385_v24 = vpop.eup %7384  ;;  %v4266_v25 = vmul.f32 %v7383_v28, %v12216_v42  ;;  %v4652_v49 = vmax.f32 %v12182_v13, 0.0 }
 0x60e   :  { %7398 = vrcp.f32 %v3885_v40  ;;  %v12264_v62 = vpop.eup %7386  ;;  %v4877_v37 = vmul.f32 0.6931472, %v7385_v24  ;;  %v12276_v19 = vadd.f32 %v11768_v3, %v10421_v22  ;;  %v12280_v2 = vadd.f32 %v11795_v8, %v10417_v38 }
 0x60f   :  { %v5416_v57 = vadd.f32 %v5415_v30, %v5289_v58  ;;  %7400 = vlog2.f32 %v3885_v40  ;;  %v4394_v45 = vsel %vm4138_vm3, %v7383_v28, %v4266_v25  ;;  %v3886_v42 = vadd.f32 1.0, %v12264_v62 }
 0x610   :  { %v7389_v36 = vpop.eup %7388  ;;  %7402 = vpow2.f32 %v3736_v29  ;;  %4522 = vst [vmem:[#allocation12 + $0x310] sm:$0xff] %v4394_v45  ;;  %v5034_v35 = vadd.f32 %v4877_v37, %v4650_v17  ;;  %v3740_v30 = vmul.f32 1.442695, %v3506_v63  ;;  %v5164_v40 = vmul.f32 %v7656_v46, %v12182_v13 }
 0x611   :  { %v7391_v15 = vpop.eup %7390  ;;  %v4267_v6 = vmul.f32 %v7389_v36, %v12226_v50  ;;  %7404 = vpow2.f32 %v3738_v10  ;;  %v3379_v3 = vand.u32 2147483647, %v12276_v19  ;;  %vm4141_vm6 = vcmp.ge.f32.partialorder %v12186_v56, 0.0 }
 0x612   :  { %v12272_v16 = vpop.eup %7392  ;;  %v4879_v51 = vmul.f32 0.6931472, %v7391_v15  ;;  %7406 = vrcp.f32 %v3886_v42  ;;  %v5290_v53 = vsub.f32 %v5034_v35, %v5162_v60  ;;  %v4653_v8 = vmax.f32 %v12186_v56, 0.0 }
 0x613   :  { %v4395_v20 = vsel %vm4139_vm4, %v7389_v36, %v4267_v6  ;;  %7408 = vlog2.f32 %v3886_v42  ;;  %v3887_v50 = vadd.f32 1.0, %v12272_v16  ;;  %v3507_v9 = vsub.f32 0.0, %v3379_v3  ;;  %v7658_v42 = vld [vmem:[#allocation2 + $0x330] sm:$0xff] }
 0x614   :  { %4523 = vst [vmem:[#allocation12 + $0x318] sm:$0xff] %v4395_v20  ;;  %v5035_v17 = vadd.f32 %v4879_v51, %v4651_v12  ;;  %7410 = vpow2.f32 %v3740_v30  ;;  %v5417_v29 = vadd.f32 %v5416_v57, %v5290_v53  ;;  %v3380_v28 = vand.u32 2147483647, %v12280_v2 }
 0x615   :  { %7412 = vrcp.f32 %v3887_v50  ;;  %v5165_v24 = vmul.f32 %v7657_v43, %v12186_v56  ;;  %vm4142_vm7 = vcmp.ge.f32.partialorder %v12195_v48, 0.0  ;;  %v4654_v25 = vmax.f32 %v12195_v48, 0.0 }
 0x616   :  { %v7395_v60 = vpop.eup %7394  ;;  %v5291_v27 = vsub.f32 %v5035_v17, %v5163_v23  ;;  %7414 = vlog2.f32 %v3887_v50  ;;  %v3742_v37 = vmul.f32 1.442695, %v3507_v9  ;;  %v3508_v63 = vsub.f32 0.0, %v3380_v28 }
 0x617   :  { %v7397_v58 = vpop.eup %7396  ;;  %v4268_v12 = vmul.f32 %v7395_v60, %v12243_v0  ;;  %v5166_v0 = vmul.f32 %v7658_v42, %v12195_v48  ;;  %v12300_v15 = vadd.f32 %v11802_v14, %v10421_v22  ;;  %vm4143_vm8 = vcmp.ge.f32.partialorder %v12211_v18, 0.0 }
 0x618   :  { %v7399_v41 = vpop.eup %7398  ;;  %v5418_v10 = vadd.f32 %v5417_v29, %v5291_v27  ;;  %v4881_v57 = vmul.f32 0.6931472, %v7397_v58  ;;  %7416 = vpow2.f32 %v3742_v37  ;;  %v3744_v51 = vmul.f32 1.442695, %v3508_v63  ;;  %v7659_v63 = vld [vmem:[#allocation2 + $0x338] sm:$0xff] }
 0x619   :  { %v7401_v23 = vpop.eup %7400  ;;  %v4396_v36 = vsel %vm4140_vm5, %v7395_v60, %v4268_v12  ;;  %v4269_v45 = vmul.f32 %v7399_v41, %v12250_v4  ;;  %v3381_v20 = vand.u32 2147483647, %v12300_v15  ;;  %v12315_v56 = vadd.f32 %v11830_v5, %v10417_v38 }
 0x61a   :  { %v12302_v35 = vpop.eup %7402  ;;  %4524 = vst [vmem:[#allocation12 + $0x320] sm:$0xff] %v4396_v36  ;;  %v5036_v6 = vadd.f32 %v4881_v57, %v4652_v49  ;;  %v4883_v30 = vmul.f32 0.6931472, %v7401_v23  ;;  %7418 = vpow2.f32 %v3744_v51  ;;  %v5167_v23 = vmul.f32 %v7659_v63, %v12211_v18 }
 0x61b   :  { %v12304_v53 = vpop.eup %7404  ;;  %v4397_v13 = vsel %vm4141_vm6, %v7399_v41, %v4269_v45  ;;  %v3888_v4 = vadd.f32 1.0, %v12302_v35  ;;  %v3509_v29 = vsub.f32 0.0, %v3381_v20  ;;  %v3382_v57 = vand.u32 2147483647, %v12315_v56 }
 0x61c   :  { %v7407_v14 = vpop.eup %7406  ;;  %v5292_v50 = vsub.f32 %v5036_v6, %v5164_v40  ;;  %4525 = vst [vmem:[#allocation12 + $0x328] sm:$0xff] %v4397_v13  ;;  %v5037_v17 = vadd.f32 %v4883_v30, %v4653_v8  ;;  %v3889_v49 = vadd.f32 1.0, %v12304_v53  ;;  %vm4144_vm9 = vcmp.ge.f32.partialorder %v12233_v33, 0.0  ;;  %v13403_v30 = vld [vmem:[#allocation40_spill] sm:$0xff]  ;;  %v7660_v13 = vld [vmem:[#allocation2 + $0x340] sm:$0xff] }
 0x61d   :  { %v7409_v46 = vpop.eup %7408  ;;  %v4270_v3 = vmul.f32 %v7407_v14, %v12264_v62  ;;  %7420 = vrcp.f32 %v3888_v4  ;;  %v3746_v62 = vmul.f32 1.442695, %v3509_v29  ;;  %v4656_v42 = vmax.f32 %v12233_v33, 0.0 }
 0x61e   :  { %v12317_v60 = vpop.eup %7410  ;;  %v5419_v27 = vadd.f32 %v5418_v10, %v5292_v50  ;;  %v5293_v9 = vsub.f32 %v5037_v17, %v5165_v24  ;;  %v4885_v28 = vmul.f32 0.6931472, %v7409_v46  ;;  %7422 = vlog2.f32 %v3888_v4  ;;  %v7661_v17 = vld [vmem:[#allocation2 + $0x348] sm:$0xff] }
 0x61f   :  { %v7413_v40 = vpop.eup %7412  ;;  %v4398_v8 = vsel %vm4142_vm7, %v7407_v14, %v4270_v3  ;;  %7424 = vrcp.f32 %v3889_v49  ;;  %v3890_v58 = vadd.f32 1.0, %v12317_v60  ;;  %v4655_v10 = vmax.f32 %v12211_v18, 0.0 }
 0x620   :  { %v7415_v12 = vpop.eup %7414  ;;  %v5420_v43 = vadd.f32 %v5419_v27, %v5293_v9  ;;  %4526 = vst [vmem:[#allocation12 + $0x330] sm:$0xff] %v4398_v8  ;;  %v5038_v41 = vadd.f32 %v4885_v28, %v4654_v25  ;;  %v4271_v5 = vmul.f32 %v7413_v40, %v12272_v16  ;;  %7426 = vlog2.f32 %v3889_v49 }
 0x621   :  { %v4887_v24 = vmul.f32 0.6931472, %v7415_v12  ;;  %7428 = vrcp.f32 %v3890_v58  ;;  %v3510_v16 = vsub.f32 0.0, %v3382_v57  ;;  %v12338_v51 = vadd.f32 %v13403_v30, %v10417_v38 }
 0x622   :  { %v5294_v37 = vsub.f32 %v5038_v41, %v5166_v0  ;;  %v4399_v48 = vsel %vm4143_vm8, %v7413_v40, %v4271_v5  ;;  %7430 = vlog2.f32 %v3890_v58  ;;  %v12329_v25 = vpop.eup %7416  ;;  %v13402_v0 = vld [vmem:[#allocation37_spill] sm:$0xff]  ;;  %v5168_v4 = vmul.f32 %v7660_v13, %v12233_v33  ;;  %v13404_v41 = vld [vmem:[#allocation48_spill] sm:$0xff] }
 0x623   :  { %4527 = vst [vmem:[#allocation12 + $0x338] sm:$0xff] %v4399_v48  ;;  %v5039_v36 = vadd.f32 %v4887_v24, %v4655_v10  ;;  %7432 = vpow2.f32 %v3746_v62  ;;  %v12334_v6 = vadd.f32 %v13402_v0, %v10421_v22  ;;  %vm4145_vm10 = vcmp.ge.f32.partialorder %v12238_v11, 0.0 }
 0x624   :  { %v5421_v45 = vadd.f32 %v5420_v43, %v5294_v37  ;;  %v3891_v20 = vadd.f32 1.0, %v12329_v25  ;;  %v12343_v14 = vpop.eup %7418  ;;  %v4657_v50 = vmax.f32 %v12238_v11, 0.0  ;;  %v5169_v49 = vmul.f32 %v7661_v17, %v12238_v11 }
 0x625   :  { %v5295_v18 = vsub.f32 %v5039_v36, %v5167_v23  ;;  %v3748_v46 = vmul.f32 1.442695, %v3510_v16  ;;  %v3383_v3 = vand.u32 2147483647, %v12334_v6  ;;  %v3892_v9 = vadd.f32 1.0, %v12343_v14 }
 0x626   :  { %7434 = vrcp.f32 %v3891_v20  ;;  %v3384_v28 = vand.u32 2147483647, %v12338_v51  ;;  %vm4146_vm11 = vcmp.ge.f32.partialorder %v12248_v55, 0.0  ;;  %v12354_v5 = vadd.f32 %v13404_v41, %v10421_v22 }
 0x627   :  { %v7421_v29 = vpop.eup %7420  ;;  %v5422_v27 = vadd.f32 %v5421_v45, %v5295_v18  ;;  %7436 = vlog2.f32 %v3891_v20  ;;  %v3511_v58 = vsub.f32 0.0, %v3383_v3  ;;  %v4658_v0 = vmax.f32 %v12248_v55, 0.0  ;;  %v7662_v3 = vld [vmem:[#allocation2 + $0x350] sm:$0xff] }
 0x628   :  { %v7423_v40 = vpop.eup %7422  ;;  %v4272_v8 = vmul.f32 %v7421_v29, %v12302_v35  ;;  %7438 = vrcp.f32 %v3892_v9  ;;  %v3512_v43 = vsub.f32 0.0, %v3384_v28  ;;  %vm4147_vm12 = vcmp.ge.f32.partialorder %v12276_v19, 0.0 }
 0x629   :  { %v7425_v62 = vpop.eup %7424  ;;  %v4889_v12 = vmul.f32 0.6931472, %v7423_v40  ;;  %7440 = vlog2.f32 %v3892_v9  ;;  %v3750_v35 = vmul.f32 1.442695, %v3511_v58  ;;  %v13406_v9 = vld [vmem:[#allocation36_spill] sm:$0xff]  ;;  %vm4148_vm13 = vcmp.ge.f32.partialorder %v12280_v2, 0.0 }
 0x62a   :  { %v7427_v10 = vpop.eup %7426  ;;  %v4400_v24 = vsel %vm4144_vm9, %v7421_v29, %v4272_v8  ;;  %v4273_v57 = vmul.f32 %v7425_v62, %v12304_v53  ;;  %7442 = vpow2.f32 %v3748_v46  ;;  %v3752_v23 = vmul.f32 1.442695, %v3512_v43 }
 0x62b   :  { %v7429_v37 = vpop.eup %7428  ;;  %4528 = vst [vmem:[#allocation12 + $0x340] sm:$0xff] %v4400_v24  ;;  %v5040_v48 = vadd.f32 %v4889_v12, %v4656_v42  ;;  %v4891_v63 = vmul.f32 0.6931472, %v7427_v10  ;;  %7444 = vpow2.f32 %v3750_v35  ;;  %v12366_v42 = vmul.f32 0.5, %v12167_v52 }
 0x62c   :  { %v7431_v36 = vpop.eup %7430  ;;  %v4401_v16 = vsel %vm4145_vm10, %v7425_v62, %v4273_v57  ;;  %v4274_v45 = vmul.f32 %v7429_v37, %v12317_v60  ;;  %7446 = vpow2.f32 %v3752_v23  ;;  %v3385_v60 = vand.u32 2147483647, %v12354_v5  ;;  %v7663_v57 = vld [vmem:[#allocation2 + $0x358] sm:$0xff] }
 0x62d   :  { %v12363_v33 = vpop.eup %7432  ;;  %v5296_v53 = vsub.f32 %v5040_v48, %v5168_v4  ;;  %4529 = vst [vmem:[#allocation12 + $0x348] sm:$0xff] %v4401_v16  ;;  %v5041_v30 = vadd.f32 %v4891_v63, %v4657_v50  ;;  %v4893_v18 = vmul.f32 0.6931472, %v7431_v36  ;;  %v5170_v4 = vmul.f32 %v7662_v3, %v12248_v55  ;;  %v13405_v50 = vld [vmem:[#allocation21_spill] sm:$0xff] }
 0x62e   :  { %v4402_v13 = vsel %vm4146_vm11, %v7429_v37, %v4274_v45  ;;  %v3893_v11 = vadd.f32 1.0, %v12363_v33  ;;  %v12374_v29 = vadd.f32 -1.0, %v13405_v50  ;;  %v3513_v52 = vsub.f32 0.0, %v3385_v60 }
 0x62f   :  { %v5423_v20 = vadd.f32 %v5422_v27, %v5296_v53  ;;  %v5297_v17 = vsub.f32 %v5041_v30, %v5169_v49  ;;  %4530 = vst [vmem:[#allocation12 + $0x350] sm:$0xff] %v4402_v13  ;;  %v5042_v46 = vadd.f32 %v4893_v18, %v4658_v0  ;;  %v12378_v28 = vadd.f32 %v13406_v9, %v10417_v38 }
 0x630   :  { %7448 = vrcp.f32 %v3893_v11  ;;  %v7435_v40 = vpop.eup %7434  ;;  %v12382_v49 = vadd.f32 %v11927_v34, %v10421_v22  ;;  %v3754_v62 = vmul.f32 1.442695, %v3513_v52  ;;  %v4659_v10 = vmax.f32 %v12276_v19, 0.0  ;;  %v7665_v52 = vld [vmem:[#allocation2 + $0x368] sm:$0xff] }
 0x631   :  { %v5424_v8 = vadd.f32 %v5423_v20, %v5297_v17  ;;  %v5298_v58 = vsub.f32 %v5042_v46, %v5170_v4  ;;  %7450 = vlog2.f32 %v3893_v11  ;;  %v7437_v27 = vpop.eup %7436  ;;  %v4275_v55 = vmul.f32 %v7435_v40, %v12329_v25 }
 0x632   :  { %v3386_v12 = vand.u32 2147483647, %v12378_v28  ;;  %v7439_v43 = vpop.eup %7438  ;;  %v4895_v24 = vmul.f32 0.6931472, %v7437_v27  ;;  %v5171_v35 = vmul.f32 %v7663_v57, %v12276_v19  ;;  %7452 = vpow2.f32 %v3754_v62  ;;  %v7664_v19 = vld [vmem:[#allocation2 + $0x360] sm:$0xff] }
 0x633   :  { %v5425_v41 = vadd.f32 %v5424_v8, %v5298_v58  ;;  %v7441_v37 = vpop.eup %7440  ;;  %v4403_v48 = vsel %vm4147_vm12, %v7435_v40, %v4275_v55  ;;  %v4276_v34 = vmul.f32 %v7439_v43, %v12343_v14  ;;  %v4660_v23 = vmax.f32 %v12280_v2, 0.0 }
 0x634   :  { %v12391_v63 = vpop.eup %7442  ;;  %4531 = vst [vmem:[#allocation12 + $0x358] sm:$0xff] %v4403_v48  ;;  %v5043_v25 = vadd.f32 %v4895_v24, %v4659_v10  ;;  %v4897_v36 = vmul.f32 0.6931472, %v7441_v37  ;;  %v3387_v16 = vand.u32 2147483647, %v12382_v49  ;;  %v5172_v53 = vmul.f32 %v7664_v19, %v12280_v2  ;;  %v7667_v19 = vld [vmem:[#allocation2 + $0x378] sm:$0xff] }
 0x635   :  { %v12395_v45 = vpop.eup %7444  ;;  %v4404_v0 = vsel %vm4148_vm13, %v7439_v43, %v4276_v34  ;;  %v3894_v30 = vadd.f32 1.0, %v12391_v63  ;;  %v3514_v18 = vsub.f32 0.0, %v3386_v12  ;;  %vm4149_vm14 = vcmp.ge.f32.partialorder %v12300_v15, 0.0 }
 0x636   :  { %v12399_v14 = vpop.eup %7446  ;;  %v5299_v13 = vsub.f32 %v5043_v25, %v5171_v35  ;;  %4532 = vst [vmem:[#allocation12 + $0x360] sm:$0xff] %v4404_v0  ;;  %v5044_v11 = vadd.f32 %v4897_v36, %v4660_v23  ;;  %v3895_v60 = vadd.f32 1.0, %v12395_v45  ;;  %v3515_v20 = vsub.f32 0.0, %v3387_v16 }
 0x637   :  { %7454 = vrcp.f32 %v3894_v30  ;;  %v3896_v17 = vadd.f32 1.0, %v12399_v14  ;;  %v12406_v46 = vadd.f32 %v11952_v1, %v10417_v38  ;;  %v4661_v4 = vmax.f32 %v12300_v15, 0.0 }
 0x638   :  { %v5426_v2 = vadd.f32 %v5425_v41, %v5299_v13  ;;  %v5300_v3 = vsub.f32 %v5044_v11, %v5172_v53  ;;  %7456 = vlog2.f32 %v3894_v30  ;;  %v5173_v9 = vmul.f32 %v7665_v52, %v12300_v15 }
 0x639   :  { %7458 = vrcp.f32 %v3895_v60  ;;  %v3756_v40 = vmul.f32 1.442695, %v3514_v18  ;;  %v3388_v8 = vand.u32 2147483647, %v12406_v46  ;;  %v3758_v1 = vmul.f32 1.442695, %v3515_v20 }
 0x63a   :  { %v7449_v50 = vpop.eup %7448  ;;  %v5427_v27 = vadd.f32 %v5426_v2, %v5300_v3  ;;  %7460 = vlog2.f32 %v3895_v60  ;;  %v12414_v43 = vadd.f32 %v11957_v31, %v10421_v22  ;;  %vm4150_vm15 = vcmp.ge.f32.partialorder %v12315_v56, 0.0  ;;  %v7668_v2 = vld [vmem:[#allocation2 + $0x380] sm:$0xff] }
 0x63b   :  { %v7451_v58 = vpop.eup %7450  ;;  %v4277_v55 = vmul.f32 %v7449_v50, %v12363_v33  ;;  %7462 = vrcp.f32 %v3896_v17  ;;  %v3516_v12 = vsub.f32 0.0, %v3388_v8  ;;  %v12421_v10 = vadd.f32 %v11964_v61, %v10417_v38  ;;  %v7666_v61 = vld [vmem:[#allocation2 + $0x370] sm:$0xff] }
 0x63c   :  { %v4899_v62 = vmul.f32 0.6931472, %v7451_v58  ;;  %7464 = vlog2.f32 %v3896_v17  ;;  %v12423_v33 = vpop.eup %7452  ;;  %v3389_v35 = vand.u32 2147483647, %v12414_v43  ;;  %v4662_v31 = vmax.f32 %v12315_v56, 0.0 }
 0x63d   :  { %v4405_v41 = vsel %vm4149_vm14, %v7449_v50, %v4277_v55  ;;  %7466 = vpow2.f32 %v3756_v40  ;;  %v3760_v57 = vmul.f32 1.442695, %v3516_v12  ;;  %v3897_v15 = vadd.f32 1.0, %v12423_v33 }
 0x63e   :  { %4533 = vst [vmem:[#allocation12 + $0x368] sm:$0xff] %v4405_v41  ;;  %v5045_v24 = vadd.f32 %v4899_v62, %v4661_v4  ;;  %7468 = vpow2.f32 %v3758_v1  ;;  %v12430_v37 = vadd.f32 %v11970_v7, %v10421_v22  ;;  %v5174_v34 = vmul.f32 %v7666_v61, %v12315_v56 }
 0x63f   :  { %7470 = vpow2.f32 %v3760_v57  ;;  %v3517_v25 = vsub.f32 0.0, %v3389_v35  ;;  %vm4151_vm0 = vcmp.ge.f32.partialorder %v12334_v6, 0.0  ;;  %v4663_v23 = vmax.f32 %v12334_v6, 0.0 }
 0x640   :  { %v5301_v48 = vsub.f32 %v5045_v24, %v5173_v9  ;;  %7472 = vrcp.f32 %v3897_v15  ;;  %v3390_v36 = vand.u32 2147483647, %v12421_v10  ;;  %v5175_v53 = vmul.f32 %v7667_v19, %v12334_v6 }
 0x641   :  { %v7455_v16 = vpop.eup %7454  ;;  %7474 = vlog2.f32 %v3897_v15  ;;  %v3762_v7 = vmul.f32 1.442695, %v3517_v25  ;;  %vm4152_vm1 = vcmp.ge.f32.partialorder %v12338_v51, 0.0  ;;  %v3391_v11 = vand.u32 2147483647, %v12430_v37 }
 0x642   :  { %v5428_v0 = vadd.f32 %v5427_v27, %v5301_v48  ;;  %v7457_v30 = vpop.eup %7456  ;;  %v4278_v18 = vmul.f32 %v7455_v16, %v12391_v63  ;;  %v3518_v13 = vsub.f32 0.0, %v3390_v36  ;;  %v4664_v17 = vmax.f32 %v12338_v51, 0.0 }
 0x643   :  { %v7459_v60 = vpop.eup %7458  ;;  %v4901_v20 = vmul.f32 0.6931472, %v7457_v30  ;;  %v5176_v3 = vmul.f32 %v7668_v2, %v12338_v51  ;;  %7476 = vpow2.f32 %v3762_v7  ;;  %v3519_v9 = vsub.f32 0.0, %v3391_v11 }
 0x644   :  { %v7461_v4 = vpop.eup %7460  ;;  %v4406_v50 = vsel %vm4150_vm15, %v7455_v16, %v4278_v18  ;;  %v4279_v52 = vmul.f32 %v7459_v60, %v12395_v45  ;;  %v3764_v63 = vmul.f32 1.442695, %v3518_v13  ;;  %vm4153_vm2 = vcmp.ge.f32.partialorder %v12354_v5, 0.0 }
 0x645   :  { %v7463_v40 = vpop.eup %7462  ;;  %4534 = vst [vmem:[#allocation12 + $0x370] sm:$0xff] %v4406_v50  ;;  %v5046_v8 = vadd.f32 %v4901_v20, %v4662_v31  ;;  %v4903_v58 = vmul.f32 0.6931472, %v7461_v4  ;;  %v12448_v27 = vadd.f32 %v11999_v21, %v10417_v38  ;;  %v3766_v45 = vmul.f32 1.442695, %v3519_v9 }
 0x646   :  { %v7465_v55 = vpop.eup %7464  ;;  %v4407_v1 = vsel %vm4151_vm0, %v7459_v60, %v4279_v52  ;;  %v4280_v56 = vmul.f32 %v7463_v40, %v12399_v14  ;;  %7478 = vpow2.f32 %v3764_v63  ;;  %v12463_v14 = vadd.f32 %v12024_v47, %v10421_v22 }
 0x647   :  { %v12453_v62 = vpop.eup %7466  ;;  %v5302_v12 = vsub.f32 %v5046_v8, %v5174_v34  ;;  %4535 = vst [vmem:[#allocation12 + $0x378] sm:$0xff] %v4407_v1  ;;  %v5047_v41 = vadd.f32 %v4903_v58, %v4663_v23  ;;  %v4905_v24 = vmul.f32 0.6931472, %v7465_v55  ;;  %v3392_v57 = vand.u32 2147483647, %v12448_v27  ;;  %v7671_v8 = vld [vmem:[#allocation2 + $0x398] sm:$0xff] }
 0x648   :  { %v12456_v35 = vpop.eup %7468  ;;  %v4408_v21 = vsel %vm4152_vm1, %v7463_v40, %v4280_v56  ;;  %v3898_v6 = vadd.f32 1.0, %v12453_v62  ;;  %7480 = vpow2.f32 %v3766_v45  ;;  %v4665_v23 = vmax.f32 %v12354_v5, 0.0 }
 0x649   :  { %v12465_v31 = vpop.eup %7470  ;;  %v5429_v15 = vadd.f32 %v5428_v0, %v5302_v12  ;;  %v5303_v48 = vsub.f32 %v5047_v41, %v5175_v53  ;;  %4536 = vst [vmem:[#allocation12 + $0x380] sm:$0xff] %v4408_v21  ;;  %v5048_v61 = vadd.f32 %v4905_v24, %v4664_v17  ;;  %v3899_v34 = vadd.f32 1.0, %v12456_v35  ;;  %v7669_v0 = vld [vmem:[#allocation2 + $0x388] sm:$0xff] }
 0x64a   :  { %v7473_v25 = vpop.eup %7472  ;;  %7482 = vrcp.f32 %v3898_v6  ;;  %v3900_v51 = vadd.f32 1.0, %v12465_v31  ;;  %v3520_v36 = vsub.f32 0.0, %v3392_v57  ;;  %v5177_v53 = vmul.f32 %v7669_v0, %v12354_v5 }
 0x64b   :  { %v7475_v16 = vpop.eup %7474  ;;  %v5430_v19 = vadd.f32 %v5429_v15, %v5303_v48  ;;  %v5304_v7 = vsub.f32 %v5048_v61, %v5176_v3  ;;  %v4281_v47 = vmul.f32 %v7473_v25, %v12423_v33  ;;  %7484 = vlog2.f32 %v3898_v6  ;;  %v7670_v3 = vld [vmem:[#allocation2 + $0x390] sm:$0xff] }
 0x64c   :  { %v4907_v30 = vmul.f32 0.6931472, %v7475_v16  ;;  %v4666_v18 = vmax.f32 %v12378_v28, 0.0  ;;  %7486 = vrcp.f32 %v3899_v34  ;;  %v3393_v20 = vand.u32 2147483647, %v12463_v14 }
 0x64d   :  { %v12473_v13 = vpop.eup %7476  ;;  %v5431_v11 = vadd.f32 %v5430_v19, %v5304_v7  ;;  %v4409_v60 = vsel %vm4153_vm2, %v7473_v25, %v4281_v47  ;;  %7488 = vlog2.f32 %v3899_v34  ;;  %vm4154_vm3 = vcmp.ge.f32.partialorder %v12378_v28, 0.0  ;;  %v7673_v25 = vld [vmem:[#allocation2 + $0x3a8] sm:$0xff] }
 0x64e   :  { %4537 = vst [vmem:[#allocation12 + $0x388] sm:$0xff] %v4409_v60  ;;  %v5049_v17 = vadd.f32 %v4907_v30, %v4665_v23  ;;  %7490 = vrcp.f32 %v3900_v51  ;;  %v3901_v33 = vadd.f32 1.0, %v12473_v13  ;;  %v3768_v2 = vmul.f32 1.442695, %v3520_v36 }
 0x64f   :  { %v12481_v4 = vmul.f32 %v7670_v3, %v12378_v28  ;;  %v4667_v50 = vmax.f32 %v12382_v49, 0.0  ;;  %7492 = vlog2.f32 %v3900_v51  ;;  %v3521_v5 = vsub.f32 0.0, %v3393_v20 }
 0x650   :  { %v12484_v52 = vpop.eup %7478  ;;  %v5305_v63 = vsub.f32 %v5049_v17, %v5177_v53  ;;  %vm4155_vm4 = vcmp.ge.f32.partialorder %v12382_v49, 0.0  ;;  %7494 = vrcp.f32 %v3901_v33  ;;  %v12489_v9 = vadd.f32 %v12035_v32, %v10417_v38  ;;  %v7672_v32 = vld [vmem:[#allocation2 + $0x3a0] sm:$0xff] }
 0x651   :  { %v12493_v40 = vadd.f32 %v12047_v39, %v10421_v22  ;;  %v12496_v58 = vmul.f32 %v7671_v8, %v12382_v49  ;;  %v4668_v55 = vmax.f32 %v12406_v46, 0.0  ;;  %7496 = vlog2.f32 %v3901_v33 }
 0x652   :  { %v3902_v1 = vadd.f32 1.0, %v12484_v52  ;;  %v12500_v56 = vpop.eup %7480  ;;  %v5432_v45 = vadd.f32 %v5431_v11, %v5305_v63  ;;  %vm4156_vm5 = vcmp.ge.f32.partialorder %v12406_v46, 0.0  ;;  %v12504_v12 = vmul.f32 %v7672_v32, %v12406_v46 }
 0x653   :  { %7498 = vpow2.f32 %v3768_v2  ;;  %v3394_v39 = vand.u32 2147483647, %v12489_v9  ;;  %v3903_v41 = vadd.f32 1.0, %v12500_v56  ;;  %v3770_v24 = vmul.f32 1.442695, %v3521_v5 }
 0x654   :  { %7500 = vrcp.f32 %v3902_v1  ;;  %v12510_v57 = vadd.f32 %v12072_v54, %v10417_v38  ;;  %v7483_v21 = vpop.eup %7482  ;;  %vm4157_vm6 = vcmp.ge.f32.partialorder %v12414_v43, 0.0  ;;  %v4669_v6 = vmax.f32 %v12414_v43, 0.0 }
 0x655   :  { %7502 = vlog2.f32 %v3902_v1  ;;  %v3522_v15 = vsub.f32 0.0, %v3394_v39  ;;  %v3395_v48 = vand.u32 2147483647, %v12493_v40  ;;  %v7485_v61 = vpop.eup %7484  ;;  %v4282_v34 = vmul.f32 %v7483_v21, %v12453_v62 }
 0x656   :  { %v12517_v23 = vmul.f32 %v7673_v25, %v12414_v43  ;;  %v4670_v51 = vmax.f32 %v12421_v10, 0.0  ;;  %7504 = vrcp.f32 %v3903_v41  ;;  %v7487_v54 = vpop.eup %7486  ;;  %v4909_v36 = vmul.f32 0.6931472, %v7485_v61 }
 0x657   :  { %7506 = vlog2.f32 %v3903_v41  ;;  %v3772_v16 = vmul.f32 1.442695, %v3522_v15  ;;  %v3523_v19 = vsub.f32 0.0, %v3395_v48  ;;  %v7489_v7 = vpop.eup %7488  ;;  %v4410_v47 = vsel %vm4154_vm3, %v7483_v21, %v4282_v34 }
 0x658   :  { %v4283_v30 = vmul.f32 %v7487_v54, %v12456_v35  ;;  %vm4158_vm7 = vcmp.ge.f32.partialorder %v12421_v10, 0.0  ;;  %7508 = vpow2.f32 %v3770_v24  ;;  %v3396_v62 = vand.u32 2147483647, %v12510_v57  ;;  %v7491_v0 = vpop.eup %7490  ;;  %4538 = vst [vmem:[#allocation12 + $0x390] sm:$0xff] %v4410_v47  ;;  %v7674_v35 = vld [vmem:[#allocation2 + $0x3b0] sm:$0xff]  ;;  %v7675_v47 = vld [vmem:[#allocation2 + $0x3b8] sm:$0xff] }
 0x659   :  { %v5050_v53 = vadd.f32 %v4909_v36, %v4666_v18  ;;  %v4911_v11 = vmul.f32 0.6931472, %v7489_v7  ;;  %7510 = vpow2.f32 %v3772_v16  ;;  %v3774_v60 = vmul.f32 1.442695, %v3523_v19  ;;  %v7493_v20 = vpop.eup %7492 }
 0x65a   :  { %v4411_v17 = vsel %vm4155_vm4, %v7487_v54, %v4283_v30  ;;  %v4284_v33 = vmul.f32 %v7491_v0, %v12465_v31  ;;  %v12531_v2 = vmul.f32 %v7674_v35, %v12421_v10  ;;  %v3524_v3 = vsub.f32 0.0, %v3396_v62  ;;  %v7495_v5 = vpop.eup %7494 }
 0x65b   :  { %v5306_v63 = vsub.f32 %v5050_v53, %v12481_v4  ;;  %4539 = vst [vmem:[#allocation12 + $0x398] sm:$0xff] %v4411_v17  ;;  %v5051_v28 = vadd.f32 %v4911_v11, %v4667_v50  ;;  %v4913_v18 = vmul.f32 0.6931472, %v7493_v20  ;;  %7512 = vpow2.f32 %v3774_v60  ;;  %v7497_v8 = vpop.eup %7496  ;;  %v13407_v11 = vld [vmem:[#allocation35_spill] sm:$0xff] }
 0x65c   :  { %v4412_v1 = vsel %vm4156_vm5, %v7491_v0, %v4284_v33  ;;  %v4285_v31 = vmul.f32 %v7495_v5, %v12473_v13  ;;  %vm4159_vm8 = vcmp.ge.f32.partialorder %v12430_v37, 0.0  ;;  %v3776_v32 = vmul.f32 1.442695, %v3524_v3 }
 0x65d   :  { %v12540_v39 = vpop.eup %7498  ;;  %v5433_v41 = vadd.f32 %v5432_v45, %v5306_v63  ;;  %v5307_v4 = vsub.f32 %v5051_v28, %v12496_v58  ;;  %4540 = vst [vmem:[#allocation12 + $0x3a0] sm:$0xff] %v4412_v1  ;;  %v5052_v49 = vadd.f32 %v4913_v18, %v4668_v55  ;;  %v4915_v50 = vmul.f32 0.6931472, %v7497_v8  ;;  %v13409_v8 = vld [vmem:[#allocation173_spill] sm:$0xff] }
 0x65e   :  { %v7501_v24 = vpop.eup %7500  ;;  %v4413_v21 = vsel %vm4157_vm6, %v7495_v5, %v4285_v31  ;;  %v4671_v15 = vmax.f32 %v12430_v37, 0.0  ;;  %v3904_v13 = vadd.f32 1.0, %v12540_v39  ;;  %7514 = vpow2.f32 %v3776_v32  ;;  %v13408_v5 = vld [vmem:[#allocation20_spill] sm:$0xff] }
 0x65f   :  { %v7503_v48 = vpop.eup %7502  ;;  %v5434_v61 = vadd.f32 %v5433_v41, %v5307_v4  ;;  %v5308_v45 = vsub.f32 %v5052_v49, %v12504_v12  ;;  %4541 = vst [vmem:[#allocation12 + $0x3a8] sm:$0xff] %v4413_v21  ;;  %v5053_v58 = vadd.f32 %v4915_v50, %v4669_v6  ;;  %v4286_v34 = vmul.f32 %v7501_v24, %v12484_v52 }
 0x660   :  { %v7505_v46 = vpop.eup %7504  ;;  %v4917_v55 = vmul.f32 0.6931472, %v7503_v48  ;;  %7516 = vrcp.f32 %v3904_v13  ;;  %v12553_v43 = vadd.f32 %v12089_v59, %v10421_v22  ;;  %v12557_v25 = vadd.f32 %v12123_v44, %v10417_v38 }
 0x661   :  { %v7507_v54 = vpop.eup %7506  ;;  %v5435_v36 = vadd.f32 %v5434_v61, %v5308_v45  ;;  %v5309_v16 = vsub.f32 %v5053_v58, %v12517_v23  ;;  %v4414_v12 = vsel %vm4158_vm7, %v7501_v24, %v4286_v34  ;;  %v4287_v52 = vmul.f32 %v7505_v46, %v12500_v56  ;;  %v13411_v61 = vld [vmem:[#allocation145_spill] sm:$0xff] }
 0x662   :  { %v12563_v6 = vpop.eup %7508  ;;  %4542 = vst [vmem:[#allocation12 + $0x3b0] sm:$0xff] %v4414_v12  ;;  %v5054_v59 = vadd.f32 %v4917_v55, %v4670_v51  ;;  %v4919_v19 = vmul.f32 0.6931472, %v7507_v54  ;;  %7518 = vlog2.f32 %v3904_v13  ;;  %v3397_v38 = vand.u32 2147483647, %v12553_v43  ;;  %v13410_v13 = vld [vmem:[#allocation146_spill] sm:$0xff] }
 0x663   :  { %v12568_v44 = vpop.eup %7510  ;;  %v5436_v7 = vadd.f32 %v5435_v36, %v5309_v16  ;;  %v4415_v23 = vsel %vm4159_vm8, %v7505_v46, %v4287_v52  ;;  %v5183_v30 = vmul.f32 %v7675_v47, %v12430_v37  ;;  %v3905_v56 = vadd.f32 1.0, %v12563_v6  ;;  %v13412_v54 = vld [vmem:[#allocation34_spill] sm:$0xff] }
 0x664   :  { %v5310_v62 = vsub.f32 %v5054_v59, %v12531_v2  ;;  %4543 = vst [vmem:[#allocation12 + $0x3b8] sm:$0xff] %v4415_v23  ;;  %v5055_v10 = vadd.f32 %v4919_v19, %v4671_v15  ;;  %v3906_v51 = vadd.f32 1.0, %v12568_v44  ;;  %v3525_v0 = vsub.f32 0.0, %v3397_v38 }
 0x665   :  { %v12576_v53 = vpop.eup %7512  ;;  %v6259_v60 = vadd.f32 -1.0, %v13407_v11  ;;  %v5964_v20 = vmul.f32 0.5, %v12374_v29  ;;  %7520 = vrcp.f32 %v3905_v56  ;;  %v3398_v17 = vand.u32 2147483647, %v12557_v25 }
 0x666   :  { %v5437_v33 = vadd.f32 %v5436_v7, %v5310_v62  ;;  %v5311_v37 = vsub.f32 %v5055_v10, %v5183_v30  ;;  %7522 = vlog2.f32 %v3905_v56  ;;  %v3907_v35 = vadd.f32 1.0, %v12576_v53  ;;  %v7678_v10 = vld [vmem:[#allocation2 + $0x3d0] sm:$0xff] }
 0x667   :  { %7524 = vrcp.f32 %v3906_v51  ;;  %v3526_v2 = vsub.f32 0.0, %v3398_v17  ;;  %v12584_v3 = vadd.f32 %v12129_v26, %v10421_v22  ;;  %v5774_v63 = vmul.f32 %v13408_v5, %v13408_v5  ;;  %v7676_v26 = vld [vmem:[#allocation2 + $0x3c0] sm:$0xff] }
 0x668   :  { %v12588_v28 = vpop.eup %7514  ;;  %v5438_v29 = vadd.f32 %v5437_v33, %v5311_v37  ;;  %7526 = vlog2.f32 %v3906_v51  ;;  %v3778_v18 = vmul.f32 1.442695, %v3525_v0  ;;  %v5775_v1 = vmul.f32 %v13409_v8, %v13409_v8 }
 0x669   :  { %7528 = vrcp.f32 %v3907_v35  ;;  %v3908_v31 = vadd.f32 1.0, %v12588_v28  ;;  %v3780_v32 = vmul.f32 1.442695, %v3526_v2  ;;  %v3399_v41 = vand.u32 2147483647, %v12584_v3 }
 0x66a   :  { %v7517_v4 = vpop.eup %7516  ;;  %vm4160_vm9 = vcmp.ge.f32.partialorder %v12448_v27, 0.0  ;;  %v4672_v22 = vmax.f32 %v12448_v27, 0.0  ;;  %v5184_v49 = vmul.f32 %v7676_v26, %v12448_v27  ;;  %7530 = vlog2.f32 %v3907_v35  ;;  %v7677_v27 = vld [vmem:[#allocation2 + $0x3c8] sm:$0xff] }
 0x66b   :  { %v4288_v50 = vmul.f32 %v7517_v4, %v12540_v39  ;;  %vm4161_vm10 = vcmp.ge.f32.partialorder %v12463_v14, 0.0  ;;  %7532 = vrcp.f32 %v3908_v31  ;;  %v3527_v24 = vsub.f32 0.0, %v3399_v41 }
 0x66c   :  { %v7519_v21 = vpop.eup %7518  ;;  %v4673_v15 = vmax.f32 %v12463_v14, 0.0  ;;  %7534 = vpow2.f32 %v3778_v18  ;;  %v5838_v48 = vadd.f32 %v5774_v63, %v13410_v13  ;;  %v5839_v45 = vadd.f32 %v5775_v1, %v13411_v61 }
 0x66d   :  { %v4416_v58 = vsel %vm4160_vm9, %v7517_v4, %v4288_v50  ;;  %v4921_v34 = vmul.f32 0.6931472, %v7519_v21  ;;  %7536 = vpow2.f32 %v3780_v32  ;;  %v3782_v46 = vmul.f32 1.442695, %v3527_v24 }
 0x66e   :  { %4544 = vst [vmem:[#allocation12 + $0x3c0] sm:$0xff] %v4416_v58  ;;  %v5185_v39 = vmul.f32 %v7677_v27, %v12463_v14  ;;  %7538 = vlog2.f32 %v3908_v31  ;;  %v6260_v55 = vadd.f32 -1.0, %v5838_v48  ;;  %v6026_v36 = vadd.f32 %v13412_v54, %v12366_v42  ;;  %v7679_v31 = vld [vmem:[#allocation2 + $0x3d8] sm:$0xff]  ;;  %v7680_v58 = vld [vmem:[#allocation2 + $0x3e0] sm:$0xff] }
 0x66f   :  { %v7521_v16 = vpop.eup %7520  ;;  %v5056_v12 = vadd.f32 %v4921_v34, %v4672_v22  ;;  %vm4162_vm11 = vcmp.ge.f32.partialorder %v12489_v9, 0.0  ;;  %7540 = vpow2.f32 %v3782_v46  ;;  %v5965_v52 = vmul.f32 0.5, %v6259_v60 }
 0x670   :  { %v7523_v59 = vpop.eup %7522  ;;  %v4289_v19 = vmul.f32 %v7521_v16, %v12563_v6  ;;  %v6261_v38 = vadd.f32 -1.0, %v5839_v45  ;;  %v5966_v7 = vmul.f32 0.5, %v6260_v55  ;;  %v6027_v23 = vadd.f32 %v6026_v36, %v5964_v20 }
 0x671   :  { %v7525_v47 = vpop.eup %7524  ;;  %v5312_v30 = vsub.f32 %v5056_v12, %v5184_v49  ;;  %v4923_v56 = vmul.f32 0.6931472, %v7523_v59  ;;  %v4674_v62 = vmax.f32 %v12489_v9, 0.0  ;;  %v5186_v42 = vmul.f32 %v7678_v10, %v12489_v9 }
 0x672   :  { %v7527_v51 = vpop.eup %7526  ;;  %v4417_v0 = vsel %vm4161_vm10, %v7521_v16, %v4289_v19  ;;  %v4290_v11 = vmul.f32 %v7525_v47, %v12568_v44  ;;  %vm4163_vm12 = vcmp.ge.f32.partialorder %v12493_v40, 0.0  ;;  %v6028_v6 = vadd.f32 %v6027_v23, %v5965_v52 }
 0x673   :  { %v7529_v60 = vpop.eup %7528  ;;  %v5439_v17 = vadd.f32 %v5438_v29, %v5312_v30  ;;  %4545 = vst [vmem:[#allocation12 + $0x3c8] sm:$0xff] %v4417_v0  ;;  %v5057_v20 = vadd.f32 %v4923_v56, %v4673_v15  ;;  %v4925_v33 = vmul.f32 0.6931472, %v7527_v51  ;;  %v4675_v37 = vmax.f32 %v12493_v40, 0.0 }
 0x674   :  { %v7531_v35 = vpop.eup %7530  ;;  %v4418_v2 = vsel %vm4162_vm11, %v7525_v47, %v4290_v11  ;;  %v4291_v5 = vmul.f32 %v7529_v60, %v12576_v53  ;;  %v5967_v14 = vmul.f32 0.5, %v6261_v38  ;;  %v6029_v63 = vadd.f32 %v6028_v6, %v5966_v7 }
 0x675   :  { %v7533_v18 = vpop.eup %7532  ;;  %v5313_v44 = vsub.f32 %v5057_v20, %v5185_v39  ;;  %4546 = vst [vmem:[#allocation12 + $0x3d0] sm:$0xff] %v4418_v2  ;;  %v5058_v8 = vadd.f32 %v4925_v33, %v4674_v62  ;;  %v4927_v1 = vmul.f32 0.6931472, %v7531_v35  ;;  %v5187_v29 = vmul.f32 %v7679_v31, %v12493_v40  ;;  %v7683_v35 = vld [vmem:[#allocation2 + $0x3f8] sm:$0xff] }
 0x676   :  { %v7535_v32 = vpop.eup %7534  ;;  %v4419_v41 = vsel %vm4163_vm12, %v7529_v60, %v4291_v5  ;;  %vm4164_vm13 = vcmp.ge.f32.partialorder %v12510_v57, 0.0  ;;  %v4292_v9 = vmul.f32 %v7533_v18, %v12588_v28  ;;  %v12622_v4 = vadd.f32 %v6029_v63, %v5967_v14 }
 0x677   :  { %v7537_v53 = vpop.eup %7536  ;;  %v5314_v22 = vsub.f32 %v5058_v8, %v5186_v42  ;;  %4547 = vst [vmem:[#allocation12 + $0x3d8] sm:$0xff] %v4419_v41  ;;  %v5059_v26 = vadd.f32 %v4927_v1, %v4675_v37  ;;  %v3909_v49 = vadd.f32 1.0, %v7535_v32  ;;  %v5440_v50 = vadd.f32 %v5439_v17, %v5313_v44  ;;  %v7681_v42 = vld [vmem:[#allocation2 + $0x3e8] sm:$0xff]  ;;  %v7682_v17 = vld [vmem:[#allocation2 + $0x3f0] sm:$0xff] }
 0x678   :  { %v7539_v24 = vpop.eup %7538  ;;  %v4420_v21 = vsel %vm4164_vm13, %v7533_v18, %v4292_v9  ;;  %v4676_v15 = vmax.f32 %v12510_v57, 0.0  ;;  %v3910_v13 = vadd.f32 1.0, %v7537_v53  ;;  %v5188_v34 = vmul.f32 %v7680_v58, %v12510_v57 }
 0x679   :  { %v7541_v48 = vpop.eup %7540  ;;  %4548 = vst [vmem:[#allocation12 + $0x3e0] sm:$0xff] %v4420_v21  ;;  %7542 = vrcp.f32 %v3909_v49  ;;  %v4929_v40 = vmul.f32 0.6931472, %v7539_v24  ;;  %v5315_v61 = vsub.f32 %v5059_v26, %v5187_v29  ;;  %v5441_v45 = vadd.f32 %v5440_v50, %v5314_v22 }
 0x67a   :  { %7544 = vrcp.f32 %v3910_v13  ;;  %v3911_v28 = vadd.f32 1.0, %v7541_v48  ;;  %vm4165_vm14 = vcmp.ge.f32.partialorder %v12553_v43, 0.0  ;;  %v4677_v38 = vmax.f32 %v12553_v43, 0.0 }
 0x67b   :  { %7546 = vlog2.f32 %v3909_v49  ;;  %v5060_v46 = vadd.f32 %v4929_v40, %v4676_v15  ;;  %v5442_v27 = vadd.f32 %v5441_v45, %v5315_v61  ;;  %vm4166_vm15 = vcmp.ge.f32.partialorder %v12557_v25, 0.0 }
 0x67c   :  { %7548 = vrcp.f32 %v3911_v28  ;;  %v4678_v30 = vmax.f32 %v12557_v25, 0.0  ;;  %vm4167_vm0 = vcmp.ge.f32.partialorder %v12584_v3, 0.0  ;;  %v5189_v51 = vmul.f32 %v7681_v42, %v12553_v43 }
 0x67d   :  { %7550 = vlog2.f32 %v3910_v13  ;;  %v5316_v39 = vsub.f32 %v5060_v46, %v5188_v34  ;;  %v4679_v11 = vmax.f32 %v12584_v3, 0.0  ;;  %v5190_v20 = vmul.f32 %v7682_v17, %v12557_v25 }
 0x67e   :  { %7552 = vlog2.f32 %v3911_v28  ;;  %v5191_v2 = vmul.f32 %v7683_v35, %v12584_v3 }
 0x67f   :  { %v5443_v55 = vadd.f32 %v5442_v27, %v5316_v39 }
 0x683   :  { %v7543_v54 = vpop.eup %7542 }
 0x684   :  { %v7545_v36 = vpop.eup %7544  ;;  %v4293_v16 = vmul.f32 %v7543_v54, %v7535_v32 }
 0x685   :  { %v7547_v12 = vpop.eup %7546  ;;  %v4294_v52 = vmul.f32 %v7545_v36, %v7537_v53 }
 0x686   :  { %v7549_v59 = vpop.eup %7548  ;;  %v4421_v19 = vsel %vm4165_vm14, %v7543_v54, %v4293_v16  ;;  %v4931_v57 = vmul.f32 0.6931472, %v7547_v12 }
 0x687   :  { %v7551_v7 = vpop.eup %7550  ;;  %4549 = vst [vmem:[#allocation12 + $0x3e8] sm:$0xff] %v4421_v19  ;;  %v4422_v23 = vsel %vm4166_vm15, %v7545_v36, %v4294_v52  ;;  %v4295_v47 = vmul.f32 %v7549_v59, %v7541_v48 }
 0x688   :  { %v7553_v56 = vpop.eup %7552  ;;  %4550 = vst [vmem:[#allocation12 + $0x3f0] sm:$0xff] %v4422_v23  ;;  %v4933_v62 = vmul.f32 0.6931472, %v7551_v7  ;;  %v5061_v10 = vadd.f32 %v4931_v57, %v4677_v38 }
 0x689   :  { %v4423_v0 = vsel %vm4167_vm0, %v7549_v59, %v4295_v47  ;;  %v4935_v6 = vmul.f32 0.6931472, %v7553_v56 }
 0x68a   :  { %4551 = vst [vmem:[#allocation12 + $0x3f8] sm:$0xff] %v4423_v0  ;;  %v5062_v60 = vadd.f32 %v4933_v62, %v4678_v30  ;;  %v5317_v33 = vsub.f32 %v5061_v10, %v5189_v51 }
 0x68b   :  { %v5063_v37 = vadd.f32 %v4935_v6, %v4679_v11 }
 0x68c   :  { %v5318_v5 = vsub.f32 %v5062_v60, %v5190_v20  ;;  %v5444_v14 = vadd.f32 %v5443_v55, %v5317_v33 }
 0x68d   :  { %v5319_v63 = vsub.f32 %v5063_v37, %v5191_v2 }
 0x68e   :  { %v5445_v18 = vadd.f32 %v5444_v14, %v5318_v5 }
 0x690   :  { %v5446_v44 = vadd.f32 %v5445_v18, %v5319_v63 }
 0x692   :  { %5447 = vadd.xlane.f32.xlu0 %v5446_v44 }
 0x696   :  { %6031 = vadd.xlane.f32.xlu0 %v12622_v4 }
 0x697   :  { %7805 = shalt.err (!%p7802_p2)
}
 0x698   :  { %s7806_s20 = scalar_lea.hbm %s12676_s13, 16384 }
 0x699   :  { %p7807_p3 = scmp.ne.s32.totalorder %s12676_s13, %s7806_s20  ;;  %p7810_p4 = scmp.lt.u32.totalorder %s7806_s20, %s12676_s13 }
 0x69b   :  { %p7812_p5 = pnand %p7810_p4, %p7807_p3 }
 0x69d   :  { %7815 = shalt.err (!%p7812_p5)
}
 0x69e   :  { %6054 = dma.vmem_to_hbm [thread:$0]  %s6049_s15, 16384, %s12676_s13, [#allocation4], %s7841_s10, %s7841_s10, %s7842_s28  }
 0x69f   :  { %s7816_s28 = scalar_lea.hbm %s12677_s14, 16 }
 0x6a0   :  { %p7817_p6 = scmp.ne.s32.totalorder %s12677_s14, %s7816_s28  ;;  %p7820_p7 = scmp.lt.u32.totalorder %s7816_s28, %s12677_s14 }
 0x6a2   :  { %p7822_p8 = pnand %p7820_p7, %p7817_p6 }
 0x71f   :  { %v5448_v43 = vpop.xlane.xlu0 %5447 }
 0x720   :  { %v5449_v25 = vrot.slane %v5448_v43, 4 }
 0x722   :  { %v5450_v3 = vadd.f32 %v5449_v25, %v5448_v43 }
 0x723   :  { %v6032_v8 = vpop.xlane.xlu0 %6031 }
 0x724   :  { %v5451_v1 = vrot.slane %v5450_v3, 2  ;;  %v6033_v31 = vrot.slane %v6032_v8, 4 }
 0x726   :  { %v6034_v29 = vadd.f32 %v6033_v31, %v6032_v8  ;;  %v5452_v32 = vadd.f32 %v5451_v1, %v5450_v3 }
 0x728   :  { %v6035_v41 = vrot.slane %v6034_v29, 2  ;;  %v5453_v9 = vrot.slane %v5452_v32, 1 }
 0x72a   :  { %v6036_v4 = vadd.f32 %v6035_v41, %v6034_v29  ;;  %v5454_v53 = vadd.f32 %v5453_v9, %v5452_v32 }
 0x72c   :  { %6568 = vpush %v5454_v53  ;;  %v6037_v22 = vrot.slane %v6036_v4, 1 }
 0x72e   :  { %v6038_v26 = vadd.f32 %v6037_v22, %v6036_v4 }
 0x730   :  { %6570 = vpush %v6038_v26 }
 0x75d   :  { %s6569_s5 = spop %6568 }
 0x761   :  { %s6571_s26 = spop %6570 }
 0x762   :  { %s6040_s27 = sadd.f32 %s6571_s26, %s6569_s5 }
 0x764   :  { %6042 = sst [smem:[#allocation13]] %s6040_s27 }
 0x765   :  { %7825 = shalt.err (!%p7822_p8)
}
 0x766   :  { %s7849_s1 = smov [#allocation13]  }
 0x767   :  { %6062 = dma.smem_to_hbm %s7849_s1, 16, %s12677_s14, [#allocation5]  }
 0x768   :  { %7832 = dma.done.wait [#allocation4], 16384  }
 0x769   :  { %7833 = vsyncadd [#allocation4], 4294950912 }
 0x76a   :  { %7834 = dma.done.wait [#allocation5], 16  }
 0x76b   :  { %7835 = vsyncadd [#allocation5], 4294967280 }
 0x76c   :  { %6069 = sfence }
 0x76d   :  { %6070 = vsyncpa [#allocation3], 1 }
 0x76e   :  { %6071 = vsyncpa [#allocation7], 1 }
 0x76f   :  { %6072 = vsyncpa [#allocation10], 1 }
 0x770   :  { %6073 = vsyncpa [#allocation4], 1 }
 0x771   :  { %6074 = vsyncpa [#allocation5], 1 }

</bundles_post_ra>
